<compile_context>
chip_gen: v7x
topology: tpu7x:2x2x1
jax: 0.10.0
libtpu: 0.0.40
codegen_flags: <defaults>
</compile_context>

<pallas_src>
import functools

import jax
import jax.numpy as jnp
from jax.experimental import pallas as pl
from jax.experimental.pallas import tpu as pltpu


# ----------------------------------------------------------------------------
# Kernel 1: conv-as-matmul (im2col columns) + bias + ReLU.
# ----------------------------------------------------------------------------
def _conv_matmul_kernel(col_ref, w_ref, b_ref, o_ref):
    acc = jnp.dot(col_ref[...], w_ref[...], preferred_element_type=jnp.float32)
    o_ref[...] = jnp.maximum(acc + b_ref[...], 0.0)


def conv_matmul_bias_relu(col, w, b):
    """col: (M, K) f32, w: (K, OC) f32, b: (1, OC) f32 -> relu(col @ w + b)."""
    M, K = col.shape
    _, OC = w.shape
    # Split M across two grid steps when cleanly 8-aligned: feeds both
    # TensorCores on v7x, harmless sequential loop on v5e/v6e.
    if M % 16 == 0:
        mt, nm = M // 2, 2
    else:
        mt, nm = M, 1
    return pl.pallas_call(
        _conv_matmul_kernel,
        out_shape=jax.ShapeDtypeStruct((M, OC), jnp.float32),
        grid=(nm,),
        in_specs=[
            pl.BlockSpec((mt, K), lambda i: (i, 0)),
            pl.BlockSpec((K, OC), lambda i: (0, 0)),
            pl.BlockSpec((1, OC), lambda i: (0, 0)),
        ],
        out_specs=pl.BlockSpec((mt, OC), lambda i: (i, 0)),
        compiler_params=pltpu.CompilerParams(
            dimension_semantics=("parallel",)),
    )(col, w, b)


# ----------------------------------------------------------------------------
# Kernel 2: fc layer — bf16 weight stream, f32 accumulation directly in o_ref,
#           grid = (N tiles [parallel], K tiles [arbitrary]).
# ----------------------------------------------------------------------------
def _fc_relu_kernel(x_ref, w_ref, b_ref, o_ref):
    k = pl.program_id(1)

    @pl.when(k == 0)
    def _():
        o_ref[...] = jnp.zeros_like(o_ref)

    a = x_ref[...].astype(jnp.bfloat16)           # bf16 MXU path
    o_ref[...] += jnp.dot(a, w_ref[...], preferred_element_type=jnp.float32)

    @pl.when(k == pl.num_programs(1) - 1)
    def _():
        o_ref[...] = jnp.maximum(o_ref[...] + b_ref[...], 0.0)


def _pick_k_tile(K, tn, elem_bytes, max_tile_bytes=4 * 1024 * 1024):
    """Largest K tile dividing K, multiple of 128, weight tile <= cap."""
    for nk in range(1, K // 128 + 1):
        if K % nk:
            continue
        tk = K // nk
        if tk % 128 == 0 and tk * tn * elem_bytes <= max_tile_bytes:
            return tk
    return 128


def fc_relu(x, w_bf16, b, *, tn=256):
    """x: (M, K) f32, w_bf16: (K, N) bf16, b: (1, N) f32 -> relu(x @ w + b)."""
    M, K = x.shape
    _, N = w_bf16.shape
    tn = min(tn, N)
    nj = N // tn
    tk = _pick_k_tile(K, tn, 2)                   # bf16 weight bytes
    nk = K // tk
    return pl.pallas_call(
        _fc_relu_kernel,
        out_shape=jax.ShapeDtypeStruct((M, N), jnp.float32),
        grid=(nj, nk),
        in_specs=[
            pl.BlockSpec((M, tk), lambda j, k: (0, k)),
            pl.BlockSpec((tk, tn), lambda j, k: (k, j)),
            pl.BlockSpec((1, tn), lambda j, k: (0, j)),
        ],
        out_specs=pl.BlockSpec((M, tn), lambda j, k: (0, j)),
        compiler_params=pltpu.CompilerParams(
            dimension_semantics=("parallel", "arbitrary"),
            vmem_limit_bytes=32 * 1024 * 1024),
    )(x, w_bf16, b)


# ----------------------------------------------------------------------------
# Kernel 3: fused dueling head — single concatenated (512, 128) head matrix
#           (col 0 = value, cols 1..n_action = advantages) + dueling combine.
# ----------------------------------------------------------------------------
def _dueling_head_kernel(h_ref, w_ref, b_ref, o_ref, *, n_action):
    hv = jnp.dot(h_ref[...], w_ref[...],
                 preferred_element_type=jnp.float32) + b_ref[...]
    col = jax.lax.broadcasted_iota(jnp.int32, hv.shape, 1)
    adv_mask = (col >= 1) & (col <= n_action)
    amax = jnp.max(jnp.where(adv_mask, hv, -jnp.inf), axis=-1, keepdims=True)
    v0 = hv[:, 0:1]
    o_ref[...] = v0 + (hv - (1.0 / n_action) * amax)


def dueling_head(h, w_head, b_head, n_action):
    M = h.shape[0]
    out = pl.pallas_call(
        functools.partial(_dueling_head_kernel, n_action=n_action),
        out_shape=jax.ShapeDtypeStruct((M, w_head.shape[1]), jnp.float32),
        in_specs=[pl.BlockSpec(memory_space=pltpu.MemorySpace.VMEM)] * 3,
        out_specs=pl.BlockSpec(memory_space=pltpu.MemorySpace.VMEM),
    )(h, w_head, b_head)
    return out[:, 1:1 + n_action]


# ----------------------------------------------------------------------------
# Glue: NHWC im2col (strided slicing only; MACs happen in the Pallas kernels).
# TODO(synk): fuse the patch extraction itself into the conv kernels (strided
#             in-kernel slices); kept in plain JAX here for lowering safety.
# ----------------------------------------------------------------------------
def im2col_nhwc(x, kh, kw, stride):
    """x: (N, H, W, C) -> (N*OH*OW, kh*kw*C), column order (kh, kw, C)."""
    N, H, W, C = x.shape
    OH = (H - kh) // stride + 1
    OW = (W - kw) // stride + 1
    cols = []
    for i in range(kh):
        for j in range(kw):
            cols.append(x[:, i:i + stride * OH:stride,
                          j:j + stride * OW:stride, :])       # (N, OH, OW, C)
    col = jnp.stack(cols, axis=3)                             # (N,OH,OW,kh*kw,C)
    return col.reshape(N * OH * OW, kh * kw * C), OH, OW


# ----------------------------------------------------------------------------
# Parameters: PyTorch-style init + one-time preprocessing (hoisted out of
# forward): pre-transposed / NHWC-permuted matrices, bf16 fc weight,
# concatenated dueling head.
# ----------------------------------------------------------------------------
def init_params(key, n_frame, n_action):
    def uniform(key, shape, fan_in):
        bound = 1.0 / jnp.sqrt(jnp.float32(fan_in))
        return jax.random.uniform(key, shape, jnp.float32, -bound, bound)

    ks = jax.random.split(key, 10)
    w1 = uniform(ks[0], (32, n_frame, 8, 8), n_frame * 8 * 8)
    b1 = uniform(ks[1], (32,), n_frame * 8 * 8)
    w2 = uniform(ks[2], (64, 32, 3, 3), 32 * 3 * 3)
    b2 = uniform(ks[3], (64,), 32 * 3 * 3)
    wf = uniform(ks[4], (512, 20736), 20736)
    bf = uniform(ks[5], (512,), 20736)
    wq = uniform(ks[6], (n_action, 512), 512)
    bq = uniform(ks[7], (n_action,), 512)
    wv = uniform(ks[8], (1, 512), 512)
    bv = uniform(ks[9], (1,), 512)
    return (w1, b1, w2, b2, wf, bf, wq, bq, wv, bv)


def prepare_params(params):
    """One-time weight preprocessing (runs once, NOT per forward)."""
    w1, b1, w2, b2, wf, bf, wq, bq, wv, bv = params
    f32 = jnp.float32
    # Conv weights: (OC, IC, KH, KW) -> (KH*KW*IC, OC) to match NHWC im2col.
    w1m = jnp.transpose(w1, (2, 3, 1, 0)).reshape(-1, w1.shape[0]).astype(f32)
    w2m = jnp.transpose(w2, (2, 3, 1, 0)).reshape(-1, w2.shape[0]).astype(f32)
    b1r = b1.reshape(1, -1).astype(f32)
    b2r = b2.reshape(1, -1).astype(f32)
    # fc: PyTorch flattens conv2 output as (C, H, W); ours is (H, W, C).
    oc2 = w2.shape[0]
    hw = int(round((wf.shape[1] // oc2) ** 0.5))
    wft = jnp.transpose(wf.reshape(wf.shape[0], oc2, hw, hw), (2, 3, 1, 0))
    wft = wft.reshape(hw * hw * oc2, wf.shape[0]).astype(jnp.bfloat16)
    bfr = bf.reshape(1, -1).astype(f32)
    # Dueling heads concatenated: column 0 = value, columns 1..n_action = adv.
    n_action = wq.shape[0]
    whead = jnp.zeros((wq.shape[1], 128), f32)
    whead = whead.at[:, 0:1].set(wv.T.astype(f32))
    whead = whead.at[:, 1:1 + n_action].set(wq.T.astype(f32))
    bhead = jnp.zeros((1, 128), f32)
    bhead = bhead.at[0, 0].set(bv[0])
    bhead = bhead.at[0, 1:1 + n_action].set(bq)
    return dict(w1=w1m, b1=b1r, w2=w2m, b2=b2r, wf=wft, bf=bfr,
                whead=whead, bhead=bhead)


# ----------------------------------------------------------------------------
# Forward pass (matches the PyTorch module; activations NHWC end-to-end).
# ----------------------------------------------------------------------------
@functools.partial(jax.jit, static_argnums=(2,))
def forward(prep, x, n_action):
    N = x.shape[0]
    x = jnp.transpose(x.astype(jnp.float32), (0, 2, 3, 1))        # NCHW -> NHWC

    # conv1: 8x8 stride 4 + ReLU
    col1, oh1, ow1 = im2col_nhwc(x, 8, 8, 4)
    y1 = conv_matmul_bias_relu(col1, prep['w1'], prep['b1'])      # (N*20*20, 32)
    y1 = y1.reshape(N, oh1, ow1, -1)                              # NHWC, no transpose

    # conv2: 3x3 stride 1 + ReLU
    col2, oh2, ow2 = im2col_nhwc(y1, 3, 3, 1)
    y2 = conv_matmul_bias_relu(col2, prep['w2'], prep['b2'])      # (N*18*18, 64)

    # flatten (NHWC order; fc weight pre-permuted to match) + fc + ReLU
    flat = y2.reshape(N, oh2 * ow2 * y2.shape[-1])                # (N, 20736)
    h = fc_relu(flat, prep['wf'], prep['bf'])                     # (N, 512)

    # fused dueling head: q = v + adv - max(adv)/n_action
    return dueling_head(h, prep['whead'], prep['bhead'], n_action)


def reference(params, x):
    """Plain-JAX (f32) reference for the numerical sanity check."""
    w1, b1, w2, b2, wf, bf, wq, bq, wv, bv = params
    dn = ('NCHW', 'OIHW', 'NCHW')
    hp = jax.lax.Precision.HIGHEST
    y = jax.lax.conv_general_dilated(x, w1, (4, 4), 'VALID',
                                     dimension_numbers=dn, precision=hp)
    y = jax.nn.relu(y + b1[None, :, None, None])
    y = jax.lax.conv_general_dilated(y, w2, (1, 1), 'VALID',
                                     dimension_numbers=dn, precision=hp)
    y = jax.nn.relu(y + b2[None, :, None, None])
    flat = y.reshape(y.shape[0], -1)
    h = jax.nn.relu(jnp.dot(flat, wf.T, precision=hp) + bf)
    adv = jnp.dot(h, wq.T, precision=hp) + bq
    v = jnp.dot(h, wv.T, precision=hp) + bv
    return v + (adv - (1.0 / adv.shape[-1]) * jnp.max(adv, -1, keepdims=True))


if __name__ == "__main__":
    n_frame, n_action, batch = 4, 6, 2

    key = jax.random.PRNGKey(0)
    kx, kp = jax.random.split(key)
    x = jax.random.uniform(kx, (batch, n_frame, 84, 84), jnp.float32)
    params = init_params(kp, n_frame, n_action)
    prep = prepare_params(params)          # one-time weight prep (hoisted)

    q = jax.block_until_ready(forward(prep, x, n_action))
    assert q.shape == (batch, n_action), q.shape

    q_ref = jax.block_until_ready(reference(params, x))
    # bf16 streaming of the fc weight (f32 accumulation) keeps error ~1e-4.
    assert jnp.allclose(q, q_ref, rtol=5e-3, atol=5e-3), \
        float(jnp.max(jnp.abs(q - q_ref)))

    print("KERNEL_OK")
</pallas_src>

<mosaic_0001>
module attributes {stable_mosaic.version = 11 : i64} {
  func.func @_conv_matmul_kernel(%arg0: i32, %arg1: memref<400x256xf32, #tpu.memory_space<vmem>>, %arg2: memref<256x32xf32, #tpu.memory_space<vmem>>, %arg3: memref<1x32xf32, #tpu.memory_space<vmem>>, %arg4: memref<400x32xf32, #tpu.memory_space<vmem>>) attributes {dimension_semantics = [#tpu.dimension_semantics<parallel>], iteration_bounds = array<i64: 2>, scalar_prefetch = 0 : i64, scratch_operands = 0 : i64, tpu.core_type = #tpu.core_type<tc>, window_params = [{transform_indices = @transform_0, window_bounds = array<i64: 400, 256>}, {pipeline_mode = #tpu.pipeline_mode<synchronous>, transform_indices = @transform_1, window_bounds = array<i64: 256, 32>}, {pipeline_mode = #tpu.pipeline_mode<synchronous>, transform_indices = @transform_2, window_bounds = array<i64: 1, 32>}, {transform_indices = @transform_3, window_bounds = array<i64: 400, 32>}]} {
    %c0 = arith.constant 0 : index
    %c0_0 = arith.constant 0 : index
    %0 = vector.load %arg1[%c0, %c0_0] : memref<400x256xf32, #tpu.memory_space<vmem>>, vector<400x256xf32>
    %c0_1 = arith.constant 0 : index
    %c0_2 = arith.constant 0 : index
    %1 = vector.load %arg2[%c0_1, %c0_2] : memref<256x32xf32, #tpu.memory_space<vmem>>, vector<256x32xf32>
    %cst = arith.constant dense<0.000000e+00> : vector<400x32xf32>
    %2 = tpu.matmul %0, %1, %cst {dimension_numbers = #tpu.dot_dimension_numbers<[1], [0], [0], [1], [0, 0, 1, 1], [], []>} : vector<400x256xf32>, vector<256x32xf32>, vector<400x32xf32> -> vector<400x32xf32>
    %c0_3 = arith.constant 0 : index
    %c0_4 = arith.constant 0 : index
    %3 = vector.load %arg3[%c0_3, %c0_4] : memref<1x32xf32, #tpu.memory_space<vmem>>, vector<1x32xf32>
    %4 = vector.broadcast %3 : vector<1x32xf32> to vector<400x32xf32>
    %5 = arith.addf %2, %4 : vector<400x32xf32>
    %cst_5 = arith.constant 0.000000e+00 : f32
    %6 = vector.broadcast %cst_5 : f32 to vector<400x32xf32>
    %7 = arith.maximumf %5, %6 : vector<400x32xf32>
    %c0_6 = arith.constant 0 : index
    %c0_7 = arith.constant 0 : index
    %8 = vector.load %arg4[%c0_6, %c0_7] : memref<400x32xf32, #tpu.memory_space<vmem>>, vector<400x32xf32>
    tpu.vector_store %arg4[%c0_6, %c0_7], %7 {strides = array<i32>} : memref<400x32xf32, #tpu.memory_space<vmem>>, vector<400x32xf32>,
    return
  }
  func.func @transform_0(%arg0: i32) -> (i32, i32) {
    %c0_i32 = arith.constant 0 : i32
    %c0_i32_0 = arith.constant 0 : i32
    return %arg0, %c0_i32 : i32, i32
  }
  func.func @transform_1(%arg0: i32) -> (i32, i32) {
    %c0_i32 = arith.constant 0 : i32
    %c0_i32_0 = arith.constant 0 : i32
    %c0_i32_1 = arith.constant 0 : i32
    return %c0_i32, %c0_i32_0 : i32, i32
  }
  func.func @transform_2(%arg0: i32) -> (i32, i32) {
    %c0_i32 = arith.constant 0 : i32
    %c0_i32_0 = arith.constant 0 : i32
    %c0_i32_1 = arith.constant 0 : i32
    return %c0_i32, %c0_i32_0 : i32, i32
  }
  func.func @transform_3(%arg0: i32) -> (i32, i32) {
    %c0_i32 = arith.constant 0 : i32
    %c0_i32_0 = arith.constant 0 : i32
    return %arg0, %c0_i32 : i32, i32
  }
}

module attributes {stable_mosaic.version = 11 : i64} {
  func.func @_conv_matmul_kernel(%arg0: i32, %arg1: memref<648x288xf32, #tpu.memory_space<vmem>>, %arg2: memref<288x64xf32, #tpu.memory_space<vmem>>, %arg3: memref<1x64xf32, #tpu.memory_space<vmem>>, %arg4: memref<648x64xf32, #tpu.memory_space<vmem>>) attributes {dimension_semantics = [#tpu.dimension_semantics<parallel>], iteration_bounds = array<i64: 1>, scalar_prefetch = 0 : i64, scratch_operands = 0 : i64, tpu.core_type = #tpu.core_type<tc>, window_params = [{transform_indices = @transform_0, window_bounds = array<i64: 648, 288>}, {pipeline_mode = #tpu.pipeline_mode<synchronous>, transform_indices = @transform_1, window_bounds = array<i64: 288, 64>}, {pipeline_mode = #tpu.pipeline_mode<synchronous>, transform_indices = @transform_2, window_bounds = array<i64: 1, 64>}, {transform_indices = @transform_3, window_bounds = array<i64: 648, 64>}]} {
    %c0 = arith.constant 0 : index
    %c0_0 = arith.constant 0 : index
    %0 = vector.load %arg1[%c0, %c0_0] : memref<648x288xf32, #tpu.memory_space<vmem>>, vector<648x288xf32>
    %c0_1 = arith.constant 0 : index
    %c0_2 = arith.constant 0 : index
    %1 = vector.load %arg2[%c0_1, %c0_2] : memref<288x64xf32, #tpu.memory_space<vmem>>, vector<288x64xf32>
    %cst = arith.constant dense<0.000000e+00> : vector<648x64xf32>
    %2 = tpu.matmul %0, %1, %cst {dimension_numbers = #tpu.dot_dimension_numbers<[1], [0], [0], [1], [0, 0, 1, 1], [], []>} : vector<648x288xf32>, vector<288x64xf32>, vector<648x64xf32> -> vector<648x64xf32>
    %c0_3 = arith.constant 0 : index
    %c0_4 = arith.constant 0 : index
    %3 = vector.load %arg3[%c0_3, %c0_4] : memref<1x64xf32, #tpu.memory_space<vmem>>, vector<1x64xf32>
    %4 = vector.broadcast %3 : vector<1x64xf32> to vector<648x64xf32>
    %5 = arith.addf %2, %4 : vector<648x64xf32>
    %cst_5 = arith.constant 0.000000e+00 : f32
    %6 = vector.broadcast %cst_5 : f32 to vector<648x64xf32>
    %7 = arith.maximumf %5, %6 : vector<648x64xf32>
    %c0_6 = arith.constant 0 : index
    %c0_7 = arith.constant 0 : index
    %8 = vector.load %arg4[%c0_6, %c0_7] : memref<648x64xf32, #tpu.memory_space<vmem>>, vector<648x64xf32>
    tpu.vector_store %arg4[%c0_6, %c0_7], %7 {strides = array<i32>} : memref<648x64xf32, #tpu.memory_space<vmem>>, vector<648x64xf32>,
    return
  }
  func.func @transform_0(%arg0: i32) -> (i32, i32) {
    %c0_i32 = arith.constant 0 : i32
    %c0_i32_0 = arith.constant 0 : i32
    return %arg0, %c0_i32 : i32, i32
  }
  func.func @transform_1(%arg0: i32) -> (i32, i32) {
    %c0_i32 = arith.constant 0 : i32
    %c0_i32_0 = arith.constant 0 : i32
    %c0_i32_1 = arith.constant 0 : i32
    return %c0_i32, %c0_i32_0 : i32, i32
  }
  func.func @transform_2(%arg0: i32) -> (i32, i32) {
    %c0_i32 = arith.constant 0 : i32
    %c0_i32_0 = arith.constant 0 : i32
    %c0_i32_1 = arith.constant 0 : i32
    return %c0_i32, %c0_i32_0 : i32, i32
  }
  func.func @transform_3(%arg0: i32) -> (i32, i32) {
    %c0_i32 = arith.constant 0 : i32
    %c0_i32_0 = arith.constant 0 : i32
    return %arg0, %c0_i32 : i32, i32
  }
}

module attributes {stable_mosaic.version = 11 : i64} {
  func.func @_fc_relu_kernel(%arg0: i32, %arg1: i32, %arg2: memref<2x6912xf32, #tpu.memory_space<vmem>>, %arg3: memref<6912x256xbf16, #tpu.memory_space<vmem>>, %arg4: memref<1x256xf32, #tpu.memory_space<vmem>>, %arg5: memref<2x256xf32, #tpu.memory_space<vmem>>) attributes {dimension_semantics = [#tpu.dimension_semantics<parallel>, #tpu.dimension_semantics<arbitrary>], iteration_bounds = array<i64: 2, 3>, scalar_prefetch = 0 : i64, scratch_operands = 0 : i64, tpu.core_type = #tpu.core_type<tc>, window_params = [{transform_indices = @transform_0, window_bounds = array<i64: 2, 6912>}, {transform_indices = @transform_1, window_bounds = array<i64: 6912, 256>}, {transform_indices = @transform_2, window_bounds = array<i64: 1, 256>}, {transform_indices = @transform_3, window_bounds = array<i64: 2, 256>}]} {
    %c0_i32 = arith.constant 0 : i32
    %0 = arith.cmpi eq, %arg1, %c0_i32 : i32
    %1 = arith.extui %0 : i1 to i32
    %c0_i32_0 = arith.constant 0 : i32
    %2 = arith.cmpi ne, %1, %c0_i32_0 : i32
    scf.if %2 {
      %cst_9 = arith.constant 0.000000e+00 : f32
      %13 = vector.broadcast %cst_9 : f32 to vector<2x256xf32>
      %c0_10 = arith.constant 0 : index
      %c0_11 = arith.constant 0 : index
      %14 = vector.load %arg5[%c0_10, %c0_11] : memref<2x256xf32, #tpu.memory_space<vmem>>, vector<2x256xf32>
      tpu.vector_store %arg5[%c0_10, %c0_11], %13 {strides = array<i32>} : memref<2x256xf32, #tpu.memory_space<vmem>>, vector<2x256xf32>,
    } else {
    }
    %c0 = arith.constant 0 : index
    %c0_1 = arith.constant 0 : index
    %3 = vector.load %arg2[%c0, %c0_1] : memref<2x6912xf32, #tpu.memory_space<vmem>>, vector<2x6912xf32>
    %4 = arith.truncf %3 : vector<2x6912xf32> to vector<2x6912xbf16>
    %c0_2 = arith.constant 0 : index
    %c0_3 = arith.constant 0 : index
    %5 = vector.load %arg5[%c0_2, %c0_3] : memref<2x256xf32, #tpu.memory_space<vmem>>, vector<2x256xf32>
    %c0_4 = arith.constant 0 : index
    %c0_5 = arith.constant 0 : index
    %6 = vector.load %arg3[%c0_4, %c0_5] : memref<6912x256xbf16, #tpu.memory_space<vmem>>, vector<6912x256xbf16>
    %cst = arith.constant dense<0.000000e+00> : vector<2x256xf32>
    %7 = tpu.matmul %4, %6, %cst {dimension_numbers = #tpu.dot_dimension_numbers<[1], [0], [0], [1], [0, 0, 1, 1], [], []>} : vector<2x6912xbf16>, vector<6912x256xbf16>, vector<2x256xf32> -> vector<2x256xf32>
    %8 = arith.addf %5, %7 : vector<2x256xf32>
    %c0_6 = arith.constant 0 : index
    %c0_7 = arith.constant 0 : index
    %9 = vector.load %arg5[%c0_6, %c0_7] : memref<2x256xf32, #tpu.memory_space<vmem>>, vector<2x256xf32>
    tpu.vector_store %arg5[%c0_6, %c0_7], %8 {strides = array<i32>} : memref<2x256xf32, #tpu.memory_space<vmem>>, vector<2x256xf32>,
    %c2_i32 = arith.constant 2 : i32
    %10 = arith.cmpi eq, %arg1, %c2_i32 : i32
    %11 = arith.extui %10 : i1 to i32
    %c0_i32_8 = arith.constant 0 : i32
    %12 = arith.cmpi ne, %11, %c0_i32_8 : i32
    scf.if %12 {
      %c0_9 = arith.constant 0 : index
      %c0_10 = arith.constant 0 : index
      %13 = vector.load %arg5[%c0_9, %c0_10] : memref<2x256xf32, #tpu.memory_space<vmem>>, vector<2x256xf32>
      %c0_11 = arith.constant 0 : index
      %c0_12 = arith.constant 0 : index
      %14 = vector.load %arg4[%c0_11, %c0_12] : memref<1x256xf32, #tpu.memory_space<vmem>>, vector<1x256xf32>
      %15 = vector.broadcast %14 : vector<1x256xf32> to vector<2x256xf32>
      %16 = arith.addf %13, %15 : vector<2x256xf32>
      %cst_13 = arith.constant 0.000000e+00 : f32
      %17 = vector.broadcast %cst_13 : f32 to vector<2x256xf32>
      %18 = arith.maximumf %16, %17 : vector<2x256xf32>
      %c0_14 = arith.constant 0 : index
      %c0_15 = arith.constant 0 : index
      %19 = vector.load %arg5[%c0_14, %c0_15] : memref<2x256xf32, #tpu.memory_space<vmem>>, vector<2x256xf32>
      tpu.vector_store %arg5[%c0_14, %c0_15], %18 {strides = array<i32>} : memref<2x256xf32, #tpu.memory_space<vmem>>, vector<2x256xf32>,
    } else {
    }
    return
  }
  func.func @transform_0(%arg0: i32, %arg1: i32) -> (i32, i32) {
    %c0_i32 = arith.constant 0 : i32
    %c0_i32_0 = arith.constant 0 : i32
    return %c0_i32, %arg1 : i32, i32
  }
  func.func @transform_1(%arg0: i32, %arg1: i32) -> (i32, i32) {
    %c0_i32 = arith.constant 0 : i32
    return %arg1, %arg0 : i32, i32
  }
  func.func @transform_2(%arg0: i32, %arg1: i32) -> (i32, i32) {
    %c0_i32 = arith.constant 0 : i32
    %c0_i32_0 = arith.constant 0 : i32
    return %c0_i32, %arg0 : i32, i32
  }
  func.func @transform_3(%arg0: i32, %arg1: i32) -> (i32, i32) {
    %c0_i32 = arith.constant 0 : i32
    %c0_i32_0 = arith.constant 0 : i32
    return %c0_i32, %arg0 : i32, i32
  }
}

module attributes {stable_mosaic.version = 11 : i64} {
  func.func @_dueling_head_kernel(%arg0: memref<2x512xf32, #tpu.memory_space<vmem>>, %arg1: memref<512x128xf32, #tpu.memory_space<vmem>>, %arg2: memref<1x128xf32, #tpu.memory_space<vmem>>, %arg3: memref<2x128xf32, #tpu.memory_space<vmem>>) attributes {dimension_semantics = [], scalar_prefetch = 0 : i64, scratch_operands = 0 : i64, tpu.core_type = #tpu.core_type<tc>} {
    %c0 = arith.constant 0 : index
    %c0_0 = arith.constant 0 : index
    %0 = vector.load %arg0[%c0, %c0_0] : memref<2x512xf32, #tpu.memory_space<vmem>>, vector<2x512xf32>
    %c0_1 = arith.constant 0 : index
    %c0_2 = arith.constant 0 : index
    %1 = vector.load %arg1[%c0_1, %c0_2] : memref<512x128xf32, #tpu.memory_space<vmem>>, vector<512x128xf32>
    %cst = arith.constant dense<0.000000e+00> : vector<2x128xf32>
    %2 = tpu.matmul %0, %1, %cst {dimension_numbers = #tpu.dot_dimension_numbers<[1], [0], [0], [1], [0, 0, 1, 1], [], []>} : vector<2x512xf32>, vector<512x128xf32>, vector<2x128xf32> -> vector<2x128xf32>
    %c0_3 = arith.constant 0 : index
    %c0_4 = arith.constant 0 : index
    %3 = vector.load %arg2[%c0_3, %c0_4] : memref<1x128xf32, #tpu.memory_space<vmem>>, vector<1x128xf32>
    %4 = vector.broadcast %3 : vector<1x128xf32> to vector<2x128xf32>
    %5 = arith.addf %2, %4 : vector<2x128xf32>
    %6 = tpu.iota {dimensions = array<i32: 1>} : vector<2x128xi32>
    %c1_i32 = arith.constant 1 : i32
    %7 = vector.broadcast %c1_i32 : i32 to vector<2x128xi32>
    %8 = arith.cmpi sge, %6, %7 : vector<2x128xi32>
    %c6_i32 = arith.constant 6 : i32
    %9 = vector.broadcast %c6_i32 : i32 to vector<2x128xi32>
    %10 = arith.cmpi sle, %6, %9 : vector<2x128xi32>
    %11 = arith.andi %8, %10 : vector<2x128xi1>
    %cst_5 = arith.constant 0xFF800000 : f32
    %12 = vector.broadcast %cst_5 : f32 to vector<2x128xf32>
    %13 = arith.select %11, %5, %12 : vector<2x128xi1>, vector<2x128xf32>
    %cst_6 = arith.constant dense<0xFF800000> : vector<2xf32>
    %14 = vector.multi_reduction <maximumf>, %13, %cst_6 [1] : vector<2x128xf32> to vector<2xf32>
    %15 = vector.shape_cast %14 : vector<2xf32> to vector<2x1xf32>
    %16 = vector.extract_strided_slice %5 {offsets = [0, 0], sizes = [2, 1], strides = [1, 1]} : vector<2x128xf32> to vector<2x1xf32>
    %cst_7 = arith.constant 0.166666672 : f32
    %17 = vector.broadcast %cst_7 : f32 to vector<2x1xf32>
    %18 = arith.mulf %17, %15 : vector<2x1xf32>
    %19 = vector.broadcast %18 : vector<2x1xf32> to vector<2x128xf32>
    %20 = arith.subf %5, %19 : vector<2x128xf32>
    %21 = vector.broadcast %16 : vector<2x1xf32> to vector<2x128xf32>
    %22 = arith.addf %21, %20 : vector<2x128xf32>
    %c0_8 = arith.constant 0 : index
    %c0_9 = arith.constant 0 : index
    %23 = vector.load %arg3[%c0_8, %c0_9] : memref<2x128xf32, #tpu.memory_space<vmem>>, vector<2x128xf32>
    tpu.vector_store %arg3[%c0_8, %c0_9], %22 {strides = array<i32>} : memref<2x128xf32, #tpu.memory_space<vmem>>, vector<2x128xf32>,
    return
  }
}

</mosaic_0001>

<bundles_post_ra>
// kernel: forward.4
= control target key start
LH: loop header
LB: loop body
LE: loop exit
PB: predicated region body
PF: predicated region fallthrough
CT: control target
= control target key end

     0   :  { %s918_s12 = smov 0   ;;  %s1326_s0 = inlined_call_operand.vmem [shape: f32[800,256], index: 0, kind: input, shape index: {}]   ;;  %s1327_s1 = inlined_call_operand.vmem [shape: f32[256,32], index: 1, kind: input, shape index: {}]   ;;  %s1328_s2 = inlined_call_operand.vmem [shape: f32[1,32], index: 2, kind: input, shape index: {}]   ;;  %s1329_s3 = inlined_call_operand.vmem [shape: f32[800,32], index: 3, kind: output, shape index: {}]  }
   0x1 LB: > { %s788_s13 = sadd.s32 4294967295, %s895_s12   ;;  %p792_p0 = scmp.ge.s32.totalorder %s895_s12, 1  ;;  %s895_s12 = sphi %s918_s12, %s13_s12  }
   0x2   : > { %p139_p1 = scmp.lt.s32.totalorder %s895_s12, 3 }
   0x4   : > { %p140_p2 = pnand %p792_p0, %p139_p1 }
   0x5   : > { %v277_v0 = vld [vmem:[%s1327_s1] sm:$0xff] (!%p140_p2)  ;;  %v278_v1 = vld [vmem:[%s1327_s1 + $0x8] sm:$0xff] (!%p140_p2)  ;;  %v279_v2 = vld [vmem:[%s1327_s1 + $0x10] sm:$0xff] (!%p140_p2)  ;;  %s164_s20 = smul.u32 (!%p140_p2), 50, %s788_s13  ;;  %v897_v3 = vmov (!%p140_p2), 0.0|0.0   ;;  %vm681_vm0 = vcmask (!%p140_p2), 261120  }
   0x6   : > { %143 = sbr.rel (%p140_p2) target bundleno = 384 (0x180), region = 32  ;;  %800 = vmatprep.subr.bf16.mxu0 (!%p140_p2), %v897_v3  ;;  %848 = vmatprep.subr.bf16.mxu1 (!%p140_p2), %v897_v3  ;;  %v801_v4 = vpack.c.bf16 (!%p140_p2), %v278_v1, %v277_v0  ;;  %v280_v5 = vld [vmem:[%s1327_s1 + $0x18] sm:$0xff] (!%p140_p2)  ;;  %v281_v7 = vld [vmem:[%s1327_s1 + $0x20] sm:$0xff] (!%p140_p2)  ;;  %v282_v8 = vld [vmem:[%s1327_s1 + $0x28] sm:$0xff] (!%p140_p2) }
   0x7   : > { %p165_p3 = scmp.lt.s32.totalorder (!%p140_p2), %s164_s20, 99  ;;  %v804_v6 = vpack.c.bf16 (!%p140_p2), %v280_v5, %v279_v2  ;;  %v807_v9 = vpack.c.bf16 (!%p140_p2), %v282_v8, %v281_v7  ;;  %v283_v10 = vld [vmem:[%s1327_s1 + $0x30] sm:$0xff] (!%p140_p2)  ;;  %v284_v11 = vld [vmem:[%s1327_s1 + $0x38] sm:$0xff] (!%p140_p2)  ;;  %v285_v15 = vld [vmem:[%s1327_s1 + $0x40] sm:$0xff] (!%p140_p2) }
   0x8   : > { %802 = vmatpush1.bf16.msra.mxu0 (!%p140_p2), %v801_v4  ;;  %864 = vmatpush1.bf16.msra.mxu1 (!%p140_p2), %v801_v4  ;;  %v810_v13 = vpack.c.bf16 (!%p140_p2), %v284_v11, %v283_v10  ;;  %v286_v16 = vld [vmem:[%s1327_s1 + $0x48] sm:$0xff] (!%p140_p2)  ;;  %v287_v18 = vld [vmem:[%s1327_s1 + $0x50] sm:$0xff] (!%p140_p2)  ;;  %v288_v19 = vld [vmem:[%s1327_s1 + $0x58] sm:$0xff] (!%p140_p2) }
   0x9   : > { %803 = vmatprep.subr.bf16.mxu0 (!%p140_p2), %v897_v3  ;;  %849 = vmatprep.subr.bf16.mxu1 (!%p140_p2), %v897_v3  ;;  %v813_v17 = vpack.c.bf16 (!%p140_p2), %v286_v16, %v285_v15  ;;  %v816_v20 = vpack.c.bf16 (!%p140_p2), %v288_v19, %v287_v18  ;;  %v289_v21 = vld [vmem:[%s1327_s1 + $0x60] sm:$0xff] (!%p140_p2)  ;;  %v290_v22 = vld [vmem:[%s1327_s1 + $0x68] sm:$0xff] (!%p140_p2)  ;;  %v291_v24 = vld [vmem:[%s1327_s1 + $0x70] sm:$0xff] (!%p140_p2) }
   0xa   : > { %v819_v23 = vpack.c.bf16 (!%p140_p2), %v290_v22, %v289_v21  ;;  %v292_v25 = vld [vmem:[%s1327_s1 + $0x78] sm:$0xff] (!%p140_p2)  ;;  %v293_v27 = vld [vmem:[%s1327_s1 + $0x80] sm:$0xff] (!%p140_p2)  ;;  %v294_v28 = vld [vmem:[%s1327_s1 + $0x88] sm:$0xff] (!%p140_p2) }
   0xb   : > { %v822_v26 = vpack.c.bf16 (!%p140_p2), %v292_v25, %v291_v24  ;;  %v825_v29 = vpack.c.bf16 (!%p140_p2), %v294_v28, %v293_v27  ;;  %v295_v30 = vld [vmem:[%s1327_s1 + $0x90] sm:$0xff] (!%p140_p2)  ;;  %v296_v31 = vld [vmem:[%s1327_s1 + $0x98] sm:$0xff] (!%p140_p2)  ;;  %v297_v33 = vld [vmem:[%s1327_s1 + $0xa0] sm:$0xff] (!%p140_p2) }
   0xc   : > { %805 = vmatpush1.bf16.msra.mxu0 (!%p140_p2), %v804_v6  ;;  %865 = vmatpush1.bf16.msra.mxu1 (!%p140_p2), %v804_v6  ;;  %v828_v32 = vpack.c.bf16 (!%p140_p2), %v296_v31, %v295_v30  ;;  %v298_v34 = vld [vmem:[%s1327_s1 + $0xa8] sm:$0xff] (!%p140_p2)  ;;  %v299_v36 = vld [vmem:[%s1327_s1 + $0xb0] sm:$0xff] (!%p140_p2)  ;;  %v300_v37 = vld [vmem:[%s1327_s1 + $0xb8] sm:$0xff] (!%p140_p2) }
   0xd   : > { %s1331_s20 = smov (!%p165_p3, %s164_s20), 99  ;;  %806 = vmatprep.subr.bf16.mxu0 %v897_v3  ;;  %850 = vmatprep.subr.bf16.mxu1 %v897_v3  ;;  %v831_v35 = vpack.c.bf16 %v298_v34, %v297_v33  ;;  %v834_v38 = vpack.c.bf16 %v300_v37, %v299_v36  ;;  %v301_v39 = vld [vmem:[%s1327_s1 + $0xc0] sm:$0xff]  ;;  %v302_v40 = vld [vmem:[%s1327_s1 + $0xc8] sm:$0xff]  ;;  %v303_v42 = vld [vmem:[%s1327_s1 + $0xd0] sm:$0xff] }
   0xe   : > { %s799_s27 = sshll.u32 %s1331_s20, 4  ;;  %v837_v41 = vpack.c.bf16 %v302_v40, %v301_v39  ;;  %v304_v43 = vld [vmem:[%s1327_s1 + $0xd8] sm:$0xff]  ;;  %v305_v45 = vld [vmem:[%s1327_s1 + $0xe0] sm:$0xff]  ;;  %v306_v46 = vld [vmem:[%s1327_s1 + $0xe8] sm:$0xff]  ;;  %s795_s10 = sshll.u32 %s1331_s20, 3 }
   0xf   : > { %s954_s30 = scalar_lea.vmem %s1326_s0, %s799_s27  ;;  %v840_v44 = vpack.c.bf16 %v304_v43, %v303_v42  ;;  %v843_v47 = vpack.c.bf16 %v306_v46, %v305_v45  ;;  %v307_v48 = vld [vmem:[%s1327_s1 + $0xf0] sm:$0xff]  ;;  %v308_v49 = vld [vmem:[%s1327_s1 + $0xf8] sm:$0xff] }
  0x10   : > { %v178_v12 = vld [vmem:[%s954_s30 + $0x8] sm:$0xff]  ;;  %808 = vmatpush1.bf16.msra.mxu0 %v807_v9  ;;  %866 = vmatpush1.bf16.msra.mxu1 %v807_v9  ;;  %v228_v14 = vld [vmem:[%s954_s30 + $0x198] sm:$0xff]  ;;  %v846_v50 = vpack.c.bf16 %v308_v49, %v307_v48  ;;  %v177_v51 = vld [vmem:[%s954_s30] sm:$0xff] }
  0x11   : > { %809 = vmatprep.subr.bf16.mxu0 %v897_v3  ;;  %851 = vmatprep.subr.bf16.mxu1 %v897_v3  ;;  %v227_v52 = vld [vmem:[%s954_s30 + $0x190] sm:$0xff]  ;;  %v180_v53 = vld [vmem:[%s954_s30 + $0x18] sm:$0xff]  ;;  %v230_v54 = vld [vmem:[%s954_s30 + $0x1a8] sm:$0xff] }
  0x12   : > { %380 = vmatprep.mubr.f32.mxu0 %v178_v12  ;;  %505 = vmatprep.mubr.f32.mxu1 %v228_v14  ;;  %v179_v55 = vld [vmem:[%s954_s30 + $0x10] sm:$0xff]  ;;  %v229_v56 = vld [vmem:[%s954_s30 + $0x1a0] sm:$0xff]  ;;  %v182_v57 = vld [vmem:[%s954_s30 + $0x28] sm:$0xff] }
  0x13   : > { %v232_v58 = vld [vmem:[%s954_s30 + $0x1b8] sm:$0xff]  ;;  %v181_v59 = vld [vmem:[%s954_s30 + $0x20] sm:$0xff]  ;;  %v231_v60 = vld [vmem:[%s954_s30 + $0x1b0] sm:$0xff] }
  0x14   : > { %811 = vmatpush1.bf16.msra.mxu0 %v810_v13  ;;  %867 = vmatpush1.bf16.msra.mxu1 %v810_v13  ;;  %v184_v61 = vld [vmem:[%s954_s30 + $0x38] sm:$0xff]  ;;  %v234_v62 = vld [vmem:[%s954_s30 + $0x1c8] sm:$0xff]  ;;  %v183_v63 = vld [vmem:[%s954_s30 + $0x30] sm:$0xff] }
  0x15   : > { %812 = vmatprep.subr.bf16.mxu0 %v897_v3  ;;  %852 = vmatprep.subr.bf16.mxu1 %v897_v3  ;;  %v233_v0 = vld [vmem:[%s954_s30 + $0x1c0] sm:$0xff]  ;;  %v186_v1 = vld [vmem:[%s954_s30 + $0x48] sm:$0xff]  ;;  %v236_v2 = vld [vmem:[%s954_s30 + $0x1d8] sm:$0xff] }
  0x16   : > { %v235_v4 = vld [vmem:[%s954_s30 + $0x1d0] sm:$0xff]  ;;  %v188_v5 = vld [vmem:[%s954_s30 + $0x58] sm:$0xff]  ;;  %v238_v6 = vld [vmem:[%s954_s30 + $0x1e8] sm:$0xff] }
  0x17   : > { %v187_v7 = vld [vmem:[%s954_s30 + $0x50] sm:$0xff]  ;;  %v237_v8 = vld [vmem:[%s954_s30 + $0x1e0] sm:$0xff]  ;;  %v190_v9 = vld [vmem:[%s954_s30 + $0x68] sm:$0xff] }
  0x18   : > { %814 = vmatpush1.bf16.msra.mxu0 %v813_v17  ;;  %868 = vmatpush1.bf16.msra.mxu1 %v813_v17  ;;  %v240_v10 = vld [vmem:[%s954_s30 + $0x1f8] sm:$0xff]  ;;  %v189_v11 = vld [vmem:[%s954_s30 + $0x60] sm:$0xff]  ;;  %v239_v12 = vld [vmem:[%s954_s30 + $0x1f0] sm:$0xff] }
  0x19   : > { %815 = vmatprep.subr.bf16.mxu0 %v897_v3  ;;  %853 = vmatprep.subr.bf16.mxu1 %v897_v3  ;;  %v192_v13 = vld [vmem:[%s954_s30 + $0x78] sm:$0xff]  ;;  %v242_v14 = vld [vmem:[%s954_s30 + $0x208] sm:$0xff]  ;;  %v191_v15 = vld [vmem:[%s954_s30 + $0x70] sm:$0xff] }
  0x1a   : > { %v241_v16 = vld [vmem:[%s954_s30 + $0x200] sm:$0xff]  ;;  %v194_v17 = vld [vmem:[%s954_s30 + $0x88] sm:$0xff]  ;;  %v244_v18 = vld [vmem:[%s954_s30 + $0x218] sm:$0xff] }
  0x1b   : > { %v193_v19 = vld [vmem:[%s954_s30 + $0x80] sm:$0xff]  ;;  %v196_v21 = vld [vmem:[%s954_s30 + $0x98] sm:$0xff]  ;;  %v246_v22 = vld [vmem:[%s954_s30 + $0x228] sm:$0xff] }
  0x1c   : > { %817 = vmatpush1.bf16.msra.mxu0 %v816_v20  ;;  %869 = vmatpush1.bf16.msra.mxu1 %v816_v20  ;;  %v243_v20 = vld [vmem:[%s954_s30 + $0x210] sm:$0xff]  ;;  %v245_v24 = vld [vmem:[%s954_s30 + $0x220] sm:$0xff]  ;;  %v198_v25 = vld [vmem:[%s954_s30 + $0xa8] sm:$0xff] }
  0x1d   : > { %818 = vmatprep.subr.bf16.mxu0 %v897_v3  ;;  %854 = vmatprep.subr.bf16.mxu1 %v897_v3  ;;  %v197_v27 = vld [vmem:[%s954_s30 + $0xa0] sm:$0xff]  ;;  %v247_v28 = vld [vmem:[%s954_s30 + $0x230] sm:$0xff]  ;;  %v250_v30 = vld [vmem:[%s954_s30 + $0x248] sm:$0xff] }
  0x1e   : > { %v199_v31 = vld [vmem:[%s954_s30 + $0xb0] sm:$0xff]  ;;  %v202_v33 = vld [vmem:[%s954_s30 + $0xc8] sm:$0xff]  ;;  %v252_v34 = vld [vmem:[%s954_s30 + $0x258] sm:$0xff] }
  0x1f   : > { %v251_v36 = vld [vmem:[%s954_s30 + $0x250] sm:$0xff]  ;;  %v204_v37 = vld [vmem:[%s954_s30 + $0xd8] sm:$0xff]  ;;  %v253_v40 = vld [vmem:[%s954_s30 + $0x260] sm:$0xff] }
  0x20   : > { %820 = vmatpush1.bf16.msra.mxu0 %v819_v23  ;;  %870 = vmatpush1.bf16.msra.mxu1 %v819_v23  ;;  %v195_v23 = vld [vmem:[%s954_s30 + $0x90] sm:$0xff]  ;;  %v256_v42 = vld [vmem:[%s954_s30 + $0x278] sm:$0xff]  ;;  %v205_v43 = vld [vmem:[%s954_s30 + $0xe0] sm:$0xff] }
  0x21   : > { %821 = vmatprep.subr.bf16.mxu0 %v897_v3  ;;  %855 = vmatprep.subr.bf16.mxu1 %v897_v3  ;;  %v203_v39 = vld [vmem:[%s954_s30 + $0xd0] sm:$0xff]  ;;  %v208_v45 = vld [vmem:[%s954_s30 + $0xf8] sm:$0xff]  ;;  %v258_v46 = vld [vmem:[%s954_s30 + $0x288] sm:$0xff] }
  0x22   : > { %v257_v48 = vld [vmem:[%s954_s30 + $0x280] sm:$0xff]  ;;  %v210_v49 = vld [vmem:[%s954_s30 + $0x108] sm:$0xff] }
  0x24   : > { %823 = vmatpush1.bf16.msra.mxu0 %v822_v26  ;;  %871 = vmatpush1.bf16.msra.mxu1 %v822_v26  ;;  %v248_v26 = vld [vmem:[%s954_s30 + $0x238] sm:$0xff] }
  0x25   : > { %824 = vmatprep.subr.bf16.mxu0 %v897_v3  ;;  %856 = vmatprep.subr.bf16.mxu1 %v897_v3 }
  0x28   : > { %826 = vmatpush1.bf16.msra.mxu0 %v825_v29  ;;  %872 = vmatpush1.bf16.msra.mxu1 %v825_v29  ;;  %v200_v29 = vld [vmem:[%s954_s30 + $0xb8] sm:$0xff] }
  0x29   : > { %827 = vmatprep.subr.bf16.mxu0 %v897_v3  ;;  %857 = vmatprep.subr.bf16.mxu1 %v897_v3 }
  0x2c   : > { %829 = vmatpush1.bf16.msra.mxu0 %v828_v32  ;;  %873 = vmatpush1.bf16.msra.mxu1 %v828_v32  ;;  %v249_v32 = vld [vmem:[%s954_s30 + $0x240] sm:$0xff] }
  0x2d   : > { %830 = vmatprep.subr.bf16.mxu0 %v897_v3  ;;  %858 = vmatprep.subr.bf16.mxu1 %v897_v3 }
  0x30   : > { %832 = vmatpush1.bf16.msra.mxu0 %v831_v35  ;;  %874 = vmatpush1.bf16.msra.mxu1 %v831_v35  ;;  %v201_v35 = vld [vmem:[%s954_s30 + $0xc0] sm:$0xff] }
  0x31   : > { %833 = vmatprep.subr.bf16.mxu0 %v897_v3  ;;  %859 = vmatprep.subr.bf16.mxu1 %v897_v3 }
  0x34   : > { %835 = vmatpush1.bf16.msra.mxu0 %v834_v38  ;;  %875 = vmatpush1.bf16.msra.mxu1 %v834_v38  ;;  %v254_v38 = vld [vmem:[%s954_s30 + $0x268] sm:$0xff] }
  0x35   : > { %836 = vmatprep.subr.bf16.mxu0 %v897_v3  ;;  %860 = vmatprep.subr.bf16.mxu1 %v897_v3 }
  0x38   : > { %838 = vmatpush1.bf16.msra.mxu0 %v837_v41  ;;  %876 = vmatpush1.bf16.msra.mxu1 %v837_v41  ;;  %v206_v41 = vld [vmem:[%s954_s30 + $0xe8] sm:$0xff] }
  0x39   : > { %839 = vmatprep.subr.bf16.mxu0 %v897_v3  ;;  %861 = vmatprep.subr.bf16.mxu1 %v897_v3 }
  0x3c   : > { %841 = vmatpush1.bf16.msra.mxu0 %v840_v44  ;;  %877 = vmatpush1.bf16.msra.mxu1 %v840_v44  ;;  %v255_v44 = vld [vmem:[%s954_s30 + $0x270] sm:$0xff] }
  0x3d   : > { %842 = vmatprep.subr.bf16.mxu0 %v897_v3  ;;  %862 = vmatprep.subr.bf16.mxu1 %v897_v3 }
  0x40   : > { %844 = vmatpush1.bf16.msra.mxu0 %v843_v47  ;;  %878 = vmatpush1.bf16.msra.mxu1 %v843_v47  ;;  %v207_v47 = vld [vmem:[%s954_s30 + $0xf0] sm:$0xff] }
  0x41   : > { %845 = vmatprep.subr.bf16.mxu0 %v897_v3  ;;  %863 = vmatprep.subr.bf16.mxu1 %v897_v3  ;;  %v185_v3 = vld [vmem:[%s954_s30 + $0x40] sm:$0xff] }
  0x44   : > { %847 = vmatpush1.bf16.msra.mxu0 %v846_v50  ;;  %879 = vmatpush1.bf16.msra.mxu1 %v846_v50  ;;  %v260_v50 = vld [vmem:[%s954_s30 + $0x298] sm:$0xff] }
  0x47   : > { %381 = vmatmul.mubr.f32.vlgmr.msra.gmra.mrb[0].mxu0 %v177_v51  ;;  %506 = vmatmul.mubr.f32.vlgmr.msra.gmra.mrb[0].mxu1 %v227_v52  ;;  %v209_v51 = vld [vmem:[%s954_s30 + $0x100] sm:$0xff]  ;;  %v259_v52 = vld [vmem:[%s954_s30 + $0x290] sm:$0xff] }
  0x48   : > { %385 = vmatprep.mubr.f32.mxu0 %v180_v53  ;;  %510 = vmatprep.mubr.f32.mxu1 %v230_v54  ;;  %v212_v53 = vld [vmem:[%s954_s30 + $0x118] sm:$0xff]  ;;  %v262_v54 = vld [vmem:[%s954_s30 + $0x2a8] sm:$0xff] }
  0x4b   : > { %386 = vmatmul.mubr.f32.gmra.mrb[2].mxu0 %v179_v55  ;;  %511 = vmatmul.mubr.f32.gmra.mrb[2].mxu1 %v229_v56  ;;  %v211_v55 = vld [vmem:[%s954_s30 + $0x110] sm:$0xff]  ;;  %v261_v56 = vld [vmem:[%s954_s30 + $0x2a0] sm:$0xff] }
  0x4c   : > { %390 = vmatprep.mubr.f32.mxu0 %v182_v57  ;;  %515 = vmatprep.mubr.f32.mxu1 %v232_v58  ;;  %v214_v57 = vld [vmem:[%s954_s30 + $0x128] sm:$0xff]  ;;  %v264_v58 = vld [vmem:[%s954_s30 + $0x2b8] sm:$0xff] }
  0x4f   : > { %391 = vmatmul.mubr.f32.gmra.mrb[4].mxu0 %v181_v59  ;;  %516 = vmatmul.mubr.f32.gmra.mrb[4].mxu1 %v231_v60  ;;  %v213_v59 = vld [vmem:[%s954_s30 + $0x120] sm:$0xff]  ;;  %v263_v60 = vld [vmem:[%s954_s30 + $0x2b0] sm:$0xff] }
  0x50   : > { %395 = vmatprep.mubr.f32.mxu0 %v184_v61  ;;  %520 = vmatprep.mubr.f32.mxu1 %v234_v62  ;;  %v216_v61 = vld [vmem:[%s954_s30 + $0x138] sm:$0xff]  ;;  %v266_v62 = vld [vmem:[%s954_s30 + $0x2c8] sm:$0xff] }
  0x53   : > { %396 = vmatmul.mubr.f32.gmra.mrb[6].mxu0 %v183_v63  ;;  %521 = vmatmul.mubr.f32.gmra.mrb[6].mxu1 %v233_v0  ;;  %v215_v63 = vld [vmem:[%s954_s30 + $0x130] sm:$0xff]  ;;  %v265_v0 = vld [vmem:[%s954_s30 + $0x2c0] sm:$0xff] }
  0x54   : > { %400 = vmatprep.mubr.f32.mxu0 %v186_v1  ;;  %525 = vmatprep.mubr.f32.mxu1 %v236_v2  ;;  %v218_v1 = vld [vmem:[%s954_s30 + $0x148] sm:$0xff]  ;;  %v268_v2 = vld [vmem:[%s954_s30 + $0x2d8] sm:$0xff] }
  0x57   : > { %401 = vmatmul.mubr.f32.gmra.mrb[8].mxu0 %v185_v3  ;;  %526 = vmatmul.mubr.f32.gmra.mrb[8].mxu1 %v235_v4  ;;  %v217_v3 = vld [vmem:[%s954_s30 + $0x140] sm:$0xff]  ;;  %v267_v4 = vld [vmem:[%s954_s30 + $0x2d0] sm:$0xff] }
  0x58   : > { %405 = vmatprep.mubr.f32.mxu0 %v188_v5  ;;  %530 = vmatprep.mubr.f32.mxu1 %v238_v6  ;;  %v220_v5 = vld [vmem:[%s954_s30 + $0x158] sm:$0xff]  ;;  %v270_v6 = vld [vmem:[%s954_s30 + $0x2e8] sm:$0xff] }
  0x5b   : > { %406 = vmatmul.mubr.f32.gmra.mrb[10].mxu0 %v187_v7  ;;  %531 = vmatmul.mubr.f32.gmra.mrb[10].mxu1 %v237_v8  ;;  %v219_v7 = vld [vmem:[%s954_s30 + $0x150] sm:$0xff]  ;;  %v269_v8 = vld [vmem:[%s954_s30 + $0x2e0] sm:$0xff] }
  0x5c   : > { %410 = vmatprep.mubr.f32.mxu0 %v190_v9  ;;  %535 = vmatprep.mubr.f32.mxu1 %v240_v10  ;;  %v222_v9 = vld [vmem:[%s954_s30 + $0x168] sm:$0xff]  ;;  %v272_v10 = vld [vmem:[%s954_s30 + $0x2f8] sm:$0xff] }
  0x5f   : > { %411 = vmatmul.mubr.f32.gmra.mrb[12].mxu0 %v189_v11  ;;  %536 = vmatmul.mubr.f32.gmra.mrb[12].mxu1 %v239_v12  ;;  %v221_v11 = vld [vmem:[%s954_s30 + $0x160] sm:$0xff]  ;;  %v271_v12 = vld [vmem:[%s954_s30 + $0x2f0] sm:$0xff] }
  0x60   : > { %415 = vmatprep.mubr.f32.mxu0 %v192_v13  ;;  %540 = vmatprep.mubr.f32.mxu1 %v242_v14  ;;  %v224_v13 = vld [vmem:[%s954_s30 + $0x178] sm:$0xff]  ;;  %v274_v14 = vld [vmem:[%s954_s30 + $0x308] sm:$0xff] }
  0x63   : > { %416 = vmatmul.mubr.f32.gmra.mrb[14].mxu0 %v191_v15  ;;  %541 = vmatmul.mubr.f32.gmra.mrb[14].mxu1 %v241_v16  ;;  %v223_v15 = vld [vmem:[%s954_s30 + $0x170] sm:$0xff]  ;;  %v273_v16 = vld [vmem:[%s954_s30 + $0x300] sm:$0xff] }
  0x64   : > { %420 = vmatprep.mubr.f32.mxu0 %v194_v17  ;;  %545 = vmatprep.mubr.f32.mxu1 %v244_v18  ;;  %v226_v17 = vld [vmem:[%s954_s30 + $0x188] sm:$0xff]  ;;  %v276_v18 = vld [vmem:[%s954_s30 + $0x318] sm:$0xff] }
  0x67   : > { %421 = vmatmul.mubr.f32.gmra.mrb[16].mxu0 %v193_v19  ;;  %546 = vmatmul.mubr.f32.gmra.mrb[16].mxu1 %v243_v20  ;;  %v225_v19 = vld [vmem:[%s954_s30 + $0x180] sm:$0xff]  ;;  %v275_v20 = vld [vmem:[%s954_s30 + $0x310] sm:$0xff]  ;;  %s1173_s30 = scalar_lea.vmem %s1329_s3, %s795_s10 }
  0x68   : > { %425 = vmatprep.mubr.f32.mxu0 %v196_v21  ;;  %550 = vmatprep.mubr.f32.mxu1 %v246_v22  ;;  %v1165_v21 = vld [vmem:[%s1328_s2] ss:$0 sm:$0xff] }
  0x6b   : > { %426 = vmatmul.mubr.f32.gmra.mrb[18].mxu0 %v195_v23  ;;  %551 = vmatmul.mubr.f32.gmra.mrb[18].mxu1 %v245_v24 }
  0x6c   : > { %430 = vmatprep.mubr.f32.mxu0 %v198_v25  ;;  %555 = vmatprep.mubr.f32.mxu1 %v248_v26 }
  0x6f   : > { %431 = vmatmul.mubr.f32.gmra.mrb[20].mxu0 %v197_v27  ;;  %556 = vmatmul.mubr.f32.gmra.mrb[20].mxu1 %v247_v28 }
  0x70   : > { %435 = vmatprep.mubr.f32.mxu0 %v200_v29  ;;  %560 = vmatprep.mubr.f32.mxu1 %v250_v30 }
  0x73   : > { %436 = vmatmul.mubr.f32.gmra.mrb[22].mxu0 %v199_v31  ;;  %561 = vmatmul.mubr.f32.gmra.mrb[22].mxu1 %v249_v32 }
  0x74   : > { %440 = vmatprep.mubr.f32.mxu0 %v202_v33  ;;  %565 = vmatprep.mubr.f32.mxu1 %v252_v34 }
  0x77   : > { %441 = vmatmul.mubr.f32.gmra.mrb[24].mxu0 %v201_v35  ;;  %566 = vmatmul.mubr.f32.gmra.mrb[24].mxu1 %v251_v36 }
  0x78   : > { %445 = vmatprep.mubr.f32.mxu0 %v204_v37  ;;  %570 = vmatprep.mubr.f32.mxu1 %v254_v38 }
  0x7b   : > { %446 = vmatmul.mubr.f32.gmra.mrb[26].mxu0 %v203_v39  ;;  %571 = vmatmul.mubr.f32.gmra.mrb[26].mxu1 %v253_v40 }
  0x7c   : > { %450 = vmatprep.mubr.f32.mxu0 %v206_v41  ;;  %575 = vmatprep.mubr.f32.mxu1 %v256_v42 }
  0x7f   : > { %451 = vmatmul.mubr.f32.gmra.mrb[28].mxu0 %v205_v43  ;;  %576 = vmatmul.mubr.f32.gmra.mrb[28].mxu1 %v255_v44 }
  0x80   : > { %455 = vmatprep.mubr.f32.mxu0 %v208_v45  ;;  %580 = vmatprep.mubr.f32.mxu1 %v258_v46 }
  0x83   : > { %456 = vmatmul.mubr.f32.gmra.mrb[30].mxu0 %v207_v47  ;;  %581 = vmatmul.mubr.f32.gmra.mrb[30].mxu1 %v257_v48 }
  0x84   : > { %460 = vmatprep.mubr.f32.mxu0 %v210_v49  ;;  %585 = vmatprep.mubr.f32.mxu1 %v260_v50 }
  0x87   : > { %461 = vmatmul.mubr.f32.gmra.mrb[32].mxu0 %v209_v51  ;;  %586 = vmatmul.mubr.f32.gmra.mrb[32].mxu1 %v259_v52 }
  0x88   : > { %465 = vmatprep.mubr.f32.mxu0 %v212_v53  ;;  %590 = vmatprep.mubr.f32.mxu1 %v262_v54 }
  0x8b   : > { %466 = vmatmul.mubr.f32.gmra.mrb[34].mxu0 %v211_v55  ;;  %591 = vmatmul.mubr.f32.gmra.mrb[34].mxu1 %v261_v56 }
  0x8c   : > { %470 = vmatprep.mubr.f32.mxu0 %v214_v57  ;;  %595 = vmatprep.mubr.f32.mxu1 %v264_v58 }
  0x8f   : > { %471 = vmatmul.mubr.f32.gmra.mrb[36].mxu0 %v213_v59  ;;  %596 = vmatmul.mubr.f32.gmra.mrb[36].mxu1 %v263_v60 }
  0x90   : > { %475 = vmatprep.mubr.f32.mxu0 %v216_v61  ;;  %600 = vmatprep.mubr.f32.mxu1 %v266_v62 }
  0x93   : > { %476 = vmatmul.mubr.f32.gmra.mrb[38].mxu0 %v215_v63  ;;  %601 = vmatmul.mubr.f32.gmra.mrb[38].mxu1 %v265_v0 }
  0x94   : > { %480 = vmatprep.mubr.f32.mxu0 %v218_v1  ;;  %605 = vmatprep.mubr.f32.mxu1 %v268_v2 }
  0x97   : > { %481 = vmatmul.mubr.f32.gmra.mrb[40].mxu0 %v217_v3  ;;  %606 = vmatmul.mubr.f32.gmra.mrb[40].mxu1 %v267_v4 }
  0x98   : > { %485 = vmatprep.mubr.f32.mxu0 %v220_v5  ;;  %610 = vmatprep.mubr.f32.mxu1 %v270_v6 }
  0x9b   : > { %486 = vmatmul.mubr.f32.gmra.mrb[42].mxu0 %v219_v7  ;;  %611 = vmatmul.mubr.f32.gmra.mrb[42].mxu1 %v269_v8 }
  0x9c   : > { %490 = vmatprep.mubr.f32.mxu0 %v222_v9  ;;  %615 = vmatprep.mubr.f32.mxu1 %v272_v10 }
  0x9f   : > { %491 = vmatmul.mubr.f32.gmra.mrb[44].mxu0 %v221_v11  ;;  %616 = vmatmul.mubr.f32.gmra.mrb[44].mxu1 %v271_v12 }
  0xa0   : > { %495 = vmatprep.mubr.f32.mxu0 %v224_v13  ;;  %620 = vmatprep.mubr.f32.mxu1 %v274_v14 }
  0xa3   : > { %496 = vmatmul.mubr.f32.gmra.mrb[46].mxu0 %v223_v15  ;;  %621 = vmatmul.mubr.f32.gmra.mrb[46].mxu1 %v273_v16 }
  0xa4   : > { %500 = vmatprep.mubr.f32.mxu0 %v226_v17  ;;  %625 = vmatprep.mubr.f32.mxu1 %v276_v18 }
  0xa7   : > { %501 = vmatmul.mubr.f32.gmra.mrb[48].mxu0 %v225_v19  ;;  %626 = vmatmul.mubr.f32.gmra.mrb[48].mxu1 %v275_v20 }
 0x11a   : > { %v382_v22 = vpop.f32.mrb[0].mxu0  ;;  %v507_v23 = vpop.f32.mrb[0].mxu1 }
 0x11b   : > { %v383_v24 = vadd.f32 %v1165_v21, %v382_v22  ;;  %v508_v25 = vadd.f32 %v1165_v21, %v507_v23  ;;  %v384_v26 = vpop.f32.mrb[1].mxu0  ;;  %v509_v27 = vpop.f32.mrb[1].mxu1 }
 0x11d   : > { %v631_v28 = vmax.f32 %v383_v24, 0.0  ;;  %v656_v29 = vmax.f32 %v508_v25, 0.0 }
 0x11e   : > { %v387_v30 = vpop.f32.mrb[2].mxu0  ;;  %v512_v31 = vpop.f32.mrb[2].mxu1 }
 0x11f   : > { %682 = vst.msk [vmem:[%s1173_s30] sm:$0xff] %vm681_vm0, %v631_v28  ;;  %707 = vst.msk [vmem:[%s1173_s30 + $0xc8] sm:$0xff] %vm681_vm0, %v656_v29  ;;  %v388_v32 = vadd.f32 %v1165_v21, %v387_v30  ;;  %v513_v33 = vadd.f32 %v1165_v21, %v512_v31  ;;  %v389_v34 = vpop.f32.mrb[3].mxu0  ;;  %v514_v35 = vpop.f32.mrb[3].mxu1 }
 0x121   : > { %v632_v36 = vmax.f32 %v388_v32, 0.0  ;;  %v657_v37 = vmax.f32 %v513_v33, 0.0 }
 0x122   : > { %v392_v38 = vpop.f32.mrb[4].mxu0  ;;  %v517_v39 = vpop.f32.mrb[4].mxu1 }
 0x123   : > { %683 = vst.msk [vmem:[%s1173_s30 + $0x8] sm:$0xff] %vm681_vm0, %v632_v36  ;;  %708 = vst.msk [vmem:[%s1173_s30 + $0xd0] sm:$0xff] %vm681_vm0, %v657_v37  ;;  %v393_v40 = vadd.f32 %v1165_v21, %v392_v38  ;;  %v518_v41 = vadd.f32 %v1165_v21, %v517_v39  ;;  %v394_v42 = vpop.f32.mrb[5].mxu0  ;;  %v519_v43 = vpop.f32.mrb[5].mxu1 }
 0x125   : > { %v633_v44 = vmax.f32 %v393_v40, 0.0  ;;  %v658_v45 = vmax.f32 %v518_v41, 0.0 }
 0x126   : > { %v397_v46 = vpop.f32.mrb[6].mxu0  ;;  %v522_v47 = vpop.f32.mrb[6].mxu1 }
 0x127   : > { %684 = vst.msk [vmem:[%s1173_s30 + $0x10] sm:$0xff] %vm681_vm0, %v633_v44  ;;  %709 = vst.msk [vmem:[%s1173_s30 + $0xd8] sm:$0xff] %vm681_vm0, %v658_v45  ;;  %v398_v48 = vadd.f32 %v1165_v21, %v397_v46  ;;  %v523_v49 = vadd.f32 %v1165_v21, %v522_v47  ;;  %v399_v50 = vpop.f32.mrb[7].mxu0  ;;  %v524_v51 = vpop.f32.mrb[7].mxu1 }
 0x129   : > { %v634_v52 = vmax.f32 %v398_v48, 0.0  ;;  %v659_v53 = vmax.f32 %v523_v49, 0.0 }
 0x12a   : > { %v402_v54 = vpop.f32.mrb[8].mxu0  ;;  %v527_v55 = vpop.f32.mrb[8].mxu1 }
 0x12b   : > { %685 = vst.msk [vmem:[%s1173_s30 + $0x18] sm:$0xff] %vm681_vm0, %v634_v52  ;;  %710 = vst.msk [vmem:[%s1173_s30 + $0xe0] sm:$0xff] %vm681_vm0, %v659_v53  ;;  %v403_v56 = vadd.f32 %v1165_v21, %v402_v54  ;;  %v528_v57 = vadd.f32 %v1165_v21, %v527_v55  ;;  %v404_v58 = vpop.f32.mrb[9].mxu0  ;;  %v529_v59 = vpop.f32.mrb[9].mxu1 }
 0x12d   : > { %v635_v60 = vmax.f32 %v403_v56, 0.0  ;;  %v660_v61 = vmax.f32 %v528_v57, 0.0 }
 0x12e   : > { %v407_v62 = vpop.f32.mrb[10].mxu0  ;;  %v532_v63 = vpop.f32.mrb[10].mxu1 }
 0x12f   : > { %686 = vst.msk [vmem:[%s1173_s30 + $0x20] sm:$0xff] %vm681_vm0, %v635_v60  ;;  %711 = vst.msk [vmem:[%s1173_s30 + $0xe8] sm:$0xff] %vm681_vm0, %v660_v61  ;;  %v408_v0 = vadd.f32 %v1165_v21, %v407_v62  ;;  %v533_v1 = vadd.f32 %v1165_v21, %v532_v63  ;;  %v409_v2 = vpop.f32.mrb[11].mxu0  ;;  %v534_v3 = vpop.f32.mrb[11].mxu1 }
 0x131   : > { %v636_v4 = vmax.f32 %v408_v0, 0.0  ;;  %v661_v5 = vmax.f32 %v533_v1, 0.0 }
 0x132   : > { %v412_v6 = vpop.f32.mrb[12].mxu0  ;;  %v537_v7 = vpop.f32.mrb[12].mxu1 }
 0x133   : > { %687 = vst.msk [vmem:[%s1173_s30 + $0x28] sm:$0xff] %vm681_vm0, %v636_v4  ;;  %712 = vst.msk [vmem:[%s1173_s30 + $0xf0] sm:$0xff] %vm681_vm0, %v661_v5  ;;  %v413_v8 = vadd.f32 %v1165_v21, %v412_v6  ;;  %v538_v9 = vadd.f32 %v1165_v21, %v537_v7  ;;  %v414_v10 = vpop.f32.mrb[13].mxu0  ;;  %v539_v11 = vpop.f32.mrb[13].mxu1 }
 0x135   : > { %v637_v12 = vmax.f32 %v413_v8, 0.0  ;;  %v662_v13 = vmax.f32 %v538_v9, 0.0 }
 0x136   : > { %v417_v14 = vpop.f32.mrb[14].mxu0  ;;  %v542_v15 = vpop.f32.mrb[14].mxu1 }
 0x137   : > { %688 = vst.msk [vmem:[%s1173_s30 + $0x30] sm:$0xff] %vm681_vm0, %v637_v12  ;;  %713 = vst.msk [vmem:[%s1173_s30 + $0xf8] sm:$0xff] %vm681_vm0, %v662_v13  ;;  %v418_v16 = vadd.f32 %v1165_v21, %v417_v14  ;;  %v543_v17 = vadd.f32 %v1165_v21, %v542_v15  ;;  %v419_v18 = vpop.f32.mrb[15].mxu0  ;;  %v544_v19 = vpop.f32.mrb[15].mxu1 }
 0x139   : > { %v638_v20 = vmax.f32 %v418_v16, 0.0  ;;  %v663_v22 = vmax.f32 %v543_v17, 0.0 }
 0x13a   : > { %v422_v23 = vpop.f32.mrb[16].mxu0  ;;  %v547_v24 = vpop.f32.mrb[16].mxu1 }
 0x13b   : > { %689 = vst.msk [vmem:[%s1173_s30 + $0x38] sm:$0xff] %vm681_vm0, %v638_v20  ;;  %714 = vst.msk [vmem:[%s1173_s30 + $0x100] sm:$0xff] %vm681_vm0, %v663_v22  ;;  %v423_v25 = vadd.f32 %v1165_v21, %v422_v23  ;;  %v548_v26 = vadd.f32 %v1165_v21, %v547_v24  ;;  %v424_v27 = vpop.f32.mrb[17].mxu0  ;;  %v549_v28 = vpop.f32.mrb[17].mxu1 }
 0x13d   : > { %v639_v29 = vmax.f32 %v423_v25, 0.0  ;;  %v664_v30 = vmax.f32 %v548_v26, 0.0 }
 0x13e   : > { %v427_v31 = vpop.f32.mrb[18].mxu0  ;;  %v552_v32 = vpop.f32.mrb[18].mxu1 }
 0x13f   : > { %690 = vst.msk [vmem:[%s1173_s30 + $0x40] sm:$0xff] %vm681_vm0, %v639_v29  ;;  %715 = vst.msk [vmem:[%s1173_s30 + $0x108] sm:$0xff] %vm681_vm0, %v664_v30  ;;  %v428_v33 = vadd.f32 %v1165_v21, %v427_v31  ;;  %v553_v34 = vadd.f32 %v1165_v21, %v552_v32  ;;  %v429_v35 = vpop.f32.mrb[19].mxu0  ;;  %v554_v36 = vpop.f32.mrb[19].mxu1 }
 0x141   : > { %v640_v37 = vmax.f32 %v428_v33, 0.0  ;;  %v665_v38 = vmax.f32 %v553_v34, 0.0 }
 0x142   : > { %v432_v39 = vpop.f32.mrb[20].mxu0  ;;  %v557_v40 = vpop.f32.mrb[20].mxu1 }
 0x143   : > { %691 = vst.msk [vmem:[%s1173_s30 + $0x48] sm:$0xff] %vm681_vm0, %v640_v37  ;;  %716 = vst.msk [vmem:[%s1173_s30 + $0x110] sm:$0xff] %vm681_vm0, %v665_v38  ;;  %v433_v41 = vadd.f32 %v1165_v21, %v432_v39  ;;  %v558_v42 = vadd.f32 %v1165_v21, %v557_v40  ;;  %v434_v43 = vpop.f32.mrb[21].mxu0  ;;  %v559_v44 = vpop.f32.mrb[21].mxu1 }
 0x145   : > { %v641_v45 = vmax.f32 %v433_v41, 0.0  ;;  %v666_v46 = vmax.f32 %v558_v42, 0.0 }
 0x146   : > { %v437_v47 = vpop.f32.mrb[22].mxu0  ;;  %v562_v48 = vpop.f32.mrb[22].mxu1 }
 0x147   : > { %692 = vst.msk [vmem:[%s1173_s30 + $0x50] sm:$0xff] %vm681_vm0, %v641_v45  ;;  %717 = vst.msk [vmem:[%s1173_s30 + $0x118] sm:$0xff] %vm681_vm0, %v666_v46  ;;  %v438_v49 = vadd.f32 %v1165_v21, %v437_v47  ;;  %v563_v50 = vadd.f32 %v1165_v21, %v562_v48  ;;  %v439_v51 = vpop.f32.mrb[23].mxu0  ;;  %v564_v52 = vpop.f32.mrb[23].mxu1 }
 0x149   : > { %v642_v53 = vmax.f32 %v438_v49, 0.0  ;;  %v667_v54 = vmax.f32 %v563_v50, 0.0 }
 0x14a   : > { %v442_v55 = vpop.f32.mrb[24].mxu0  ;;  %v567_v56 = vpop.f32.mrb[24].mxu1 }
 0x14b   : > { %693 = vst.msk [vmem:[%s1173_s30 + $0x58] sm:$0xff] %vm681_vm0, %v642_v53  ;;  %718 = vst.msk [vmem:[%s1173_s30 + $0x120] sm:$0xff] %vm681_vm0, %v667_v54  ;;  %v443_v57 = vadd.f32 %v1165_v21, %v442_v55  ;;  %v568_v58 = vadd.f32 %v1165_v21, %v567_v56  ;;  %v444_v59 = vpop.f32.mrb[25].mxu0  ;;  %v569_v60 = vpop.f32.mrb[25].mxu1 }
 0x14d   : > { %v643_v61 = vmax.f32 %v443_v57, 0.0  ;;  %v668_v62 = vmax.f32 %v568_v58, 0.0 }
 0x14e   : > { %v447_v63 = vpop.f32.mrb[26].mxu0  ;;  %v572_v0 = vpop.f32.mrb[26].mxu1 }
 0x14f   : > { %694 = vst.msk [vmem:[%s1173_s30 + $0x60] sm:$0xff] %vm681_vm0, %v643_v61  ;;  %719 = vst.msk [vmem:[%s1173_s30 + $0x128] sm:$0xff] %vm681_vm0, %v668_v62  ;;  %v448_v1 = vadd.f32 %v1165_v21, %v447_v63  ;;  %v573_v2 = vadd.f32 %v1165_v21, %v572_v0  ;;  %v449_v3 = vpop.f32.mrb[27].mxu0  ;;  %v574_v4 = vpop.f32.mrb[27].mxu1 }
 0x151   : > { %v644_v5 = vmax.f32 %v448_v1, 0.0  ;;  %v669_v6 = vmax.f32 %v573_v2, 0.0 }
 0x152   : > { %v452_v7 = vpop.f32.mrb[28].mxu0  ;;  %v577_v8 = vpop.f32.mrb[28].mxu1 }
 0x153   : > { %695 = vst.msk [vmem:[%s1173_s30 + $0x68] sm:$0xff] %vm681_vm0, %v644_v5  ;;  %720 = vst.msk [vmem:[%s1173_s30 + $0x130] sm:$0xff] %vm681_vm0, %v669_v6  ;;  %v453_v9 = vadd.f32 %v1165_v21, %v452_v7  ;;  %v578_v10 = vadd.f32 %v1165_v21, %v577_v8  ;;  %v454_v11 = vpop.f32.mrb[29].mxu0  ;;  %v579_v12 = vpop.f32.mrb[29].mxu1 }
 0x155   : > { %v645_v13 = vmax.f32 %v453_v9, 0.0  ;;  %v670_v14 = vmax.f32 %v578_v10, 0.0 }
 0x156   : > { %v457_v15 = vpop.f32.mrb[30].mxu0  ;;  %v582_v16 = vpop.f32.mrb[30].mxu1 }
 0x157   : > { %696 = vst.msk [vmem:[%s1173_s30 + $0x70] sm:$0xff] %vm681_vm0, %v645_v13  ;;  %721 = vst.msk [vmem:[%s1173_s30 + $0x138] sm:$0xff] %vm681_vm0, %v670_v14  ;;  %v458_v17 = vadd.f32 %v1165_v21, %v457_v15  ;;  %v583_v18 = vadd.f32 %v1165_v21, %v582_v16  ;;  %v459_v19 = vpop.f32.mrb[31].mxu0  ;;  %v584_v20 = vpop.f32.mrb[31].mxu1 }
 0x159   : > { %v646_v22 = vmax.f32 %v458_v17, 0.0  ;;  %v671_v23 = vmax.f32 %v583_v18, 0.0 }
 0x15a   : > { %v462_v24 = vpop.f32.mrb[32].mxu0  ;;  %v587_v25 = vpop.f32.mrb[32].mxu1 }
 0x15b   : > { %697 = vst.msk [vmem:[%s1173_s30 + $0x78] sm:$0xff] %vm681_vm0, %v646_v22  ;;  %722 = vst.msk [vmem:[%s1173_s30 + $0x140] sm:$0xff] %vm681_vm0, %v671_v23  ;;  %v463_v26 = vadd.f32 %v1165_v21, %v462_v24  ;;  %v588_v27 = vadd.f32 %v1165_v21, %v587_v25  ;;  %v464_v28 = vpop.f32.mrb[33].mxu0  ;;  %v589_v29 = vpop.f32.mrb[33].mxu1 }
 0x15d   : > { %v647_v30 = vmax.f32 %v463_v26, 0.0  ;;  %v672_v31 = vmax.f32 %v588_v27, 0.0 }
 0x15e   : > { %v467_v32 = vpop.f32.mrb[34].mxu0  ;;  %v592_v33 = vpop.f32.mrb[34].mxu1 }
 0x15f   : > { %698 = vst.msk [vmem:[%s1173_s30 + $0x80] sm:$0xff] %vm681_vm0, %v647_v30  ;;  %723 = vst.msk [vmem:[%s1173_s30 + $0x148] sm:$0xff] %vm681_vm0, %v672_v31  ;;  %v468_v34 = vadd.f32 %v1165_v21, %v467_v32  ;;  %v593_v35 = vadd.f32 %v1165_v21, %v592_v33  ;;  %v469_v36 = vpop.f32.mrb[35].mxu0  ;;  %v594_v37 = vpop.f32.mrb[35].mxu1 }
 0x161   : > { %v648_v38 = vmax.f32 %v468_v34, 0.0  ;;  %v673_v39 = vmax.f32 %v593_v35, 0.0 }
 0x162   : > { %v472_v40 = vpop.f32.mrb[36].mxu0  ;;  %v597_v41 = vpop.f32.mrb[36].mxu1 }
 0x163   : > { %699 = vst.msk [vmem:[%s1173_s30 + $0x88] sm:$0xff] %vm681_vm0, %v648_v38  ;;  %724 = vst.msk [vmem:[%s1173_s30 + $0x150] sm:$0xff] %vm681_vm0, %v673_v39  ;;  %v473_v42 = vadd.f32 %v1165_v21, %v472_v40  ;;  %v598_v43 = vadd.f32 %v1165_v21, %v597_v41  ;;  %v474_v44 = vpop.f32.mrb[37].mxu0  ;;  %v599_v45 = vpop.f32.mrb[37].mxu1 }
 0x165   : > { %v649_v46 = vmax.f32 %v473_v42, 0.0  ;;  %v674_v47 = vmax.f32 %v598_v43, 0.0 }
 0x166   : > { %v477_v48 = vpop.f32.mrb[38].mxu0  ;;  %v602_v49 = vpop.f32.mrb[38].mxu1 }
 0x167   : > { %700 = vst.msk [vmem:[%s1173_s30 + $0x90] sm:$0xff] %vm681_vm0, %v649_v46  ;;  %725 = vst.msk [vmem:[%s1173_s30 + $0x158] sm:$0xff] %vm681_vm0, %v674_v47  ;;  %v478_v50 = vadd.f32 %v1165_v21, %v477_v48  ;;  %v603_v51 = vadd.f32 %v1165_v21, %v602_v49  ;;  %v479_v52 = vpop.f32.mrb[39].mxu0  ;;  %v604_v53 = vpop.f32.mrb[39].mxu1 }
 0x169   : > { %v650_v54 = vmax.f32 %v478_v50, 0.0  ;;  %v675_v55 = vmax.f32 %v603_v51, 0.0 }
 0x16a   : > { %v482_v56 = vpop.f32.mrb[40].mxu0  ;;  %v607_v57 = vpop.f32.mrb[40].mxu1 }
 0x16b   : > { %701 = vst.msk [vmem:[%s1173_s30 + $0x98] sm:$0xff] %vm681_vm0, %v650_v54  ;;  %726 = vst.msk [vmem:[%s1173_s30 + $0x160] sm:$0xff] %vm681_vm0, %v675_v55  ;;  %v483_v58 = vadd.f32 %v1165_v21, %v482_v56  ;;  %v608_v59 = vadd.f32 %v1165_v21, %v607_v57  ;;  %v484_v60 = vpop.f32.mrb[41].mxu0  ;;  %v609_v61 = vpop.f32.mrb[41].mxu1 }
 0x16d   : > { %v651_v62 = vmax.f32 %v483_v58, 0.0  ;;  %v676_v63 = vmax.f32 %v608_v59, 0.0 }
 0x16e   : > { %v487_v0 = vpop.f32.mrb[42].mxu0  ;;  %v612_v1 = vpop.f32.mrb[42].mxu1 }
 0x16f   : > { %702 = vst.msk [vmem:[%s1173_s30 + $0xa0] sm:$0xff] %vm681_vm0, %v651_v62  ;;  %727 = vst.msk [vmem:[%s1173_s30 + $0x168] sm:$0xff] %vm681_vm0, %v676_v63  ;;  %v488_v2 = vadd.f32 %v1165_v21, %v487_v0  ;;  %v613_v3 = vadd.f32 %v1165_v21, %v612_v1  ;;  %v489_v4 = vpop.f32.mrb[43].mxu0  ;;  %v614_v5 = vpop.f32.mrb[43].mxu1 }
 0x171   : > { %v652_v6 = vmax.f32 %v488_v2, 0.0  ;;  %v677_v7 = vmax.f32 %v613_v3, 0.0 }
 0x172   : > { %v492_v8 = vpop.f32.mrb[44].mxu0  ;;  %v617_v9 = vpop.f32.mrb[44].mxu1 }
 0x173   : > { %703 = vst.msk [vmem:[%s1173_s30 + $0xa8] sm:$0xff] %vm681_vm0, %v652_v6  ;;  %728 = vst.msk [vmem:[%s1173_s30 + $0x170] sm:$0xff] %vm681_vm0, %v677_v7  ;;  %v493_v10 = vadd.f32 %v1165_v21, %v492_v8  ;;  %v618_v11 = vadd.f32 %v1165_v21, %v617_v9  ;;  %v494_v12 = vpop.f32.mrb[45].mxu0  ;;  %v619_v13 = vpop.f32.mrb[45].mxu1 }
 0x175   : > { %v653_v14 = vmax.f32 %v493_v10, 0.0  ;;  %v678_v15 = vmax.f32 %v618_v11, 0.0 }
 0x176   : > { %v497_v16 = vpop.f32.mrb[46].mxu0  ;;  %v622_v17 = vpop.f32.mrb[46].mxu1 }
 0x177   : > { %704 = vst.msk [vmem:[%s1173_s30 + $0xb0] sm:$0xff] %vm681_vm0, %v653_v14  ;;  %729 = vst.msk [vmem:[%s1173_s30 + $0x178] sm:$0xff] %vm681_vm0, %v678_v15  ;;  %v498_v18 = vadd.f32 %v1165_v21, %v497_v16  ;;  %v623_v19 = vadd.f32 %v1165_v21, %v622_v17  ;;  %v499_v20 = vpop.f32.mrb[47].mxu0  ;;  %v624_v22 = vpop.f32.mrb[47].mxu1 }
 0x179   : > { %v654_v23 = vmax.f32 %v498_v18, 0.0  ;;  %v679_v24 = vmax.f32 %v623_v19, 0.0 }
 0x17a   : > { %v502_v25 = vpop.f32.mrb[48].mxu0  ;;  %v627_v26 = vpop.f32.mrb[48].mxu1 }
 0x17b   : > { %705 = vst.msk [vmem:[%s1173_s30 + $0xb8] sm:$0xff] %vm681_vm0, %v654_v23  ;;  %730 = vst.msk [vmem:[%s1173_s30 + $0x180] sm:$0xff] %vm681_vm0, %v679_v24  ;;  %v503_v27 = vadd.f32 %v1165_v21, %v502_v25  ;;  %v628_v28 = vadd.f32 %v1165_v21, %v627_v26  ;;  %v504_v29 = vpop.f32.mrb[49].mxu0  ;;  %v629_v30 = vpop.f32.mrb[49].mxu1 }
 0x17d   : > { %v655_v31 = vmax.f32 %v503_v27, 0.0  ;;  %v680_v32 = vmax.f32 %v628_v28, 0.0 }
 0x17f   : > { %706 = vst.msk [vmem:[%s1173_s30 + $0xc0] sm:$0xff] %vm681_vm0, %v655_v31  ;;  %731 = vst.msk [vmem:[%s1173_s30 + $0x188] sm:$0xff] %vm681_vm0, %v680_v32 }
 0x180 PF: > { %s13_s12 = sadd.s32 1, %s895_s12  }
 0x181   : > { %p10_p4 = scmp.ge.s32.totalorder %s13_s12, 4  }
 0x183   :  { %12 = sbr.rel (!%p10_p4) target bundleno = 1 (0x1), region = 62 }

// kernel: forward.5
= control target key start
LH: loop header
LB: loop body
LE: loop exit
PB: predicated region body
PF: predicated region fallthrough
CT: control target
= control target key end

     0   :  { %v2289_v0 = vmov 0.0|0.0   ;;  %vm2290_vm0 = vmmov 0   ;;  %v2291_v6 = vmov 0.0   ;;  %vm300_vm1 = vcmask 261120   ;;  %s4068_s1 = inlined_call_operand.vmem [shape: f32[288,64], index: 1, kind: input, shape index: {}]   ;;  %s4069_s0 = inlined_call_operand.vmem [shape: f32[648,288], index: 0, kind: input, shape index: {}]   ;;  %s4070_s2 = inlined_call_operand.vmem [shape: f32[1,64], index: 2, kind: input, shape index: {}]   ;;  %s4071_s3 = inlined_call_operand.vmem [shape: f32[648,64], index: 3, kind: output, shape index: {}]  }
   0x1   :  { %2069 = vmatprep.subr.bf16.mxu1 %v2289_v0  ;;  %v257_v1 = vld [vmem:[%s4068_s1] sm:$0xff]  ;;  %v258_v2 = vld [vmem:[%s4068_s1 + $0x8] sm:$0xff]  ;;  %v259_v3 = vld [vmem:[%s4068_s1 + $0x10] sm:$0xff]  ;;  %2117 = vmatprep.subr.bf16.mxu0 %v2289_v0  ;;  %vm1565_vm2 = vcmask 523264  }
   0x2   :  { %v2070_v4 = vpack.c.bf16 %v258_v2, %v257_v1  ;;  %v260_v5 = vld [vmem:[%s4068_s1 + $0x18] sm:$0xff]  ;;  %1826 = vmatprep.mubr.msk.f32.mxu0 %vm2290_vm0, %v2291_v6  ;;  %v261_v8 = vld [vmem:[%s4068_s1 + $0x20] sm:$0xff]  ;;  %v262_v9 = vld [vmem:[%s4068_s1 + $0x28] sm:$0xff] }
   0x3   :  { %v2073_v7 = vpack.c.bf16 %v260_v5, %v259_v3  ;;  %v2076_v10 = vpack.c.bf16 %v262_v9, %v261_v8  ;;  %v263_v11 = vld [vmem:[%s4068_s1 + $0x30] sm:$0xff]  ;;  %v264_v12 = vld [vmem:[%s4068_s1 + $0x38] sm:$0xff]  ;;  %v289_v13 = vld [vmem:[%s4068_s1 + $0x100] sm:$0xff] }
   0x4   :  { %2071 = vmatpush1.bf16.msra.mxu1 %v2070_v4  ;;  %v290_v14 = vld [vmem:[%s4068_s1 + $0x108] sm:$0xff]  ;;  %v2079_v15 = vpack.c.bf16 %v264_v12, %v263_v11  ;;  %v291_v17 = vld [vmem:[%s4068_s1 + $0x110] sm:$0xff]  ;;  %v292_v18 = vld [vmem:[%s4068_s1 + $0x118] sm:$0xff] }
   0x5   :  { %2072 = vmatprep.subr.bf16.mxu1 %v2289_v0  ;;  %v2118_v16 = vpack.c.bf16 %v290_v14, %v289_v13  ;;  %v265_v19 = vld [vmem:[%s4068_s1 + $0x40] sm:$0xff]  ;;  %v266_v20 = vld [vmem:[%s4068_s1 + $0x48] sm:$0xff]  ;;  %v2121_v22 = vpack.c.bf16 %v292_v18, %v291_v17  ;;  %v267_v24 = vld [vmem:[%s4068_s1 + $0x50] sm:$0xff] }
   0x6   :  { %v15_v21 = vld [vmem:[%s4069_s0 + $0x8] sm:$0xff]  ;;  %v2082_v23 = vpack.c.bf16 %v266_v20, %v265_v19  ;;  %v268_v25 = vld [vmem:[%s4068_s1 + $0x58] sm:$0xff]  ;;  %v16_v26 = vld [vmem:[%s4069_s0 + $0x10] sm:$0xff] }
   0x7   :  { %2119 = vmatpush3.bf16.msra.mxu0 %v2118_v16  ;;  %608 = vmatprep.mubr.f32.mxu1 %v15_v21  ;;  %v2085_v27 = vpack.c.bf16 %v268_v25, %v267_v24  ;;  %v269_v28 = vld [vmem:[%s4068_s1 + $0x60] sm:$0xff]  ;;  %v270_v29 = vld [vmem:[%s4068_s1 + $0x68] sm:$0xff]  ;;  %v271_v32 = vld [vmem:[%s4068_s1 + $0x70] sm:$0xff] }
   0x8   :  { %2074 = vmatpush1.bf16.msra.mxu1 %v2073_v7  ;;  %2120 = vmatprep.subr.bf16.mxu0 %v2289_v0  ;;  %v19_v30 = vld [vmem:[%s4069_s0 + $0x28] sm:$0xff]  ;;  %v2088_v31 = vpack.c.bf16 %v270_v29, %v269_v28  ;;  %v272_v33 = vld [vmem:[%s4068_s1 + $0x78] sm:$0xff]  ;;  %v22_v34 = vld [vmem:[%s4069_s0 + $0x40] sm:$0xff] }
   0x9   :  { %2075 = vmatprep.subr.bf16.mxu1 %v2289_v0  ;;  %v2091_v35 = vpack.c.bf16 %v272_v33, %v271_v32  ;;  %v273_v36 = vld [vmem:[%s4068_s1 + $0x80] sm:$0xff]  ;;  %v274_v37 = vld [vmem:[%s4068_s1 + $0x88] sm:$0xff]  ;;  %v25_v38 = vld [vmem:[%s4069_s0 + $0x58] sm:$0xff] }
   0xa   :  { %v2094_v39 = vpack.c.bf16 %v274_v37, %v273_v36  ;;  %v275_v40 = vld [vmem:[%s4068_s1 + $0x90] sm:$0xff]  ;;  %v276_v41 = vld [vmem:[%s4068_s1 + $0x98] sm:$0xff]  ;;  %v277_v44 = vld [vmem:[%s4068_s1 + $0xa0] sm:$0xff] }
   0xb   :  { %2122 = vmatpush3.bf16.msra.mxu0 %v2121_v22  ;;  %v28_v42 = vld [vmem:[%s4069_s0 + $0x70] sm:$0xff]  ;;  %v2097_v43 = vpack.c.bf16 %v276_v41, %v275_v40  ;;  %v278_v45 = vld [vmem:[%s4068_s1 + $0xa8] sm:$0xff]  ;;  %v280_v49 = vld [vmem:[%s4068_s1 + $0xb8] sm:$0xff] }
   0xc   :  { %2077 = vmatpush1.bf16.msra.mxu1 %v2076_v10  ;;  %v31_v46 = vld [vmem:[%s4069_s0 + $0x88] sm:$0xff]  ;;  %v2100_v47 = vpack.c.bf16 %v278_v45, %v277_v44  ;;  %v279_v48 = vld [vmem:[%s4068_s1 + $0xb0] sm:$0xff]  ;;  %v34_v50 = vld [vmem:[%s4069_s0 + $0xa0] sm:$0xff] }
   0xd   :  { %2078 = vmatprep.subr.bf16.mxu1 %v2289_v0  ;;  %v2103_v51 = vpack.c.bf16 %v280_v49, %v279_v48  ;;  %v281_v52 = vld [vmem:[%s4068_s1 + $0xc0] sm:$0xff]  ;;  %v282_v53 = vld [vmem:[%s4068_s1 + $0xc8] sm:$0xff]  ;;  %v37_v54 = vld [vmem:[%s4069_s0 + $0xb8] sm:$0xff] }
   0xe   :  { %1827 = vmatmul.mubr.msk.f32.vlgmr.msra.gmra.mrb[0].mxu0 %vm300_vm1, %v16_v26  ;;  %v2106_v55 = vpack.c.bf16 %v282_v53, %v281_v52  ;;  %v283_v56 = vld [vmem:[%s4068_s1 + $0xd0] sm:$0xff]  ;;  %v284_v57 = vld [vmem:[%s4068_s1 + $0xd8] sm:$0xff]  ;;  %v285_v60 = vld [vmem:[%s4068_s1 + $0xe0] sm:$0xff] }
   0xf   :  { %1829 = vmatprep.mubr.msk.f32.mxu0 %vm2290_vm0, %v2291_v6  ;;  %v40_v58 = vld [vmem:[%s4069_s0 + $0xd0] sm:$0xff]  ;;  %v2109_v59 = vpack.c.bf16 %v284_v57, %v283_v56  ;;  %v286_v61 = vld [vmem:[%s4068_s1 + $0xe8] sm:$0xff]  ;;  %v288_v2 = vld [vmem:[%s4068_s1 + $0xf8] sm:$0xff] }
  0x10   :  { %2080 = vmatpush1.bf16.msra.mxu1 %v2079_v15  ;;  %v43_v62 = vld [vmem:[%s4069_s0 + $0xe8] sm:$0xff]  ;;  %v2112_v63 = vpack.c.bf16 %v286_v61, %v285_v60  ;;  %v287_v1 = vld [vmem:[%s4068_s1 + $0xf0] sm:$0xff]  ;;  %v46_v3 = vld [vmem:[%s4069_s0 + $0x100] sm:$0xff] }
  0x11   :  { %2081 = vmatprep.subr.bf16.mxu1 %v2289_v0  ;;  %v2115_v4 = vpack.c.bf16 %v288_v2, %v287_v1  ;;  %v49_v5 = vld [vmem:[%s4069_s0 + $0x118] sm:$0xff]  ;;  %v14_v7 = vld [vmem:[%s4069_s0] sm:$0xff]  ;;  %v55_v11 = vld [vmem:[%s4069_s0 + $0x148] sm:$0xff] }
  0x12   :  { %1830 = vmatmul.mubr.msk.f32.gmra.mrb[2].mxu0 %vm300_vm1, %v19_v30  ;;  %v18_v8 = vld [vmem:[%s4069_s0 + $0x20] sm:$0xff]  ;;  %v17_v9 = vld [vmem:[%s4069_s0 + $0x18] sm:$0xff]  ;;  %v20_v12 = vld [vmem:[%s4069_s0 + $0x30] sm:$0xff] }
  0x13   :  { %1832 = vmatprep.mubr.msk.f32.mxu0 %vm2290_vm0, %v2291_v6  ;;  %v21_v10 = vld [vmem:[%s4069_s0 + $0x38] sm:$0xff]  ;;  %v24_v13 = vld [vmem:[%s4069_s0 + $0x50] sm:$0xff]  ;;  %v58_v14 = vld [vmem:[%s4069_s0 + $0x160] sm:$0xff] }
  0x14   :  { %2083 = vmatpush1.bf16.msra.mxu1 %v2082_v23  ;;  %v23_v15 = vld [vmem:[%s4069_s0 + $0x48] sm:$0xff]  ;;  %v61_v17 = vld [vmem:[%s4069_s0 + $0x178] sm:$0xff]  ;;  %v26_v18 = vld [vmem:[%s4069_s0 + $0x60] sm:$0xff] }
  0x15   :  { %2084 = vmatprep.subr.bf16.mxu1 %v2289_v0  ;;  %v27_v16 = vld [vmem:[%s4069_s0 + $0x68] sm:$0xff]  ;;  %v30_v19 = vld [vmem:[%s4069_s0 + $0x80] sm:$0xff]  ;;  %v64_v20 = vld [vmem:[%s4069_s0 + $0x190] sm:$0xff] }
  0x16   :  { %1833 = vmatmul.mubr.msk.f32.gmra.mrb[4].mxu0 %vm300_vm1, %v22_v34  ;;  %v29_v21 = vld [vmem:[%s4069_s0 + $0x78] sm:$0xff]  ;;  %v67_v23 = vld [vmem:[%s4069_s0 + $0x1a8] sm:$0xff]  ;;  %v32_v24 = vld [vmem:[%s4069_s0 + $0x90] sm:$0xff] }
  0x17   :  { %1835 = vmatprep.mubr.msk.f32.mxu0 %vm2290_vm0, %v2291_v6  ;;  %v33_v22 = vld [vmem:[%s4069_s0 + $0x98] sm:$0xff]  ;;  %v36_v25 = vld [vmem:[%s4069_s0 + $0xb0] sm:$0xff]  ;;  %v70_v26 = vld [vmem:[%s4069_s0 + $0x1c0] sm:$0xff] }
  0x18   :  { %2086 = vmatpush1.bf16.msra.mxu1 %v2085_v27  ;;  %v35_v27 = vld [vmem:[%s4069_s0 + $0xa8] sm:$0xff]  ;;  %v73_v29 = vld [vmem:[%s4069_s0 + $0x1d8] sm:$0xff]  ;;  %v38_v30 = vld [vmem:[%s4069_s0 + $0xc0] sm:$0xff] }
  0x19   :  { %2087 = vmatprep.subr.bf16.mxu1 %v2289_v0  ;;  %v39_v28 = vld [vmem:[%s4069_s0 + $0xc8] sm:$0xff]  ;;  %v76_v32 = vld [vmem:[%s4069_s0 + $0x1f0] sm:$0xff]  ;;  %v41_v33 = vld [vmem:[%s4069_s0 + $0xd8] sm:$0xff] }
  0x1a   :  { %1836 = vmatmul.mubr.msk.f32.gmra.mrb[6].mxu0 %vm300_vm1, %v25_v38  ;;  %v45_v34 = vld [vmem:[%s4069_s0 + $0xf8] sm:$0xff]  ;;  %v44_v36 = vld [vmem:[%s4069_s0 + $0xf0] sm:$0xff]  ;;  %v82_v38 = vld [vmem:[%s4069_s0 + $0x220] sm:$0xff] }
  0x1b   :  { %1838 = vmatprep.mubr.msk.f32.mxu0 %vm2290_vm0, %v2291_v6  ;;  %v48_v37 = vld [vmem:[%s4069_s0 + $0x110] sm:$0xff]  ;;  %v51_v40 = vld [vmem:[%s4069_s0 + $0x128] sm:$0xff]  ;;  %v85_v41 = vld [vmem:[%s4069_s0 + $0x238] sm:$0xff] }
  0x1c   :  { %2089 = vmatpush1.bf16.msra.mxu1 %v2088_v31  ;;  %v42_v31 = vld [vmem:[%s4069_s0 + $0xe0] sm:$0xff]  ;;  %v88_v44 = vld [vmem:[%s4069_s0 + $0x250] sm:$0xff]  ;;  %v53_v45 = vld [vmem:[%s4069_s0 + $0x138] sm:$0xff] }
  0x1d   :  { %2090 = vmatprep.subr.bf16.mxu1 %v2289_v0  ;;  %v56_v48 = vld [vmem:[%s4069_s0 + $0x150] sm:$0xff]  ;;  %v63_v52 = vld [vmem:[%s4069_s0 + $0x188] sm:$0xff]  ;;  %v97_v53 = vld [vmem:[%s4069_s0 + $0x298] sm:$0xff] }
  0x1e   :  { %1839 = vmatmul.mubr.msk.f32.gmra.mrb[8].mxu0 %vm300_vm1, %v28_v42  ;;  %v50_v42 = vld [vmem:[%s4069_s0 + $0x120] sm:$0xff]  ;;  %v60_v49 = vld [vmem:[%s4069_s0 + $0x170] sm:$0xff]  ;;  %v65_v57 = vld [vmem:[%s4069_s0 + $0x198] sm:$0xff] }
  0x1f   :  { %1841 = vmatprep.mubr.msk.f32.mxu0 %vm2290_vm0, %v2291_v6  ;;  %v100_v56 = vld [vmem:[%s4069_s0 + $0x2b0] sm:$0xff]  ;;  %v75_v1 = vld [vmem:[%s4069_s0 + $0x1e8] sm:$0xff]  ;;  %v109_v2 = vld [vmem:[%s4069_s0 + $0x2f8] sm:$0xff] }
  0x20   :  { %2092 = vmatpush1.bf16.msra.mxu1 %v2091_v35  ;;  %v79_v35 = vld [vmem:[%s4069_s0 + $0x208] sm:$0xff]  ;;  %v68_v60 = vld [vmem:[%s4069_s0 + $0x1b0] sm:$0xff] }
  0x21   :  { %2093 = vmatprep.subr.bf16.mxu1 %v2289_v0  ;;  %v72_v61 = vld [vmem:[%s4069_s0 + $0x1d0] sm:$0xff] }
  0x22   :  { %1842 = vmatmul.mubr.msk.f32.gmra.mrb[10].mxu0 %vm300_vm1, %v31_v46  ;;  %v57_v46 = vld [vmem:[%s4069_s0 + $0x158] sm:$0xff] }
  0x23   :  { %1844 = vmatprep.mubr.msk.f32.mxu0 %vm2290_vm0, %v2291_v6 }
  0x24   :  { %2095 = vmatpush1.bf16.msra.mxu1 %v2094_v39  ;;  %v47_v39 = vld [vmem:[%s4069_s0 + $0x108] sm:$0xff] }
  0x25   :  { %2096 = vmatprep.subr.bf16.mxu1 %v2289_v0 }
  0x26   :  { %1845 = vmatmul.mubr.msk.f32.gmra.mrb[12].mxu0 %vm300_vm1, %v34_v50  ;;  %v94_v50 = vld [vmem:[%s4069_s0 + $0x280] sm:$0xff] }
  0x27   :  { %1847 = vmatprep.mubr.msk.f32.mxu0 %vm2290_vm0, %v2291_v6 }
  0x28   :  { %2098 = vmatpush1.bf16.msra.mxu1 %v2097_v43  ;;  %v54_v43 = vld [vmem:[%s4069_s0 + $0x140] sm:$0xff] }
  0x29   :  { %2099 = vmatprep.subr.bf16.mxu1 %v2289_v0 }
  0x2a   :  { %1848 = vmatmul.mubr.msk.f32.gmra.mrb[14].mxu0 %vm300_vm1, %v37_v54  ;;  %v62_v54 = vld [vmem:[%s4069_s0 + $0x180] sm:$0xff] }
  0x2b   :  { %1850 = vmatprep.mubr.msk.f32.mxu0 %vm2290_vm0, %v2291_v6 }
  0x2c   :  { %2101 = vmatpush1.bf16.msra.mxu1 %v2100_v47  ;;  %v91_v47 = vld [vmem:[%s4069_s0 + $0x268] sm:$0xff] }
  0x2d   :  { %2102 = vmatprep.subr.bf16.mxu1 %v2289_v0 }
  0x2e   :  { %1851 = vmatmul.mubr.msk.f32.gmra.mrb[16].mxu0 %vm300_vm1, %v40_v58  ;;  %v69_v58 = vld [vmem:[%s4069_s0 + $0x1b8] sm:$0xff] }
  0x2f   :  { %1853 = vmatprep.mubr.msk.f32.mxu0 %vm2290_vm0, %v2291_v6 }
  0x30   :  { %2104 = vmatpush1.bf16.msra.mxu1 %v2103_v51  ;;  %v59_v51 = vld [vmem:[%s4069_s0 + $0x168] sm:$0xff] }
  0x31   :  { %2105 = vmatprep.subr.bf16.mxu1 %v2289_v0 }
  0x32   :  { %1854 = vmatmul.mubr.msk.f32.gmra.mrb[18].mxu0 %vm300_vm1, %v43_v62  ;;  %v106_v62 = vld [vmem:[%s4069_s0 + $0x2e0] sm:$0xff] }
  0x33   :  { %1856 = vmatprep.mubr.msk.f32.mxu0 %vm2290_vm0, %v2291_v6 }
  0x34   :  { %2107 = vmatpush1.bf16.msra.mxu1 %v2106_v55  ;;  %v66_v55 = vld [vmem:[%s4069_s0 + $0x1a0] sm:$0xff] }
  0x35   :  { %2108 = vmatprep.subr.bf16.mxu1 %v2289_v0 }
  0x36   :  { %1857 = vmatmul.mubr.msk.f32.gmra.mrb[20].mxu0 %vm300_vm1, %v46_v3  ;;  %v74_v3 = vld [vmem:[%s4069_s0 + $0x1e0] sm:$0xff] }
  0x37   :  { %1859 = vmatprep.mubr.msk.f32.mxu0 %vm2290_vm0, %v2291_v6 }
  0x38   :  { %2110 = vmatpush1.bf16.msra.mxu1 %v2109_v59  ;;  %v103_v59 = vld [vmem:[%s4069_s0 + $0x2c8] sm:$0xff] }
  0x39   :  { %2111 = vmatprep.subr.bf16.mxu1 %v2289_v0 }
  0x3a   :  { %1860 = vmatmul.mubr.msk.f32.gmra.mrb[22].mxu0 %vm300_vm1, %v49_v5  ;;  %v112_v5 = vld [vmem:[%s4069_s0 + $0x310] sm:$0xff] }
  0x3b   :  { %1862 = vmatprep.mubr.msk.f32.mxu0 %vm2290_vm0, %v2291_v6 }
  0x3c   :  { %2113 = vmatpush1.bf16.msra.mxu1 %v2112_v63  ;;  %v71_v63 = vld [vmem:[%s4069_s0 + $0x1c8] sm:$0xff] }
  0x3d   :  { %2114 = vmatprep.subr.bf16.mxu1 %v2289_v0  ;;  %v52_v0 = vld [vmem:[%s4069_s0 + $0x130] sm:$0xff] }
  0x3e   :  { %1863 = vmatmul.mubr.msk.f32.gmra.mrb[24].mxu0 %vm300_vm1, %v52_v0  ;;  %v115_v0 = vld [vmem:[%s4069_s0 + $0x328] sm:$0xff] }
  0x3f   :  { %1865 = vmatprep.mubr.msk.f32.mxu0 %vm2290_vm0, %v2291_v6 }
  0x40   :  { %2116 = vmatpush1.bf16.msra.mxu1 %v2115_v4  ;;  %v78_v4 = vld [vmem:[%s4069_s0 + $0x200] sm:$0xff] }
  0x42   :  { %1866 = vmatmul.mubr.msk.f32.gmra.mrb[26].mxu0 %vm300_vm1, %v55_v11  ;;  %v118_v11 = vld [vmem:[%s4069_s0 + $0x340] sm:$0xff] }
  0x43   :  { %609 = vmatmul.mubr.f32.vlgmr.msra.gmra.mrb[0].mxu1 %v14_v7  ;;  %1868 = vmatprep.mubr.msk.f32.mxu0 %vm2290_vm0, %v2291_v6  ;;  %v77_v7 = vld [vmem:[%s4069_s0 + $0x1f8] sm:$0xff] }
  0x44   :  { %613 = vmatprep.mubr.f32.mxu1 %v18_v8  ;;  %v81_v8 = vld [vmem:[%s4069_s0 + $0x218] sm:$0xff] }
  0x46   :  { %1869 = vmatmul.mubr.msk.f32.gmra.mrb[28].mxu0 %vm300_vm1, %v58_v14  ;;  %v121_v14 = vld [vmem:[%s4069_s0 + $0x358] sm:$0xff] }
  0x47   :  { %614 = vmatmul.mubr.f32.gmra.mrb[2].mxu1 %v17_v9  ;;  %1871 = vmatprep.mubr.msk.f32.mxu0 %vm2290_vm0, %v2291_v6  ;;  %v80_v9 = vld [vmem:[%s4069_s0 + $0x210] sm:$0xff] }
  0x48   :  { %618 = vmatprep.mubr.f32.mxu1 %v21_v10  ;;  %v84_v10 = vld [vmem:[%s4069_s0 + $0x230] sm:$0xff] }
  0x4a   :  { %1872 = vmatmul.mubr.msk.f32.gmra.mrb[30].mxu0 %vm300_vm1, %v61_v17  ;;  %v124_v17 = vld [vmem:[%s4069_s0 + $0x370] sm:$0xff] }
  0x4b   :  { %619 = vmatmul.mubr.f32.gmra.mrb[4].mxu1 %v20_v12  ;;  %1874 = vmatprep.mubr.msk.f32.mxu0 %vm2290_vm0, %v2291_v6  ;;  %v83_v12 = vld [vmem:[%s4069_s0 + $0x228] sm:$0xff] }
  0x4c   :  { %623 = vmatprep.mubr.f32.mxu1 %v24_v13  ;;  %v87_v13 = vld [vmem:[%s4069_s0 + $0x248] sm:$0xff] }
  0x4e   :  { %1875 = vmatmul.mubr.msk.f32.gmra.mrb[32].mxu0 %vm300_vm1, %v64_v20  ;;  %v127_v20 = vld [vmem:[%s4069_s0 + $0x388] sm:$0xff] }
  0x4f   :  { %624 = vmatmul.mubr.f32.gmra.mrb[6].mxu1 %v23_v15  ;;  %1877 = vmatprep.mubr.msk.f32.mxu0 %vm2290_vm0, %v2291_v6  ;;  %v86_v15 = vld [vmem:[%s4069_s0 + $0x240] sm:$0xff] }
  0x50   :  { %628 = vmatprep.mubr.f32.mxu1 %v27_v16  ;;  %v90_v16 = vld [vmem:[%s4069_s0 + $0x260] sm:$0xff] }
  0x52   :  { %1878 = vmatmul.mubr.msk.f32.gmra.mrb[34].mxu0 %vm300_vm1, %v67_v23  ;;  %v130_v23 = vld [vmem:[%s4069_s0 + $0x3a0] sm:$0xff] }
  0x53   :  { %629 = vmatmul.mubr.f32.gmra.mrb[8].mxu1 %v26_v18  ;;  %1880 = vmatprep.mubr.msk.f32.mxu0 %vm2290_vm0, %v2291_v6  ;;  %v89_v18 = vld [vmem:[%s4069_s0 + $0x258] sm:$0xff] }
  0x54   :  { %633 = vmatprep.mubr.f32.mxu1 %v30_v19  ;;  %v93_v19 = vld [vmem:[%s4069_s0 + $0x278] sm:$0xff] }
  0x56   :  { %1881 = vmatmul.mubr.msk.f32.gmra.mrb[36].mxu0 %vm300_vm1, %v70_v26  ;;  %v133_v26 = vld [vmem:[%s4069_s0 + $0x3b8] sm:$0xff] }
  0x57   :  { %634 = vmatmul.mubr.f32.gmra.mrb[10].mxu1 %v29_v21  ;;  %1883 = vmatprep.mubr.msk.f32.mxu0 %vm2290_vm0, %v2291_v6  ;;  %v92_v21 = vld [vmem:[%s4069_s0 + $0x270] sm:$0xff] }
  0x58   :  { %638 = vmatprep.mubr.f32.mxu1 %v33_v22  ;;  %v96_v22 = vld [vmem:[%s4069_s0 + $0x290] sm:$0xff] }
  0x5a   :  { %1884 = vmatmul.mubr.msk.f32.gmra.mrb[38].mxu0 %vm300_vm1, %v73_v29  ;;  %v136_v29 = vld [vmem:[%s4069_s0 + $0x3d0] sm:$0xff] }
  0x5b   :  { %639 = vmatmul.mubr.f32.gmra.mrb[12].mxu1 %v32_v24  ;;  %1886 = vmatprep.mubr.msk.f32.mxu0 %vm2290_vm0, %v2291_v6  ;;  %v95_v24 = vld [vmem:[%s4069_s0 + $0x288] sm:$0xff] }
  0x5c   :  { %643 = vmatprep.mubr.f32.mxu1 %v36_v25  ;;  %v99_v25 = vld [vmem:[%s4069_s0 + $0x2a8] sm:$0xff] }
  0x5e   :  { %1887 = vmatmul.mubr.msk.f32.gmra.mrb[40].mxu0 %vm300_vm1, %v76_v32  ;;  %v139_v32 = vld [vmem:[%s4069_s0 + $0x3e8] sm:$0xff] }
  0x5f   :  { %644 = vmatmul.mubr.f32.gmra.mrb[14].mxu1 %v35_v27  ;;  %1889 = vmatprep.mubr.msk.f32.mxu0 %vm2290_vm0, %v2291_v6  ;;  %v98_v27 = vld [vmem:[%s4069_s0 + $0x2a0] sm:$0xff] }
  0x60   :  { %648 = vmatprep.mubr.f32.mxu1 %v39_v28  ;;  %v102_v28 = vld [vmem:[%s4069_s0 + $0x2c0] sm:$0xff] }
  0x62   :  { %1890 = vmatmul.mubr.msk.f32.gmra.mrb[42].mxu0 %vm300_vm1, %v79_v35  ;;  %v142_v35 = vld [vmem:[%s4069_s0 + $0x400] sm:$0xff] }
  0x63   :  { %649 = vmatmul.mubr.f32.gmra.mrb[16].mxu1 %v38_v30  ;;  %1892 = vmatprep.mubr.msk.f32.mxu0 %vm2290_vm0, %v2291_v6  ;;  %v101_v30 = vld [vmem:[%s4069_s0 + $0x2b8] sm:$0xff] }
  0x64   :  { %653 = vmatprep.mubr.f32.mxu1 %v42_v31  ;;  %v105_v31 = vld [vmem:[%s4069_s0 + $0x2d8] sm:$0xff] }
  0x66   :  { %1893 = vmatmul.mubr.msk.f32.gmra.mrb[44].mxu0 %vm300_vm1, %v82_v38  ;;  %v145_v38 = vld [vmem:[%s4069_s0 + $0x418] sm:$0xff] }
  0x67   :  { %654 = vmatmul.mubr.f32.gmra.mrb[18].mxu1 %v41_v33  ;;  %1895 = vmatprep.mubr.msk.f32.mxu0 %vm2290_vm0, %v2291_v6  ;;  %v104_v33 = vld [vmem:[%s4069_s0 + $0x2d0] sm:$0xff] }
  0x68   :  { %658 = vmatprep.mubr.f32.mxu1 %v45_v34  ;;  %v108_v34 = vld [vmem:[%s4069_s0 + $0x2f0] sm:$0xff] }
  0x6a   :  { %1896 = vmatmul.mubr.msk.f32.gmra.mrb[46].mxu0 %vm300_vm1, %v85_v41  ;;  %v148_v41 = vld [vmem:[%s4069_s0 + $0x430] sm:$0xff] }
  0x6b   :  { %659 = vmatmul.mubr.f32.gmra.mrb[20].mxu1 %v44_v36  ;;  %1898 = vmatprep.mubr.msk.f32.mxu0 %vm2290_vm0, %v2291_v6  ;;  %v107_v36 = vld [vmem:[%s4069_s0 + $0x2e8] sm:$0xff] }
  0x6c   :  { %663 = vmatprep.mubr.f32.mxu1 %v48_v37  ;;  %v111_v37 = vld [vmem:[%s4069_s0 + $0x308] sm:$0xff] }
  0x6e   :  { %1899 = vmatmul.mubr.msk.f32.gmra.mrb[48].mxu0 %vm300_vm1, %v88_v44  ;;  %v151_v44 = vld [vmem:[%s4069_s0 + $0x448] sm:$0xff] }
  0x6f   :  { %664 = vmatmul.mubr.f32.gmra.mrb[22].mxu1 %v47_v39  ;;  %1901 = vmatprep.mubr.msk.f32.mxu0 %vm2290_vm0, %v2291_v6  ;;  %v110_v39 = vld [vmem:[%s4069_s0 + $0x300] sm:$0xff] }
  0x70   :  { %668 = vmatprep.mubr.f32.mxu1 %v51_v40  ;;  %v114_v40 = vld [vmem:[%s4069_s0 + $0x320] sm:$0xff] }
  0x72   :  { %1902 = vmatmul.mubr.msk.f32.gmra.mrb[50].mxu0 %vm300_vm1, %v91_v47  ;;  %v154_v47 = vld [vmem:[%s4069_s0 + $0x460] sm:$0xff] }
  0x73   :  { %669 = vmatmul.mubr.f32.gmra.mrb[24].mxu1 %v50_v42  ;;  %1904 = vmatprep.mubr.msk.f32.mxu0 %vm2290_vm0, %v2291_v6  ;;  %v113_v42 = vld [vmem:[%s4069_s0 + $0x318] sm:$0xff] }
  0x74   :  { %673 = vmatprep.mubr.f32.mxu1 %v54_v43  ;;  %v117_v43 = vld [vmem:[%s4069_s0 + $0x338] sm:$0xff] }
  0x76   :  { %1905 = vmatmul.mubr.msk.f32.gmra.mrb[52].mxu0 %vm300_vm1, %v94_v50  ;;  %v157_v50 = vld [vmem:[%s4069_s0 + $0x478] sm:$0xff] }
  0x77   :  { %674 = vmatmul.mubr.f32.gmra.mrb[26].mxu1 %v53_v45  ;;  %1907 = vmatprep.mubr.msk.f32.mxu0 %vm2290_vm0, %v2291_v6  ;;  %v116_v45 = vld [vmem:[%s4069_s0 + $0x330] sm:$0xff] }
  0x78   :  { %678 = vmatprep.mubr.f32.mxu1 %v57_v46  ;;  %v120_v46 = vld [vmem:[%s4069_s0 + $0x350] sm:$0xff] }
  0x7a   :  { %1908 = vmatmul.mubr.msk.f32.gmra.mrb[54].mxu0 %vm300_vm1, %v97_v53  ;;  %v160_v53 = vld [vmem:[%s4069_s0 + $0x490] sm:$0xff] }
  0x7b   :  { %679 = vmatmul.mubr.f32.gmra.mrb[28].mxu1 %v56_v48  ;;  %1910 = vmatprep.mubr.msk.f32.mxu0 %vm2290_vm0, %v2291_v6  ;;  %v119_v48 = vld [vmem:[%s4069_s0 + $0x348] sm:$0xff] }
  0x7c   :  { %683 = vmatprep.mubr.f32.mxu1 %v60_v49  ;;  %v123_v49 = vld [vmem:[%s4069_s0 + $0x368] sm:$0xff] }
  0x7e   :  { %1911 = vmatmul.mubr.msk.f32.gmra.mrb[56].mxu0 %vm300_vm1, %v100_v56  ;;  %v163_v56 = vld [vmem:[%s4069_s0 + $0x4a8] sm:$0xff] }
  0x7f   :  { %684 = vmatmul.mubr.f32.gmra.mrb[30].mxu1 %v59_v51  ;;  %1913 = vmatprep.mubr.msk.f32.mxu0 %vm2290_vm0, %v2291_v6  ;;  %v122_v51 = vld [vmem:[%s4069_s0 + $0x360] sm:$0xff] }
  0x80   :  { %688 = vmatprep.mubr.f32.mxu1 %v63_v52  ;;  %v126_v52 = vld [vmem:[%s4069_s0 + $0x380] sm:$0xff] }
  0x82   :  { %1914 = vmatmul.mubr.msk.f32.gmra.mrb[58].mxu0 %vm300_vm1, %v103_v59  ;;  %v166_v59 = vld [vmem:[%s4069_s0 + $0x4c0] sm:$0xff] }
  0x83   :  { %689 = vmatmul.mubr.f32.gmra.mrb[32].mxu1 %v62_v54  ;;  %1916 = vmatprep.mubr.msk.f32.mxu0 %vm2290_vm0, %v2291_v6  ;;  %v125_v54 = vld [vmem:[%s4069_s0 + $0x378] sm:$0xff] }
  0x84   :  { %693 = vmatprep.mubr.f32.mxu1 %v66_v55  ;;  %v129_v55 = vld [vmem:[%s4069_s0 + $0x398] sm:$0xff] }
  0x86   :  { %1917 = vmatmul.mubr.msk.f32.gmra.mrb[60].mxu0 %vm300_vm1, %v106_v62  ;;  %v169_v62 = vld [vmem:[%s4069_s0 + $0x4d8] sm:$0xff] }
  0x87   :  { %694 = vmatmul.mubr.f32.gmra.mrb[34].mxu1 %v65_v57  ;;  %1919 = vmatprep.mubr.msk.f32.mxu0 %vm2290_vm0, %v2291_v6  ;;  %v128_v57 = vld [vmem:[%s4069_s0 + $0x390] sm:$0xff] }
  0x88   :  { %698 = vmatprep.mubr.f32.mxu1 %v69_v58  ;;  %v132_v58 = vld [vmem:[%s4069_s0 + $0x3b0] sm:$0xff] }
  0x8a   :  { %1920 = vmatmul.mubr.msk.f32.gmra.mrb[62].mxu0 %vm300_vm1, %v109_v2  ;;  %v172_v2 = vld [vmem:[%s4069_s0 + $0x4f0] sm:$0xff] }
  0x8b   :  { %699 = vmatmul.mubr.f32.gmra.mrb[36].mxu1 %v68_v60  ;;  %1922 = vmatprep.mubr.msk.f32.mxu0 %vm2290_vm0, %v2291_v6  ;;  %v131_v60 = vld [vmem:[%s4069_s0 + $0x3a8] sm:$0xff] }
  0x8c   :  { %703 = vmatprep.mubr.f32.mxu1 %v72_v61  ;;  %v135_v61 = vld [vmem:[%s4069_s0 + $0x3c8] sm:$0xff] }
  0x8e   :  { %1923 = vmatmul.mubr.msk.f32.gmra.mrb[64].mxu0 %vm300_vm1, %v112_v5  ;;  %v175_v5 = vld [vmem:[%s4069_s0 + $0x508] sm:$0xff] }
  0x8f   :  { %704 = vmatmul.mubr.f32.gmra.mrb[38].mxu1 %v71_v63  ;;  %1925 = vmatprep.mubr.msk.f32.mxu0 %vm2290_vm0, %v2291_v6  ;;  %v134_v63 = vld [vmem:[%s4069_s0 + $0x3c0] sm:$0xff] }
  0x90   :  { %708 = vmatprep.mubr.f32.mxu1 %v75_v1  ;;  %v138_v1 = vld [vmem:[%s4069_s0 + $0x3e0] sm:$0xff] }
  0x92   :  { %1926 = vmatmul.mubr.msk.f32.gmra.mrb[66].mxu0 %vm300_vm1, %v115_v0  ;;  %v144_v0 = vld [vmem:[%s4069_s0 + $0x410] sm:$0xff] }
  0x93   :  { %709 = vmatmul.mubr.f32.gmra.mrb[40].mxu1 %v74_v3  ;;  %1928 = vmatprep.mubr.msk.f32.mxu0 %vm2290_vm0, %v2291_v6  ;;  %v137_v3 = vld [vmem:[%s4069_s0 + $0x3d8] sm:$0xff] }
  0x94   :  { %713 = vmatprep.mubr.f32.mxu1 %v78_v4  ;;  %v141_v4 = vld [vmem:[%s4069_s0 + $0x3f8] sm:$0xff] }
  0x96   :  { %1929 = vmatmul.mubr.msk.f32.gmra.mrb[68].mxu0 %vm300_vm1, %v118_v11  ;;  %v143_v11 = vld [vmem:[%s4069_s0 + $0x408] sm:$0xff] }
  0x97   :  { %714 = vmatmul.mubr.f32.gmra.mrb[42].mxu1 %v77_v7  ;;  %1931 = vmatprep.mubr.msk.f32.mxu0 %vm2290_vm0, %v2291_v6  ;;  %v140_v7 = vld [vmem:[%s4069_s0 + $0x3f0] sm:$0xff] }
  0x98   :  { %718 = vmatprep.mubr.f32.mxu1 %v81_v8 }
  0x9a   :  { %1932 = vmatmul.mubr.msk.f32.gmra.mrb[70].mxu0 %vm300_vm1, %v121_v14 }
  0x9b   :  { %719 = vmatmul.mubr.f32.gmra.mrb[44].mxu1 %v80_v9  ;;  %1934 = vmatprep.mubr.msk.f32.mxu0 %vm2290_vm0, %v2291_v6 }
  0x9c   :  { %723 = vmatprep.mubr.f32.mxu1 %v84_v10  ;;  %v178_v10 = vld [vmem:[%s4069_s0 + $0x520] sm:$0xff] }
  0x9e   :  { %1935 = vmatmul.mubr.msk.f32.gmra.mrb[72].mxu0 %vm300_vm1, %v124_v17 }
  0x9f   :  { %724 = vmatmul.mubr.f32.gmra.mrb[46].mxu1 %v83_v12  ;;  %1937 = vmatprep.mubr.msk.f32.mxu0 %vm2290_vm0, %v2291_v6 }
  0xa0   :  { %728 = vmatprep.mubr.f32.mxu1 %v87_v13  ;;  %v147_v13 = vld [vmem:[%s4069_s0 + $0x428] sm:$0xff] }
  0xa2   :  { %1938 = vmatmul.mubr.msk.f32.gmra.mrb[74].mxu0 %vm300_vm1, %v127_v20  ;;  %v184_v20 = vld [vmem:[%s4069_s0 + $0x550] sm:$0xff] }
  0xa3   :  { %729 = vmatmul.mubr.f32.gmra.mrb[48].mxu1 %v86_v15  ;;  %1940 = vmatprep.mubr.msk.f32.mxu0 %vm2290_vm0, %v2291_v6  ;;  %v181_v15 = vld [vmem:[%s4069_s0 + $0x538] sm:$0xff] }
  0xa4   :  { %733 = vmatprep.mubr.f32.mxu1 %v90_v16  ;;  %v146_v16 = vld [vmem:[%s4069_s0 + $0x420] sm:$0xff] }
  0xa6   :  { %1941 = vmatmul.mubr.msk.f32.gmra.mrb[76].mxu0 %vm300_vm1, %v130_v23  ;;  %v153_v23 = vld [vmem:[%s4069_s0 + $0x458] sm:$0xff] }
  0xa7   :  { %734 = vmatmul.mubr.f32.gmra.mrb[50].mxu1 %v89_v18  ;;  %1943 = vmatprep.mubr.msk.f32.mxu0 %vm2290_vm0, %v2291_v6  ;;  %v150_v18 = vld [vmem:[%s4069_s0 + $0x440] sm:$0xff] }
  0xa8   :  { %738 = vmatprep.mubr.f32.mxu1 %v93_v19 }
  0xaa   :  { %1944 = vmatmul.mubr.msk.f32.gmra.mrb[78].mxu0 %vm300_vm1, %v133_v26  ;;  %v152_v26 = vld [vmem:[%s4069_s0 + $0x450] sm:$0xff] }
  0xab   :  { %739 = vmatmul.mubr.f32.gmra.mrb[52].mxu1 %v92_v21  ;;  %1946 = vmatprep.mubr.msk.f32.mxu0 %vm2290_vm0, %v2291_v6  ;;  %v149_v21 = vld [vmem:[%s4069_s0 + $0x438] sm:$0xff] }
  0xac   :  { %743 = vmatprep.mubr.f32.mxu1 %v96_v22 }
  0xae   :  { %1947 = vmatmul.mubr.msk.f32.gmra.mrb[80].mxu0 %vm300_vm1, %v136_v29 }
  0xaf   :  { %744 = vmatmul.mubr.f32.gmra.mrb[54].mxu1 %v95_v24  ;;  %1949 = vmatprep.mubr.msk.f32.mxu0 %vm2290_vm0, %v2291_v6 }
  0xb0   :  { %748 = vmatprep.mubr.f32.mxu1 %v99_v25  ;;  %v187_v25 = vld [vmem:[%s4069_s0 + $0x568] sm:$0xff] }
  0xb2   :  { %1950 = vmatmul.mubr.msk.f32.gmra.mrb[82].mxu0 %vm300_vm1, %v139_v32 }
  0xb3   :  { %749 = vmatmul.mubr.f32.gmra.mrb[56].mxu1 %v98_v27  ;;  %1952 = vmatprep.mubr.msk.f32.mxu0 %vm2290_vm0, %v2291_v6 }
  0xb4   :  { %753 = vmatprep.mubr.f32.mxu1 %v102_v28  ;;  %v156_v28 = vld [vmem:[%s4069_s0 + $0x470] sm:$0xff] }
  0xb6   :  { %1953 = vmatmul.mubr.msk.f32.gmra.mrb[84].mxu0 %vm300_vm1, %v142_v35  ;;  %v193_v35 = vld [vmem:[%s4069_s0 + $0x598] sm:$0xff] }
  0xb7   :  { %754 = vmatmul.mubr.f32.gmra.mrb[58].mxu1 %v101_v30  ;;  %1955 = vmatprep.mubr.msk.f32.mxu0 %vm2290_vm0, %v2291_v6  ;;  %v190_v30 = vld [vmem:[%s4069_s0 + $0x580] sm:$0xff] }
  0xb8   :  { %758 = vmatprep.mubr.f32.mxu1 %v105_v31  ;;  %v155_v31 = vld [vmem:[%s4069_s0 + $0x468] sm:$0xff] }
  0xba   :  { %1956 = vmatmul.mubr.msk.f32.gmra.mrb[86].mxu0 %vm300_vm1, %v145_v38  ;;  %v162_v38 = vld [vmem:[%s4069_s0 + $0x4a0] sm:$0xff] }
  0xbb   :  { %759 = vmatmul.mubr.f32.gmra.mrb[60].mxu1 %v104_v33  ;;  %1958 = vmatprep.mubr.msk.f32.mxu0 %vm2290_vm0, %v2291_v6  ;;  %v159_v33 = vld [vmem:[%s4069_s0 + $0x488] sm:$0xff] }
  0xbc   :  { %763 = vmatprep.mubr.f32.mxu1 %v108_v34 }
  0xbe   :  { %1959 = vmatmul.mubr.msk.f32.gmra.mrb[88].mxu0 %vm300_vm1, %v148_v41  ;;  %v161_v41 = vld [vmem:[%s4069_s0 + $0x498] sm:$0xff] }
  0xbf   :  { %764 = vmatmul.mubr.f32.gmra.mrb[62].mxu1 %v107_v36  ;;  %1961 = vmatprep.mubr.msk.f32.mxu0 %vm2290_vm0, %v2291_v6  ;;  %v158_v36 = vld [vmem:[%s4069_s0 + $0x480] sm:$0xff] }
  0xc0   :  { %768 = vmatprep.mubr.f32.mxu1 %v111_v37 }
  0xc2   :  { %1962 = vmatmul.mubr.msk.f32.gmra.mrb[90].mxu0 %vm300_vm1, %v151_v44 }
  0xc3   :  { %769 = vmatmul.mubr.f32.gmra.mrb[64].mxu1 %v110_v39  ;;  %1964 = vmatprep.mubr.msk.f32.mxu0 %vm2290_vm0, %v2291_v6 }
  0xc4   :  { %773 = vmatprep.mubr.f32.mxu1 %v114_v40  ;;  %v196_v40 = vld [vmem:[%s4069_s0 + $0x5b0] sm:$0xff] }
  0xc6   :  { %1965 = vmatmul.mubr.msk.f32.gmra.mrb[92].mxu0 %vm300_vm1, %v154_v47 }
  0xc7   :  { %774 = vmatmul.mubr.f32.gmra.mrb[66].mxu1 %v113_v42  ;;  %1967 = vmatprep.mubr.msk.f32.mxu0 %vm2290_vm0, %v2291_v6 }
  0xc8   :  { %778 = vmatprep.mubr.f32.mxu1 %v117_v43  ;;  %v165_v43 = vld [vmem:[%s4069_s0 + $0x4b8] sm:$0xff] }
  0xca   :  { %1968 = vmatmul.mubr.msk.f32.gmra.mrb[94].mxu0 %vm300_vm1, %v157_v50  ;;  %v202_v50 = vld [vmem:[%s4069_s0 + $0x5e0] sm:$0xff] }
  0xcb   :  { %779 = vmatmul.mubr.f32.gmra.mrb[68].mxu1 %v116_v45  ;;  %1970 = vmatprep.mubr.msk.f32.mxu0 %vm2290_vm0, %v2291_v6  ;;  %v199_v45 = vld [vmem:[%s4069_s0 + $0x5c8] sm:$0xff] }
  0xcc   :  { %783 = vmatprep.mubr.f32.mxu1 %v120_v46  ;;  %v164_v46 = vld [vmem:[%s4069_s0 + $0x4b0] sm:$0xff] }
  0xce   :  { %1971 = vmatmul.mubr.msk.f32.gmra.mrb[96].mxu0 %vm300_vm1, %v160_v53  ;;  %v171_v53 = vld [vmem:[%s4069_s0 + $0x4e8] sm:$0xff] }
  0xcf   :  { %784 = vmatmul.mubr.f32.gmra.mrb[70].mxu1 %v119_v48  ;;  %1973 = vmatprep.mubr.msk.f32.mxu0 %vm2290_vm0, %v2291_v6  ;;  %v168_v48 = vld [vmem:[%s4069_s0 + $0x4d0] sm:$0xff] }
  0xd0   :  { %788 = vmatprep.mubr.f32.mxu1 %v123_v49 }
  0xd2   :  { %1974 = vmatmul.mubr.msk.f32.gmra.mrb[98].mxu0 %vm300_vm1, %v163_v56  ;;  %v170_v56 = vld [vmem:[%s4069_s0 + $0x4e0] sm:$0xff] }
  0xd3   :  { %789 = vmatmul.mubr.f32.gmra.mrb[72].mxu1 %v122_v51  ;;  %1976 = vmatprep.mubr.msk.f32.mxu0 %vm2290_vm0, %v2291_v6  ;;  %v167_v51 = vld [vmem:[%s4069_s0 + $0x4c8] sm:$0xff] }
  0xd4   :  { %793 = vmatprep.mubr.f32.mxu1 %v126_v52 }
  0xd6   :  { %1977 = vmatmul.mubr.msk.f32.gmra.mrb[100].mxu0 %vm300_vm1, %v166_v59 }
  0xd7   :  { %794 = vmatmul.mubr.f32.gmra.mrb[74].mxu1 %v125_v54  ;;  %1979 = vmatprep.mubr.msk.f32.mxu0 %vm2290_vm0, %v2291_v6 }
  0xd8   :  { %798 = vmatprep.mubr.f32.mxu1 %v129_v55  ;;  %v205_v55 = vld [vmem:[%s4069_s0 + $0x5f8] sm:$0xff] }
  0xda   :  { %1980 = vmatmul.mubr.msk.f32.gmra.mrb[102].mxu0 %vm300_vm1, %v169_v62  ;;  %v173_v62 = vld [vmem:[%s4069_s0 + $0x4f8] sm:$0xff] }
  0xdb   :  { %799 = vmatmul.mubr.f32.gmra.mrb[76].mxu1 %v128_v57  ;;  %1982 = vmatprep.mubr.msk.f32.mxu0 %vm2290_vm0, %v2291_v6 }
  0xdc   :  { %803 = vmatprep.mubr.f32.mxu1 %v132_v58  ;;  %v174_v58 = vld [vmem:[%s4069_s0 + $0x500] sm:$0xff] }
  0xde   :  { %1983 = vmatmul.mubr.msk.f32.gmra.mrb[104].mxu0 %vm300_vm1, %v172_v2 }
  0xdf   :  { %804 = vmatmul.mubr.f32.gmra.mrb[78].mxu1 %v131_v60  ;;  %1985 = vmatprep.mubr.msk.f32.mxu0 %vm2290_vm0, %v2291_v6  ;;  %v208_v60 = vld [vmem:[%s4069_s0 + $0x610] sm:$0xff] }
  0xe0   :  { %808 = vmatprep.mubr.f32.mxu1 %v135_v61  ;;  %v3173_v61 = vld [vmem:[%s4070_s2] ss:$0 sm:$0xff] }
  0xe1   :  { %v3019_v8 = vpop.f32.mrb[0].mxu0 }
  0xe2   :  { %v1828_v9 = vpop.f32.mrb[1].mxu0  ;;  %1986 = vmatmul.mubr.msk.f32.gmra.mrb[106].mxu0 %vm300_vm1, %v175_v5 }
  0xe3   :  { %809 = vmatmul.mubr.f32.gmra.mrb[80].mxu1 %v134_v63  ;;  %1988 = vmatprep.mubr.msk.f32.mxu0 %vm2290_vm0, %v2291_v6 }
  0xe4   :  { %813 = vmatprep.mubr.f32.mxu1 %v138_v1  ;;  %v177_v1 = vld [vmem:[%s4069_s0 + $0x518] sm:$0xff] }
  0xe5   :  { %v3033_v12 = vpop.f32.mrb[2].mxu0 }
  0xe6   :  { %v1831_v14 = vpop.f32.mrb[3].mxu0  ;;  %1989 = vmatmul.mubr.msk.f32.gmra.mrb[108].mxu0 %vm300_vm1, %v178_v10 }
  0xe7   :  { %814 = vmatmul.mubr.f32.gmra.mrb[82].mxu1 %v137_v3  ;;  %1991 = vmatprep.mubr.msk.f32.mxu0 %vm2290_vm0, %v2291_v6 }
  0xe8   :  { %818 = vmatprep.mubr.f32.mxu1 %v141_v4  ;;  %v211_v4 = vld [vmem:[%s4069_s0 + $0x628] sm:$0xff] }
  0xe9   :  { %v3047_v17 = vpop.f32.mrb[4].mxu0 }
  0xea   :  { %v1834_v19 = vpop.f32.mrb[5].mxu0  ;;  %1992 = vmatmul.mubr.msk.f32.gmra.mrb[110].mxu0 %vm300_vm1, %v181_v15  ;;  %v214_v15 = vld [vmem:[%s4069_s0 + $0x640] sm:$0xff] }
  0xeb   :  { %819 = vmatmul.mubr.f32.gmra.mrb[84].mxu1 %v140_v7  ;;  %1994 = vmatprep.mubr.msk.f32.mxu0 %vm2290_vm0, %v2291_v6  ;;  %v179_v19 = vld [vmem:[%s4069_s0 + $0x528] sm:$0xff] }
  0xec   :  { %823 = vmatprep.mubr.f32.mxu1 %v144_v0  ;;  %v176_v0 = vld [vmem:[%s4069_s0 + $0x510] sm:$0xff] }
  0xed   :  { %v3061_v22 = vpop.f32.mrb[6].mxu0 }
  0xee   :  { %v1837_v24 = vpop.f32.mrb[7].mxu0  ;;  %1995 = vmatmul.mubr.msk.f32.gmra.mrb[112].mxu0 %vm300_vm1, %v184_v20 }
  0xef   :  { %824 = vmatmul.mubr.f32.gmra.mrb[86].mxu1 %v143_v11  ;;  %1997 = vmatprep.mubr.msk.f32.mxu0 %vm2290_vm0, %v2291_v6  ;;  %v180_v11 = vld [vmem:[%s4069_s0 + $0x530] sm:$0xff] }
  0xf0   :  { %828 = vmatprep.mubr.f32.mxu1 %v147_v13 }
  0xf1   :  { %v3075_v27 = vpop.f32.mrb[8].mxu0 }
  0xf2   :  { %v1840_v29 = vpop.f32.mrb[9].mxu0  ;;  %1998 = vmatmul.mubr.msk.f32.gmra.mrb[114].mxu0 %vm300_vm1, %v187_v25 }
  0xf3   :  { %829 = vmatmul.mubr.f32.gmra.mrb[88].mxu1 %v146_v16  ;;  %2000 = vmatprep.mubr.msk.f32.mxu0 %vm2290_vm0, %v2291_v6 }
  0xf4   :  { %833 = vmatprep.mubr.f32.mxu1 %v150_v18 }
  0xf5   :  { %v3089_v32 = vpop.f32.mrb[10].mxu0 }
  0xf6   :  { %v1843_v34 = vpop.f32.mrb[11].mxu0  ;;  %2001 = vmatmul.mubr.msk.f32.gmra.mrb[116].mxu0 %vm300_vm1, %v190_v30 }
  0xf7   :  { %834 = vmatmul.mubr.f32.gmra.mrb[90].mxu1 %v149_v21  ;;  %2003 = vmatprep.mubr.msk.f32.mxu0 %vm2290_vm0, %v2291_v6  ;;  %v186_v34 = vld [vmem:[%s4069_s0 + $0x560] sm:$0xff] }
  0xf8   :  { %838 = vmatprep.mubr.f32.mxu1 %v153_v23  ;;  %v183_v23 = vld [vmem:[%s4069_s0 + $0x548] sm:$0xff] }
  0xf9   :  { %v3103_v37 = vpop.f32.mrb[12].mxu0 }
  0xfa   :  { %v1846_v39 = vpop.f32.mrb[13].mxu0  ;;  %2004 = vmatmul.mubr.msk.f32.gmra.mrb[118].mxu0 %vm300_vm1, %v193_v35 }
  0xfb   :  { %839 = vmatmul.mubr.f32.gmra.mrb[92].mxu1 %v152_v26  ;;  %2006 = vmatprep.mubr.msk.f32.mxu0 %vm2290_vm0, %v2291_v6  ;;  %v217_v26 = vld [vmem:[%s4069_s0 + $0x658] sm:$0xff] }
  0xfc   :  { %843 = vmatprep.mubr.f32.mxu1 %v156_v28 }
  0xfd   :  { %v3117_v42 = vpop.f32.mrb[14].mxu0 }
  0xfe   :  { %v1849_v44 = vpop.f32.mrb[15].mxu0  ;;  %2007 = vmatmul.mubr.msk.f32.gmra.mrb[120].mxu0 %vm300_vm1, %v196_v40 }
  0xff   :  { %844 = vmatmul.mubr.f32.gmra.mrb[94].mxu1 %v155_v31  ;;  %2009 = vmatprep.mubr.msk.f32.mxu0 %vm2290_vm0, %v2291_v6 }
 0x100   :  { %848 = vmatprep.mubr.f32.mxu1 %v159_v33 }
 0x101   :  { %v3131_v47 = vpop.f32.mrb[16].mxu0 }
 0x102   :  { %v1852_v49 = vpop.f32.mrb[17].mxu0  ;;  %2010 = vmatmul.mubr.msk.f32.gmra.mrb[122].mxu0 %vm300_vm1, %v199_v45  ;;  %v189_v45 = vld [vmem:[%s4069_s0 + $0x578] sm:$0xff] }
 0x103   :  { %849 = vmatmul.mubr.f32.gmra.mrb[96].mxu1 %v158_v36  ;;  %2012 = vmatprep.mubr.msk.f32.mxu0 %vm2290_vm0, %v2291_v6  ;;  %v223_v49 = vld [vmem:[%s4069_s0 + $0x688] sm:$0xff] }
 0x104   :  { %853 = vmatprep.mubr.f32.mxu1 %v162_v38  ;;  %v220_v38 = vld [vmem:[%s4069_s0 + $0x670] sm:$0xff] }
 0x105   :  { %v3145_v52 = vpop.f32.mrb[18].mxu0 }
 0x106   :  { %v1855_v54 = vpop.f32.mrb[19].mxu0  ;;  %2013 = vmatmul.mubr.msk.f32.gmra.mrb[124].mxu0 %vm300_vm1, %v202_v50 }
 0x107   :  { %854 = vmatmul.mubr.f32.gmra.mrb[98].mxu1 %v161_v41  ;;  %2015 = vmatprep.mubr.msk.f32.mxu0 %vm2290_vm0, %v2291_v6 }
 0x108   :  { %858 = vmatprep.mubr.f32.mxu1 %v165_v43 }
 0x109   :  { %v3159_v57 = vpop.f32.mrb[20].mxu0 }
 0x10a   :  { %v1858_v59 = vpop.f32.mrb[21].mxu0  ;;  %2016 = vmatmul.mubr.msk.f32.gmra.mrb[126].mxu0 %vm300_vm1, %v205_v55 }
 0x10b   :  { %859 = vmatmul.mubr.f32.gmra.mrb[100].mxu1 %v164_v46  ;;  %2018 = vmatprep.mubr.msk.f32.mxu0 %vm2290_vm0, %v2291_v6 }
 0x10c   :  { %863 = vmatprep.mubr.f32.mxu1 %v168_v48 }
 0x10d   :  { %v3178_v63 = vpop.f32.mrb[22].mxu0 }
 0x10e   :  { %v1861_v2 = vpop.f32.mrb[23].mxu0  ;;  %2019 = vmatmul.mubr.msk.f32.gmra.mrb[128].mxu0 %vm300_vm1, %v208_v60  ;;  %v226_v60 = vld [vmem:[%s4069_s0 + $0x6a0] sm:$0xff] }
 0x10f   :  { %864 = vmatmul.mubr.f32.gmra.mrb[102].mxu1 %v167_v51  ;;  %2021 = vmatprep.mubr.msk.f32.mxu0 %vm2290_vm0, %v2291_v6 }
 0x110   :  { %868 = vmatprep.mubr.f32.mxu1 %v171_v53 }
 0x111   :  { %v3193_v9 = vpop.f32.mrb[24].mxu0 }
 0x112   :  { %v1864_v13 = vpop.f32.mrb[25].mxu0  ;;  %2022 = vmatmul.mubr.msk.f32.gmra.mrb[130].mxu0 %vm300_vm1, %v211_v4 }
 0x113   :  { %869 = vmatmul.mubr.f32.gmra.mrb[104].mxu1 %v170_v56  ;;  %2024 = vmatprep.mubr.msk.f32.mxu0 %vm2290_vm0, %v2291_v6  ;;  %v192_v56 = vld [vmem:[%s4069_s0 + $0x590] sm:$0xff] }
 0x114   :  { %873 = vmatprep.mubr.f32.mxu1 %v174_v58 }
 0x115   :  { %v3209_v20 = vpop.f32.mrb[26].mxu0 }
 0x116   :  { %v610_v3 = vpop.f32.mrb[0].mxu1  ;;  %v1867_v24 = vpop.f32.mrb[27].mxu0  ;;  %2025 = vmatmul.mubr.msk.f32.gmra.mrb[132].mxu0 %vm300_vm1, %v214_v15 }
 0x117   :  { %v611_v5 = vadd.f32 %v3173_v61, %v610_v3  ;;  %v612_v7 = vpop.f32.mrb[1].mxu1  ;;  %874 = vmatmul.mubr.f32.gmra.mrb[106].mxu1 %v173_v62  ;;  %2027 = vmatprep.mubr.msk.f32.mxu0 %vm2290_vm0, %v2291_v6 }
 0x118   :  { %878 = vmatprep.mubr.f32.mxu1 %v177_v1 }
 0x119   :  { %v1081_v10 = vadd.f32 %v3019_v8, %v611_v5  ;;  %v3229_v31 = vpop.f32.mrb[28].mxu0  ;;  %v195_v5 = vld [vmem:[%s4069_s0 + $0x5a8] sm:$0xff] }
 0x11a   :  { %v615_v14 = vpop.f32.mrb[2].mxu1  ;;  %v1870_v35 = vpop.f32.mrb[29].mxu0  ;;  %2028 = vmatmul.mubr.msk.f32.gmra.mrb[134].mxu0 %vm300_vm1, %v217_v26 }
 0x11b   :  { %v1484_v16 = vmax.f32 %v1081_v10, 0.0  ;;  %v616_v18 = vadd.f32 %v3173_v61, %v615_v14  ;;  %v617_v8 = vpop.f32.mrb[3].mxu1  ;;  %879 = vmatmul.mubr.f32.gmra.mrb[108].mxu1 %v176_v0  ;;  %2030 = vmatprep.mubr.msk.f32.mxu0 %vm2290_vm0, %v2291_v6  ;;  %v229_v10 = vld [vmem:[%s4069_s0 + $0x6b8] sm:$0xff] }
 0x11c   :  { %883 = vmatprep.mubr.f32.mxu1 %v180_v11 }
 0x11d   :  { %1566 = vst.msk [vmem:[%s4071_s3] sm:$0xff] %vm1565_vm2, %v1484_v16  ;;  %v1086_v21 = vadd.f32 %v3033_v12, %v616_v18  ;;  %v182_v12 = vld [vmem:[%s4069_s0 + $0x540] sm:$0xff]  ;;  %v3249_v43 = vpop.f32.mrb[30].mxu0 }
 0x11e   :  { %v620_v25 = vpop.f32.mrb[4].mxu1  ;;  %v1873_v46 = vpop.f32.mrb[31].mxu0  ;;  %2031 = vmatmul.mubr.msk.f32.gmra.mrb[136].mxu0 %vm300_vm1, %v220_v38  ;;  %v198_v18 = vld [vmem:[%s4069_s0 + $0x5c0] sm:$0xff] }
 0x11f   :  { %v1485_v28 = vmax.f32 %v1086_v21, 0.0  ;;  %v621_v29 = vadd.f32 %v3173_v61, %v620_v25  ;;  %v622_v30 = vpop.f32.mrb[5].mxu1  ;;  %884 = vmatmul.mubr.f32.gmra.mrb[110].mxu1 %v179_v19  ;;  %2033 = vmatprep.mubr.msk.f32.mxu0 %vm2290_vm0, %v2291_v6  ;;  %v232_v21 = vld [vmem:[%s4069_s0 + $0x6d0] sm:$0xff] }
 0x120   :  { %888 = vmatprep.mubr.f32.mxu1 %v183_v23 }
 0x121   :  { %1567 = vst.msk [vmem:[%s4071_s3 + $0x8] sm:$0xff] %vm1565_vm2, %v1485_v28  ;;  %v1091_v33 = vadd.f32 %v3047_v17, %v621_v29  ;;  %v185_v17 = vld [vmem:[%s4069_s0 + $0x558] sm:$0xff]  ;;  %v3269_v54 = vpop.f32.mrb[32].mxu0 }
 0x122   :  { %v625_v36 = vpop.f32.mrb[6].mxu1  ;;  %v1876_v58 = vpop.f32.mrb[33].mxu0  ;;  %2034 = vmatmul.mubr.msk.f32.gmra.mrb[138].mxu0 %vm300_vm1, %v223_v49  ;;  %v201_v29 = vld [vmem:[%s4069_s0 + $0x5d8] sm:$0xff] }
 0x123   :  { %v1486_v39 = vmax.f32 %v1091_v33, 0.0  ;;  %v626_v40 = vadd.f32 %v3173_v61, %v625_v36  ;;  %v627_v41 = vpop.f32.mrb[7].mxu1  ;;  %889 = vmatmul.mubr.f32.gmra.mrb[112].mxu1 %v182_v12  ;;  %2036 = vmatprep.mubr.msk.f32.mxu0 %vm2290_vm0, %v2291_v6  ;;  %v235_v33 = vld [vmem:[%s4069_s0 + $0x6e8] sm:$0xff] }
 0x124   :  { %893 = vmatprep.mubr.f32.mxu1 %v186_v34 }
 0x125   :  { %1568 = vst.msk [vmem:[%s4071_s3 + $0x10] sm:$0xff] %vm1565_vm2, %v1486_v39  ;;  %v1096_v44 = vadd.f32 %v3061_v22, %v626_v40  ;;  %v188_v22 = vld [vmem:[%s4069_s0 + $0x570] sm:$0xff]  ;;  %v3289_v3 = vpop.f32.mrb[34].mxu0 }
 0x126   :  { %v630_v48 = vpop.f32.mrb[8].mxu1  ;;  %v1879_v7 = vpop.f32.mrb[35].mxu0  ;;  %2037 = vmatmul.mubr.msk.f32.gmra.mrb[140].mxu0 %vm300_vm1, %v226_v60  ;;  %v204_v40 = vld [vmem:[%s4069_s0 + $0x5f0] sm:$0xff] }
 0x127   :  { %v1487_v50 = vmax.f32 %v1096_v44, 0.0  ;;  %v631_v51 = vadd.f32 %v3173_v61, %v630_v48  ;;  %v632_v53 = vpop.f32.mrb[9].mxu1  ;;  %894 = vmatmul.mubr.f32.gmra.mrb[114].mxu1 %v185_v17  ;;  %2039 = vmatprep.mubr.msk.f32.mxu0 %vm2290_vm0, %v2291_v6  ;;  %v238_v44 = vld [vmem:[%s4069_s0 + $0x700] sm:$0xff] }
 0x128   :  { %898 = vmatprep.mubr.f32.mxu1 %v189_v45 }
 0x129   :  { %1569 = vst.msk [vmem:[%s4071_s3 + $0x18] sm:$0xff] %vm1565_vm2, %v1487_v50  ;;  %v1101_v55 = vadd.f32 %v3075_v27, %v631_v51  ;;  %v191_v27 = vld [vmem:[%s4069_s0 + $0x588] sm:$0xff]  ;;  %v3309_v15 = vpop.f32.mrb[36].mxu0 }
 0x12a   :  { %v635_v59 = vpop.f32.mrb[10].mxu1  ;;  %v1882_v8 = vpop.f32.mrb[37].mxu0  ;;  %2040 = vmatmul.mubr.msk.f32.gmra.mrb[142].mxu0 %vm300_vm1, %v229_v10  ;;  %v207_v51 = vld [vmem:[%s4069_s0 + $0x608] sm:$0xff] }
 0x12b   :  { %v1488_v62 = vmax.f32 %v1101_v55, 0.0  ;;  %v636_v1 = vadd.f32 %v3173_v61, %v635_v59  ;;  %v637_v2 = vpop.f32.mrb[11].mxu1  ;;  %899 = vmatmul.mubr.f32.gmra.mrb[116].mxu1 %v188_v22  ;;  %2042 = vmatprep.mubr.msk.f32.mxu0 %vm2290_vm0, %v2291_v6  ;;  %v241_v55 = vld [vmem:[%s4069_s0 + $0x718] sm:$0xff] }
 0x12c   :  { %903 = vmatprep.mubr.f32.mxu1 %v192_v56 }
 0x12d   :  { %1570 = vst.msk [vmem:[%s4071_s3 + $0x20] sm:$0xff] %vm1565_vm2, %v1488_v62  ;;  %v1106_v4 = vadd.f32 %v3089_v32, %v636_v1  ;;  %v194_v32 = vld [vmem:[%s4069_s0 + $0x5a0] sm:$0xff]  ;;  %v3329_v26 = vpop.f32.mrb[38].mxu0 }
 0x12e   :  { %v640_v0 = vpop.f32.mrb[12].mxu1  ;;  %v1885_v30 = vpop.f32.mrb[39].mxu0  ;;  %2043 = vmatmul.mubr.msk.f32.gmra.mrb[144].mxu0 %vm300_vm1, %v232_v21  ;;  %v210_v1 = vld [vmem:[%s4069_s0 + $0x620] sm:$0xff] }
 0x12f   :  { %v1489_v11 = vmax.f32 %v1106_v4, 0.0  ;;  %v641_v13 = vadd.f32 %v3173_v61, %v640_v0  ;;  %v642_v14 = vpop.f32.mrb[13].mxu1  ;;  %904 = vmatmul.mubr.f32.gmra.mrb[118].mxu1 %v191_v27  ;;  %2045 = vmatprep.mubr.msk.f32.mxu0 %vm2290_vm0, %v2291_v6  ;;  %v244_v4 = vld [vmem:[%s4069_s0 + $0x730] sm:$0xff] }
 0x130   :  { %908 = vmatprep.mubr.f32.mxu1 %v195_v5 }
 0x131   :  { %1571 = vst.msk [vmem:[%s4071_s3 + $0x28] sm:$0xff] %vm1565_vm2, %v1489_v11  ;;  %v1111_v16 = vadd.f32 %v3103_v37, %v641_v13  ;;  %v197_v37 = vld [vmem:[%s4069_s0 + $0x5b8] sm:$0xff]  ;;  %v3349_v38 = vpop.f32.mrb[40].mxu0 }
 0x132   :  { %v645_v19 = vpop.f32.mrb[14].mxu1  ;;  %v1888_v41 = vpop.f32.mrb[41].mxu0  ;;  %2046 = vmatmul.mubr.msk.f32.gmra.mrb[146].mxu0 %vm300_vm1, %v235_v33  ;;  %v213_v13 = vld [vmem:[%s4069_s0 + $0x638] sm:$0xff] }
 0x133   :  { %v1490_v23 = vmax.f32 %v1111_v16, 0.0  ;;  %v646_v24 = vadd.f32 %v3173_v61, %v645_v19  ;;  %v647_v25 = vpop.f32.mrb[15].mxu1  ;;  %909 = vmatmul.mubr.f32.gmra.mrb[120].mxu1 %v194_v32  ;;  %2048 = vmatprep.mubr.msk.f32.mxu0 %vm2290_vm0, %v2291_v6  ;;  %v247_v16 = vld [vmem:[%s4069_s0 + $0x748] sm:$0xff] }
 0x134   :  { %913 = vmatprep.mubr.f32.mxu1 %v198_v18 }
 0x135   :  { %1572 = vst.msk [vmem:[%s4071_s3 + $0x30] sm:$0xff] %vm1565_vm2, %v1490_v23  ;;  %v1116_v28 = vadd.f32 %v3117_v42, %v646_v24  ;;  %v200_v42 = vld [vmem:[%s4069_s0 + $0x5d0] sm:$0xff]  ;;  %v3369_v49 = vpop.f32.mrb[42].mxu0 }
 0x136   :  { %v650_v12 = vpop.f32.mrb[16].mxu1  ;;  %v1891_v53 = vpop.f32.mrb[43].mxu0  ;;  %2049 = vmatmul.mubr.msk.f32.gmra.mrb[148].mxu0 %vm300_vm1, %v238_v44  ;;  %v216_v24 = vld [vmem:[%s4069_s0 + $0x650] sm:$0xff] }
 0x137   :  { %v1491_v34 = vmax.f32 %v1116_v28, 0.0  ;;  %v651_v35 = vadd.f32 %v3173_v61, %v650_v12  ;;  %v652_v36 = vpop.f32.mrb[17].mxu1  ;;  %914 = vmatmul.mubr.f32.gmra.mrb[122].mxu1 %v197_v37  ;;  %2051 = vmatprep.mubr.msk.f32.mxu0 %vm2290_vm0, %v2291_v6  ;;  %v250_v28 = vld [vmem:[%s4069_s0 + $0x760] sm:$0xff] }
 0x138   :  { %918 = vmatprep.mubr.f32.mxu1 %v201_v29 }
 0x139   :  { %1573 = vst.msk [vmem:[%s4071_s3 + $0x38] sm:$0xff] %vm1565_vm2, %v1491_v34  ;;  %v1121_v39 = vadd.f32 %v3131_v47, %v651_v35  ;;  %v203_v47 = vld [vmem:[%s4069_s0 + $0x5e8] sm:$0xff]  ;;  %v3389_v60 = vpop.f32.mrb[44].mxu0 }
 0x13a   :  { %v655_v17 = vpop.f32.mrb[18].mxu1  ;;  %v1894_v2 = vpop.f32.mrb[45].mxu0  ;;  %2052 = vmatmul.mubr.msk.f32.gmra.mrb[150].mxu0 %vm300_vm1, %v241_v55  ;;  %v219_v35 = vld [vmem:[%s4069_s0 + $0x668] sm:$0xff] }
 0x13b   :  { %v1492_v45 = vmax.f32 %v1121_v39, 0.0  ;;  %v656_v46 = vadd.f32 %v3173_v61, %v655_v17  ;;  %v657_v48 = vpop.f32.mrb[19].mxu1  ;;  %919 = vmatmul.mubr.f32.gmra.mrb[124].mxu1 %v200_v42  ;;  %2054 = vmatprep.mubr.msk.f32.mxu0 %vm2290_vm0, %v2291_v6  ;;  %v253_v39 = vld [vmem:[%s4069_s0 + $0x778] sm:$0xff]  ;;  %v224_v2 = vld [vmem:[%s4069_s0 + $0x690] sm:$0xff] }
 0x13c   :  { %923 = vmatprep.mubr.f32.mxu1 %v204_v40 }
 0x13d   :  { %1574 = vst.msk [vmem:[%s4071_s3 + $0x40] sm:$0xff] %vm1565_vm2, %v1492_v45  ;;  %v1126_v50 = vadd.f32 %v3145_v52, %v656_v46  ;;  %v206_v52 = vld [vmem:[%s4069_s0 + $0x600] sm:$0xff]  ;;  %v3409_v10 = vpop.f32.mrb[46].mxu0 }
 0x13e   :  { %v660_v22 = vpop.f32.mrb[20].mxu1  ;;  %v1897_v14 = vpop.f32.mrb[47].mxu0  ;;  %2055 = vmatmul.mubr.msk.f32.gmra.mrb[152].mxu0 %vm300_vm1, %v244_v4  ;;  %v222_v46 = vld [vmem:[%s4069_s0 + $0x680] sm:$0xff]  ;;  %v228_v4 = vld [vmem:[%s4069_s0 + $0x6b0] sm:$0xff] }
 0x13f   :  { %v1493_v56 = vmax.f32 %v1126_v50, 0.0  ;;  %v661_v58 = vadd.f32 %v3173_v61, %v660_v22  ;;  %v662_v59 = vpop.f32.mrb[21].mxu1  ;;  %924 = vmatmul.mubr.f32.gmra.mrb[126].mxu1 %v203_v47  ;;  %2057 = vmatprep.mubr.msk.f32.mxu0 %vm2290_vm0, %v2291_v6  ;;  %v256_v50 = vld [vmem:[%s4069_s0 + $0x790] sm:$0xff] }
 0x140   :  { %928 = vmatprep.mubr.f32.mxu1 %v207_v51 }
 0x141   :  { %1575 = vst.msk [vmem:[%s4071_s3 + $0x48] sm:$0xff] %vm1565_vm2, %v1493_v56  ;;  %v1131_v62 = vadd.f32 %v3159_v57, %v661_v58  ;;  %v209_v57 = vld [vmem:[%s4069_s0 + $0x618] sm:$0xff]  ;;  %v3429_v21 = vpop.f32.mrb[48].mxu0 }
 0x142   :  { %v665_v27 = vpop.f32.mrb[22].mxu1  ;;  %v1900_v25 = vpop.f32.mrb[49].mxu0  ;;  %2058 = vmatmul.mubr.msk.f32.gmra.mrb[154].mxu0 %vm300_vm1, %v247_v16  ;;  %v225_v56 = vld [vmem:[%s4069_s0 + $0x698] sm:$0xff] }
 0x143   :  { %v1494_v5 = vmax.f32 %v1131_v62, 0.0  ;;  %v666_v7 = vadd.f32 %v3173_v61, %v665_v27  ;;  %v667_v0 = vpop.f32.mrb[23].mxu1  ;;  %929 = vmatmul.mubr.f32.gmra.mrb[128].mxu1 %v206_v52  ;;  %2060 = vmatprep.mubr.msk.f32.mxu0 %vm2290_vm0, %v2291_v6  ;;  %v234_v25 = vld [vmem:[%s4069_s0 + $0x6e0] sm:$0xff] }
 0x144   :  { %933 = vmatprep.mubr.f32.mxu1 %v210_v1 }
 0x145   :  { %1576 = vst.msk [vmem:[%s4071_s3 + $0x50] sm:$0xff] %vm1565_vm2, %v1494_v5  ;;  %v1136_v11 = vadd.f32 %v3178_v63, %v666_v7  ;;  %v212_v63 = vld [vmem:[%s4069_s0 + $0x630] sm:$0xff]  ;;  %v3449_v33 = vpop.f32.mrb[50].mxu0 }
 0x146   :  { %v670_v32 = vpop.f32.mrb[24].mxu1  ;;  %v1903_v36 = vpop.f32.mrb[51].mxu0  ;;  %2061 = vmatmul.mubr.msk.f32.gmra.mrb[156].mxu0 %vm300_vm1, %v250_v28 }
 0x147   :  { %v1495_v18 = vmax.f32 %v1136_v11, 0.0  ;;  %v671_v8 = vadd.f32 %v3173_v61, %v670_v32  ;;  %v672_v19 = vpop.f32.mrb[25].mxu1  ;;  %934 = vmatmul.mubr.f32.gmra.mrb[130].mxu1 %v209_v57  ;;  %2063 = vmatprep.mubr.msk.f32.mxu0 %vm2290_vm0, %v2291_v6  ;;  %v231_v32 = vld [vmem:[%s4069_s0 + $0x6c8] sm:$0xff] }
 0x148   :  { %938 = vmatprep.mubr.f32.mxu1 %v213_v13  ;;  %v227_v13 = vld [vmem:[%s4069_s0 + $0x6a8] sm:$0xff] }
 0x149   :  { %1577 = vst.msk [vmem:[%s4071_s3 + $0x58] sm:$0xff] %vm1565_vm2, %v1495_v18  ;;  %v1141_v23 = vadd.f32 %v3193_v9, %v671_v8  ;;  %v215_v9 = vld [vmem:[%s4069_s0 + $0x648] sm:$0xff]  ;;  %v3469_v44 = vpop.f32.mrb[52].mxu0 }
 0x14a   :  { %v675_v37 = vpop.f32.mrb[26].mxu1  ;;  %v1906_v48 = vpop.f32.mrb[53].mxu0  ;;  %2064 = vmatmul.mubr.msk.f32.gmra.mrb[158].mxu0 %vm300_vm1, %v253_v39 }
 0x14b   :  { %v1496_v29 = vmax.f32 %v1141_v23, 0.0  ;;  %v676_v30 = vadd.f32 %v3173_v61, %v675_v37  ;;  %v677_v12 = vpop.f32.mrb[27].mxu1  ;;  %939 = vmatmul.mubr.f32.gmra.mrb[132].mxu1 %v212_v63  ;;  %2066 = vmatprep.mubr.msk.f32.mxu0 %vm2290_vm0, %v2291_v6  ;;  %v230_v23 = vld [vmem:[%s4069_s0 + $0x6c0] sm:$0xff] }
 0x14c   :  { %943 = vmatprep.mubr.f32.mxu1 %v216_v24 }
 0x14d   :  { %1578 = vst.msk [vmem:[%s4071_s3 + $0x60] sm:$0xff] %vm1565_vm2, %v1496_v29  ;;  %v1146_v34 = vadd.f32 %v3209_v20, %v676_v30  ;;  %v218_v20 = vld [vmem:[%s4069_s0 + $0x660] sm:$0xff]  ;;  %v3489_v55 = vpop.f32.mrb[54].mxu0 }
 0x14e   :  { %v680_v42 = vpop.f32.mrb[28].mxu1  ;;  %v1909_v58 = vpop.f32.mrb[55].mxu0  ;;  %2067 = vmatmul.mubr.msk.f32.gmra.mrb[160].mxu0 %vm300_vm1, %v256_v50 }
 0x14f   :  { %v1497_v40 = vmax.f32 %v1146_v34, 0.0  ;;  %v681_v41 = vadd.f32 %v3173_v61, %v680_v42  ;;  %v682_v17 = vpop.f32.mrb[29].mxu1  ;;  %944 = vmatmul.mubr.f32.gmra.mrb[134].mxu1 %v215_v9  ;;  %v233_v9 = vld [vmem:[%s4069_s0 + $0x6d8] sm:$0xff] }
 0x150   :  { %948 = vmatprep.mubr.f32.mxu1 %v219_v35  ;;  %v237_v35 = vld [vmem:[%s4069_s0 + $0x6f8] sm:$0xff]  ;;  %v236_v17 = vld [vmem:[%s4069_s0 + $0x6f0] sm:$0xff] }
 0x151   :  { %1579 = vst.msk [vmem:[%s4071_s3 + $0x68] sm:$0xff] %vm1565_vm2, %v1497_v40  ;;  %v1151_v45 = vadd.f32 %v3229_v31, %v681_v41  ;;  %v221_v31 = vld [vmem:[%s4069_s0 + $0x678] sm:$0xff]  ;;  %v3504_v27 = vpop.f32.mrb[56].mxu0 }
 0x152   :  { %v685_v47 = vpop.f32.mrb[30].mxu1  ;;  %v1912_v5 = vpop.f32.mrb[57].mxu0 }
 0x153   :  { %v1498_v51 = vmax.f32 %v1151_v45, 0.0  ;;  %v686_v53 = vadd.f32 %v3173_v61, %v685_v47  ;;  %v687_v22 = vpop.f32.mrb[31].mxu1  ;;  %949 = vmatmul.mubr.f32.gmra.mrb[136].mxu1 %v218_v20  ;;  %v240_v45 = vld [vmem:[%s4069_s0 + $0x710] sm:$0xff] }
 0x154   :  { %953 = vmatprep.mubr.f32.mxu1 %v222_v46 }
 0x155   :  { %1580 = vst.msk [vmem:[%s4071_s3 + $0x70] sm:$0xff] %vm1565_vm2, %v1498_v51  ;;  %v1156_v6 = vadd.f32 %v3249_v43, %v686_v53  ;;  %v3518_v14 = vpop.f32.mrb[58].mxu0  ;;  %v239_v53 = vld [vmem:[%s4069_s0 + $0x708] sm:$0xff] }
 0x156   :  { %v690_v59 = vpop.f32.mrb[32].mxu1  ;;  %v1915_v16 = vpop.f32.mrb[59].mxu0 }
 0x157   :  { %v1499_v52 = vmax.f32 %v1156_v6, 0.0  ;;  %v691_v62 = vadd.f32 %v3173_v61, %v690_v59  ;;  %v692_v1 = vpop.f32.mrb[33].mxu1  ;;  %954 = vmatmul.mubr.f32.gmra.mrb[138].mxu1 %v221_v31  ;;  %v243_v31 = vld [vmem:[%s4069_s0 + $0x728] sm:$0xff] }
 0x158   :  { %958 = vmatprep.mubr.f32.mxu1 %v225_v56 }
 0x159   :  { %1581 = vst.msk [vmem:[%s4071_s3 + $0x78] sm:$0xff] %vm1565_vm2, %v1499_v52  ;;  %v1161_v43 = vadd.f32 %v3269_v54, %v691_v62  ;;  %v3532_v24 = vpop.f32.mrb[60].mxu0  ;;  %v242_v62 = vld [vmem:[%s4069_s0 + $0x720] sm:$0xff] }
 0x15a   :  { %v695_v7 = vpop.f32.mrb[34].mxu1  ;;  %v1918_v37 = vpop.f32.mrb[61].mxu0 }
 0x15b   :  { %v1500_v0 = vmax.f32 %v1161_v43, 0.0  ;;  %v696_v57 = vadd.f32 %v3173_v61, %v695_v7  ;;  %v697_v11 = vpop.f32.mrb[35].mxu1  ;;  %959 = vmatmul.mubr.f32.gmra.mrb[140].mxu1 %v224_v2  ;;  %v246_v2 = vld [vmem:[%s4069_s0 + $0x740] sm:$0xff] }
 0x15c   :  { %963 = vmatprep.mubr.f32.mxu1 %v228_v4 }
 0x15d   :  { %1582 = vst.msk [vmem:[%s4071_s3 + $0x80] sm:$0xff] %vm1565_vm2, %v1500_v0  ;;  %v1166_v54 = vadd.f32 %v3289_v3, %v696_v57  ;;  %v3546_v34 = vpop.f32.mrb[62].mxu0  ;;  %v245_v57 = vld [vmem:[%s4069_s0 + $0x738] sm:$0xff] }
 0x15e   :  { %v700_v18 = vpop.f32.mrb[36].mxu1  ;;  %v1921_v36 = vpop.f32.mrb[63].mxu0 }
 0x15f   :  { %v1501_v8 = vmax.f32 %v1166_v54, 0.0  ;;  %v701_v19 = vadd.f32 %v3173_v61, %v700_v18  ;;  %v702_v63 = vpop.f32.mrb[37].mxu1  ;;  %964 = vmatmul.mubr.f32.gmra.mrb[142].mxu1 %v227_v13  ;;  %v249_v13 = vld [vmem:[%s4069_s0 + $0x758] sm:$0xff] }
 0x160   :  { %968 = vmatprep.mubr.f32.mxu1 %v231_v32 }
 0x161   :  { %1583 = vst.msk [vmem:[%s4071_s3 + $0x88] sm:$0xff] %vm1565_vm2, %v1501_v8  ;;  %v1171_v3 = vadd.f32 %v3309_v15, %v701_v19  ;;  %v3560_v20 = vpop.f32.mrb[64].mxu0  ;;  %v248_v19 = vld [vmem:[%s4069_s0 + $0x750] sm:$0xff] }
 0x162   :  { %v705_v28 = vpop.f32.mrb[38].mxu1  ;;  %v1924_v46 = vpop.f32.mrb[65].mxu0 }
 0x163   :  { %v1502_v29 = vmax.f32 %v1171_v3, 0.0  ;;  %v706_v30 = vadd.f32 %v3173_v61, %v705_v28  ;;  %v707_v12 = vpop.f32.mrb[39].mxu1  ;;  %969 = vmatmul.mubr.f32.gmra.mrb[144].mxu1 %v230_v23  ;;  %v252_v23 = vld [vmem:[%s4069_s0 + $0x770] sm:$0xff] }
 0x164   :  { %973 = vmatprep.mubr.f32.mxu1 %v234_v25 }
 0x165   :  { %1584 = vst.msk [vmem:[%s4071_s3 + $0x90] sm:$0xff] %vm1565_vm2, %v1502_v29  ;;  %v1176_v15 = vadd.f32 %v3329_v26, %v706_v30  ;;  %v3574_v22 = vpop.f32.mrb[66].mxu0  ;;  %v251_v30 = vld [vmem:[%s4069_s0 + $0x768] sm:$0xff] }
 0x166   :  { %v710_v42 = vpop.f32.mrb[40].mxu1  ;;  %v1927_v6 = vpop.f32.mrb[67].mxu0 }
 0x167   :  { %v1503_v39 = vmax.f32 %v1176_v15, 0.0  ;;  %v711_v40 = vadd.f32 %v3173_v61, %v710_v42  ;;  %v712_v41 = vpop.f32.mrb[41].mxu1  ;;  %974 = vmatmul.mubr.f32.gmra.mrb[146].mxu1 %v233_v9  ;;  %v255_v9 = vld [vmem:[%s4069_s0 + $0x788] sm:$0xff] }
 0x168   :  { %978 = vmatprep.mubr.f32.mxu1 %v237_v35 }
 0x169   :  { %1585 = vst.msk [vmem:[%s4071_s3 + $0x98] sm:$0xff] %vm1565_vm2, %v1503_v39  ;;  %v1181_v26 = vadd.f32 %v3349_v38, %v711_v40  ;;  %v3588_v1 = vpop.f32.mrb[68].mxu0  ;;  %v254_v40 = vld [vmem:[%s4069_s0 + $0x780] sm:$0xff] }
 0x16a   :  { %v715_v48 = vpop.f32.mrb[42].mxu1  ;;  %v1930_v43 = vpop.f32.mrb[69].mxu0 }
 0x16b   :  { %v1504_v47 = vmax.f32 %v1181_v26, 0.0  ;;  %v716_v50 = vadd.f32 %v3173_v61, %v715_v48  ;;  %v717_v51 = vpop.f32.mrb[43].mxu1  ;;  %979 = vmatmul.mubr.f32.gmra.mrb[148].mxu1 %v236_v17 }
 0x16c   :  { %983 = vmatprep.mubr.f32.mxu1 %v240_v45 }
 0x16d   :  { %1586 = vst.msk [vmem:[%s4071_s3 + $0xa0] sm:$0xff] %vm1565_vm2, %v1504_v47  ;;  %v1186_v38 = vadd.f32 %v3369_v49, %v716_v50  ;;  %v3602_v11 = vpop.f32.mrb[70].mxu0 }
 0x16e   :  { %v720_v56 = vpop.f32.mrb[44].mxu1  ;;  %v1933_v54 = vpop.f32.mrb[71].mxu0 }
 0x16f   :  { %v1505_v58 = vmax.f32 %v1186_v38, 0.0  ;;  %v721_v59 = vadd.f32 %v3173_v61, %v720_v56  ;;  %v722_v52 = vpop.f32.mrb[45].mxu1  ;;  %984 = vmatmul.mubr.f32.gmra.mrb[150].mxu1 %v239_v53 }
 0x170   :  { %988 = vmatprep.mubr.f32.mxu1 %v243_v31 }
 0x171   :  { %1587 = vst.msk [vmem:[%s4071_s3 + $0xa8] sm:$0xff] %vm1565_vm2, %v1505_v58  ;;  %v1191_v49 = vadd.f32 %v3389_v60, %v721_v59  ;;  %v3616_v63 = vpop.f32.mrb[72].mxu0 }
 0x172   :  { %v725_v4 = vpop.f32.mrb[46].mxu1  ;;  %v1936_v3 = vpop.f32.mrb[73].mxu0 }
 0x173   :  { %v1506_v5 = vmax.f32 %v1191_v49, 0.0  ;;  %v726_v7 = vadd.f32 %v3173_v61, %v725_v4  ;;  %v727_v0 = vpop.f32.mrb[47].mxu1  ;;  %989 = vmatmul.mubr.f32.gmra.mrb[152].mxu1 %v242_v62 }
 0x174   :  { %993 = vmatprep.mubr.f32.mxu1 %v246_v2 }
 0x175   :  { %1588 = vst.msk [vmem:[%s4071_s3 + $0xb0] sm:$0xff] %vm1565_vm2, %v1506_v5  ;;  %v1196_v60 = vadd.f32 %v3409_v10, %v726_v7  ;;  %v3630_v12 = vpop.f32.mrb[74].mxu0 }
 0x176   :  { %v730_v32 = vpop.f32.mrb[48].mxu1  ;;  %v1939_v15 = vpop.f32.mrb[75].mxu0 }
 0x177   :  { %v1507_v16 = vmax.f32 %v1196_v60, 0.0  ;;  %v731_v18 = vadd.f32 %v3173_v61, %v730_v32  ;;  %v732_v8 = vpop.f32.mrb[49].mxu1  ;;  %994 = vmatmul.mubr.f32.gmra.mrb[154].mxu1 %v245_v57 }
 0x178   :  { %998 = vmatprep.mubr.f32.mxu1 %v249_v13 }
 0x179   :  { %1589 = vst.msk [vmem:[%s4071_s3 + $0xb8] sm:$0xff] %vm1565_vm2, %v1507_v16  ;;  %v1201_v10 = vadd.f32 %v3429_v21, %v731_v18  ;;  %v3644_v41 = vpop.f32.mrb[76].mxu0 }
 0x17a   :  { %v735_v25 = vpop.f32.mrb[50].mxu1  ;;  %v1942_v17 = vpop.f32.mrb[77].mxu0 }
 0x17b   :  { %v1508_v37 = vmax.f32 %v1201_v10, 0.0  ;;  %v736_v28 = vadd.f32 %v3173_v61, %v735_v25  ;;  %v737_v29 = vpop.f32.mrb[51].mxu1  ;;  %999 = vmatmul.mubr.f32.gmra.mrb[156].mxu1 %v248_v19 }
 0x17c   :  { %1003 = vmatprep.mubr.f32.mxu1 %v252_v23 }
 0x17d   :  { %1590 = vst.msk [vmem:[%s4071_s3 + $0xc0] sm:$0xff] %vm1565_vm2, %v1508_v37  ;;  %v1206_v21 = vadd.f32 %v3449_v33, %v736_v28  ;;  %v3652_v47 = vpop.f32.mrb[78].mxu0 }
 0x17e   :  { %v740_v35 = vpop.f32.mrb[52].mxu1  ;;  %v1945_v51 = vpop.f32.mrb[79].mxu0 }
 0x17f   :  { %v1509_v36 = vmax.f32 %v1206_v21, 0.0  ;;  %v741_v42 = vadd.f32 %v3173_v61, %v740_v35  ;;  %v742_v39 = vpop.f32.mrb[53].mxu1  ;;  %1004 = vmatmul.mubr.f32.gmra.mrb[158].mxu1 %v251_v30 }
 0x180   :  { %1008 = vmatprep.mubr.f32.mxu1 %v255_v9 }
 0x181   :  { %1591 = vst.msk [vmem:[%s4071_s3 + $0xc8] sm:$0xff] %vm1565_vm2, %v1509_v36  ;;  %v1211_v33 = vadd.f32 %v3469_v44, %v741_v42  ;;  %v3660_v6 = vpop.f32.mrb[80].mxu0 }
 0x182   :  { %v745_v26 = vpop.f32.mrb[54].mxu1  ;;  %v1948_v58 = vpop.f32.mrb[81].mxu0 }
 0x183   :  { %v1510_v45 = vmax.f32 %v1211_v33, 0.0  ;;  %v746_v46 = vadd.f32 %v3173_v61, %v745_v26  ;;  %v747_v48 = vpop.f32.mrb[55].mxu1  ;;  %1009 = vmatmul.mubr.f32.gmra.mrb[160].mxu1 %v254_v40 }
 0x185   :  { %1592 = vst.msk [vmem:[%s4071_s3 + $0xd0] sm:$0xff] %vm1565_vm2, %v1510_v45  ;;  %v1216_v50 = vadd.f32 %v3489_v55, %v746_v46  ;;  %v3668_v49 = vpop.f32.mrb[82].mxu0 }
 0x186   :  { %v750_v53 = vpop.f32.mrb[56].mxu1  ;;  %v1951_v43 = vpop.f32.mrb[83].mxu0 }
 0x187   :  { %v1511_v38 = vmax.f32 %v1216_v50, 0.0  ;;  %v751_v44 = vadd.f32 %v3173_v61, %v750_v53  ;;  %v752_v31 = vpop.f32.mrb[57].mxu1 }
 0x189   :  { %1593 = vst.msk [vmem:[%s4071_s3 + $0xd8] sm:$0xff] %vm1565_vm2, %v1511_v38  ;;  %v1221_v56 = vadd.f32 %v3504_v27, %v751_v44  ;;  %v3676_v0 = vpop.f32.mrb[84].mxu0 }
 0x18a   :  { %v755_v59 = vpop.f32.mrb[58].mxu1  ;;  %v1954_v60 = vpop.f32.mrb[85].mxu0 }
 0x18b   :  { %v1512_v52 = vmax.f32 %v1221_v56, 0.0  ;;  %v756_v55 = vadd.f32 %v3173_v61, %v755_v59  ;;  %v757_v62 = vpop.f32.mrb[59].mxu1 }
 0x18d   :  { %1594 = vst.msk [vmem:[%s4071_s3 + $0xe0] sm:$0xff] %vm1565_vm2, %v1512_v52  ;;  %v1226_v2 = vadd.f32 %v3518_v14, %v756_v55  ;;  %v3684_v16 = vpop.f32.mrb[86].mxu0 }
 0x18e   :  { %v760_v4 = vpop.f32.mrb[60].mxu1  ;;  %v1957_v8 = vpop.f32.mrb[87].mxu0 }
 0x18f   :  { %v1513_v5 = vmax.f32 %v1226_v2, 0.0  ;;  %v761_v27 = vadd.f32 %v3173_v61, %v760_v4  ;;  %v762_v7 = vpop.f32.mrb[61].mxu1 }
 0x191   :  { %1595 = vst.msk [vmem:[%s4071_s3 + $0xe8] sm:$0xff] %vm1565_vm2, %v1513_v5  ;;  %v1231_v57 = vadd.f32 %v3532_v24, %v761_v27  ;;  %v3692_v3 = vpop.f32.mrb[88].mxu0 }
 0x192   :  { %v765_v13 = vpop.f32.mrb[62].mxu1  ;;  %v1960_v37 = vpop.f32.mrb[89].mxu0 }
 0x193   :  { %v1514_v54 = vmax.f32 %v1231_v57, 0.0  ;;  %v766_v14 = vadd.f32 %v3173_v61, %v765_v13  ;;  %v767_v32 = vpop.f32.mrb[63].mxu1 }
 0x195   :  { %1596 = vst.msk [vmem:[%s4071_s3 + $0xf0] sm:$0xff] %vm1565_vm2, %v1514_v54  ;;  %v1236_v18 = vadd.f32 %v3546_v34, %v766_v14  ;;  %v3700_v21 = vpop.f32.mrb[90].mxu0 }
 0x196   :  { %v770_v19 = vpop.f32.mrb[64].mxu1  ;;  %v1963_v15 = vpop.f32.mrb[91].mxu0 }
 0x197   :  { %v1515_v10 = vmax.f32 %v1236_v18, 0.0  ;;  %v771_v24 = vadd.f32 %v3173_v61, %v770_v19  ;;  %v772_v23 = vpop.f32.mrb[65].mxu1 }
 0x199   :  { %1597 = vst.msk [vmem:[%s4071_s3 + $0xf8] sm:$0xff] %vm1565_vm2, %v1515_v10  ;;  %v1241_v25 = vadd.f32 %v3560_v20, %v771_v24  ;;  %v3708_v39 = vpop.f32.mrb[92].mxu0 }
 0x19a   :  { %v775_v28 = vpop.f32.mrb[66].mxu1  ;;  %v1966_v33 = vpop.f32.mrb[93].mxu0 }
 0x19b   :  { %v1516_v29 = vmax.f32 %v1241_v25, 0.0  ;;  %v776_v34 = vadd.f32 %v3173_v61, %v775_v28  ;;  %v777_v30 = vpop.f32.mrb[67].mxu1 }
 0x19d   :  { %1598 = vst.msk [vmem:[%s4071_s3 + $0x100] sm:$0xff] %vm1565_vm2, %v1516_v29  ;;  %v1246_v9 = vadd.f32 %v3574_v22, %v776_v34  ;;  %v3716_v46 = vpop.f32.mrb[94].mxu0 }
 0x19e   :  { %v780_v35 = vpop.f32.mrb[68].mxu1  ;;  %v1969_v50 = vpop.f32.mrb[95].mxu0 }
 0x19f   :  { %v1517_v36 = vmax.f32 %v1246_v9, 0.0  ;;  %v781_v20 = vadd.f32 %v3173_v61, %v780_v35  ;;  %v782_v42 = vpop.f32.mrb[69].mxu1 }
 0x1a1   :  { %1599 = vst.msk [vmem:[%s4071_s3 + $0x108] sm:$0xff] %vm1565_vm2, %v1517_v36  ;;  %v1251_v40 = vadd.f32 %v3588_v1, %v781_v20  ;;  %v3724_v44 = vpop.f32.mrb[96].mxu0 }
 0x1a2   :  { %v785_v17 = vpop.f32.mrb[70].mxu1  ;;  %v1972_v56 = vpop.f32.mrb[97].mxu0 }
 0x1a3   :  { %v1518_v26 = vmax.f32 %v1251_v40, 0.0  ;;  %v786_v22 = vadd.f32 %v3173_v61, %v785_v17  ;;  %v787_v45 = vpop.f32.mrb[71].mxu1 }
 0x1a5   :  { %1600 = vst.msk [vmem:[%s4071_s3 + $0x110] sm:$0xff] %vm1565_vm2, %v1518_v26  ;;  %v1256_v48 = vadd.f32 %v3602_v11, %v786_v22  ;;  %v3732_v55 = vpop.f32.mrb[98].mxu0 }
 0x1a6   :  { %v790_v51 = vpop.f32.mrb[72].mxu1  ;;  %v1975_v2 = vpop.f32.mrb[99].mxu0 }
 0x1a7   :  { %v1519_v53 = vmax.f32 %v1256_v48, 0.0  ;;  %v791_v1 = vadd.f32 %v3173_v61, %v790_v51  ;;  %v792_v38 = vpop.f32.mrb[73].mxu1 }
 0x1a9   :  { %1601 = vst.msk [vmem:[%s4071_s3 + $0x118] sm:$0xff] %vm1565_vm2, %v1519_v53  ;;  %v1261_v31 = vadd.f32 %v3616_v63, %v791_v1  ;;  %v3740_v27 = vpop.f32.mrb[100].mxu0 }
 0x1aa   :  { %v795_v58 = vpop.f32.mrb[74].mxu1  ;;  %v1978_v57 = vpop.f32.mrb[101].mxu0 }
 0x1ab   :  { %v1520_v59 = vmax.f32 %v1261_v31, 0.0  ;;  %v796_v11 = vadd.f32 %v3173_v61, %v795_v58  ;;  %v797_v52 = vpop.f32.mrb[75].mxu1 }
 0x1ad   :  { %1602 = vst.msk [vmem:[%s4071_s3 + $0x120] sm:$0xff] %vm1565_vm2, %v1520_v59  ;;  %v1266_v62 = vadd.f32 %v3630_v12, %v796_v11  ;;  %v3748_v14 = vpop.f32.mrb[102].mxu0 }
 0x1ae   :  { %v800_v43 = vpop.f32.mrb[76].mxu1  ;;  %v1981_v18 = vpop.f32.mrb[103].mxu0 }
 0x1af   :  { %v1521_v4 = vmax.f32 %v1266_v62, 0.0  ;;  %v801_v63 = vadd.f32 %v3173_v61, %v800_v43  ;;  %v802_v5 = vpop.f32.mrb[77].mxu1 }
 0x1b1   :  { %1603 = vst.msk [vmem:[%s4071_s3 + $0x128] sm:$0xff] %vm1565_vm2, %v1521_v4  ;;  %v1271_v7 = vadd.f32 %v3644_v41, %v801_v63  ;;  %v3756_v24 = vpop.f32.mrb[104].mxu0 }
 0x1b2   :  { %v805_v60 = vpop.f32.mrb[78].mxu1  ;;  %v1984_v25 = vpop.f32.mrb[105].mxu0 }
 0x1b3   :  { %v1522_v13 = vmax.f32 %v1271_v7, 0.0  ;;  %v806_v12 = vadd.f32 %v3173_v61, %v805_v60  ;;  %v807_v54 = vpop.f32.mrb[79].mxu1 }
 0x1b5   :  { %1604 = vst.msk [vmem:[%s4071_s3 + $0x130] sm:$0xff] %vm1565_vm2, %v1522_v13  ;;  %v1276_v32 = vadd.f32 %v3652_v47, %v806_v12  ;;  %v3764_v34 = vpop.f32.mrb[106].mxu0 }
 0x1b6   :  { %v810_v8 = vpop.f32.mrb[80].mxu1  ;;  %v1987_v9 = vpop.f32.mrb[107].mxu0 }
 0x1b7   :  { %v1523_v19 = vmax.f32 %v1276_v32, 0.0  ;;  %v811_v41 = vadd.f32 %v3173_v61, %v810_v8  ;;  %v812_v10 = vpop.f32.mrb[81].mxu1 }
 0x1b9   :  { %1605 = vst.msk [vmem:[%s4071_s3 + $0x138] sm:$0xff] %vm1565_vm2, %v1523_v19  ;;  %v1281_v23 = vadd.f32 %v3660_v6, %v811_v41  ;;  %v3772_v20 = vpop.f32.mrb[108].mxu0 }
 0x1ba   :  { %v815_v37 = vpop.f32.mrb[82].mxu1  ;;  %v1990_v40 = vpop.f32.mrb[109].mxu0 }
 0x1bb   :  { %v1524_v28 = vmax.f32 %v1281_v23, 0.0  ;;  %v816_v47 = vadd.f32 %v3173_v61, %v815_v37  ;;  %v817_v29 = vpop.f32.mrb[83].mxu1 }
 0x1bd   :  { %1606 = vst.msk [vmem:[%s4071_s3 + $0x140] sm:$0xff] %vm1565_vm2, %v1524_v28  ;;  %v1286_v30 = vadd.f32 %v3668_v49, %v816_v47  ;;  %v3780_v22 = vpop.f32.mrb[110].mxu0 }
 0x1be   :  { %v820_v15 = vpop.f32.mrb[84].mxu1  ;;  %v1993_v48 = vpop.f32.mrb[111].mxu0 }
 0x1bf   :  { %v1525_v35 = vmax.f32 %v1286_v30, 0.0  ;;  %v821_v6 = vadd.f32 %v3173_v61, %v820_v15  ;;  %v822_v36 = vpop.f32.mrb[85].mxu1 }
 0x1c1   :  { %1607 = vst.msk [vmem:[%s4071_s3 + $0x148] sm:$0xff] %vm1565_vm2, %v1525_v35  ;;  %v1291_v42 = vadd.f32 %v3676_v0, %v821_v6  ;;  %v3790_v0 = vld [vmem:[%s4070_s2] ss:$0 sm:$0xff]  ;;  %v3793_v1 = vpop.f32.mrb[112].mxu0 }
 0x1c2   :  { %v825_v33 = vpop.f32.mrb[86].mxu1  ;;  %v1996_v38 = vpop.f32.mrb[113].mxu0 }
 0x1c3   :  { %v1526_v17 = vmax.f32 %v1291_v42, 0.0  ;;  %v826_v49 = vadd.f32 %v3173_v61, %v825_v33  ;;  %v827_v26 = vpop.f32.mrb[87].mxu1 }
 0x1c5   :  { %1608 = vst.msk [vmem:[%s4071_s3 + $0x150] sm:$0xff] %vm1565_vm2, %v1526_v17  ;;  %v1296_v45 = vadd.f32 %v3684_v16, %v826_v49  ;;  %v3801_v11 = vpop.f32.mrb[114].mxu0 }
 0x1c6   :  { %v830_v50 = vpop.f32.mrb[88].mxu1  ;;  %v1999_v62 = vpop.f32.mrb[115].mxu0 }
 0x1c7   :  { %v1527_v51 = vmax.f32 %v1296_v45, 0.0  ;;  %v831_v61 = vadd.f32 %v3790_v0, %v830_v50  ;;  %v832_v53 = vpop.f32.mrb[89].mxu1 }
 0x1c9   :  { %1609 = vst.msk [vmem:[%s4071_s3 + $0x158] sm:$0xff] %vm1565_vm2, %v1527_v51  ;;  %v1301_v16 = vadd.f32 %v3692_v3, %v831_v61  ;;  %v3809_v63 = vpop.f32.mrb[116].mxu0 }
 0x1ca   :  { %v835_v31 = vpop.f32.mrb[90].mxu1  ;;  %v2002_v7 = vpop.f32.mrb[117].mxu0 }
 0x1cb   :  { %v1528_v56 = vmax.f32 %v1301_v16, 0.0  ;;  %v836_v58 = vadd.f32 %v3790_v0, %v835_v31  ;;  %v837_v59 = vpop.f32.mrb[91].mxu1 }
 0x1cd   :  { %1610 = vst.msk [vmem:[%s4071_s3 + $0x160] sm:$0xff] %vm1565_vm2, %v1528_v56  ;;  %v1306_v52 = vadd.f32 %v3700_v21, %v836_v58  ;;  %v3817_v12 = vpop.f32.mrb[118].mxu0 }
 0x1ce   :  { %v840_v2 = vpop.f32.mrb[92].mxu1  ;;  %v2005_v32 = vpop.f32.mrb[119].mxu0 }
 0x1cf   :  { %v1529_v43 = vmax.f32 %v1306_v52, 0.0  ;;  %v841_v3 = vadd.f32 %v3790_v0, %v840_v2  ;;  %v842_v4 = vpop.f32.mrb[93].mxu1 }
 0x1d1   :  { %1611 = vst.msk [vmem:[%s4071_s3 + $0x168] sm:$0xff] %vm1565_vm2, %v1529_v43  ;;  %v1311_v5 = vadd.f32 %v3708_v39, %v841_v3  ;;  %v3825_v41 = vpop.f32.mrb[120].mxu0 }
 0x1d2   :  { %v845_v57 = vpop.f32.mrb[94].mxu1  ;;  %v2008_v23 = vpop.f32.mrb[121].mxu0 }
 0x1d3   :  { %v1530_v60 = vmax.f32 %v1311_v5, 0.0  ;;  %v846_v21 = vadd.f32 %v3790_v0, %v845_v57  ;;  %v847_v13 = vpop.f32.mrb[95].mxu1 }
 0x1d5   :  { %1612 = vst.msk [vmem:[%s4071_s3 + $0x170] sm:$0xff] %vm1565_vm2, %v1530_v60  ;;  %v1316_v54 = vadd.f32 %v3716_v46, %v846_v21  ;;  %v3833_v47 = vpop.f32.mrb[122].mxu0 }
 0x1d6   :  { %v850_v18 = vpop.f32.mrb[96].mxu1  ;;  %v2011_v30 = vpop.f32.mrb[123].mxu0 }
 0x1d7   :  { %v1531_v8 = vmax.f32 %v1316_v54, 0.0  ;;  %v851_v39 = vadd.f32 %v3790_v0, %v850_v18  ;;  %v852_v19 = vpop.f32.mrb[97].mxu1 }
 0x1d9   :  { %1613 = vst.msk [vmem:[%s4071_s3 + $0x178] sm:$0xff] %vm1565_vm2, %v1531_v8  ;;  %v1321_v10 = vadd.f32 %v3724_v44, %v851_v39  ;;  %v3841_v6 = vpop.f32.mrb[124].mxu0 }
 0x1da   :  { %v855_v25 = vpop.f32.mrb[98].mxu1  ;;  %v2014_v42 = vpop.f32.mrb[125].mxu0 }
 0x1db   :  { %v1532_v37 = vmax.f32 %v1321_v10, 0.0  ;;  %v856_v46 = vadd.f32 %v3790_v0, %v855_v25  ;;  %v857_v28 = vpop.f32.mrb[99].mxu1 }
 0x1dd   :  { %1614 = vst.msk [vmem:[%s4071_s3 + $0x180] sm:$0xff] %vm1565_vm2, %v1532_v37  ;;  %v1326_v29 = vadd.f32 %v3732_v55, %v856_v46  ;;  %v3849_v49 = vpop.f32.mrb[126].mxu0 }
 0x1de   :  { %v860_v9 = vpop.f32.mrb[100].mxu1  ;;  %v2017_v45 = vpop.f32.mrb[127].mxu0 }
 0x1df   :  { %v1533_v15 = vmax.f32 %v1326_v29, 0.0  ;;  %v861_v44 = vadd.f32 %v3790_v0, %v860_v9  ;;  %v862_v35 = vpop.f32.mrb[101].mxu1 }
 0x1e1   :  { %1615 = vst.msk [vmem:[%s4071_s3 + $0x188] sm:$0xff] %vm1565_vm2, %v1533_v15  ;;  %v1331_v36 = vadd.f32 %v3740_v27, %v861_v44  ;;  %v3857_v61 = vpop.f32.mrb[128].mxu0 }
 0x1e2   :  { %v865_v40 = vpop.f32.mrb[102].mxu1  ;;  %v2020_v16 = vpop.f32.mrb[129].mxu0 }
 0x1e3   :  { %v1534_v33 = vmax.f32 %v1331_v36, 0.0  ;;  %v866_v55 = vadd.f32 %v3790_v0, %v865_v40  ;;  %v867_v17 = vpop.f32.mrb[103].mxu1 }
 0x1e5   :  { %1616 = vst.msk [vmem:[%s4071_s3 + $0x190] sm:$0xff] %vm1565_vm2, %v1534_v33  ;;  %v1336_v26 = vadd.f32 %v3748_v14, %v866_v55  ;;  %v3865_v58 = vpop.f32.mrb[130].mxu0 }
 0x1e6   :  { %v870_v48 = vpop.f32.mrb[104].mxu1  ;;  %v2023_v52 = vpop.f32.mrb[131].mxu0 }
 0x1e7   :  { %v1535_v50 = vmax.f32 %v1336_v26, 0.0  ;;  %v871_v27 = vadd.f32 %v3790_v0, %v870_v48  ;;  %v872_v51 = vpop.f32.mrb[105].mxu1 }
 0x1e9   :  { %1617 = vst.msk [vmem:[%s4071_s3 + $0x198] sm:$0xff] %vm1565_vm2, %v1535_v50  ;;  %v1341_v53 = vadd.f32 %v3756_v24, %v871_v27  ;;  %v3873_v3 = vpop.f32.mrb[132].mxu0 }
 0x1ea   :  { %v875_v38 = vpop.f32.mrb[106].mxu1  ;;  %v2026_v5 = vpop.f32.mrb[133].mxu0 }
 0x1eb   :  { %v1536_v31 = vmax.f32 %v1341_v53, 0.0  ;;  %v876_v14 = vadd.f32 %v3790_v0, %v875_v38  ;;  %v877_v56 = vpop.f32.mrb[107].mxu1 }
 0x1ed   :  { %1618 = vst.msk [vmem:[%s4071_s3 + $0x1a0] sm:$0xff] %vm1565_vm2, %v1536_v31  ;;  %v1346_v59 = vadd.f32 %v3764_v34, %v876_v14  ;;  %v3881_v21 = vpop.f32.mrb[134].mxu0 }
 0x1ee   :  { %v880_v62 = vpop.f32.mrb[108].mxu1  ;;  %v2029_v54 = vpop.f32.mrb[135].mxu0 }
 0x1ef   :  { %v1537_v2 = vmax.f32 %v1346_v59, 0.0  ;;  %v881_v24 = vadd.f32 %v3790_v0, %v880_v62  ;;  %v882_v43 = vpop.f32.mrb[109].mxu1 }
 0x1f1   :  { %1619 = vst.msk [vmem:[%s4071_s3 + $0x1a8] sm:$0xff] %vm1565_vm2, %v1537_v2  ;;  %v1351_v4 = vadd.f32 %v3772_v20, %v881_v24  ;;  %v3889_v39 = vpop.f32.mrb[136].mxu0 }
 0x1f2   :  { %v885_v7 = vpop.f32.mrb[110].mxu1  ;;  %v2032_v10 = vpop.f32.mrb[137].mxu0 }
 0x1f3   :  { %v1538_v57 = vmax.f32 %v1351_v4, 0.0  ;;  %v886_v34 = vadd.f32 %v3790_v0, %v885_v7  ;;  %v887_v60 = vpop.f32.mrb[111].mxu1 }
 0x1f5   :  { %1620 = vst.msk [vmem:[%s4071_s3 + $0x1b0] sm:$0xff] %vm1565_vm2, %v1538_v57  ;;  %v1356_v13 = vadd.f32 %v3780_v22, %v886_v34  ;;  %v3897_v46 = vpop.f32.mrb[138].mxu0 }
 0x1f6   :  { %v890_v32 = vpop.f32.mrb[112].mxu1  ;;  %v2035_v29 = vpop.f32.mrb[139].mxu0 }
 0x1f7   :  { %v1539_v18 = vmax.f32 %v1356_v13, 0.0  ;;  %v891_v20 = vadd.f32 %v3790_v0, %v890_v32  ;;  %v892_v8 = vpop.f32.mrb[113].mxu1 }
 0x1f9   :  { %1621 = vst.msk [vmem:[%s4071_s3 + $0x1b8] sm:$0xff] %vm1565_vm2, %v1539_v18  ;;  %v1361_v19 = vadd.f32 %v3793_v1, %v891_v20  ;;  %v3905_v44 = vpop.f32.mrb[140].mxu0 }
 0x1fa   :  { %v895_v23 = vpop.f32.mrb[114].mxu1  ;;  %v2038_v36 = vpop.f32.mrb[141].mxu0 }
 0x1fb   :  { %v1540_v25 = vmax.f32 %v1361_v19, 0.0  ;;  %v896_v22 = vadd.f32 %v3790_v0, %v895_v23  ;;  %v897_v37 = vpop.f32.mrb[115].mxu1 }
 0x1fd   :  { %1622 = vst.msk [vmem:[%s4071_s3 + $0x1c0] sm:$0xff] %vm1565_vm2, %v1540_v25  ;;  %v1366_v28 = vadd.f32 %v3801_v11, %v896_v22  ;;  %v3913_v55 = vpop.f32.mrb[142].mxu0 }
 0x1fe   :  { %v900_v30 = vpop.f32.mrb[116].mxu1  ;;  %v2041_v26 = vpop.f32.mrb[143].mxu0 }
 0x1ff   :  { %v1541_v9 = vmax.f32 %v1366_v28, 0.0  ;;  %v901_v1 = vadd.f32 %v3790_v0, %v900_v30  ;;  %v902_v15 = vpop.f32.mrb[117].mxu1 }
 0x201   :  { %1623 = vst.msk [vmem:[%s4071_s3 + $0x1c8] sm:$0xff] %vm1565_vm2, %v1541_v9  ;;  %v1371_v35 = vadd.f32 %v3809_v63, %v901_v1  ;;  %v3921_v27 = vpop.f32.mrb[144].mxu0 }
 0x202   :  { %v905_v42 = vpop.f32.mrb[118].mxu1  ;;  %v2044_v53 = vpop.f32.mrb[145].mxu0 }
 0x203   :  { %v1542_v40 = vmax.f32 %v1371_v35, 0.0  ;;  %v906_v11 = vadd.f32 %v3790_v0, %v905_v42  ;;  %v907_v33 = vpop.f32.mrb[119].mxu1 }
 0x205   :  { %1624 = vst.msk [vmem:[%s4071_s3 + $0x1d0] sm:$0xff] %vm1565_vm2, %v1542_v40  ;;  %v1376_v17 = vadd.f32 %v3817_v12, %v906_v11  ;;  %v3929_v14 = vpop.f32.mrb[146].mxu0 }
 0x206   :  { %v910_v45 = vpop.f32.mrb[120].mxu1  ;;  %v2047_v59 = vpop.f32.mrb[147].mxu0 }
 0x207   :  { %v1543_v48 = vmax.f32 %v1376_v17, 0.0  ;;  %v911_v63 = vadd.f32 %v3790_v0, %v910_v45  ;;  %v912_v50 = vpop.f32.mrb[121].mxu1 }
 0x209   :  { %1625 = vst.msk [vmem:[%s4071_s3 + $0x1d8] sm:$0xff] %vm1565_vm2, %v1543_v48  ;;  %v1381_v51 = vadd.f32 %v3825_v41, %v911_v63  ;;  %v3937_v24 = vpop.f32.mrb[148].mxu0 }
 0x20a   :  { %v915_v16 = vpop.f32.mrb[122].mxu1  ;;  %v2050_v4 = vpop.f32.mrb[149].mxu0 }
 0x20b   :  { %v1544_v38 = vmax.f32 %v1381_v51, 0.0  ;;  %v916_v12 = vadd.f32 %v3790_v0, %v915_v16  ;;  %v917_v31 = vpop.f32.mrb[123].mxu1 }
 0x20d   :  { %1626 = vst.msk [vmem:[%s4071_s3 + $0x1e0] sm:$0xff] %vm1565_vm2, %v1544_v38  ;;  %v1386_v56 = vadd.f32 %v3833_v47, %v916_v12  ;;  %v3945_v34 = vpop.f32.mrb[150].mxu0 }
 0x20e   :  { %v920_v52 = vpop.f32.mrb[124].mxu1  ;;  %v2053_v13 = vpop.f32.mrb[151].mxu0 }
 0x20f   :  { %v1545_v62 = vmax.f32 %v1386_v56, 0.0  ;;  %v921_v41 = vadd.f32 %v3790_v0, %v920_v52  ;;  %v922_v2 = vpop.f32.mrb[125].mxu1 }
 0x211   :  { %1627 = vst.msk [vmem:[%s4071_s3 + $0x1e8] sm:$0xff] %vm1565_vm2, %v1545_v62  ;;  %v1391_v43 = vadd.f32 %v3841_v6, %v921_v41  ;;  %v3953_v20 = vpop.f32.mrb[152].mxu0 }
 0x212   :  { %v925_v5 = vpop.f32.mrb[126].mxu1  ;;  %v2056_v19 = vpop.f32.mrb[153].mxu0 }
 0x213   :  { %v1546_v7 = vmax.f32 %v1391_v43, 0.0  ;;  %v926_v47 = vadd.f32 %v3790_v0, %v925_v5  ;;  %v927_v57 = vpop.f32.mrb[127].mxu1 }
 0x215   :  { %1628 = vst.msk [vmem:[%s4071_s3 + $0x1f0] sm:$0xff] %vm1565_vm2, %v1546_v7  ;;  %v1396_v60 = vadd.f32 %v3849_v49, %v926_v47  ;;  %v3961_v22 = vpop.f32.mrb[154].mxu0 }
 0x216   :  { %v930_v54 = vpop.f32.mrb[128].mxu1  ;;  %v2059_v28 = vpop.f32.mrb[155].mxu0 }
 0x217   :  { %v1547_v32 = vmax.f32 %v1396_v60, 0.0  ;;  %v931_v6 = vadd.f32 %v3790_v0, %v930_v54  ;;  %v932_v18 = vpop.f32.mrb[129].mxu1 }
 0x219   :  { %1629 = vst.msk [vmem:[%s4071_s3 + $0x1f8] sm:$0xff] %vm1565_vm2, %v1547_v32  ;;  %v1401_v8 = vadd.f32 %v3857_v61, %v931_v6  ;;  %v3969_v1 = vpop.f32.mrb[156].mxu0 }
 0x21a   :  { %v935_v10 = vpop.f32.mrb[130].mxu1  ;;  %v2062_v35 = vpop.f32.mrb[157].mxu0 }
 0x21b   :  { %v1548_v23 = vmax.f32 %v1401_v8, 0.0  ;;  %v936_v49 = vadd.f32 %v3790_v0, %v935_v10  ;;  %v937_v25 = vpop.f32.mrb[131].mxu1 }
 0x21d   :  { %1630 = vst.msk [vmem:[%s4071_s3 + $0x200] sm:$0xff] %vm1565_vm2, %v1548_v23  ;;  %v1406_v37 = vadd.f32 %v3865_v58, %v936_v49  ;;  %v3977_v11 = vpop.f32.mrb[158].mxu0 }
 0x21e   :  { %v940_v29 = vpop.f32.mrb[132].mxu1  ;;  %v2065_v17 = vpop.f32.mrb[159].mxu0 }
 0x21f   :  { %v1549_v30 = vmax.f32 %v1406_v37, 0.0  ;;  %v941_v61 = vadd.f32 %v3790_v0, %v940_v29  ;;  %v942_v9 = vpop.f32.mrb[133].mxu1 }
 0x221   :  { %1631 = vst.msk [vmem:[%s4071_s3 + $0x208] sm:$0xff] %vm1565_vm2, %v1549_v30  ;;  %v1411_v15 = vadd.f32 %v3873_v3, %v941_v61  ;;  %v3985_v63 = vpop.f32.mrb[160].mxu0 }
 0x222   :  { %v945_v36 = vpop.f32.mrb[134].mxu1  ;;  %v2068_v51 = vpop.f32.mrb[161].mxu0 }
 0x223   :  { %v1550_v42 = vmax.f32 %v1411_v15, 0.0  ;;  %v946_v58 = vadd.f32 %v3790_v0, %v945_v36  ;;  %v947_v40 = vpop.f32.mrb[135].mxu1 }
 0x225   :  { %1632 = vst.msk [vmem:[%s4071_s3 + $0x210] sm:$0xff] %vm1565_vm2, %v1550_v42  ;;  %v1416_v33 = vadd.f32 %v3881_v21, %v946_v58 }
 0x226   :  { %v950_v26 = vpop.f32.mrb[136].mxu1 }
 0x227   :  { %v1551_v45 = vmax.f32 %v1416_v33, 0.0  ;;  %v951_v3 = vadd.f32 %v3790_v0, %v950_v26  ;;  %v952_v48 = vpop.f32.mrb[137].mxu1 }
 0x229   :  { %1633 = vst.msk [vmem:[%s4071_s3 + $0x218] sm:$0xff] %vm1565_vm2, %v1551_v45  ;;  %v1421_v50 = vadd.f32 %v3889_v39, %v951_v3 }
 0x22a   :  { %v955_v53 = vpop.f32.mrb[138].mxu1 }
 0x22b   :  { %v1552_v16 = vmax.f32 %v1421_v50, 0.0  ;;  %v956_v21 = vadd.f32 %v3790_v0, %v955_v53  ;;  %v957_v38 = vpop.f32.mrb[139].mxu1 }
 0x22d   :  { %1634 = vst.msk [vmem:[%s4071_s3 + $0x220] sm:$0xff] %vm1565_vm2, %v1552_v16  ;;  %v1426_v12 = vadd.f32 %v3897_v46, %v956_v21 }
 0x22e   :  { %v960_v31 = vpop.f32.mrb[140].mxu1 }
 0x22f   :  { %v1553_v56 = vmax.f32 %v1426_v12, 0.0  ;;  %v961_v59 = vadd.f32 %v3790_v0, %v960_v31  ;;  %v962_v52 = vpop.f32.mrb[141].mxu1 }
 0x231   :  { %1635 = vst.msk [vmem:[%s4071_s3 + $0x228] sm:$0xff] %vm1565_vm2, %v1553_v56  ;;  %v1431_v39 = vadd.f32 %v3905_v44, %v961_v59 }
 0x232   :  { %v965_v62 = vpop.f32.mrb[142].mxu1 }
 0x233   :  { %v1554_v41 = vmax.f32 %v1431_v39, 0.0  ;;  %v966_v2 = vadd.f32 %v3790_v0, %v965_v62  ;;  %v967_v43 = vpop.f32.mrb[143].mxu1 }
 0x235   :  { %1636 = vst.msk [vmem:[%s4071_s3 + $0x230] sm:$0xff] %vm1565_vm2, %v1554_v41  ;;  %v1436_v46 = vadd.f32 %v3913_v55, %v966_v2 }
 0x236   :  { %v970_v4 = vpop.f32.mrb[144].mxu1 }
 0x237   :  { %v1555_v5 = vmax.f32 %v1436_v46, 0.0  ;;  %v971_v7 = vadd.f32 %v3790_v0, %v970_v4  ;;  %v972_v47 = vpop.f32.mrb[145].mxu1 }
 0x239   :  { %1637 = vst.msk [vmem:[%s4071_s3 + $0x238] sm:$0xff] %vm1565_vm2, %v1555_v5  ;;  %v1441_v44 = vadd.f32 %v3921_v27, %v971_v7 }
 0x23a   :  { %v975_v57 = vpop.f32.mrb[146].mxu1 }
 0x23b   :  { %v1556_v60 = vmax.f32 %v1441_v44, 0.0  ;;  %v976_v13 = vadd.f32 %v3790_v0, %v975_v57  ;;  %v977_v54 = vpop.f32.mrb[147].mxu1 }
 0x23d   :  { %1638 = vst.msk [vmem:[%s4071_s3 + $0x240] sm:$0xff] %vm1565_vm2, %v1556_v60  ;;  %v1446_v55 = vadd.f32 %v3929_v14, %v976_v13 }
 0x23e   :  { %v980_v32 = vpop.f32.mrb[148].mxu1 }
 0x23f   :  { %v1557_v6 = vmax.f32 %v1446_v55, 0.0  ;;  %v981_v18 = vadd.f32 %v3790_v0, %v980_v32  ;;  %v982_v8 = vpop.f32.mrb[149].mxu1 }
 0x241   :  { %1639 = vst.msk [vmem:[%s4071_s3 + $0x248] sm:$0xff] %vm1565_vm2, %v1557_v6  ;;  %v1451_v27 = vadd.f32 %v3937_v24, %v981_v18 }
 0x242   :  { %v985_v19 = vpop.f32.mrb[150].mxu1 }
 0x243   :  { %v1558_v10 = vmax.f32 %v1451_v27, 0.0  ;;  %v986_v23 = vadd.f32 %v3790_v0, %v985_v19  ;;  %v987_v49 = vpop.f32.mrb[151].mxu1 }
 0x245   :  { %1640 = vst.msk [vmem:[%s4071_s3 + $0x250] sm:$0xff] %vm1565_vm2, %v1558_v10  ;;  %v1456_v14 = vadd.f32 %v3945_v34, %v986_v23 }
 0x246   :  { %v990_v25 = vpop.f32.mrb[152].mxu1 }
 0x247   :  { %v1559_v37 = vmax.f32 %v1456_v14, 0.0  ;;  %v991_v28 = vadd.f32 %v3790_v0, %v990_v25  ;;  %v992_v29 = vpop.f32.mrb[153].mxu1 }
 0x249   :  { %1641 = vst.msk [vmem:[%s4071_s3 + $0x258] sm:$0xff] %vm1565_vm2, %v1559_v37  ;;  %v1461_v24 = vadd.f32 %v3953_v20, %v991_v28 }
 0x24a   :  { %v995_v30 = vpop.f32.mrb[154].mxu1 }
 0x24b   :  { %v1560_v61 = vmax.f32 %v1461_v24, 0.0  ;;  %v996_v9 = vadd.f32 %v3790_v0, %v995_v30  ;;  %v997_v15 = vpop.f32.mrb[155].mxu1 }
 0x24d   :  { %1642 = vst.msk [vmem:[%s4071_s3 + $0x260] sm:$0xff] %vm1565_vm2, %v1560_v61  ;;  %v1466_v34 = vadd.f32 %v3961_v22, %v996_v9 }
 0x24e   :  { %v1000_v35 = vpop.f32.mrb[156].mxu1 }
 0x24f   :  { %v1561_v36 = vmax.f32 %v1466_v34, 0.0  ;;  %v1001_v42 = vadd.f32 %v3790_v0, %v1000_v35  ;;  %v1002_v58 = vpop.f32.mrb[157].mxu1 }
 0x251   :  { %1643 = vst.msk [vmem:[%s4071_s3 + $0x268] sm:$0xff] %vm1565_vm2, %v1561_v36  ;;  %v1471_v20 = vadd.f32 %v3969_v1, %v1001_v42 }
 0x252   :  { %v1005_v40 = vpop.f32.mrb[158].mxu1 }
 0x253   :  { %v1562_v33 = vmax.f32 %v1471_v20, 0.0  ;;  %v1006_v17 = vadd.f32 %v3790_v0, %v1005_v40  ;;  %v1007_v26 = vpop.f32.mrb[159].mxu1 }
 0x255   :  { %1644 = vst.msk [vmem:[%s4071_s3 + $0x270] sm:$0xff] %vm1565_vm2, %v1562_v33  ;;  %v1476_v22 = vadd.f32 %v3977_v11, %v1006_v17 }
 0x256   :  { %v1010_v45 = vpop.f32.mrb[160].mxu1 }
 0x257   :  { %v1563_v3 = vmax.f32 %v1476_v22, 0.0  ;;  %v1011_v48 = vadd.f32 %v3790_v0, %v1010_v45  ;;  %v1012_v50 = vpop.f32.mrb[161].mxu1 }
 0x259   :  { %1645 = vst.msk [vmem:[%s4071_s3 + $0x278] sm:$0xff] %vm1565_vm2, %v1563_v3  ;;  %v1481_v1 = vadd.f32 %v3985_v63, %v1011_v48 }
 0x25b   :  { %v1564_v51 = vmax.f32 %v1481_v1, 0.0 }
 0x25d   :  { %1646 = vst.msk [vmem:[%s4071_s3 + $0x280] sm:$0xff] %vm1565_vm2, %v1564_v51 }

// kernel: forward.7
= control target key start
LH: loop header
LB: loop body
LE: loop exit
PB: predicated region body
PF: predicated region fallthrough
CT: control target
= control target key end

     0   :  { %v410_v47 = vmov 1983009808   ;;  %v91_v49 = vlaneseq  ;;  %vm254_vm3 = vcmask 1041408   ;;  %s635_s1 = inlined_call_operand.vmem [shape: f32[512,128], index: 1, kind: input, shape index: {}]   ;;  %s636_s0 = inlined_call_operand.vmem [shape: f32[2,512], index: 0, kind: input, shape index: {}]   ;;  %s637_s2 = inlined_call_operand.vmem [shape: f32[1,128], index: 2, kind: input, shape index: {}]   ;;  %s638_s3 = inlined_call_operand.vmem [shape: f32[2,128], index: 3, kind: output, shape index: {}]  }
   0x1   :  { %v31_v0 = vld [vmem:[%s635_s1 + $0x80] sm:$0xff]  ;;  %v32_v1 = vld [vmem:[%s635_s1 + $0x88] sm:$0xff]  ;;  %v33_v11 = vld [vmem:[%s635_s1 + $0x90] sm:$0xff]  ;;  %v89_v48 = vunpack.c.l.s4 %v410_v47 }
   0x2   :  { %v15_v2 = vld [vmem:[%s635_s1] sm:$0xff]  ;;  %v342_v3 = vpack.c.bf16 %v32_v1, %v31_v0  ;;  %v16_v4 = vld [vmem:[%s635_s1 + $0x8] sm:$0xff]  ;;  %v34_v13 = vld [vmem:[%s635_s1 + $0x98] sm:$0xff]  ;;  %v92_v0 = vshrl.u32 %v91_v49, 7 }
   0x3   :  { %v63_v5 = vld [vmem:[%s635_s1 + $0x180] sm:$0xff]  ;;  %v64_v6 = vld [vmem:[%s635_s1 + $0x188] sm:$0xff]  ;;  %v344_v7 = vpack.c.bf16 %v16_v4, %v15_v2  ;;  %v17_v14 = vld [vmem:[%s635_s1 + $0x10] sm:$0xff]  ;;  %v346_v16 = vpack.c.bf16 %v34_v13, %v33_v11  ;;  %v90_v63 = vunpack.c.0.s8 %v89_v48 }
   0x4   :  { %v374_v8 = vpack.c.bf16 %v64_v6, %v63_v5  ;;  %v47_v9 = vld [vmem:[%s635_s1 + $0x100] sm:$0xff]  ;;  %v48_v10 = vld [vmem:[%s635_s1 + $0x108] sm:$0xff]  ;;  %343 = vmatprep.subr.bf16.mxu0 %v342_v3  ;;  %v18_v15 = vld [vmem:[%s635_s1 + $0x18] sm:$0xff] }
   0x5   :  { %v376_v12 = vpack.c.bf16 %v48_v10, %v47_v9  ;;  %345 = vmatpush3.bf16.msra.mxu0 %v344_v7  ;;  %v348_v17 = vpack.c.bf16 %v18_v15, %v17_v14  ;;  %v65_v18 = vld [vmem:[%s635_s1 + $0x190] sm:$0xff]  ;;  %v66_v19 = vld [vmem:[%s635_s1 + $0x198] sm:$0xff]  ;;  %v35_v23 = vld [vmem:[%s635_s1 + $0xa0] sm:$0xff]  ;;  %v93_v13 = vsub.s32 %v90_v63, %v92_v0 }
   0x6   :  { %375 = vmatprep.subr.bf16.mxu1 %v374_v8  ;;  %v49_v20 = vld [vmem:[%s635_s1 + $0x110] sm:$0xff]  ;;  %v378_v21 = vpack.c.bf16 %v66_v19, %v65_v18  ;;  %v50_v22 = vld [vmem:[%s635_s1 + $0x118] sm:$0xff]  ;;  %v36_v24 = vld [vmem:[%s635_s1 + $0xa8] sm:$0xff]  ;;  %347 = vmatprep.subr.bf16.mxu0 %v346_v16 }
   0x7   :  { %377 = vmatpush3.bf16.msra.mxu1 %v376_v12  ;;  %v380_v25 = vpack.c.bf16 %v50_v22, %v49_v20  ;;  %v350_v26 = vpack.c.bf16 %v36_v24, %v35_v23  ;;  %v19_v27 = vld [vmem:[%s635_s1 + $0x20] sm:$0xff]  ;;  %v20_v28 = vld [vmem:[%s635_s1 + $0x28] sm:$0xff]  ;;  %v37_v35 = vld [vmem:[%s635_s1 + $0xb0] sm:$0xff] }
   0x8   :  { %v67_v29 = vld [vmem:[%s635_s1 + $0x1a0] sm:$0xff]  ;;  %379 = vmatprep.subr.bf16.mxu1 %v378_v21  ;;  %v68_v30 = vld [vmem:[%s635_s1 + $0x1a8] sm:$0xff]  ;;  %v352_v33 = vpack.c.bf16 %v20_v28, %v19_v27  ;;  %v38_v36 = vld [vmem:[%s635_s1 + $0xb8] sm:$0xff] }
   0x9   :  { %v51_v31 = vld [vmem:[%s635_s1 + $0x120] sm:$0xff]  ;;  %v52_v32 = vld [vmem:[%s635_s1 + $0x128] sm:$0xff]  ;;  %349 = vmatpush3.bf16.msra.mxu0 %v348_v17  ;;  %v382_v34 = vpack.c.bf16 %v68_v30, %v67_v29  ;;  %v21_v37 = vld [vmem:[%s635_s1 + $0x30] sm:$0xff]  ;;  %v354_v39 = vpack.c.bf16 %v38_v36, %v37_v35 }
   0xa   :  { %351 = vmatprep.subr.bf16.mxu0 %v350_v26  ;;  %v384_v38 = vpack.c.bf16 %v52_v32, %v51_v31  ;;  %v22_v40 = vld [vmem:[%s635_s1 + $0x38] sm:$0xff]  ;;  %v69_v41 = vld [vmem:[%s635_s1 + $0x1b0] sm:$0xff]  ;;  %v39_v46 = vld [vmem:[%s635_s1 + $0xc0] sm:$0xff] }
   0xb   :  { %381 = vmatpush3.bf16.msra.mxu1 %v380_v25  ;;  %v70_v42 = vld [vmem:[%s635_s1 + $0x1b8] sm:$0xff]  ;;  %v53_v44 = vld [vmem:[%s635_s1 + $0x130] sm:$0xff]  ;;  %v40_v50 = vld [vmem:[%s635_s1 + $0xc8] sm:$0xff]  ;;  %v356_v51 = vpack.c.bf16 %v22_v40, %v21_v37 }
   0xc   :  { %383 = vmatprep.subr.bf16.mxu1 %v382_v34  ;;  %v386_v43 = vpack.c.bf16 %v70_v42, %v69_v41  ;;  %v54_v45 = vld [vmem:[%s635_s1 + $0x138] sm:$0xff]  ;;  %v71_v52 = vld [vmem:[%s635_s1 + $0x1c0] sm:$0xff]  ;;  %v72_v53 = vld [vmem:[%s635_s1 + $0x1c8] sm:$0xff]  ;;  %v358_v55 = vpack.c.bf16 %v40_v50, %v39_v46 }
   0xd   :  { %353 = vmatpush3.bf16.msra.mxu0 %v352_v33  ;;  %v388_v54 = vpack.c.bf16 %v54_v45, %v53_v44  ;;  %v23_v56 = vld [vmem:[%s635_s1 + $0x40] sm:$0xff]  ;;  %v24_v57 = vld [vmem:[%s635_s1 + $0x48] sm:$0xff]  ;;  %v390_v59 = vpack.c.bf16 %v72_v53, %v71_v52  ;;  %v41_v61 = vld [vmem:[%s635_s1 + $0xd0] sm:$0xff]  ;;  %v411_v44 = vmov 0   ;;  %v249_v45 = vand.u32 127, %v91_v49 }
   0xe   :  { %355 = vmatprep.subr.bf16.mxu0 %v354_v39  ;;  %v55_v58 = vld [vmem:[%s635_s1 + $0x140] sm:$0xff]  ;;  %v56_v60 = vld [vmem:[%s635_s1 + $0x148] sm:$0xff]  ;;  %v42_v62 = vld [vmem:[%s635_s1 + $0xd8] sm:$0xff]  ;;  %v360_v3 = vpack.c.bf16 %v24_v57, %v23_v56  ;;  %408 = vset.pattern.permute.xlu0 %v411_v44 }
   0xf   :  { %385 = vmatpush3.bf16.msra.mxu1 %v384_v38  ;;  %v73_v1 = vld [vmem:[%s635_s1 + $0x1d0] sm:$0xff]  ;;  %v74_v2 = vld [vmem:[%s635_s1 + $0x1d8] sm:$0xff]  ;;  %v392_v4 = vpack.c.bf16 %v56_v60, %v55_v58  ;;  %v362_v5 = vpack.c.bf16 %v42_v62, %v41_v61  ;;  %v43_v11 = vld [vmem:[%s635_s1 + $0xe0] sm:$0xff]  ;;  %vm250_vm0 = vcmp.ge.s32.totalorder %v249_v45, 1  ;;  %vm251_vm1 = vcmp.le.s32.totalorder %v249_v45, 6 }
  0x10   :  { %387 = vmatprep.subr.bf16.mxu1 %v386_v43  ;;  %v25_v6 = vld [vmem:[%s635_s1 + $0x50] sm:$0xff]  ;;  %v26_v7 = vld [vmem:[%s635_s1 + $0x58] sm:$0xff]  ;;  %v394_v9 = vpack.c.bf16 %v74_v2, %v73_v1  ;;  %v44_v12 = vld [vmem:[%s635_s1 + $0xe8] sm:$0xff] }
  0x11   :  { %357 = vmatpush3.bf16.msra.mxu0 %v356_v51  ;;  %v57_v8 = vld [vmem:[%s635_s1 + $0x150] sm:$0xff]  ;;  %v58_v10 = vld [vmem:[%s635_s1 + $0x158] sm:$0xff]  ;;  %v75_v14 = vld [vmem:[%s635_s1 + $0x1e0] sm:$0xff]  ;;  %v364_v16 = vpack.c.bf16 %v26_v7, %v25_v6  ;;  %v366_v19 = vpack.c.bf16 %v44_v12, %v43_v11 }
  0x12   :  { %359 = vmatprep.subr.bf16.mxu0 %v358_v55  ;;  %v76_v15 = vld [vmem:[%s635_s1 + $0x1e8] sm:$0xff]  ;;  %v27_v17 = vld [vmem:[%s635_s1 + $0x60] sm:$0xff]  ;;  %v396_v18 = vpack.c.bf16 %v58_v10, %v57_v8  ;;  %v45_v25 = vld [vmem:[%s635_s1 + $0xf0] sm:$0xff] }
  0x13   :  { %389 = vmatpush3.bf16.msra.mxu1 %v388_v54  ;;  %v28_v20 = vld [vmem:[%s635_s1 + $0x68] sm:$0xff]  ;;  %v59_v21 = vld [vmem:[%s635_s1 + $0x160] sm:$0xff]  ;;  %v398_v23 = vpack.c.bf16 %v76_v15, %v75_v14  ;;  %v46_v26 = vld [vmem:[%s635_s1 + $0xf8] sm:$0xff] }
  0x14   :  { %391 = vmatprep.subr.bf16.mxu1 %v390_v59  ;;  %v14_v22 = vld [vmem:[%s636_s0] sm:$0xff]  ;;  %v60_v24 = vld [vmem:[%s635_s1 + $0x168] sm:$0xff]  ;;  %v77_v29 = vld [vmem:[%s635_s1 + $0x1f0] sm:$0xff]  ;;  %v368_v31 = vpack.c.bf16 %v28_v20, %v27_v17  ;;  %v370_v35 = vpack.c.bf16 %v46_v26, %v45_v25 }
  0x15   :  { %361 = vmatpush3.bf16.msra.mxu0 %v360_v3  ;;  %v94_v27 = vrot.slane %v14_v22, %v93_v13  ;;  %v87_v28 = vcombine.high %v14_v22, %v14_v22  ;;  %v78_v30 = vld [vmem:[%s635_s1 + $0x1f8] sm:$0xff]  ;;  %v400_v34 = vpack.c.bf16 %v60_v24, %v59_v21  ;;  %v29_v36 = vld [vmem:[%s635_s1 + $0x70] sm:$0xff]  ;;  %v271_v47 = vld [vmem:[%s637_s2] ss:$0 sm:$0xff] }
  0x16   :  { %363 = vmatprep.subr.bf16.mxu0 %v362_v5  ;;  %v30_v37 = vld [vmem:[%s635_s1 + $0x78] sm:$0xff]  ;;  %v402_v38 = vpack.c.bf16 %v78_v30, %v77_v29  ;;  %v61_v39 = vld [vmem:[%s635_s1 + $0x170] sm:$0xff]  ;;  %vm252_vm2 = vmand %vm250_vm0, %vm251_vm1 }
  0x17   :  { %393 = vmatpush3.bf16.msra.mxu1 %v392_v4  ;;  %v102_v32 = vcombine.high %v94_v27, %v94_v27  ;;  %v101_v33 = vrot.slane %v87_v28, %v93_v13  ;;  %v62_v40 = vld [vmem:[%s635_s1 + $0x178] sm:$0xff]  ;;  %v372_v42 = vpack.c.bf16 %v30_v37, %v29_v36 }
  0x18   :  { %395 = vmatprep.subr.bf16.mxu1 %v394_v9  ;;  %v404_v43 = vpack.c.bf16 %v62_v40, %v61_v39 }
  0x19   :  { %365 = vmatpush3.bf16.msra.mxu0 %v364_v16  ;;  %172 = vmatprep.mubr.f32.mxu0 %v102_v32  ;;  %v103_v41 = vcombine.high %v101_v33, %v101_v33 }
  0x1a   :  { %367 = vmatprep.subr.bf16.mxu0 %v366_v19 }
  0x1b   :  { %397 = vmatpush3.bf16.msra.mxu1 %v396_v18  ;;  %242 = vmatprep.mubr.f32.mxu1 %v103_v41 }
  0x1c   :  { %399 = vmatprep.subr.bf16.mxu1 %v398_v23 }
  0x1d   :  { %369 = vmatpush3.bf16.msra.mxu0 %v368_v31 }
  0x1e   :  { %371 = vmatprep.subr.bf16.mxu0 %v370_v35 }
  0x1f   :  { %401 = vmatpush3.bf16.msra.mxu1 %v400_v34 }
  0x20   :  { %403 = vmatprep.subr.bf16.mxu1 %v402_v38 }
  0x21   :  { %373 = vmatpush3.bf16.msra.mxu0 %v372_v42 }
  0x23   :  { %405 = vmatpush3.bf16.msra.mxu1 %v404_v43 }
  0x24   :  { %173 = vmatmul.mubr.f32.vlgmr.msra.gmra.mrb[0].mxu0 %v94_v27 }
  0x26   :  { %243 = vmatmul.mubr.f32.vlgmr.msra.gmra.mrb[0].mxu1 %v101_v33 }
  0xf7   :  { %v304_v46 = vpop.f32.mrb[0].mxu0 }
  0xf8   :  { %v305_v48 = vpop.f32.mrb[1].mxu0 }
  0xf9   :  { %v339_v50 = vpop.f32.mrb[0].mxu1  ;;  %v306_v51 = vadd.f32 %v305_v48, %v304_v46 }
  0xfa   :  { %v340_v52 = vpop.f32.mrb[1].mxu1 }
  0xfb   :  { %v341_v53 = vadd.f32 %v340_v52, %v339_v50  ;;  %v175_v54 = vadd.f32 %v306_v51, %v271_v47 }
  0xfd   :  { %v245_v55 = vadd.f32 %v341_v53, %v175_v54 }
  0xff   :  { %v253_v56 = vsel %vm252_vm2, %v245_v55, -inf }
 0x100   :  { %v255_v57 = vsel %vm254_vm3, %v253_v56, -inf }
 0x101   :  { %256 = vmax.xlane.f32.xlu0 %v255_v57 }
 0x117   :  { %262 = vperm.xlu0 %408, %v245_v55  }
 0x18e   :  { %v257_v49 = vpop.xlane.xlu0 %256 }
 0x18f   :  { %v258_v58 = vmul.f32 0.16666667, %v257_v49 }
 0x191   :  { %v259_v59 = vsub.f32 %v245_v55, %v258_v58 }
 0x196   :  { %v263_v60 = vpop.permute.xlu0 %262 }
 0x197   :  { %v265_v61 = vadd.f32 %v263_v60, %v259_v59 }
 0x199   :  { %266 = vst [vmem:[%s638_s3] sm:$0x3] %v265_v61 }

// kernel: forward.6
= control target key start
LH: loop header
LB: loop body
LE: loop exit
PB: predicated region body
PF: predicated region fallthrough
CT: control target
= control target key end

     0   :  { %s16456_s12 = smov 0   ;;  %s16458_s13 = smov 0   ;;  %s19429_s0 = inlined_call_operand.vmem [shape: f32[2,20736], index: 0, kind: input, shape index: {}]   ;;  %s19430_s1 = inlined_call_operand.vmem [shape: bf16[20736,512], index: 1, kind: input, shape index: {}]   ;;  %s19431_s2 = inlined_call_operand.vmem [shape: f32[1,512], index: 2, kind: input, shape index: {}]   ;;  %s19432_s3 = inlined_call_operand.vmem [shape: f32[2,512], index: 3, kind: output, shape index: {}]  }
   0x1   :  { %s16460_s14 = smov 0   ;;  %s16462_s15 = smov 0  }
   0x2   :  { %s16464_s16 = smov 0   ;;  %s16466_s17 = smov 0  }
   0x3   :  { %s16468_s18 = smov 0  }
   0x4 LB: > { %s22_s19 = sadd.s32 1, %s16424_s16  ;;  %s25_s20 = sadd.s32 1, %s16428_s17  ;;  %s16432_s18 = sphi %s16468_s18, %s13_s18   ;;  %s16428_s17 = sphi %s16466_s17, %s19438_s17   ;;  %s16424_s16 = sphi %s16464_s16, %s19437_s16   ;;  %s16420_s15 = sphi %s16462_s15, %s19436_s15   ;;  %s16416_s14 = sphi %s16460_s14, %s19435_s14   ;;  %s16412_s13 = sphi %s16458_s13, %s19434_s13   ;;  %s16408_s12 = sphi %s16456_s12, %s19433_s12  }
   0x5   : > { %p23_p0 = scmp.ge.s32.totalorder %s22_s19, 3  ;;  %p67_p1 = scmp.ne.s32.totalorder %s16412_s13, %s16408_s12 }
   0x6   : > { %p68_p2 = scmp.eq.s32.totalorder %s16432_s18, 0  ;;  %s60_s24 = sadd.s32 1, %s16412_s13 }
   0x7   : > { %s19440_s19 = smov (%p23_p0, %s22_s19), 0  ;;  %s19442_s20 = smov (!%p23_p0, %s25_s20), %s16428_s17 }
   0x8   : > { %p69_p3 = por %p68_p2, %p67_p1  ;;  %p27_p4 = scmp.ge.s32.totalorder %s19442_s20, 2 }
   0x9   : > { %s55_s21 = ssub.s32 %s16424_s16, %s19440_s19  ;;  %p14026_p6 = scmp.ge.s32.totalorder %s16432_s18, 6 }
   0xa   : > { %s19444_s20 = smov (%p27_p4, %s19442_s20), 0 }
   0xb   : > { %s56_s22 = ssub.s32 %s16428_s17, %s19444_s20  ;;  %145 = sbr.rel (%p14026_p6) target bundleno = 458 (0x1ca), region = 16 }
   0xc   : > { %s57_s23 = sor.u32 %s56_s22, %s55_s21 }
   0xd   : > { %p58_p5 = scmp.eq.s32.totalorder %s57_s23, 0 }
   0xf   : > { %s16507_s25 = scalar_select %p58_p5, %s16412_s13, %s60_s24  }
  0x12   : > { %157 = sbr.rel (!%p69_p3) target bundleno = 458 (0x1ca), region = 24  ;;  %s159_s26 = sand.u32 (%p69_p3), 1, %s16412_s13  }
  0x13   : > { %s15007_s27 = smul.u32 (%p69_p3), 6912, %s159_s26  ;;  %s14027_s28 = sshll.u32 (%p69_p3), %s16428_s17, 1 }
  0x14   : > { %s14904_s29 = smul.u32 (%p69_p3), 3456, %s16424_s16 }
  0x15   : > { %s16521_s8 = scalar_lea.vmem (%p69_p3), [#allocation2], %s15007_s27 }
  0x16   : > { %s165_s30 = sadd.s32 (%p69_p3), %s14904_s29, %s14027_s28 }
  0x17   : > { %s14029_s4 = sshll.u32 (%p69_p3), %s165_s30, 2 }
  0x18   : > { %s16516_s7 = scalar_lea.vmem (%p69_p3), %s19430_s1, %s14029_s4 }
  0x19   : > { %v1924_v0 = vld [vmem:[%s16516_s7] sm:$0xff]  ;;  %v1926_v1 = vld [vmem:[%s16516_s7 + $0x10] sm:$0xff] }
  0x1a   : > { %v1928_v2 = vld [vmem:[%s16516_s7 + $0x20] sm:$0xff]  ;;  %1925 = vst [vmem:[%s16521_s8] sm:$0xff] %v1924_v0  ;;  %1927 = vst [vmem:[%s16521_s8 + $0x8] sm:$0xff] %v1926_v1  ;;  %v1930_v3 = vld [vmem:[%s16516_s7 + $0x30] sm:$0xff] }
  0x1b   : > { %1929 = vst [vmem:[%s16521_s8 + $0x10] sm:$0xff] %v1928_v2  ;;  %v1932_v4 = vld [vmem:[%s16516_s7 + $0x40] sm:$0xff]  ;;  %v1934_v5 = vld [vmem:[%s16516_s7 + $0x50] sm:$0xff]  ;;  %1931 = vst [vmem:[%s16521_s8 + $0x18] sm:$0xff] %v1930_v3 }
  0x1c   : > { %1933 = vst [vmem:[%s16521_s8 + $0x20] sm:$0xff] %v1932_v4  ;;  %1935 = vst [vmem:[%s16521_s8 + $0x28] sm:$0xff] %v1934_v5  ;;  %v1936_v6 = vld [vmem:[%s16516_s7 + $0x60] sm:$0xff]  ;;  %v1938_v7 = vld [vmem:[%s16516_s7 + $0x70] sm:$0xff] }
  0x1d   : > { %v1940_v8 = vld [vmem:[%s16516_s7 + $0x80] sm:$0xff]  ;;  %1937 = vst [vmem:[%s16521_s8 + $0x30] sm:$0xff] %v1936_v6  ;;  %1939 = vst [vmem:[%s16521_s8 + $0x38] sm:$0xff] %v1938_v7  ;;  %v1942_v9 = vld [vmem:[%s16516_s7 + $0x90] sm:$0xff] }
  0x1e   : > { %1941 = vst [vmem:[%s16521_s8 + $0x40] sm:$0xff] %v1940_v8  ;;  %v1944_v10 = vld [vmem:[%s16516_s7 + $0xa0] sm:$0xff]  ;;  %v1946_v11 = vld [vmem:[%s16516_s7 + $0xb0] sm:$0xff]  ;;  %1943 = vst [vmem:[%s16521_s8 + $0x48] sm:$0xff] %v1942_v9 }
  0x1f   : > { %1945 = vst [vmem:[%s16521_s8 + $0x50] sm:$0xff] %v1944_v10  ;;  %1947 = vst [vmem:[%s16521_s8 + $0x58] sm:$0xff] %v1946_v11  ;;  %v1948_v12 = vld [vmem:[%s16516_s7 + $0xc0] sm:$0xff]  ;;  %v1950_v13 = vld [vmem:[%s16516_s7 + $0xd0] sm:$0xff] }
  0x20   : > { %v1952_v14 = vld [vmem:[%s16516_s7 + $0xe0] sm:$0xff]  ;;  %1949 = vst [vmem:[%s16521_s8 + $0x60] sm:$0xff] %v1948_v12  ;;  %1951 = vst [vmem:[%s16521_s8 + $0x68] sm:$0xff] %v1950_v13  ;;  %v1954_v15 = vld [vmem:[%s16516_s7 + $0xf0] sm:$0xff] }
  0x21   : > { %1953 = vst [vmem:[%s16521_s8 + $0x70] sm:$0xff] %v1952_v14  ;;  %v1956_v16 = vld [vmem:[%s16516_s7 + $0x100] sm:$0xff]  ;;  %v1958_v17 = vld [vmem:[%s16516_s7 + $0x110] sm:$0xff]  ;;  %1955 = vst [vmem:[%s16521_s8 + $0x78] sm:$0xff] %v1954_v15 }
  0x22   : > { %1957 = vst [vmem:[%s16521_s8 + $0x80] sm:$0xff] %v1956_v16  ;;  %1959 = vst [vmem:[%s16521_s8 + $0x88] sm:$0xff] %v1958_v17  ;;  %v1960_v18 = vld [vmem:[%s16516_s7 + $0x120] sm:$0xff]  ;;  %v1962_v19 = vld [vmem:[%s16516_s7 + $0x130] sm:$0xff] }
  0x23   : > { %v1964_v20 = vld [vmem:[%s16516_s7 + $0x140] sm:$0xff]  ;;  %1961 = vst [vmem:[%s16521_s8 + $0x90] sm:$0xff] %v1960_v18  ;;  %1963 = vst [vmem:[%s16521_s8 + $0x98] sm:$0xff] %v1962_v19  ;;  %v1966_v21 = vld [vmem:[%s16516_s7 + $0x150] sm:$0xff] }
  0x24   : > { %1965 = vst [vmem:[%s16521_s8 + $0xa0] sm:$0xff] %v1964_v20  ;;  %v1968_v22 = vld [vmem:[%s16516_s7 + $0x160] sm:$0xff]  ;;  %v1970_v23 = vld [vmem:[%s16516_s7 + $0x170] sm:$0xff]  ;;  %1967 = vst [vmem:[%s16521_s8 + $0xa8] sm:$0xff] %v1966_v21 }
  0x25   : > { %1969 = vst [vmem:[%s16521_s8 + $0xb0] sm:$0xff] %v1968_v22  ;;  %1971 = vst [vmem:[%s16521_s8 + $0xb8] sm:$0xff] %v1970_v23  ;;  %v1972_v24 = vld [vmem:[%s16516_s7 + $0x180] sm:$0xff]  ;;  %v1974_v25 = vld [vmem:[%s16516_s7 + $0x190] sm:$0xff] }
  0x26   : > { %v1976_v26 = vld [vmem:[%s16516_s7 + $0x1a0] sm:$0xff]  ;;  %1973 = vst [vmem:[%s16521_s8 + $0xc0] sm:$0xff] %v1972_v24  ;;  %1975 = vst [vmem:[%s16521_s8 + $0xc8] sm:$0xff] %v1974_v25  ;;  %v1978_v27 = vld [vmem:[%s16516_s7 + $0x1b0] sm:$0xff] }
  0x27   : > { %1977 = vst [vmem:[%s16521_s8 + $0xd0] sm:$0xff] %v1976_v26  ;;  %v1980_v28 = vld [vmem:[%s16516_s7 + $0x1c0] sm:$0xff]  ;;  %v1982_v29 = vld [vmem:[%s16516_s7 + $0x1d0] sm:$0xff]  ;;  %1979 = vst [vmem:[%s16521_s8 + $0xd8] sm:$0xff] %v1978_v27 }
  0x28   : > { %1981 = vst [vmem:[%s16521_s8 + $0xe0] sm:$0xff] %v1980_v28  ;;  %1983 = vst [vmem:[%s16521_s8 + $0xe8] sm:$0xff] %v1982_v29  ;;  %v1984_v30 = vld [vmem:[%s16516_s7 + $0x1e0] sm:$0xff]  ;;  %v1986_v31 = vld [vmem:[%s16516_s7 + $0x1f0] sm:$0xff] }
  0x29   : > { %v1988_v32 = vld [vmem:[%s16516_s7 + $0x200] sm:$0xff]  ;;  %1985 = vst [vmem:[%s16521_s8 + $0xf0] sm:$0xff] %v1984_v30  ;;  %1987 = vst [vmem:[%s16521_s8 + $0xf8] sm:$0xff] %v1986_v31  ;;  %v1990_v33 = vld [vmem:[%s16516_s7 + $0x210] sm:$0xff] }
  0x2a   : > { %1989 = vst [vmem:[%s16521_s8 + $0x100] sm:$0xff] %v1988_v32  ;;  %v1992_v34 = vld [vmem:[%s16516_s7 + $0x220] sm:$0xff]  ;;  %v1994_v35 = vld [vmem:[%s16516_s7 + $0x230] sm:$0xff]  ;;  %1991 = vst [vmem:[%s16521_s8 + $0x108] sm:$0xff] %v1990_v33 }
  0x2b   : > { %1993 = vst [vmem:[%s16521_s8 + $0x110] sm:$0xff] %v1992_v34  ;;  %1995 = vst [vmem:[%s16521_s8 + $0x118] sm:$0xff] %v1994_v35  ;;  %v1996_v36 = vld [vmem:[%s16516_s7 + $0x240] sm:$0xff]  ;;  %v1998_v37 = vld [vmem:[%s16516_s7 + $0x250] sm:$0xff] }
  0x2c   : > { %v2000_v38 = vld [vmem:[%s16516_s7 + $0x260] sm:$0xff]  ;;  %1997 = vst [vmem:[%s16521_s8 + $0x120] sm:$0xff] %v1996_v36  ;;  %1999 = vst [vmem:[%s16521_s8 + $0x128] sm:$0xff] %v1998_v37  ;;  %v2002_v39 = vld [vmem:[%s16516_s7 + $0x270] sm:$0xff] }
  0x2d   : > { %2001 = vst [vmem:[%s16521_s8 + $0x130] sm:$0xff] %v2000_v38  ;;  %v2004_v40 = vld [vmem:[%s16516_s7 + $0x280] sm:$0xff]  ;;  %v2006_v41 = vld [vmem:[%s16516_s7 + $0x290] sm:$0xff]  ;;  %2003 = vst [vmem:[%s16521_s8 + $0x138] sm:$0xff] %v2002_v39 }
  0x2e   : > { %2005 = vst [vmem:[%s16521_s8 + $0x140] sm:$0xff] %v2004_v40  ;;  %2007 = vst [vmem:[%s16521_s8 + $0x148] sm:$0xff] %v2006_v41  ;;  %v2008_v42 = vld [vmem:[%s16516_s7 + $0x2a0] sm:$0xff]  ;;  %v2010_v43 = vld [vmem:[%s16516_s7 + $0x2b0] sm:$0xff] }
  0x2f   : > { %v2012_v44 = vld [vmem:[%s16516_s7 + $0x2c0] sm:$0xff]  ;;  %2009 = vst [vmem:[%s16521_s8 + $0x150] sm:$0xff] %v2008_v42  ;;  %2011 = vst [vmem:[%s16521_s8 + $0x158] sm:$0xff] %v2010_v43  ;;  %v2014_v45 = vld [vmem:[%s16516_s7 + $0x2d0] sm:$0xff] }
  0x30   : > { %2013 = vst [vmem:[%s16521_s8 + $0x160] sm:$0xff] %v2012_v44  ;;  %v2016_v46 = vld [vmem:[%s16516_s7 + $0x2e0] sm:$0xff]  ;;  %v2018_v47 = vld [vmem:[%s16516_s7 + $0x2f0] sm:$0xff]  ;;  %2015 = vst [vmem:[%s16521_s8 + $0x168] sm:$0xff] %v2014_v45 }
  0x31   : > { %2017 = vst [vmem:[%s16521_s8 + $0x170] sm:$0xff] %v2016_v46  ;;  %2019 = vst [vmem:[%s16521_s8 + $0x178] sm:$0xff] %v2018_v47  ;;  %v2020_v48 = vld [vmem:[%s16516_s7 + $0x300] sm:$0xff]  ;;  %v2022_v49 = vld [vmem:[%s16516_s7 + $0x310] sm:$0xff] }
  0x32   : > { %v2024_v50 = vld [vmem:[%s16516_s7 + $0x320] sm:$0xff]  ;;  %2021 = vst [vmem:[%s16521_s8 + $0x180] sm:$0xff] %v2020_v48  ;;  %2023 = vst [vmem:[%s16521_s8 + $0x188] sm:$0xff] %v2022_v49  ;;  %v2026_v51 = vld [vmem:[%s16516_s7 + $0x330] sm:$0xff] }
  0x33   : > { %2025 = vst [vmem:[%s16521_s8 + $0x190] sm:$0xff] %v2024_v50  ;;  %v2028_v52 = vld [vmem:[%s16516_s7 + $0x340] sm:$0xff]  ;;  %v2030_v53 = vld [vmem:[%s16516_s7 + $0x350] sm:$0xff]  ;;  %2027 = vst [vmem:[%s16521_s8 + $0x198] sm:$0xff] %v2026_v51 }
  0x34   : > { %2029 = vst [vmem:[%s16521_s8 + $0x1a0] sm:$0xff] %v2028_v52  ;;  %2031 = vst [vmem:[%s16521_s8 + $0x1a8] sm:$0xff] %v2030_v53  ;;  %v2032_v54 = vld [vmem:[%s16516_s7 + $0x360] sm:$0xff]  ;;  %v2034_v55 = vld [vmem:[%s16516_s7 + $0x370] sm:$0xff] }
  0x35   : > { %v2036_v56 = vld [vmem:[%s16516_s7 + $0x380] sm:$0xff]  ;;  %2033 = vst [vmem:[%s16521_s8 + $0x1b0] sm:$0xff] %v2032_v54  ;;  %2035 = vst [vmem:[%s16521_s8 + $0x1b8] sm:$0xff] %v2034_v55  ;;  %v2038_v57 = vld [vmem:[%s16516_s7 + $0x390] sm:$0xff] }
  0x36   : > { %2037 = vst [vmem:[%s16521_s8 + $0x1c0] sm:$0xff] %v2036_v56  ;;  %v2040_v58 = vld [vmem:[%s16516_s7 + $0x3a0] sm:$0xff]  ;;  %v2042_v59 = vld [vmem:[%s16516_s7 + $0x3b0] sm:$0xff]  ;;  %2039 = vst [vmem:[%s16521_s8 + $0x1c8] sm:$0xff] %v2038_v57 }
  0x37   : > { %2041 = vst [vmem:[%s16521_s8 + $0x1d0] sm:$0xff] %v2040_v58  ;;  %2043 = vst [vmem:[%s16521_s8 + $0x1d8] sm:$0xff] %v2042_v59  ;;  %v2044_v60 = vld [vmem:[%s16516_s7 + $0x3c0] sm:$0xff]  ;;  %v2046_v61 = vld [vmem:[%s16516_s7 + $0x3d0] sm:$0xff] }
  0x38   : > { %v2048_v62 = vld [vmem:[%s16516_s7 + $0x3e0] sm:$0xff]  ;;  %2045 = vst [vmem:[%s16521_s8 + $0x1e0] sm:$0xff] %v2044_v60  ;;  %2047 = vst [vmem:[%s16521_s8 + $0x1e8] sm:$0xff] %v2046_v61  ;;  %v2050_v63 = vld [vmem:[%s16516_s7 + $0x3f0] sm:$0xff] }
  0x39   : > { %2049 = vst [vmem:[%s16521_s8 + $0x1f0] sm:$0xff] %v2048_v62  ;;  %v2052_v0 = vld [vmem:[%s16516_s7 + $0x400] sm:$0xff]  ;;  %v2054_v1 = vld [vmem:[%s16516_s7 + $0x410] sm:$0xff]  ;;  %2051 = vst [vmem:[%s16521_s8 + $0x1f8] sm:$0xff] %v2050_v63 }
  0x3a   : > { %2053 = vst [vmem:[%s16521_s8 + $0x200] sm:$0xff] %v2052_v0  ;;  %2055 = vst [vmem:[%s16521_s8 + $0x208] sm:$0xff] %v2054_v1  ;;  %v2056_v2 = vld [vmem:[%s16516_s7 + $0x420] sm:$0xff]  ;;  %v2058_v3 = vld [vmem:[%s16516_s7 + $0x430] sm:$0xff] }
  0x3b   : > { %v2060_v4 = vld [vmem:[%s16516_s7 + $0x440] sm:$0xff]  ;;  %2057 = vst [vmem:[%s16521_s8 + $0x210] sm:$0xff] %v2056_v2  ;;  %2059 = vst [vmem:[%s16521_s8 + $0x218] sm:$0xff] %v2058_v3  ;;  %v2062_v5 = vld [vmem:[%s16516_s7 + $0x450] sm:$0xff] }
  0x3c   : > { %2061 = vst [vmem:[%s16521_s8 + $0x220] sm:$0xff] %v2060_v4  ;;  %v2064_v6 = vld [vmem:[%s16516_s7 + $0x460] sm:$0xff]  ;;  %v2066_v7 = vld [vmem:[%s16516_s7 + $0x470] sm:$0xff]  ;;  %2063 = vst [vmem:[%s16521_s8 + $0x228] sm:$0xff] %v2062_v5 }
  0x3d   : > { %2065 = vst [vmem:[%s16521_s8 + $0x230] sm:$0xff] %v2064_v6  ;;  %2067 = vst [vmem:[%s16521_s8 + $0x238] sm:$0xff] %v2066_v7  ;;  %v2068_v8 = vld [vmem:[%s16516_s7 + $0x480] sm:$0xff]  ;;  %v2070_v9 = vld [vmem:[%s16516_s7 + $0x490] sm:$0xff] }
  0x3e   : > { %v2072_v10 = vld [vmem:[%s16516_s7 + $0x4a0] sm:$0xff]  ;;  %2069 = vst [vmem:[%s16521_s8 + $0x240] sm:$0xff] %v2068_v8  ;;  %2071 = vst [vmem:[%s16521_s8 + $0x248] sm:$0xff] %v2070_v9  ;;  %v2074_v11 = vld [vmem:[%s16516_s7 + $0x4b0] sm:$0xff] }
  0x3f   : > { %2073 = vst [vmem:[%s16521_s8 + $0x250] sm:$0xff] %v2072_v10  ;;  %v2076_v12 = vld [vmem:[%s16516_s7 + $0x4c0] sm:$0xff]  ;;  %v2078_v13 = vld [vmem:[%s16516_s7 + $0x4d0] sm:$0xff]  ;;  %2075 = vst [vmem:[%s16521_s8 + $0x258] sm:$0xff] %v2074_v11 }
  0x40   : > { %2077 = vst [vmem:[%s16521_s8 + $0x260] sm:$0xff] %v2076_v12  ;;  %2079 = vst [vmem:[%s16521_s8 + $0x268] sm:$0xff] %v2078_v13  ;;  %v2080_v14 = vld [vmem:[%s16516_s7 + $0x4e0] sm:$0xff]  ;;  %v2082_v15 = vld [vmem:[%s16516_s7 + $0x4f0] sm:$0xff] }
  0x41   : > { %v2084_v16 = vld [vmem:[%s16516_s7 + $0x500] sm:$0xff]  ;;  %2081 = vst [vmem:[%s16521_s8 + $0x270] sm:$0xff] %v2080_v14  ;;  %2083 = vst [vmem:[%s16521_s8 + $0x278] sm:$0xff] %v2082_v15  ;;  %v2086_v17 = vld [vmem:[%s16516_s7 + $0x510] sm:$0xff] }
  0x42   : > { %2085 = vst [vmem:[%s16521_s8 + $0x280] sm:$0xff] %v2084_v16  ;;  %v2088_v18 = vld [vmem:[%s16516_s7 + $0x520] sm:$0xff]  ;;  %v2090_v19 = vld [vmem:[%s16516_s7 + $0x530] sm:$0xff]  ;;  %2087 = vst [vmem:[%s16521_s8 + $0x288] sm:$0xff] %v2086_v17 }
  0x43   : > { %2089 = vst [vmem:[%s16521_s8 + $0x290] sm:$0xff] %v2088_v18  ;;  %2091 = vst [vmem:[%s16521_s8 + $0x298] sm:$0xff] %v2090_v19  ;;  %v2092_v20 = vld [vmem:[%s16516_s7 + $0x540] sm:$0xff]  ;;  %v2094_v21 = vld [vmem:[%s16516_s7 + $0x550] sm:$0xff] }
  0x44   : > { %v2096_v22 = vld [vmem:[%s16516_s7 + $0x560] sm:$0xff]  ;;  %2093 = vst [vmem:[%s16521_s8 + $0x2a0] sm:$0xff] %v2092_v20  ;;  %2095 = vst [vmem:[%s16521_s8 + $0x2a8] sm:$0xff] %v2094_v21  ;;  %v2098_v23 = vld [vmem:[%s16516_s7 + $0x570] sm:$0xff] }
  0x45   : > { %2097 = vst [vmem:[%s16521_s8 + $0x2b0] sm:$0xff] %v2096_v22  ;;  %v2100_v24 = vld [vmem:[%s16516_s7 + $0x580] sm:$0xff]  ;;  %v2102_v25 = vld [vmem:[%s16516_s7 + $0x590] sm:$0xff]  ;;  %2099 = vst [vmem:[%s16521_s8 + $0x2b8] sm:$0xff] %v2098_v23 }
  0x46   : > { %2101 = vst [vmem:[%s16521_s8 + $0x2c0] sm:$0xff] %v2100_v24  ;;  %2103 = vst [vmem:[%s16521_s8 + $0x2c8] sm:$0xff] %v2102_v25  ;;  %v2104_v26 = vld [vmem:[%s16516_s7 + $0x5a0] sm:$0xff]  ;;  %v2106_v27 = vld [vmem:[%s16516_s7 + $0x5b0] sm:$0xff] }
  0x47   : > { %v2108_v28 = vld [vmem:[%s16516_s7 + $0x5c0] sm:$0xff]  ;;  %2105 = vst [vmem:[%s16521_s8 + $0x2d0] sm:$0xff] %v2104_v26  ;;  %2107 = vst [vmem:[%s16521_s8 + $0x2d8] sm:$0xff] %v2106_v27  ;;  %v2110_v29 = vld [vmem:[%s16516_s7 + $0x5d0] sm:$0xff] }
  0x48   : > { %2109 = vst [vmem:[%s16521_s8 + $0x2e0] sm:$0xff] %v2108_v28  ;;  %v2112_v30 = vld [vmem:[%s16516_s7 + $0x5e0] sm:$0xff]  ;;  %v2114_v31 = vld [vmem:[%s16516_s7 + $0x5f0] sm:$0xff]  ;;  %2111 = vst [vmem:[%s16521_s8 + $0x2e8] sm:$0xff] %v2110_v29 }
  0x49   : > { %2113 = vst [vmem:[%s16521_s8 + $0x2f0] sm:$0xff] %v2112_v30  ;;  %2115 = vst [vmem:[%s16521_s8 + $0x2f8] sm:$0xff] %v2114_v31  ;;  %v2116_v32 = vld [vmem:[%s16516_s7 + $0x600] sm:$0xff]  ;;  %v2118_v33 = vld [vmem:[%s16516_s7 + $0x610] sm:$0xff] }
  0x4a   : > { %v2120_v34 = vld [vmem:[%s16516_s7 + $0x620] sm:$0xff]  ;;  %2117 = vst [vmem:[%s16521_s8 + $0x300] sm:$0xff] %v2116_v32  ;;  %2119 = vst [vmem:[%s16521_s8 + $0x308] sm:$0xff] %v2118_v33  ;;  %v2122_v35 = vld [vmem:[%s16516_s7 + $0x630] sm:$0xff] }
  0x4b   : > { %2121 = vst [vmem:[%s16521_s8 + $0x310] sm:$0xff] %v2120_v34  ;;  %v2124_v36 = vld [vmem:[%s16516_s7 + $0x640] sm:$0xff]  ;;  %v2126_v37 = vld [vmem:[%s16516_s7 + $0x650] sm:$0xff]  ;;  %2123 = vst [vmem:[%s16521_s8 + $0x318] sm:$0xff] %v2122_v35 }
  0x4c   : > { %2125 = vst [vmem:[%s16521_s8 + $0x320] sm:$0xff] %v2124_v36  ;;  %2127 = vst [vmem:[%s16521_s8 + $0x328] sm:$0xff] %v2126_v37  ;;  %v2128_v38 = vld [vmem:[%s16516_s7 + $0x660] sm:$0xff]  ;;  %v2130_v39 = vld [vmem:[%s16516_s7 + $0x670] sm:$0xff] }
  0x4d   : > { %v2132_v40 = vld [vmem:[%s16516_s7 + $0x680] sm:$0xff]  ;;  %2129 = vst [vmem:[%s16521_s8 + $0x330] sm:$0xff] %v2128_v38  ;;  %2131 = vst [vmem:[%s16521_s8 + $0x338] sm:$0xff] %v2130_v39  ;;  %v2134_v41 = vld [vmem:[%s16516_s7 + $0x690] sm:$0xff] }
  0x4e   : > { %2133 = vst [vmem:[%s16521_s8 + $0x340] sm:$0xff] %v2132_v40  ;;  %v2136_v42 = vld [vmem:[%s16516_s7 + $0x6a0] sm:$0xff]  ;;  %v2138_v43 = vld [vmem:[%s16516_s7 + $0x6b0] sm:$0xff]  ;;  %2135 = vst [vmem:[%s16521_s8 + $0x348] sm:$0xff] %v2134_v41 }
  0x4f   : > { %2137 = vst [vmem:[%s16521_s8 + $0x350] sm:$0xff] %v2136_v42  ;;  %2139 = vst [vmem:[%s16521_s8 + $0x358] sm:$0xff] %v2138_v43  ;;  %v2140_v44 = vld [vmem:[%s16516_s7 + $0x6c0] sm:$0xff]  ;;  %v2142_v45 = vld [vmem:[%s16516_s7 + $0x6d0] sm:$0xff] }
  0x50   : > { %v2144_v46 = vld [vmem:[%s16516_s7 + $0x6e0] sm:$0xff]  ;;  %2141 = vst [vmem:[%s16521_s8 + $0x360] sm:$0xff] %v2140_v44  ;;  %2143 = vst [vmem:[%s16521_s8 + $0x368] sm:$0xff] %v2142_v45  ;;  %v2146_v47 = vld [vmem:[%s16516_s7 + $0x6f0] sm:$0xff] }
  0x51   : > { %2145 = vst [vmem:[%s16521_s8 + $0x370] sm:$0xff] %v2144_v46  ;;  %v2148_v48 = vld [vmem:[%s16516_s7 + $0x700] sm:$0xff]  ;;  %v2150_v49 = vld [vmem:[%s16516_s7 + $0x710] sm:$0xff]  ;;  %2147 = vst [vmem:[%s16521_s8 + $0x378] sm:$0xff] %v2146_v47 }
  0x52   : > { %2149 = vst [vmem:[%s16521_s8 + $0x380] sm:$0xff] %v2148_v48  ;;  %2151 = vst [vmem:[%s16521_s8 + $0x388] sm:$0xff] %v2150_v49  ;;  %v2152_v50 = vld [vmem:[%s16516_s7 + $0x720] sm:$0xff]  ;;  %v2154_v51 = vld [vmem:[%s16516_s7 + $0x730] sm:$0xff] }
  0x53   : > { %v2156_v52 = vld [vmem:[%s16516_s7 + $0x740] sm:$0xff]  ;;  %2153 = vst [vmem:[%s16521_s8 + $0x390] sm:$0xff] %v2152_v50  ;;  %2155 = vst [vmem:[%s16521_s8 + $0x398] sm:$0xff] %v2154_v51  ;;  %v2158_v53 = vld [vmem:[%s16516_s7 + $0x750] sm:$0xff] }
  0x54   : > { %2157 = vst [vmem:[%s16521_s8 + $0x3a0] sm:$0xff] %v2156_v52  ;;  %v2160_v54 = vld [vmem:[%s16516_s7 + $0x760] sm:$0xff]  ;;  %v2162_v55 = vld [vmem:[%s16516_s7 + $0x770] sm:$0xff]  ;;  %2159 = vst [vmem:[%s16521_s8 + $0x3a8] sm:$0xff] %v2158_v53 }
  0x55   : > { %2161 = vst [vmem:[%s16521_s8 + $0x3b0] sm:$0xff] %v2160_v54  ;;  %2163 = vst [vmem:[%s16521_s8 + $0x3b8] sm:$0xff] %v2162_v55  ;;  %v2164_v56 = vld [vmem:[%s16516_s7 + $0x780] sm:$0xff]  ;;  %v2166_v57 = vld [vmem:[%s16516_s7 + $0x790] sm:$0xff] }
  0x56   : > { %v2168_v58 = vld [vmem:[%s16516_s7 + $0x7a0] sm:$0xff]  ;;  %2165 = vst [vmem:[%s16521_s8 + $0x3c0] sm:$0xff] %v2164_v56  ;;  %2167 = vst [vmem:[%s16521_s8 + $0x3c8] sm:$0xff] %v2166_v57  ;;  %v2170_v59 = vld [vmem:[%s16516_s7 + $0x7b0] sm:$0xff] }
  0x57   : > { %2169 = vst [vmem:[%s16521_s8 + $0x3d0] sm:$0xff] %v2168_v58  ;;  %v2172_v60 = vld [vmem:[%s16516_s7 + $0x7c0] sm:$0xff]  ;;  %v2174_v61 = vld [vmem:[%s16516_s7 + $0x7d0] sm:$0xff]  ;;  %2171 = vst [vmem:[%s16521_s8 + $0x3d8] sm:$0xff] %v2170_v59 }
  0x58   : > { %2173 = vst [vmem:[%s16521_s8 + $0x3e0] sm:$0xff] %v2172_v60  ;;  %2175 = vst [vmem:[%s16521_s8 + $0x3e8] sm:$0xff] %v2174_v61  ;;  %v2176_v62 = vld [vmem:[%s16516_s7 + $0x7e0] sm:$0xff]  ;;  %v2178_v63 = vld [vmem:[%s16516_s7 + $0x7f0] sm:$0xff] }
  0x59   : > { %v2180_v0 = vld [vmem:[%s16516_s7 + $0x800] sm:$0xff]  ;;  %2177 = vst [vmem:[%s16521_s8 + $0x3f0] sm:$0xff] %v2176_v62  ;;  %2179 = vst [vmem:[%s16521_s8 + $0x3f8] sm:$0xff] %v2178_v63  ;;  %v2182_v1 = vld [vmem:[%s16516_s7 + $0x810] sm:$0xff] }
  0x5a   : > { %2181 = vst [vmem:[%s16521_s8 + $0x400] sm:$0xff] %v2180_v0  ;;  %v2184_v2 = vld [vmem:[%s16516_s7 + $0x820] sm:$0xff]  ;;  %v2186_v3 = vld [vmem:[%s16516_s7 + $0x830] sm:$0xff]  ;;  %2183 = vst [vmem:[%s16521_s8 + $0x408] sm:$0xff] %v2182_v1 }
  0x5b   : > { %2185 = vst [vmem:[%s16521_s8 + $0x410] sm:$0xff] %v2184_v2  ;;  %2187 = vst [vmem:[%s16521_s8 + $0x418] sm:$0xff] %v2186_v3  ;;  %v2188_v4 = vld [vmem:[%s16516_s7 + $0x840] sm:$0xff]  ;;  %v2190_v5 = vld [vmem:[%s16516_s7 + $0x850] sm:$0xff] }
  0x5c   : > { %v2192_v6 = vld [vmem:[%s16516_s7 + $0x860] sm:$0xff]  ;;  %2189 = vst [vmem:[%s16521_s8 + $0x420] sm:$0xff] %v2188_v4  ;;  %2191 = vst [vmem:[%s16521_s8 + $0x428] sm:$0xff] %v2190_v5  ;;  %v2194_v7 = vld [vmem:[%s16516_s7 + $0x870] sm:$0xff] }
  0x5d   : > { %2193 = vst [vmem:[%s16521_s8 + $0x430] sm:$0xff] %v2192_v6  ;;  %v2196_v8 = vld [vmem:[%s16516_s7 + $0x880] sm:$0xff]  ;;  %v2198_v9 = vld [vmem:[%s16516_s7 + $0x890] sm:$0xff]  ;;  %2195 = vst [vmem:[%s16521_s8 + $0x438] sm:$0xff] %v2194_v7 }
  0x5e   : > { %2197 = vst [vmem:[%s16521_s8 + $0x440] sm:$0xff] %v2196_v8  ;;  %2199 = vst [vmem:[%s16521_s8 + $0x448] sm:$0xff] %v2198_v9  ;;  %v2200_v10 = vld [vmem:[%s16516_s7 + $0x8a0] sm:$0xff]  ;;  %v2202_v11 = vld [vmem:[%s16516_s7 + $0x8b0] sm:$0xff] }
  0x5f   : > { %v2204_v12 = vld [vmem:[%s16516_s7 + $0x8c0] sm:$0xff]  ;;  %2201 = vst [vmem:[%s16521_s8 + $0x450] sm:$0xff] %v2200_v10  ;;  %2203 = vst [vmem:[%s16521_s8 + $0x458] sm:$0xff] %v2202_v11  ;;  %v2206_v13 = vld [vmem:[%s16516_s7 + $0x8d0] sm:$0xff] }
  0x60   : > { %2205 = vst [vmem:[%s16521_s8 + $0x460] sm:$0xff] %v2204_v12  ;;  %v2208_v14 = vld [vmem:[%s16516_s7 + $0x8e0] sm:$0xff]  ;;  %v2210_v15 = vld [vmem:[%s16516_s7 + $0x8f0] sm:$0xff]  ;;  %2207 = vst [vmem:[%s16521_s8 + $0x468] sm:$0xff] %v2206_v13 }
  0x61   : > { %2209 = vst [vmem:[%s16521_s8 + $0x470] sm:$0xff] %v2208_v14  ;;  %2211 = vst [vmem:[%s16521_s8 + $0x478] sm:$0xff] %v2210_v15  ;;  %v2212_v16 = vld [vmem:[%s16516_s7 + $0x900] sm:$0xff]  ;;  %v2214_v17 = vld [vmem:[%s16516_s7 + $0x910] sm:$0xff] }
  0x62   : > { %v2216_v18 = vld [vmem:[%s16516_s7 + $0x920] sm:$0xff]  ;;  %2213 = vst [vmem:[%s16521_s8 + $0x480] sm:$0xff] %v2212_v16  ;;  %2215 = vst [vmem:[%s16521_s8 + $0x488] sm:$0xff] %v2214_v17  ;;  %v2218_v19 = vld [vmem:[%s16516_s7 + $0x930] sm:$0xff] }
  0x63   : > { %2217 = vst [vmem:[%s16521_s8 + $0x490] sm:$0xff] %v2216_v18  ;;  %v2220_v20 = vld [vmem:[%s16516_s7 + $0x940] sm:$0xff]  ;;  %v2222_v21 = vld [vmem:[%s16516_s7 + $0x950] sm:$0xff]  ;;  %2219 = vst [vmem:[%s16521_s8 + $0x498] sm:$0xff] %v2218_v19 }
  0x64   : > { %2221 = vst [vmem:[%s16521_s8 + $0x4a0] sm:$0xff] %v2220_v20  ;;  %2223 = vst [vmem:[%s16521_s8 + $0x4a8] sm:$0xff] %v2222_v21  ;;  %v2224_v22 = vld [vmem:[%s16516_s7 + $0x960] sm:$0xff]  ;;  %v2226_v23 = vld [vmem:[%s16516_s7 + $0x970] sm:$0xff] }
  0x65   : > { %v2228_v24 = vld [vmem:[%s16516_s7 + $0x980] sm:$0xff]  ;;  %2225 = vst [vmem:[%s16521_s8 + $0x4b0] sm:$0xff] %v2224_v22  ;;  %2227 = vst [vmem:[%s16521_s8 + $0x4b8] sm:$0xff] %v2226_v23  ;;  %v2230_v25 = vld [vmem:[%s16516_s7 + $0x990] sm:$0xff] }
  0x66   : > { %2229 = vst [vmem:[%s16521_s8 + $0x4c0] sm:$0xff] %v2228_v24  ;;  %v2232_v26 = vld [vmem:[%s16516_s7 + $0x9a0] sm:$0xff]  ;;  %v2234_v27 = vld [vmem:[%s16516_s7 + $0x9b0] sm:$0xff]  ;;  %2231 = vst [vmem:[%s16521_s8 + $0x4c8] sm:$0xff] %v2230_v25 }
  0x67   : > { %2233 = vst [vmem:[%s16521_s8 + $0x4d0] sm:$0xff] %v2232_v26  ;;  %2235 = vst [vmem:[%s16521_s8 + $0x4d8] sm:$0xff] %v2234_v27  ;;  %v2236_v28 = vld [vmem:[%s16516_s7 + $0x9c0] sm:$0xff]  ;;  %v2238_v29 = vld [vmem:[%s16516_s7 + $0x9d0] sm:$0xff] }
  0x68   : > { %v2240_v30 = vld [vmem:[%s16516_s7 + $0x9e0] sm:$0xff]  ;;  %2237 = vst [vmem:[%s16521_s8 + $0x4e0] sm:$0xff] %v2236_v28  ;;  %2239 = vst [vmem:[%s16521_s8 + $0x4e8] sm:$0xff] %v2238_v29  ;;  %v2242_v31 = vld [vmem:[%s16516_s7 + $0x9f0] sm:$0xff] }
  0x69   : > { %2241 = vst [vmem:[%s16521_s8 + $0x4f0] sm:$0xff] %v2240_v30  ;;  %v2244_v32 = vld [vmem:[%s16516_s7 + $0xa00] sm:$0xff]  ;;  %v2246_v33 = vld [vmem:[%s16516_s7 + $0xa10] sm:$0xff]  ;;  %2243 = vst [vmem:[%s16521_s8 + $0x4f8] sm:$0xff] %v2242_v31 }
  0x6a   : > { %2245 = vst [vmem:[%s16521_s8 + $0x500] sm:$0xff] %v2244_v32  ;;  %2247 = vst [vmem:[%s16521_s8 + $0x508] sm:$0xff] %v2246_v33  ;;  %v2248_v34 = vld [vmem:[%s16516_s7 + $0xa20] sm:$0xff]  ;;  %v2250_v35 = vld [vmem:[%s16516_s7 + $0xa30] sm:$0xff] }
  0x6b   : > { %v2252_v36 = vld [vmem:[%s16516_s7 + $0xa40] sm:$0xff]  ;;  %2249 = vst [vmem:[%s16521_s8 + $0x510] sm:$0xff] %v2248_v34  ;;  %2251 = vst [vmem:[%s16521_s8 + $0x518] sm:$0xff] %v2250_v35  ;;  %v2254_v37 = vld [vmem:[%s16516_s7 + $0xa50] sm:$0xff] }
  0x6c   : > { %2253 = vst [vmem:[%s16521_s8 + $0x520] sm:$0xff] %v2252_v36  ;;  %v2256_v38 = vld [vmem:[%s16516_s7 + $0xa60] sm:$0xff]  ;;  %v2258_v39 = vld [vmem:[%s16516_s7 + $0xa70] sm:$0xff]  ;;  %2255 = vst [vmem:[%s16521_s8 + $0x528] sm:$0xff] %v2254_v37 }
  0x6d   : > { %2257 = vst [vmem:[%s16521_s8 + $0x530] sm:$0xff] %v2256_v38  ;;  %2259 = vst [vmem:[%s16521_s8 + $0x538] sm:$0xff] %v2258_v39  ;;  %v2260_v40 = vld [vmem:[%s16516_s7 + $0xa80] sm:$0xff]  ;;  %v2262_v41 = vld [vmem:[%s16516_s7 + $0xa90] sm:$0xff] }
  0x6e   : > { %v2264_v42 = vld [vmem:[%s16516_s7 + $0xaa0] sm:$0xff]  ;;  %2261 = vst [vmem:[%s16521_s8 + $0x540] sm:$0xff] %v2260_v40  ;;  %2263 = vst [vmem:[%s16521_s8 + $0x548] sm:$0xff] %v2262_v41  ;;  %v2266_v43 = vld [vmem:[%s16516_s7 + $0xab0] sm:$0xff] }
  0x6f   : > { %2265 = vst [vmem:[%s16521_s8 + $0x550] sm:$0xff] %v2264_v42  ;;  %v2268_v44 = vld [vmem:[%s16516_s7 + $0xac0] sm:$0xff]  ;;  %v2270_v45 = vld [vmem:[%s16516_s7 + $0xad0] sm:$0xff]  ;;  %2267 = vst [vmem:[%s16521_s8 + $0x558] sm:$0xff] %v2266_v43 }
  0x70   : > { %2269 = vst [vmem:[%s16521_s8 + $0x560] sm:$0xff] %v2268_v44  ;;  %2271 = vst [vmem:[%s16521_s8 + $0x568] sm:$0xff] %v2270_v45  ;;  %v2272_v46 = vld [vmem:[%s16516_s7 + $0xae0] sm:$0xff]  ;;  %v2274_v47 = vld [vmem:[%s16516_s7 + $0xaf0] sm:$0xff] }
  0x71   : > { %v2276_v48 = vld [vmem:[%s16516_s7 + $0xb00] sm:$0xff]  ;;  %2273 = vst [vmem:[%s16521_s8 + $0x570] sm:$0xff] %v2272_v46  ;;  %2275 = vst [vmem:[%s16521_s8 + $0x578] sm:$0xff] %v2274_v47  ;;  %v2278_v49 = vld [vmem:[%s16516_s7 + $0xb10] sm:$0xff] }
  0x72   : > { %2277 = vst [vmem:[%s16521_s8 + $0x580] sm:$0xff] %v2276_v48  ;;  %v2280_v50 = vld [vmem:[%s16516_s7 + $0xb20] sm:$0xff]  ;;  %v2282_v51 = vld [vmem:[%s16516_s7 + $0xb30] sm:$0xff]  ;;  %2279 = vst [vmem:[%s16521_s8 + $0x588] sm:$0xff] %v2278_v49 }
  0x73   : > { %2281 = vst [vmem:[%s16521_s8 + $0x590] sm:$0xff] %v2280_v50  ;;  %2283 = vst [vmem:[%s16521_s8 + $0x598] sm:$0xff] %v2282_v51  ;;  %v2284_v52 = vld [vmem:[%s16516_s7 + $0xb40] sm:$0xff]  ;;  %v2286_v53 = vld [vmem:[%s16516_s7 + $0xb50] sm:$0xff] }
  0x74   : > { %v2288_v54 = vld [vmem:[%s16516_s7 + $0xb60] sm:$0xff]  ;;  %2285 = vst [vmem:[%s16521_s8 + $0x5a0] sm:$0xff] %v2284_v52  ;;  %2287 = vst [vmem:[%s16521_s8 + $0x5a8] sm:$0xff] %v2286_v53  ;;  %v2290_v55 = vld [vmem:[%s16516_s7 + $0xb70] sm:$0xff] }
  0x75   : > { %2289 = vst [vmem:[%s16521_s8 + $0x5b0] sm:$0xff] %v2288_v54  ;;  %v2292_v56 = vld [vmem:[%s16516_s7 + $0xb80] sm:$0xff]  ;;  %v2294_v57 = vld [vmem:[%s16516_s7 + $0xb90] sm:$0xff]  ;;  %2291 = vst [vmem:[%s16521_s8 + $0x5b8] sm:$0xff] %v2290_v55 }
  0x76   : > { %2293 = vst [vmem:[%s16521_s8 + $0x5c0] sm:$0xff] %v2292_v56  ;;  %2295 = vst [vmem:[%s16521_s8 + $0x5c8] sm:$0xff] %v2294_v57  ;;  %v2296_v58 = vld [vmem:[%s16516_s7 + $0xba0] sm:$0xff]  ;;  %v2298_v59 = vld [vmem:[%s16516_s7 + $0xbb0] sm:$0xff] }
  0x77   : > { %v2300_v60 = vld [vmem:[%s16516_s7 + $0xbc0] sm:$0xff]  ;;  %2297 = vst [vmem:[%s16521_s8 + $0x5d0] sm:$0xff] %v2296_v58  ;;  %2299 = vst [vmem:[%s16521_s8 + $0x5d8] sm:$0xff] %v2298_v59  ;;  %v2302_v61 = vld [vmem:[%s16516_s7 + $0xbd0] sm:$0xff] }
  0x78   : > { %2301 = vst [vmem:[%s16521_s8 + $0x5e0] sm:$0xff] %v2300_v60  ;;  %v2304_v62 = vld [vmem:[%s16516_s7 + $0xbe0] sm:$0xff]  ;;  %v2306_v63 = vld [vmem:[%s16516_s7 + $0xbf0] sm:$0xff]  ;;  %2303 = vst [vmem:[%s16521_s8 + $0x5e8] sm:$0xff] %v2302_v61 }
  0x79   : > { %2305 = vst [vmem:[%s16521_s8 + $0x5f0] sm:$0xff] %v2304_v62  ;;  %2307 = vst [vmem:[%s16521_s8 + $0x5f8] sm:$0xff] %v2306_v63  ;;  %v2308_v0 = vld [vmem:[%s16516_s7 + $0xc00] sm:$0xff]  ;;  %v2310_v1 = vld [vmem:[%s16516_s7 + $0xc10] sm:$0xff] }
  0x7a   : > { %v2312_v2 = vld [vmem:[%s16516_s7 + $0xc20] sm:$0xff]  ;;  %2309 = vst [vmem:[%s16521_s8 + $0x600] sm:$0xff] %v2308_v0  ;;  %2311 = vst [vmem:[%s16521_s8 + $0x608] sm:$0xff] %v2310_v1  ;;  %v2314_v3 = vld [vmem:[%s16516_s7 + $0xc30] sm:$0xff] }
  0x7b   : > { %2313 = vst [vmem:[%s16521_s8 + $0x610] sm:$0xff] %v2312_v2  ;;  %v2316_v4 = vld [vmem:[%s16516_s7 + $0xc40] sm:$0xff]  ;;  %v2318_v5 = vld [vmem:[%s16516_s7 + $0xc50] sm:$0xff]  ;;  %2315 = vst [vmem:[%s16521_s8 + $0x618] sm:$0xff] %v2314_v3 }
  0x7c   : > { %2317 = vst [vmem:[%s16521_s8 + $0x620] sm:$0xff] %v2316_v4  ;;  %2319 = vst [vmem:[%s16521_s8 + $0x628] sm:$0xff] %v2318_v5  ;;  %v2320_v6 = vld [vmem:[%s16516_s7 + $0xc60] sm:$0xff]  ;;  %v2322_v7 = vld [vmem:[%s16516_s7 + $0xc70] sm:$0xff] }
  0x7d   : > { %v2324_v8 = vld [vmem:[%s16516_s7 + $0xc80] sm:$0xff]  ;;  %2321 = vst [vmem:[%s16521_s8 + $0x630] sm:$0xff] %v2320_v6  ;;  %2323 = vst [vmem:[%s16521_s8 + $0x638] sm:$0xff] %v2322_v7  ;;  %v2326_v9 = vld [vmem:[%s16516_s7 + $0xc90] sm:$0xff] }
  0x7e   : > { %2325 = vst [vmem:[%s16521_s8 + $0x640] sm:$0xff] %v2324_v8  ;;  %v2328_v10 = vld [vmem:[%s16516_s7 + $0xca0] sm:$0xff]  ;;  %v2330_v11 = vld [vmem:[%s16516_s7 + $0xcb0] sm:$0xff]  ;;  %2327 = vst [vmem:[%s16521_s8 + $0x648] sm:$0xff] %v2326_v9 }
  0x7f   : > { %2329 = vst [vmem:[%s16521_s8 + $0x650] sm:$0xff] %v2328_v10  ;;  %2331 = vst [vmem:[%s16521_s8 + $0x658] sm:$0xff] %v2330_v11  ;;  %v2332_v12 = vld [vmem:[%s16516_s7 + $0xcc0] sm:$0xff]  ;;  %v2334_v13 = vld [vmem:[%s16516_s7 + $0xcd0] sm:$0xff] }
  0x80   : > { %v2336_v14 = vld [vmem:[%s16516_s7 + $0xce0] sm:$0xff]  ;;  %2333 = vst [vmem:[%s16521_s8 + $0x660] sm:$0xff] %v2332_v12  ;;  %2335 = vst [vmem:[%s16521_s8 + $0x668] sm:$0xff] %v2334_v13  ;;  %v2338_v15 = vld [vmem:[%s16516_s7 + $0xcf0] sm:$0xff] }
  0x81   : > { %2337 = vst [vmem:[%s16521_s8 + $0x670] sm:$0xff] %v2336_v14  ;;  %v2340_v16 = vld [vmem:[%s16516_s7 + $0xd00] sm:$0xff]  ;;  %v2342_v17 = vld [vmem:[%s16516_s7 + $0xd10] sm:$0xff]  ;;  %2339 = vst [vmem:[%s16521_s8 + $0x678] sm:$0xff] %v2338_v15 }
  0x82   : > { %2341 = vst [vmem:[%s16521_s8 + $0x680] sm:$0xff] %v2340_v16  ;;  %2343 = vst [vmem:[%s16521_s8 + $0x688] sm:$0xff] %v2342_v17  ;;  %v2344_v18 = vld [vmem:[%s16516_s7 + $0xd20] sm:$0xff]  ;;  %v2346_v19 = vld [vmem:[%s16516_s7 + $0xd30] sm:$0xff] }
  0x83   : > { %v2348_v20 = vld [vmem:[%s16516_s7 + $0xd40] sm:$0xff]  ;;  %2345 = vst [vmem:[%s16521_s8 + $0x690] sm:$0xff] %v2344_v18  ;;  %2347 = vst [vmem:[%s16521_s8 + $0x698] sm:$0xff] %v2346_v19  ;;  %v2350_v21 = vld [vmem:[%s16516_s7 + $0xd50] sm:$0xff] }
  0x84   : > { %2349 = vst [vmem:[%s16521_s8 + $0x6a0] sm:$0xff] %v2348_v20  ;;  %v2352_v22 = vld [vmem:[%s16516_s7 + $0xd60] sm:$0xff]  ;;  %v2354_v23 = vld [vmem:[%s16516_s7 + $0xd70] sm:$0xff]  ;;  %2351 = vst [vmem:[%s16521_s8 + $0x6a8] sm:$0xff] %v2350_v21 }
  0x85   : > { %2353 = vst [vmem:[%s16521_s8 + $0x6b0] sm:$0xff] %v2352_v22  ;;  %2355 = vst [vmem:[%s16521_s8 + $0x6b8] sm:$0xff] %v2354_v23  ;;  %v2356_v24 = vld [vmem:[%s16516_s7 + $0xd80] sm:$0xff]  ;;  %v2358_v25 = vld [vmem:[%s16516_s7 + $0xd90] sm:$0xff] }
  0x86   : > { %v2360_v26 = vld [vmem:[%s16516_s7 + $0xda0] sm:$0xff]  ;;  %2357 = vst [vmem:[%s16521_s8 + $0x6c0] sm:$0xff] %v2356_v24  ;;  %2359 = vst [vmem:[%s16521_s8 + $0x6c8] sm:$0xff] %v2358_v25  ;;  %v2362_v27 = vld [vmem:[%s16516_s7 + $0xdb0] sm:$0xff] }
  0x87   : > { %2361 = vst [vmem:[%s16521_s8 + $0x6d0] sm:$0xff] %v2360_v26  ;;  %v2364_v28 = vld [vmem:[%s16516_s7 + $0xdc0] sm:$0xff]  ;;  %v2366_v29 = vld [vmem:[%s16516_s7 + $0xdd0] sm:$0xff]  ;;  %2363 = vst [vmem:[%s16521_s8 + $0x6d8] sm:$0xff] %v2362_v27 }
  0x88   : > { %2365 = vst [vmem:[%s16521_s8 + $0x6e0] sm:$0xff] %v2364_v28  ;;  %2367 = vst [vmem:[%s16521_s8 + $0x6e8] sm:$0xff] %v2366_v29  ;;  %v2368_v30 = vld [vmem:[%s16516_s7 + $0xde0] sm:$0xff]  ;;  %v2370_v31 = vld [vmem:[%s16516_s7 + $0xdf0] sm:$0xff] }
  0x89   : > { %v2372_v32 = vld [vmem:[%s16516_s7 + $0xe00] sm:$0xff]  ;;  %2369 = vst [vmem:[%s16521_s8 + $0x6f0] sm:$0xff] %v2368_v30  ;;  %2371 = vst [vmem:[%s16521_s8 + $0x6f8] sm:$0xff] %v2370_v31  ;;  %v2374_v33 = vld [vmem:[%s16516_s7 + $0xe10] sm:$0xff] }
  0x8a   : > { %2373 = vst [vmem:[%s16521_s8 + $0x700] sm:$0xff] %v2372_v32  ;;  %v2376_v34 = vld [vmem:[%s16516_s7 + $0xe20] sm:$0xff]  ;;  %v2378_v35 = vld [vmem:[%s16516_s7 + $0xe30] sm:$0xff]  ;;  %2375 = vst [vmem:[%s16521_s8 + $0x708] sm:$0xff] %v2374_v33 }
  0x8b   : > { %2377 = vst [vmem:[%s16521_s8 + $0x710] sm:$0xff] %v2376_v34  ;;  %2379 = vst [vmem:[%s16521_s8 + $0x718] sm:$0xff] %v2378_v35  ;;  %v2380_v36 = vld [vmem:[%s16516_s7 + $0xe40] sm:$0xff]  ;;  %v2382_v37 = vld [vmem:[%s16516_s7 + $0xe50] sm:$0xff] }
  0x8c   : > { %v2384_v38 = vld [vmem:[%s16516_s7 + $0xe60] sm:$0xff]  ;;  %2381 = vst [vmem:[%s16521_s8 + $0x720] sm:$0xff] %v2380_v36  ;;  %2383 = vst [vmem:[%s16521_s8 + $0x728] sm:$0xff] %v2382_v37  ;;  %v2386_v39 = vld [vmem:[%s16516_s7 + $0xe70] sm:$0xff] }
  0x8d   : > { %2385 = vst [vmem:[%s16521_s8 + $0x730] sm:$0xff] %v2384_v38  ;;  %v2388_v40 = vld [vmem:[%s16516_s7 + $0xe80] sm:$0xff]  ;;  %v2390_v41 = vld [vmem:[%s16516_s7 + $0xe90] sm:$0xff]  ;;  %2387 = vst [vmem:[%s16521_s8 + $0x738] sm:$0xff] %v2386_v39 }
  0x8e   : > { %2389 = vst [vmem:[%s16521_s8 + $0x740] sm:$0xff] %v2388_v40  ;;  %2391 = vst [vmem:[%s16521_s8 + $0x748] sm:$0xff] %v2390_v41  ;;  %v2392_v42 = vld [vmem:[%s16516_s7 + $0xea0] sm:$0xff]  ;;  %v2394_v43 = vld [vmem:[%s16516_s7 + $0xeb0] sm:$0xff] }
  0x8f   : > { %v2396_v44 = vld [vmem:[%s16516_s7 + $0xec0] sm:$0xff]  ;;  %2393 = vst [vmem:[%s16521_s8 + $0x750] sm:$0xff] %v2392_v42  ;;  %2395 = vst [vmem:[%s16521_s8 + $0x758] sm:$0xff] %v2394_v43  ;;  %v2398_v45 = vld [vmem:[%s16516_s7 + $0xed0] sm:$0xff] }
  0x90   : > { %2397 = vst [vmem:[%s16521_s8 + $0x760] sm:$0xff] %v2396_v44  ;;  %v2400_v46 = vld [vmem:[%s16516_s7 + $0xee0] sm:$0xff]  ;;  %v2402_v47 = vld [vmem:[%s16516_s7 + $0xef0] sm:$0xff]  ;;  %2399 = vst [vmem:[%s16521_s8 + $0x768] sm:$0xff] %v2398_v45 }
  0x91   : > { %2401 = vst [vmem:[%s16521_s8 + $0x770] sm:$0xff] %v2400_v46  ;;  %2403 = vst [vmem:[%s16521_s8 + $0x778] sm:$0xff] %v2402_v47  ;;  %v2404_v48 = vld [vmem:[%s16516_s7 + $0xf00] sm:$0xff]  ;;  %v2406_v49 = vld [vmem:[%s16516_s7 + $0xf10] sm:$0xff] }
  0x92   : > { %v2408_v50 = vld [vmem:[%s16516_s7 + $0xf20] sm:$0xff]  ;;  %2405 = vst [vmem:[%s16521_s8 + $0x780] sm:$0xff] %v2404_v48  ;;  %2407 = vst [vmem:[%s16521_s8 + $0x788] sm:$0xff] %v2406_v49  ;;  %v2410_v51 = vld [vmem:[%s16516_s7 + $0xf30] sm:$0xff] }
  0x93   : > { %2409 = vst [vmem:[%s16521_s8 + $0x790] sm:$0xff] %v2408_v50  ;;  %v2412_v52 = vld [vmem:[%s16516_s7 + $0xf40] sm:$0xff]  ;;  %v2414_v53 = vld [vmem:[%s16516_s7 + $0xf50] sm:$0xff]  ;;  %2411 = vst [vmem:[%s16521_s8 + $0x798] sm:$0xff] %v2410_v51 }
  0x94   : > { %2413 = vst [vmem:[%s16521_s8 + $0x7a0] sm:$0xff] %v2412_v52  ;;  %2415 = vst [vmem:[%s16521_s8 + $0x7a8] sm:$0xff] %v2414_v53  ;;  %v2416_v54 = vld [vmem:[%s16516_s7 + $0xf60] sm:$0xff]  ;;  %v2418_v55 = vld [vmem:[%s16516_s7 + $0xf70] sm:$0xff] }
  0x95   : > { %v2420_v56 = vld [vmem:[%s16516_s7 + $0xf80] sm:$0xff]  ;;  %2417 = vst [vmem:[%s16521_s8 + $0x7b0] sm:$0xff] %v2416_v54  ;;  %2419 = vst [vmem:[%s16521_s8 + $0x7b8] sm:$0xff] %v2418_v55  ;;  %v2422_v57 = vld [vmem:[%s16516_s7 + $0xf90] sm:$0xff] }
  0x96   : > { %2421 = vst [vmem:[%s16521_s8 + $0x7c0] sm:$0xff] %v2420_v56  ;;  %v2424_v58 = vld [vmem:[%s16516_s7 + $0xfa0] sm:$0xff]  ;;  %v2426_v59 = vld [vmem:[%s16516_s7 + $0xfb0] sm:$0xff]  ;;  %2423 = vst [vmem:[%s16521_s8 + $0x7c8] sm:$0xff] %v2422_v57 }
  0x97   : > { %2425 = vst [vmem:[%s16521_s8 + $0x7d0] sm:$0xff] %v2424_v58  ;;  %2427 = vst [vmem:[%s16521_s8 + $0x7d8] sm:$0xff] %v2426_v59  ;;  %v2428_v60 = vld [vmem:[%s16516_s7 + $0xfc0] sm:$0xff]  ;;  %v2430_v61 = vld [vmem:[%s16516_s7 + $0xfd0] sm:$0xff] }
  0x98   : > { %v2432_v62 = vld [vmem:[%s16516_s7 + $0xfe0] sm:$0xff]  ;;  %2429 = vst [vmem:[%s16521_s8 + $0x7e0] sm:$0xff] %v2428_v60  ;;  %2431 = vst [vmem:[%s16521_s8 + $0x7e8] sm:$0xff] %v2430_v61  ;;  %v2434_v63 = vld [vmem:[%s16516_s7 + $0xff0] sm:$0xff] }
  0x99   : > { %2433 = vst [vmem:[%s16521_s8 + $0x7f0] sm:$0xff] %v2432_v62  ;;  %v2436_v0 = vld [vmem:[%s16516_s7 + $0x1000] sm:$0xff]  ;;  %v2438_v1 = vld [vmem:[%s16516_s7 + $0x1010] sm:$0xff]  ;;  %2435 = vst [vmem:[%s16521_s8 + $0x7f8] sm:$0xff] %v2434_v63 }
  0x9a   : > { %2437 = vst [vmem:[%s16521_s8 + $0x800] sm:$0xff] %v2436_v0  ;;  %2439 = vst [vmem:[%s16521_s8 + $0x808] sm:$0xff] %v2438_v1  ;;  %v2440_v2 = vld [vmem:[%s16516_s7 + $0x1020] sm:$0xff]  ;;  %v2442_v3 = vld [vmem:[%s16516_s7 + $0x1030] sm:$0xff] }
  0x9b   : > { %v2444_v4 = vld [vmem:[%s16516_s7 + $0x1040] sm:$0xff]  ;;  %2441 = vst [vmem:[%s16521_s8 + $0x810] sm:$0xff] %v2440_v2  ;;  %2443 = vst [vmem:[%s16521_s8 + $0x818] sm:$0xff] %v2442_v3  ;;  %v2446_v5 = vld [vmem:[%s16516_s7 + $0x1050] sm:$0xff] }
  0x9c   : > { %2445 = vst [vmem:[%s16521_s8 + $0x820] sm:$0xff] %v2444_v4  ;;  %v2448_v6 = vld [vmem:[%s16516_s7 + $0x1060] sm:$0xff]  ;;  %v2450_v7 = vld [vmem:[%s16516_s7 + $0x1070] sm:$0xff]  ;;  %2447 = vst [vmem:[%s16521_s8 + $0x828] sm:$0xff] %v2446_v5 }
  0x9d   : > { %2449 = vst [vmem:[%s16521_s8 + $0x830] sm:$0xff] %v2448_v6  ;;  %2451 = vst [vmem:[%s16521_s8 + $0x838] sm:$0xff] %v2450_v7  ;;  %v2452_v8 = vld [vmem:[%s16516_s7 + $0x1080] sm:$0xff]  ;;  %v2454_v9 = vld [vmem:[%s16516_s7 + $0x1090] sm:$0xff] }
  0x9e   : > { %v2456_v10 = vld [vmem:[%s16516_s7 + $0x10a0] sm:$0xff]  ;;  %2453 = vst [vmem:[%s16521_s8 + $0x840] sm:$0xff] %v2452_v8  ;;  %2455 = vst [vmem:[%s16521_s8 + $0x848] sm:$0xff] %v2454_v9  ;;  %v2458_v11 = vld [vmem:[%s16516_s7 + $0x10b0] sm:$0xff] }
  0x9f   : > { %2457 = vst [vmem:[%s16521_s8 + $0x850] sm:$0xff] %v2456_v10  ;;  %v2460_v12 = vld [vmem:[%s16516_s7 + $0x10c0] sm:$0xff]  ;;  %v2462_v13 = vld [vmem:[%s16516_s7 + $0x10d0] sm:$0xff]  ;;  %2459 = vst [vmem:[%s16521_s8 + $0x858] sm:$0xff] %v2458_v11 }
  0xa0   : > { %2461 = vst [vmem:[%s16521_s8 + $0x860] sm:$0xff] %v2460_v12  ;;  %2463 = vst [vmem:[%s16521_s8 + $0x868] sm:$0xff] %v2462_v13  ;;  %v2464_v14 = vld [vmem:[%s16516_s7 + $0x10e0] sm:$0xff]  ;;  %v2466_v15 = vld [vmem:[%s16516_s7 + $0x10f0] sm:$0xff] }
  0xa1   : > { %v2468_v16 = vld [vmem:[%s16516_s7 + $0x1100] sm:$0xff]  ;;  %2465 = vst [vmem:[%s16521_s8 + $0x870] sm:$0xff] %v2464_v14  ;;  %2467 = vst [vmem:[%s16521_s8 + $0x878] sm:$0xff] %v2466_v15  ;;  %v2470_v17 = vld [vmem:[%s16516_s7 + $0x1110] sm:$0xff] }
  0xa2   : > { %2469 = vst [vmem:[%s16521_s8 + $0x880] sm:$0xff] %v2468_v16  ;;  %v2472_v18 = vld [vmem:[%s16516_s7 + $0x1120] sm:$0xff]  ;;  %v2474_v19 = vld [vmem:[%s16516_s7 + $0x1130] sm:$0xff]  ;;  %2471 = vst [vmem:[%s16521_s8 + $0x888] sm:$0xff] %v2470_v17 }
  0xa3   : > { %2473 = vst [vmem:[%s16521_s8 + $0x890] sm:$0xff] %v2472_v18  ;;  %2475 = vst [vmem:[%s16521_s8 + $0x898] sm:$0xff] %v2474_v19  ;;  %v2476_v20 = vld [vmem:[%s16516_s7 + $0x1140] sm:$0xff]  ;;  %v2478_v21 = vld [vmem:[%s16516_s7 + $0x1150] sm:$0xff] }
  0xa4   : > { %v2480_v22 = vld [vmem:[%s16516_s7 + $0x1160] sm:$0xff]  ;;  %2477 = vst [vmem:[%s16521_s8 + $0x8a0] sm:$0xff] %v2476_v20  ;;  %2479 = vst [vmem:[%s16521_s8 + $0x8a8] sm:$0xff] %v2478_v21  ;;  %v2482_v23 = vld [vmem:[%s16516_s7 + $0x1170] sm:$0xff] }
  0xa5   : > { %2481 = vst [vmem:[%s16521_s8 + $0x8b0] sm:$0xff] %v2480_v22  ;;  %v2484_v24 = vld [vmem:[%s16516_s7 + $0x1180] sm:$0xff]  ;;  %v2486_v25 = vld [vmem:[%s16516_s7 + $0x1190] sm:$0xff]  ;;  %2483 = vst [vmem:[%s16521_s8 + $0x8b8] sm:$0xff] %v2482_v23 }
  0xa6   : > { %2485 = vst [vmem:[%s16521_s8 + $0x8c0] sm:$0xff] %v2484_v24  ;;  %2487 = vst [vmem:[%s16521_s8 + $0x8c8] sm:$0xff] %v2486_v25  ;;  %v2488_v26 = vld [vmem:[%s16516_s7 + $0x11a0] sm:$0xff]  ;;  %v2490_v27 = vld [vmem:[%s16516_s7 + $0x11b0] sm:$0xff] }
  0xa7   : > { %v2492_v28 = vld [vmem:[%s16516_s7 + $0x11c0] sm:$0xff]  ;;  %2489 = vst [vmem:[%s16521_s8 + $0x8d0] sm:$0xff] %v2488_v26  ;;  %2491 = vst [vmem:[%s16521_s8 + $0x8d8] sm:$0xff] %v2490_v27  ;;  %v2494_v29 = vld [vmem:[%s16516_s7 + $0x11d0] sm:$0xff] }
  0xa8   : > { %2493 = vst [vmem:[%s16521_s8 + $0x8e0] sm:$0xff] %v2492_v28  ;;  %v2496_v30 = vld [vmem:[%s16516_s7 + $0x11e0] sm:$0xff]  ;;  %v2498_v31 = vld [vmem:[%s16516_s7 + $0x11f0] sm:$0xff]  ;;  %2495 = vst [vmem:[%s16521_s8 + $0x8e8] sm:$0xff] %v2494_v29 }
  0xa9   : > { %2497 = vst [vmem:[%s16521_s8 + $0x8f0] sm:$0xff] %v2496_v30  ;;  %2499 = vst [vmem:[%s16521_s8 + $0x8f8] sm:$0xff] %v2498_v31  ;;  %v2500_v32 = vld [vmem:[%s16516_s7 + $0x1200] sm:$0xff]  ;;  %v2502_v33 = vld [vmem:[%s16516_s7 + $0x1210] sm:$0xff] }
  0xaa   : > { %v2504_v34 = vld [vmem:[%s16516_s7 + $0x1220] sm:$0xff]  ;;  %2501 = vst [vmem:[%s16521_s8 + $0x900] sm:$0xff] %v2500_v32  ;;  %2503 = vst [vmem:[%s16521_s8 + $0x908] sm:$0xff] %v2502_v33  ;;  %v2506_v35 = vld [vmem:[%s16516_s7 + $0x1230] sm:$0xff] }
  0xab   : > { %2505 = vst [vmem:[%s16521_s8 + $0x910] sm:$0xff] %v2504_v34  ;;  %v2508_v36 = vld [vmem:[%s16516_s7 + $0x1240] sm:$0xff]  ;;  %v2510_v37 = vld [vmem:[%s16516_s7 + $0x1250] sm:$0xff]  ;;  %2507 = vst [vmem:[%s16521_s8 + $0x918] sm:$0xff] %v2506_v35 }
  0xac   : > { %2509 = vst [vmem:[%s16521_s8 + $0x920] sm:$0xff] %v2508_v36  ;;  %2511 = vst [vmem:[%s16521_s8 + $0x928] sm:$0xff] %v2510_v37  ;;  %v2512_v38 = vld [vmem:[%s16516_s7 + $0x1260] sm:$0xff]  ;;  %v2514_v39 = vld [vmem:[%s16516_s7 + $0x1270] sm:$0xff] }
  0xad   : > { %v2516_v40 = vld [vmem:[%s16516_s7 + $0x1280] sm:$0xff]  ;;  %2513 = vst [vmem:[%s16521_s8 + $0x930] sm:$0xff] %v2512_v38  ;;  %2515 = vst [vmem:[%s16521_s8 + $0x938] sm:$0xff] %v2514_v39  ;;  %v2518_v41 = vld [vmem:[%s16516_s7 + $0x1290] sm:$0xff] }
  0xae   : > { %2517 = vst [vmem:[%s16521_s8 + $0x940] sm:$0xff] %v2516_v40  ;;  %v2520_v42 = vld [vmem:[%s16516_s7 + $0x12a0] sm:$0xff]  ;;  %v2522_v43 = vld [vmem:[%s16516_s7 + $0x12b0] sm:$0xff]  ;;  %2519 = vst [vmem:[%s16521_s8 + $0x948] sm:$0xff] %v2518_v41 }
  0xaf   : > { %2521 = vst [vmem:[%s16521_s8 + $0x950] sm:$0xff] %v2520_v42  ;;  %2523 = vst [vmem:[%s16521_s8 + $0x958] sm:$0xff] %v2522_v43  ;;  %v2524_v44 = vld [vmem:[%s16516_s7 + $0x12c0] sm:$0xff]  ;;  %v2526_v45 = vld [vmem:[%s16516_s7 + $0x12d0] sm:$0xff] }
  0xb0   : > { %v2528_v46 = vld [vmem:[%s16516_s7 + $0x12e0] sm:$0xff]  ;;  %2525 = vst [vmem:[%s16521_s8 + $0x960] sm:$0xff] %v2524_v44  ;;  %2527 = vst [vmem:[%s16521_s8 + $0x968] sm:$0xff] %v2526_v45  ;;  %v2530_v47 = vld [vmem:[%s16516_s7 + $0x12f0] sm:$0xff] }
  0xb1   : > { %2529 = vst [vmem:[%s16521_s8 + $0x970] sm:$0xff] %v2528_v46  ;;  %v2532_v48 = vld [vmem:[%s16516_s7 + $0x1300] sm:$0xff]  ;;  %v2534_v49 = vld [vmem:[%s16516_s7 + $0x1310] sm:$0xff]  ;;  %2531 = vst [vmem:[%s16521_s8 + $0x978] sm:$0xff] %v2530_v47 }
  0xb2   : > { %2533 = vst [vmem:[%s16521_s8 + $0x980] sm:$0xff] %v2532_v48  ;;  %2535 = vst [vmem:[%s16521_s8 + $0x988] sm:$0xff] %v2534_v49  ;;  %v2536_v50 = vld [vmem:[%s16516_s7 + $0x1320] sm:$0xff]  ;;  %v2538_v51 = vld [vmem:[%s16516_s7 + $0x1330] sm:$0xff] }
  0xb3   : > { %v2540_v52 = vld [vmem:[%s16516_s7 + $0x1340] sm:$0xff]  ;;  %2537 = vst [vmem:[%s16521_s8 + $0x990] sm:$0xff] %v2536_v50  ;;  %2539 = vst [vmem:[%s16521_s8 + $0x998] sm:$0xff] %v2538_v51  ;;  %v2542_v53 = vld [vmem:[%s16516_s7 + $0x1350] sm:$0xff] }
  0xb4   : > { %2541 = vst [vmem:[%s16521_s8 + $0x9a0] sm:$0xff] %v2540_v52  ;;  %v2544_v54 = vld [vmem:[%s16516_s7 + $0x1360] sm:$0xff]  ;;  %v2546_v55 = vld [vmem:[%s16516_s7 + $0x1370] sm:$0xff]  ;;  %2543 = vst [vmem:[%s16521_s8 + $0x9a8] sm:$0xff] %v2542_v53 }
  0xb5   : > { %2545 = vst [vmem:[%s16521_s8 + $0x9b0] sm:$0xff] %v2544_v54  ;;  %2547 = vst [vmem:[%s16521_s8 + $0x9b8] sm:$0xff] %v2546_v55  ;;  %v2548_v56 = vld [vmem:[%s16516_s7 + $0x1380] sm:$0xff]  ;;  %v2550_v57 = vld [vmem:[%s16516_s7 + $0x1390] sm:$0xff] }
  0xb6   : > { %v2552_v58 = vld [vmem:[%s16516_s7 + $0x13a0] sm:$0xff]  ;;  %2549 = vst [vmem:[%s16521_s8 + $0x9c0] sm:$0xff] %v2548_v56  ;;  %2551 = vst [vmem:[%s16521_s8 + $0x9c8] sm:$0xff] %v2550_v57  ;;  %v2554_v59 = vld [vmem:[%s16516_s7 + $0x13b0] sm:$0xff] }
  0xb7   : > { %2553 = vst [vmem:[%s16521_s8 + $0x9d0] sm:$0xff] %v2552_v58  ;;  %v2556_v60 = vld [vmem:[%s16516_s7 + $0x13c0] sm:$0xff]  ;;  %v2558_v61 = vld [vmem:[%s16516_s7 + $0x13d0] sm:$0xff]  ;;  %2555 = vst [vmem:[%s16521_s8 + $0x9d8] sm:$0xff] %v2554_v59 }
  0xb8   : > { %2557 = vst [vmem:[%s16521_s8 + $0x9e0] sm:$0xff] %v2556_v60  ;;  %2559 = vst [vmem:[%s16521_s8 + $0x9e8] sm:$0xff] %v2558_v61  ;;  %v2560_v62 = vld [vmem:[%s16516_s7 + $0x13e0] sm:$0xff]  ;;  %v2562_v63 = vld [vmem:[%s16516_s7 + $0x13f0] sm:$0xff] }
  0xb9   : > { %v2564_v0 = vld [vmem:[%s16516_s7 + $0x1400] sm:$0xff]  ;;  %2561 = vst [vmem:[%s16521_s8 + $0x9f0] sm:$0xff] %v2560_v62  ;;  %2563 = vst [vmem:[%s16521_s8 + $0x9f8] sm:$0xff] %v2562_v63  ;;  %v2566_v1 = vld [vmem:[%s16516_s7 + $0x1410] sm:$0xff] }
  0xba   : > { %2565 = vst [vmem:[%s16521_s8 + $0xa00] sm:$0xff] %v2564_v0  ;;  %v2568_v2 = vld [vmem:[%s16516_s7 + $0x1420] sm:$0xff]  ;;  %v2570_v3 = vld [vmem:[%s16516_s7 + $0x1430] sm:$0xff]  ;;  %2567 = vst [vmem:[%s16521_s8 + $0xa08] sm:$0xff] %v2566_v1 }
  0xbb   : > { %2569 = vst [vmem:[%s16521_s8 + $0xa10] sm:$0xff] %v2568_v2  ;;  %2571 = vst [vmem:[%s16521_s8 + $0xa18] sm:$0xff] %v2570_v3  ;;  %v2572_v4 = vld [vmem:[%s16516_s7 + $0x1440] sm:$0xff]  ;;  %v2574_v5 = vld [vmem:[%s16516_s7 + $0x1450] sm:$0xff] }
  0xbc   : > { %v2576_v6 = vld [vmem:[%s16516_s7 + $0x1460] sm:$0xff]  ;;  %2573 = vst [vmem:[%s16521_s8 + $0xa20] sm:$0xff] %v2572_v4  ;;  %2575 = vst [vmem:[%s16521_s8 + $0xa28] sm:$0xff] %v2574_v5  ;;  %v2578_v7 = vld [vmem:[%s16516_s7 + $0x1470] sm:$0xff] }
  0xbd   : > { %2577 = vst [vmem:[%s16521_s8 + $0xa30] sm:$0xff] %v2576_v6  ;;  %v2580_v8 = vld [vmem:[%s16516_s7 + $0x1480] sm:$0xff]  ;;  %v2582_v9 = vld [vmem:[%s16516_s7 + $0x1490] sm:$0xff]  ;;  %2579 = vst [vmem:[%s16521_s8 + $0xa38] sm:$0xff] %v2578_v7 }
  0xbe   : > { %2581 = vst [vmem:[%s16521_s8 + $0xa40] sm:$0xff] %v2580_v8  ;;  %2583 = vst [vmem:[%s16521_s8 + $0xa48] sm:$0xff] %v2582_v9  ;;  %v2584_v10 = vld [vmem:[%s16516_s7 + $0x14a0] sm:$0xff]  ;;  %v2586_v11 = vld [vmem:[%s16516_s7 + $0x14b0] sm:$0xff] }
  0xbf   : > { %v2588_v12 = vld [vmem:[%s16516_s7 + $0x14c0] sm:$0xff]  ;;  %2585 = vst [vmem:[%s16521_s8 + $0xa50] sm:$0xff] %v2584_v10  ;;  %2587 = vst [vmem:[%s16521_s8 + $0xa58] sm:$0xff] %v2586_v11  ;;  %v2590_v13 = vld [vmem:[%s16516_s7 + $0x14d0] sm:$0xff] }
  0xc0   : > { %2589 = vst [vmem:[%s16521_s8 + $0xa60] sm:$0xff] %v2588_v12  ;;  %v2592_v14 = vld [vmem:[%s16516_s7 + $0x14e0] sm:$0xff]  ;;  %v2594_v15 = vld [vmem:[%s16516_s7 + $0x14f0] sm:$0xff]  ;;  %2591 = vst [vmem:[%s16521_s8 + $0xa68] sm:$0xff] %v2590_v13 }
  0xc1   : > { %2593 = vst [vmem:[%s16521_s8 + $0xa70] sm:$0xff] %v2592_v14  ;;  %2595 = vst [vmem:[%s16521_s8 + $0xa78] sm:$0xff] %v2594_v15  ;;  %v2596_v16 = vld [vmem:[%s16516_s7 + $0x1500] sm:$0xff]  ;;  %v2598_v17 = vld [vmem:[%s16516_s7 + $0x1510] sm:$0xff] }
  0xc2   : > { %v2600_v18 = vld [vmem:[%s16516_s7 + $0x1520] sm:$0xff]  ;;  %2597 = vst [vmem:[%s16521_s8 + $0xa80] sm:$0xff] %v2596_v16  ;;  %2599 = vst [vmem:[%s16521_s8 + $0xa88] sm:$0xff] %v2598_v17  ;;  %v2602_v19 = vld [vmem:[%s16516_s7 + $0x1530] sm:$0xff] }
  0xc3   : > { %2601 = vst [vmem:[%s16521_s8 + $0xa90] sm:$0xff] %v2600_v18  ;;  %v2604_v20 = vld [vmem:[%s16516_s7 + $0x1540] sm:$0xff]  ;;  %v2606_v21 = vld [vmem:[%s16516_s7 + $0x1550] sm:$0xff]  ;;  %2603 = vst [vmem:[%s16521_s8 + $0xa98] sm:$0xff] %v2602_v19 }
  0xc4   : > { %2605 = vst [vmem:[%s16521_s8 + $0xaa0] sm:$0xff] %v2604_v20  ;;  %2607 = vst [vmem:[%s16521_s8 + $0xaa8] sm:$0xff] %v2606_v21  ;;  %v2608_v22 = vld [vmem:[%s16516_s7 + $0x1560] sm:$0xff]  ;;  %v2610_v23 = vld [vmem:[%s16516_s7 + $0x1570] sm:$0xff] }
  0xc5   : > { %v2612_v24 = vld [vmem:[%s16516_s7 + $0x1580] sm:$0xff]  ;;  %2609 = vst [vmem:[%s16521_s8 + $0xab0] sm:$0xff] %v2608_v22  ;;  %2611 = vst [vmem:[%s16521_s8 + $0xab8] sm:$0xff] %v2610_v23  ;;  %v2614_v25 = vld [vmem:[%s16516_s7 + $0x1590] sm:$0xff] }
  0xc6   : > { %2613 = vst [vmem:[%s16521_s8 + $0xac0] sm:$0xff] %v2612_v24  ;;  %v2616_v26 = vld [vmem:[%s16516_s7 + $0x15a0] sm:$0xff]  ;;  %v2618_v27 = vld [vmem:[%s16516_s7 + $0x15b0] sm:$0xff]  ;;  %2615 = vst [vmem:[%s16521_s8 + $0xac8] sm:$0xff] %v2614_v25 }
  0xc7   : > { %2617 = vst [vmem:[%s16521_s8 + $0xad0] sm:$0xff] %v2616_v26  ;;  %2619 = vst [vmem:[%s16521_s8 + $0xad8] sm:$0xff] %v2618_v27  ;;  %v2620_v28 = vld [vmem:[%s16516_s7 + $0x15c0] sm:$0xff]  ;;  %v2622_v29 = vld [vmem:[%s16516_s7 + $0x15d0] sm:$0xff] }
  0xc8   : > { %v2624_v30 = vld [vmem:[%s16516_s7 + $0x15e0] sm:$0xff]  ;;  %2621 = vst [vmem:[%s16521_s8 + $0xae0] sm:$0xff] %v2620_v28  ;;  %2623 = vst [vmem:[%s16521_s8 + $0xae8] sm:$0xff] %v2622_v29  ;;  %v2626_v31 = vld [vmem:[%s16516_s7 + $0x15f0] sm:$0xff] }
  0xc9   : > { %2625 = vst [vmem:[%s16521_s8 + $0xaf0] sm:$0xff] %v2624_v30  ;;  %v2628_v32 = vld [vmem:[%s16516_s7 + $0x1600] sm:$0xff]  ;;  %v2630_v33 = vld [vmem:[%s16516_s7 + $0x1610] sm:$0xff]  ;;  %2627 = vst [vmem:[%s16521_s8 + $0xaf8] sm:$0xff] %v2626_v31 }
  0xca   : > { %2629 = vst [vmem:[%s16521_s8 + $0xb00] sm:$0xff] %v2628_v32  ;;  %2631 = vst [vmem:[%s16521_s8 + $0xb08] sm:$0xff] %v2630_v33  ;;  %v2632_v34 = vld [vmem:[%s16516_s7 + $0x1620] sm:$0xff]  ;;  %v2634_v35 = vld [vmem:[%s16516_s7 + $0x1630] sm:$0xff] }
  0xcb   : > { %v2636_v36 = vld [vmem:[%s16516_s7 + $0x1640] sm:$0xff]  ;;  %2633 = vst [vmem:[%s16521_s8 + $0xb10] sm:$0xff] %v2632_v34  ;;  %2635 = vst [vmem:[%s16521_s8 + $0xb18] sm:$0xff] %v2634_v35  ;;  %v2638_v37 = vld [vmem:[%s16516_s7 + $0x1650] sm:$0xff] }
  0xcc   : > { %2637 = vst [vmem:[%s16521_s8 + $0xb20] sm:$0xff] %v2636_v36  ;;  %v2640_v38 = vld [vmem:[%s16516_s7 + $0x1660] sm:$0xff]  ;;  %v2642_v39 = vld [vmem:[%s16516_s7 + $0x1670] sm:$0xff]  ;;  %2639 = vst [vmem:[%s16521_s8 + $0xb28] sm:$0xff] %v2638_v37 }
  0xcd   : > { %2641 = vst [vmem:[%s16521_s8 + $0xb30] sm:$0xff] %v2640_v38  ;;  %2643 = vst [vmem:[%s16521_s8 + $0xb38] sm:$0xff] %v2642_v39  ;;  %v2644_v40 = vld [vmem:[%s16516_s7 + $0x1680] sm:$0xff]  ;;  %v2646_v41 = vld [vmem:[%s16516_s7 + $0x1690] sm:$0xff] }
  0xce   : > { %v2648_v42 = vld [vmem:[%s16516_s7 + $0x16a0] sm:$0xff]  ;;  %2645 = vst [vmem:[%s16521_s8 + $0xb40] sm:$0xff] %v2644_v40  ;;  %2647 = vst [vmem:[%s16521_s8 + $0xb48] sm:$0xff] %v2646_v41  ;;  %v2650_v43 = vld [vmem:[%s16516_s7 + $0x16b0] sm:$0xff] }
  0xcf   : > { %2649 = vst [vmem:[%s16521_s8 + $0xb50] sm:$0xff] %v2648_v42  ;;  %v2652_v44 = vld [vmem:[%s16516_s7 + $0x16c0] sm:$0xff]  ;;  %v2654_v45 = vld [vmem:[%s16516_s7 + $0x16d0] sm:$0xff]  ;;  %2651 = vst [vmem:[%s16521_s8 + $0xb58] sm:$0xff] %v2650_v43 }
  0xd0   : > { %2653 = vst [vmem:[%s16521_s8 + $0xb60] sm:$0xff] %v2652_v44  ;;  %2655 = vst [vmem:[%s16521_s8 + $0xb68] sm:$0xff] %v2654_v45  ;;  %v2656_v46 = vld [vmem:[%s16516_s7 + $0x16e0] sm:$0xff]  ;;  %v2658_v47 = vld [vmem:[%s16516_s7 + $0x16f0] sm:$0xff] }
  0xd1   : > { %v2660_v48 = vld [vmem:[%s16516_s7 + $0x1700] sm:$0xff]  ;;  %2657 = vst [vmem:[%s16521_s8 + $0xb70] sm:$0xff] %v2656_v46  ;;  %2659 = vst [vmem:[%s16521_s8 + $0xb78] sm:$0xff] %v2658_v47  ;;  %v2662_v49 = vld [vmem:[%s16516_s7 + $0x1710] sm:$0xff] }
  0xd2   : > { %2661 = vst [vmem:[%s16521_s8 + $0xb80] sm:$0xff] %v2660_v48  ;;  %v2664_v50 = vld [vmem:[%s16516_s7 + $0x1720] sm:$0xff]  ;;  %v2666_v51 = vld [vmem:[%s16516_s7 + $0x1730] sm:$0xff]  ;;  %2663 = vst [vmem:[%s16521_s8 + $0xb88] sm:$0xff] %v2662_v49 }
  0xd3   : > { %2665 = vst [vmem:[%s16521_s8 + $0xb90] sm:$0xff] %v2664_v50  ;;  %2667 = vst [vmem:[%s16521_s8 + $0xb98] sm:$0xff] %v2666_v51  ;;  %v2668_v52 = vld [vmem:[%s16516_s7 + $0x1740] sm:$0xff]  ;;  %v2670_v53 = vld [vmem:[%s16516_s7 + $0x1750] sm:$0xff] }
  0xd4   : > { %v2672_v54 = vld [vmem:[%s16516_s7 + $0x1760] sm:$0xff]  ;;  %2669 = vst [vmem:[%s16521_s8 + $0xba0] sm:$0xff] %v2668_v52  ;;  %2671 = vst [vmem:[%s16521_s8 + $0xba8] sm:$0xff] %v2670_v53  ;;  %v2674_v55 = vld [vmem:[%s16516_s7 + $0x1770] sm:$0xff] }
  0xd5   : > { %2673 = vst [vmem:[%s16521_s8 + $0xbb0] sm:$0xff] %v2672_v54  ;;  %v2676_v56 = vld [vmem:[%s16516_s7 + $0x1780] sm:$0xff]  ;;  %v2678_v57 = vld [vmem:[%s16516_s7 + $0x1790] sm:$0xff]  ;;  %2675 = vst [vmem:[%s16521_s8 + $0xbb8] sm:$0xff] %v2674_v55 }
  0xd6   : > { %2677 = vst [vmem:[%s16521_s8 + $0xbc0] sm:$0xff] %v2676_v56  ;;  %2679 = vst [vmem:[%s16521_s8 + $0xbc8] sm:$0xff] %v2678_v57  ;;  %v2680_v58 = vld [vmem:[%s16516_s7 + $0x17a0] sm:$0xff]  ;;  %v2682_v59 = vld [vmem:[%s16516_s7 + $0x17b0] sm:$0xff] }
  0xd7   : > { %v2684_v60 = vld [vmem:[%s16516_s7 + $0x17c0] sm:$0xff]  ;;  %2681 = vst [vmem:[%s16521_s8 + $0xbd0] sm:$0xff] %v2680_v58  ;;  %2683 = vst [vmem:[%s16521_s8 + $0xbd8] sm:$0xff] %v2682_v59  ;;  %v2686_v61 = vld [vmem:[%s16516_s7 + $0x17d0] sm:$0xff] }
  0xd8   : > { %2685 = vst [vmem:[%s16521_s8 + $0xbe0] sm:$0xff] %v2684_v60  ;;  %v2688_v62 = vld [vmem:[%s16516_s7 + $0x17e0] sm:$0xff]  ;;  %v2690_v63 = vld [vmem:[%s16516_s7 + $0x17f0] sm:$0xff]  ;;  %2687 = vst [vmem:[%s16521_s8 + $0xbe8] sm:$0xff] %v2686_v61 }
  0xd9   : > { %2689 = vst [vmem:[%s16521_s8 + $0xbf0] sm:$0xff] %v2688_v62  ;;  %2691 = vst [vmem:[%s16521_s8 + $0xbf8] sm:$0xff] %v2690_v63  ;;  %v2692_v0 = vld [vmem:[%s16516_s7 + $0x1800] sm:$0xff]  ;;  %v2694_v1 = vld [vmem:[%s16516_s7 + $0x1810] sm:$0xff] }
  0xda   : > { %v2696_v2 = vld [vmem:[%s16516_s7 + $0x1820] sm:$0xff]  ;;  %2693 = vst [vmem:[%s16521_s8 + $0xc00] sm:$0xff] %v2692_v0  ;;  %2695 = vst [vmem:[%s16521_s8 + $0xc08] sm:$0xff] %v2694_v1  ;;  %v2698_v3 = vld [vmem:[%s16516_s7 + $0x1830] sm:$0xff] }
  0xdb   : > { %2697 = vst [vmem:[%s16521_s8 + $0xc10] sm:$0xff] %v2696_v2  ;;  %v2700_v4 = vld [vmem:[%s16516_s7 + $0x1840] sm:$0xff]  ;;  %v2702_v5 = vld [vmem:[%s16516_s7 + $0x1850] sm:$0xff]  ;;  %2699 = vst [vmem:[%s16521_s8 + $0xc18] sm:$0xff] %v2698_v3 }
  0xdc   : > { %2701 = vst [vmem:[%s16521_s8 + $0xc20] sm:$0xff] %v2700_v4  ;;  %2703 = vst [vmem:[%s16521_s8 + $0xc28] sm:$0xff] %v2702_v5  ;;  %v2704_v6 = vld [vmem:[%s16516_s7 + $0x1860] sm:$0xff]  ;;  %v2706_v7 = vld [vmem:[%s16516_s7 + $0x1870] sm:$0xff] }
  0xdd   : > { %v2708_v8 = vld [vmem:[%s16516_s7 + $0x1880] sm:$0xff]  ;;  %2705 = vst [vmem:[%s16521_s8 + $0xc30] sm:$0xff] %v2704_v6  ;;  %2707 = vst [vmem:[%s16521_s8 + $0xc38] sm:$0xff] %v2706_v7  ;;  %v2710_v9 = vld [vmem:[%s16516_s7 + $0x1890] sm:$0xff] }
  0xde   : > { %2709 = vst [vmem:[%s16521_s8 + $0xc40] sm:$0xff] %v2708_v8  ;;  %v2712_v10 = vld [vmem:[%s16516_s7 + $0x18a0] sm:$0xff]  ;;  %v2714_v11 = vld [vmem:[%s16516_s7 + $0x18b0] sm:$0xff]  ;;  %2711 = vst [vmem:[%s16521_s8 + $0xc48] sm:$0xff] %v2710_v9 }
  0xdf   : > { %2713 = vst [vmem:[%s16521_s8 + $0xc50] sm:$0xff] %v2712_v10  ;;  %2715 = vst [vmem:[%s16521_s8 + $0xc58] sm:$0xff] %v2714_v11  ;;  %v2716_v12 = vld [vmem:[%s16516_s7 + $0x18c0] sm:$0xff]  ;;  %v2718_v13 = vld [vmem:[%s16516_s7 + $0x18d0] sm:$0xff] }
  0xe0   : > { %v2720_v14 = vld [vmem:[%s16516_s7 + $0x18e0] sm:$0xff]  ;;  %2717 = vst [vmem:[%s16521_s8 + $0xc60] sm:$0xff] %v2716_v12  ;;  %2719 = vst [vmem:[%s16521_s8 + $0xc68] sm:$0xff] %v2718_v13  ;;  %v2722_v15 = vld [vmem:[%s16516_s7 + $0x18f0] sm:$0xff] }
  0xe1   : > { %2721 = vst [vmem:[%s16521_s8 + $0xc70] sm:$0xff] %v2720_v14  ;;  %v2724_v16 = vld [vmem:[%s16516_s7 + $0x1900] sm:$0xff]  ;;  %v2726_v17 = vld [vmem:[%s16516_s7 + $0x1910] sm:$0xff]  ;;  %2723 = vst [vmem:[%s16521_s8 + $0xc78] sm:$0xff] %v2722_v15 }
  0xe2   : > { %2725 = vst [vmem:[%s16521_s8 + $0xc80] sm:$0xff] %v2724_v16  ;;  %2727 = vst [vmem:[%s16521_s8 + $0xc88] sm:$0xff] %v2726_v17  ;;  %v2728_v18 = vld [vmem:[%s16516_s7 + $0x1920] sm:$0xff]  ;;  %v2730_v19 = vld [vmem:[%s16516_s7 + $0x1930] sm:$0xff] }
  0xe3   : > { %v2732_v20 = vld [vmem:[%s16516_s7 + $0x1940] sm:$0xff]  ;;  %2729 = vst [vmem:[%s16521_s8 + $0xc90] sm:$0xff] %v2728_v18  ;;  %2731 = vst [vmem:[%s16521_s8 + $0xc98] sm:$0xff] %v2730_v19  ;;  %v2734_v21 = vld [vmem:[%s16516_s7 + $0x1950] sm:$0xff] }
  0xe4   : > { %2733 = vst [vmem:[%s16521_s8 + $0xca0] sm:$0xff] %v2732_v20  ;;  %v2736_v22 = vld [vmem:[%s16516_s7 + $0x1960] sm:$0xff]  ;;  %v2738_v23 = vld [vmem:[%s16516_s7 + $0x1970] sm:$0xff]  ;;  %2735 = vst [vmem:[%s16521_s8 + $0xca8] sm:$0xff] %v2734_v21 }
  0xe5   : > { %2737 = vst [vmem:[%s16521_s8 + $0xcb0] sm:$0xff] %v2736_v22  ;;  %2739 = vst [vmem:[%s16521_s8 + $0xcb8] sm:$0xff] %v2738_v23  ;;  %v2740_v24 = vld [vmem:[%s16516_s7 + $0x1980] sm:$0xff]  ;;  %v2742_v25 = vld [vmem:[%s16516_s7 + $0x1990] sm:$0xff] }
  0xe6   : > { %v2744_v26 = vld [vmem:[%s16516_s7 + $0x19a0] sm:$0xff]  ;;  %2741 = vst [vmem:[%s16521_s8 + $0xcc0] sm:$0xff] %v2740_v24  ;;  %2743 = vst [vmem:[%s16521_s8 + $0xcc8] sm:$0xff] %v2742_v25  ;;  %v2746_v27 = vld [vmem:[%s16516_s7 + $0x19b0] sm:$0xff] }
  0xe7   : > { %2745 = vst [vmem:[%s16521_s8 + $0xcd0] sm:$0xff] %v2744_v26  ;;  %v2748_v28 = vld [vmem:[%s16516_s7 + $0x19c0] sm:$0xff]  ;;  %v2750_v29 = vld [vmem:[%s16516_s7 + $0x19d0] sm:$0xff]  ;;  %2747 = vst [vmem:[%s16521_s8 + $0xcd8] sm:$0xff] %v2746_v27 }
  0xe8   : > { %2749 = vst [vmem:[%s16521_s8 + $0xce0] sm:$0xff] %v2748_v28  ;;  %2751 = vst [vmem:[%s16521_s8 + $0xce8] sm:$0xff] %v2750_v29  ;;  %v2752_v30 = vld [vmem:[%s16516_s7 + $0x19e0] sm:$0xff]  ;;  %v2754_v31 = vld [vmem:[%s16516_s7 + $0x19f0] sm:$0xff] }
  0xe9   : > { %v2756_v32 = vld [vmem:[%s16516_s7 + $0x1a00] sm:$0xff]  ;;  %2753 = vst [vmem:[%s16521_s8 + $0xcf0] sm:$0xff] %v2752_v30  ;;  %2755 = vst [vmem:[%s16521_s8 + $0xcf8] sm:$0xff] %v2754_v31  ;;  %v2758_v33 = vld [vmem:[%s16516_s7 + $0x1a10] sm:$0xff] }
  0xea   : > { %2757 = vst [vmem:[%s16521_s8 + $0xd00] sm:$0xff] %v2756_v32  ;;  %v2760_v34 = vld [vmem:[%s16516_s7 + $0x1a20] sm:$0xff]  ;;  %v2762_v35 = vld [vmem:[%s16516_s7 + $0x1a30] sm:$0xff]  ;;  %2759 = vst [vmem:[%s16521_s8 + $0xd08] sm:$0xff] %v2758_v33 }
  0xeb   : > { %2761 = vst [vmem:[%s16521_s8 + $0xd10] sm:$0xff] %v2760_v34  ;;  %2763 = vst [vmem:[%s16521_s8 + $0xd18] sm:$0xff] %v2762_v35  ;;  %v2764_v36 = vld [vmem:[%s16516_s7 + $0x1a40] sm:$0xff]  ;;  %v2766_v37 = vld [vmem:[%s16516_s7 + $0x1a50] sm:$0xff] }
  0xec   : > { %v2768_v38 = vld [vmem:[%s16516_s7 + $0x1a60] sm:$0xff]  ;;  %2765 = vst [vmem:[%s16521_s8 + $0xd20] sm:$0xff] %v2764_v36  ;;  %2767 = vst [vmem:[%s16521_s8 + $0xd28] sm:$0xff] %v2766_v37  ;;  %v2770_v39 = vld [vmem:[%s16516_s7 + $0x1a70] sm:$0xff] }
  0xed   : > { %2769 = vst [vmem:[%s16521_s8 + $0xd30] sm:$0xff] %v2768_v38  ;;  %v2772_v40 = vld [vmem:[%s16516_s7 + $0x1a80] sm:$0xff]  ;;  %v2774_v41 = vld [vmem:[%s16516_s7 + $0x1a90] sm:$0xff]  ;;  %2771 = vst [vmem:[%s16521_s8 + $0xd38] sm:$0xff] %v2770_v39 }
  0xee   : > { %2773 = vst [vmem:[%s16521_s8 + $0xd40] sm:$0xff] %v2772_v40  ;;  %2775 = vst [vmem:[%s16521_s8 + $0xd48] sm:$0xff] %v2774_v41  ;;  %v2776_v42 = vld [vmem:[%s16516_s7 + $0x1aa0] sm:$0xff]  ;;  %v2778_v43 = vld [vmem:[%s16516_s7 + $0x1ab0] sm:$0xff] }
  0xef   : > { %v2780_v44 = vld [vmem:[%s16516_s7 + $0x1ac0] sm:$0xff]  ;;  %2777 = vst [vmem:[%s16521_s8 + $0xd50] sm:$0xff] %v2776_v42  ;;  %2779 = vst [vmem:[%s16521_s8 + $0xd58] sm:$0xff] %v2778_v43  ;;  %v2782_v45 = vld [vmem:[%s16516_s7 + $0x1ad0] sm:$0xff] }
  0xf0   : > { %2781 = vst [vmem:[%s16521_s8 + $0xd60] sm:$0xff] %v2780_v44  ;;  %v2784_v46 = vld [vmem:[%s16516_s7 + $0x1ae0] sm:$0xff]  ;;  %v2786_v47 = vld [vmem:[%s16516_s7 + $0x1af0] sm:$0xff]  ;;  %2783 = vst [vmem:[%s16521_s8 + $0xd68] sm:$0xff] %v2782_v45 }
  0xf1   : > { %2785 = vst [vmem:[%s16521_s8 + $0xd70] sm:$0xff] %v2784_v46  ;;  %2787 = vst [vmem:[%s16521_s8 + $0xd78] sm:$0xff] %v2786_v47  ;;  %v2788_v48 = vld [vmem:[%s16516_s7 + $0x1b00] sm:$0xff]  ;;  %v2790_v49 = vld [vmem:[%s16516_s7 + $0x1b10] sm:$0xff] }
  0xf2   : > { %v2792_v50 = vld [vmem:[%s16516_s7 + $0x1b20] sm:$0xff]  ;;  %2789 = vst [vmem:[%s16521_s8 + $0xd80] sm:$0xff] %v2788_v48  ;;  %2791 = vst [vmem:[%s16521_s8 + $0xd88] sm:$0xff] %v2790_v49  ;;  %v2794_v51 = vld [vmem:[%s16516_s7 + $0x1b30] sm:$0xff] }
  0xf3   : > { %2793 = vst [vmem:[%s16521_s8 + $0xd90] sm:$0xff] %v2792_v50  ;;  %v2796_v52 = vld [vmem:[%s16516_s7 + $0x1b40] sm:$0xff]  ;;  %v2798_v53 = vld [vmem:[%s16516_s7 + $0x1b50] sm:$0xff]  ;;  %2795 = vst [vmem:[%s16521_s8 + $0xd98] sm:$0xff] %v2794_v51 }
  0xf4   : > { %2797 = vst [vmem:[%s16521_s8 + $0xda0] sm:$0xff] %v2796_v52  ;;  %2799 = vst [vmem:[%s16521_s8 + $0xda8] sm:$0xff] %v2798_v53  ;;  %v2800_v54 = vld [vmem:[%s16516_s7 + $0x1b60] sm:$0xff]  ;;  %v2802_v55 = vld [vmem:[%s16516_s7 + $0x1b70] sm:$0xff] }
  0xf5   : > { %v2804_v56 = vld [vmem:[%s16516_s7 + $0x1b80] sm:$0xff]  ;;  %2801 = vst [vmem:[%s16521_s8 + $0xdb0] sm:$0xff] %v2800_v54  ;;  %2803 = vst [vmem:[%s16521_s8 + $0xdb8] sm:$0xff] %v2802_v55  ;;  %v2806_v57 = vld [vmem:[%s16516_s7 + $0x1b90] sm:$0xff] }
  0xf6   : > { %2805 = vst [vmem:[%s16521_s8 + $0xdc0] sm:$0xff] %v2804_v56  ;;  %v2808_v58 = vld [vmem:[%s16516_s7 + $0x1ba0] sm:$0xff]  ;;  %v2810_v59 = vld [vmem:[%s16516_s7 + $0x1bb0] sm:$0xff]  ;;  %2807 = vst [vmem:[%s16521_s8 + $0xdc8] sm:$0xff] %v2806_v57 }
  0xf7   : > { %2809 = vst [vmem:[%s16521_s8 + $0xdd0] sm:$0xff] %v2808_v58  ;;  %2811 = vst [vmem:[%s16521_s8 + $0xdd8] sm:$0xff] %v2810_v59  ;;  %v2812_v60 = vld [vmem:[%s16516_s7 + $0x1bc0] sm:$0xff]  ;;  %v2814_v61 = vld [vmem:[%s16516_s7 + $0x1bd0] sm:$0xff] }
  0xf8   : > { %v2816_v62 = vld [vmem:[%s16516_s7 + $0x1be0] sm:$0xff]  ;;  %2813 = vst [vmem:[%s16521_s8 + $0xde0] sm:$0xff] %v2812_v60  ;;  %2815 = vst [vmem:[%s16521_s8 + $0xde8] sm:$0xff] %v2814_v61  ;;  %v2818_v63 = vld [vmem:[%s16516_s7 + $0x1bf0] sm:$0xff] }
  0xf9   : > { %2817 = vst [vmem:[%s16521_s8 + $0xdf0] sm:$0xff] %v2816_v62  ;;  %v2820_v0 = vld [vmem:[%s16516_s7 + $0x1c00] sm:$0xff]  ;;  %v2822_v1 = vld [vmem:[%s16516_s7 + $0x1c10] sm:$0xff]  ;;  %2819 = vst [vmem:[%s16521_s8 + $0xdf8] sm:$0xff] %v2818_v63 }
  0xfa   : > { %2821 = vst [vmem:[%s16521_s8 + $0xe00] sm:$0xff] %v2820_v0  ;;  %2823 = vst [vmem:[%s16521_s8 + $0xe08] sm:$0xff] %v2822_v1  ;;  %v2824_v2 = vld [vmem:[%s16516_s7 + $0x1c20] sm:$0xff]  ;;  %v2826_v3 = vld [vmem:[%s16516_s7 + $0x1c30] sm:$0xff] }
  0xfb   : > { %v2828_v4 = vld [vmem:[%s16516_s7 + $0x1c40] sm:$0xff]  ;;  %2825 = vst [vmem:[%s16521_s8 + $0xe10] sm:$0xff] %v2824_v2  ;;  %2827 = vst [vmem:[%s16521_s8 + $0xe18] sm:$0xff] %v2826_v3  ;;  %v2830_v5 = vld [vmem:[%s16516_s7 + $0x1c50] sm:$0xff] }
  0xfc   : > { %2829 = vst [vmem:[%s16521_s8 + $0xe20] sm:$0xff] %v2828_v4  ;;  %v2832_v6 = vld [vmem:[%s16516_s7 + $0x1c60] sm:$0xff]  ;;  %v2834_v7 = vld [vmem:[%s16516_s7 + $0x1c70] sm:$0xff]  ;;  %2831 = vst [vmem:[%s16521_s8 + $0xe28] sm:$0xff] %v2830_v5 }
  0xfd   : > { %2833 = vst [vmem:[%s16521_s8 + $0xe30] sm:$0xff] %v2832_v6  ;;  %2835 = vst [vmem:[%s16521_s8 + $0xe38] sm:$0xff] %v2834_v7  ;;  %v2836_v8 = vld [vmem:[%s16516_s7 + $0x1c80] sm:$0xff]  ;;  %v2838_v9 = vld [vmem:[%s16516_s7 + $0x1c90] sm:$0xff] }
  0xfe   : > { %v2840_v10 = vld [vmem:[%s16516_s7 + $0x1ca0] sm:$0xff]  ;;  %2837 = vst [vmem:[%s16521_s8 + $0xe40] sm:$0xff] %v2836_v8  ;;  %2839 = vst [vmem:[%s16521_s8 + $0xe48] sm:$0xff] %v2838_v9  ;;  %v2842_v11 = vld [vmem:[%s16516_s7 + $0x1cb0] sm:$0xff] }
  0xff   : > { %2841 = vst [vmem:[%s16521_s8 + $0xe50] sm:$0xff] %v2840_v10  ;;  %v2844_v12 = vld [vmem:[%s16516_s7 + $0x1cc0] sm:$0xff]  ;;  %v2846_v13 = vld [vmem:[%s16516_s7 + $0x1cd0] sm:$0xff]  ;;  %2843 = vst [vmem:[%s16521_s8 + $0xe58] sm:$0xff] %v2842_v11 }
 0x100   : > { %2845 = vst [vmem:[%s16521_s8 + $0xe60] sm:$0xff] %v2844_v12  ;;  %2847 = vst [vmem:[%s16521_s8 + $0xe68] sm:$0xff] %v2846_v13  ;;  %v2848_v14 = vld [vmem:[%s16516_s7 + $0x1ce0] sm:$0xff]  ;;  %v2850_v15 = vld [vmem:[%s16516_s7 + $0x1cf0] sm:$0xff] }
 0x101   : > { %v2852_v16 = vld [vmem:[%s16516_s7 + $0x1d00] sm:$0xff]  ;;  %2849 = vst [vmem:[%s16521_s8 + $0xe70] sm:$0xff] %v2848_v14  ;;  %2851 = vst [vmem:[%s16521_s8 + $0xe78] sm:$0xff] %v2850_v15  ;;  %v2854_v17 = vld [vmem:[%s16516_s7 + $0x1d10] sm:$0xff] }
 0x102   : > { %2853 = vst [vmem:[%s16521_s8 + $0xe80] sm:$0xff] %v2852_v16  ;;  %v2856_v18 = vld [vmem:[%s16516_s7 + $0x1d20] sm:$0xff]  ;;  %v2858_v19 = vld [vmem:[%s16516_s7 + $0x1d30] sm:$0xff]  ;;  %2855 = vst [vmem:[%s16521_s8 + $0xe88] sm:$0xff] %v2854_v17 }
 0x103   : > { %2857 = vst [vmem:[%s16521_s8 + $0xe90] sm:$0xff] %v2856_v18  ;;  %2859 = vst [vmem:[%s16521_s8 + $0xe98] sm:$0xff] %v2858_v19  ;;  %v2860_v20 = vld [vmem:[%s16516_s7 + $0x1d40] sm:$0xff]  ;;  %v2862_v21 = vld [vmem:[%s16516_s7 + $0x1d50] sm:$0xff] }
 0x104   : > { %v2864_v22 = vld [vmem:[%s16516_s7 + $0x1d60] sm:$0xff]  ;;  %2861 = vst [vmem:[%s16521_s8 + $0xea0] sm:$0xff] %v2860_v20  ;;  %2863 = vst [vmem:[%s16521_s8 + $0xea8] sm:$0xff] %v2862_v21  ;;  %v2866_v23 = vld [vmem:[%s16516_s7 + $0x1d70] sm:$0xff] }
 0x105   : > { %2865 = vst [vmem:[%s16521_s8 + $0xeb0] sm:$0xff] %v2864_v22  ;;  %v2868_v24 = vld [vmem:[%s16516_s7 + $0x1d80] sm:$0xff]  ;;  %v2870_v25 = vld [vmem:[%s16516_s7 + $0x1d90] sm:$0xff]  ;;  %2867 = vst [vmem:[%s16521_s8 + $0xeb8] sm:$0xff] %v2866_v23 }
 0x106   : > { %2869 = vst [vmem:[%s16521_s8 + $0xec0] sm:$0xff] %v2868_v24  ;;  %2871 = vst [vmem:[%s16521_s8 + $0xec8] sm:$0xff] %v2870_v25  ;;  %v2872_v26 = vld [vmem:[%s16516_s7 + $0x1da0] sm:$0xff]  ;;  %v2874_v27 = vld [vmem:[%s16516_s7 + $0x1db0] sm:$0xff] }
 0x107   : > { %v2876_v28 = vld [vmem:[%s16516_s7 + $0x1dc0] sm:$0xff]  ;;  %2873 = vst [vmem:[%s16521_s8 + $0xed0] sm:$0xff] %v2872_v26  ;;  %2875 = vst [vmem:[%s16521_s8 + $0xed8] sm:$0xff] %v2874_v27  ;;  %v2878_v29 = vld [vmem:[%s16516_s7 + $0x1dd0] sm:$0xff] }
 0x108   : > { %2877 = vst [vmem:[%s16521_s8 + $0xee0] sm:$0xff] %v2876_v28  ;;  %v2880_v30 = vld [vmem:[%s16516_s7 + $0x1de0] sm:$0xff]  ;;  %v2882_v31 = vld [vmem:[%s16516_s7 + $0x1df0] sm:$0xff]  ;;  %2879 = vst [vmem:[%s16521_s8 + $0xee8] sm:$0xff] %v2878_v29 }
 0x109   : > { %2881 = vst [vmem:[%s16521_s8 + $0xef0] sm:$0xff] %v2880_v30  ;;  %2883 = vst [vmem:[%s16521_s8 + $0xef8] sm:$0xff] %v2882_v31  ;;  %v2884_v32 = vld [vmem:[%s16516_s7 + $0x1e00] sm:$0xff]  ;;  %v2886_v33 = vld [vmem:[%s16516_s7 + $0x1e10] sm:$0xff] }
 0x10a   : > { %v2888_v34 = vld [vmem:[%s16516_s7 + $0x1e20] sm:$0xff]  ;;  %2885 = vst [vmem:[%s16521_s8 + $0xf00] sm:$0xff] %v2884_v32  ;;  %2887 = vst [vmem:[%s16521_s8 + $0xf08] sm:$0xff] %v2886_v33  ;;  %v2890_v35 = vld [vmem:[%s16516_s7 + $0x1e30] sm:$0xff] }
 0x10b   : > { %2889 = vst [vmem:[%s16521_s8 + $0xf10] sm:$0xff] %v2888_v34  ;;  %v2892_v36 = vld [vmem:[%s16516_s7 + $0x1e40] sm:$0xff]  ;;  %v2894_v37 = vld [vmem:[%s16516_s7 + $0x1e50] sm:$0xff]  ;;  %2891 = vst [vmem:[%s16521_s8 + $0xf18] sm:$0xff] %v2890_v35 }
 0x10c   : > { %2893 = vst [vmem:[%s16521_s8 + $0xf20] sm:$0xff] %v2892_v36  ;;  %2895 = vst [vmem:[%s16521_s8 + $0xf28] sm:$0xff] %v2894_v37  ;;  %v2896_v38 = vld [vmem:[%s16516_s7 + $0x1e60] sm:$0xff]  ;;  %v2898_v39 = vld [vmem:[%s16516_s7 + $0x1e70] sm:$0xff] }
 0x10d   : > { %v2900_v40 = vld [vmem:[%s16516_s7 + $0x1e80] sm:$0xff]  ;;  %2897 = vst [vmem:[%s16521_s8 + $0xf30] sm:$0xff] %v2896_v38  ;;  %2899 = vst [vmem:[%s16521_s8 + $0xf38] sm:$0xff] %v2898_v39  ;;  %v2902_v41 = vld [vmem:[%s16516_s7 + $0x1e90] sm:$0xff] }
 0x10e   : > { %2901 = vst [vmem:[%s16521_s8 + $0xf40] sm:$0xff] %v2900_v40  ;;  %v2904_v42 = vld [vmem:[%s16516_s7 + $0x1ea0] sm:$0xff]  ;;  %v2906_v43 = vld [vmem:[%s16516_s7 + $0x1eb0] sm:$0xff]  ;;  %2903 = vst [vmem:[%s16521_s8 + $0xf48] sm:$0xff] %v2902_v41 }
 0x10f   : > { %2905 = vst [vmem:[%s16521_s8 + $0xf50] sm:$0xff] %v2904_v42  ;;  %2907 = vst [vmem:[%s16521_s8 + $0xf58] sm:$0xff] %v2906_v43  ;;  %v2908_v44 = vld [vmem:[%s16516_s7 + $0x1ec0] sm:$0xff]  ;;  %v2910_v45 = vld [vmem:[%s16516_s7 + $0x1ed0] sm:$0xff] }
 0x110   : > { %v2912_v46 = vld [vmem:[%s16516_s7 + $0x1ee0] sm:$0xff]  ;;  %2909 = vst [vmem:[%s16521_s8 + $0xf60] sm:$0xff] %v2908_v44  ;;  %2911 = vst [vmem:[%s16521_s8 + $0xf68] sm:$0xff] %v2910_v45  ;;  %v2914_v47 = vld [vmem:[%s16516_s7 + $0x1ef0] sm:$0xff] }
 0x111   : > { %2913 = vst [vmem:[%s16521_s8 + $0xf70] sm:$0xff] %v2912_v46  ;;  %v2916_v48 = vld [vmem:[%s16516_s7 + $0x1f00] sm:$0xff]  ;;  %v2918_v49 = vld [vmem:[%s16516_s7 + $0x1f10] sm:$0xff]  ;;  %2915 = vst [vmem:[%s16521_s8 + $0xf78] sm:$0xff] %v2914_v47 }
 0x112   : > { %2917 = vst [vmem:[%s16521_s8 + $0xf80] sm:$0xff] %v2916_v48  ;;  %2919 = vst [vmem:[%s16521_s8 + $0xf88] sm:$0xff] %v2918_v49  ;;  %v2920_v50 = vld [vmem:[%s16516_s7 + $0x1f20] sm:$0xff]  ;;  %v2922_v51 = vld [vmem:[%s16516_s7 + $0x1f30] sm:$0xff] }
 0x113   : > { %v2924_v52 = vld [vmem:[%s16516_s7 + $0x1f40] sm:$0xff]  ;;  %2921 = vst [vmem:[%s16521_s8 + $0xf90] sm:$0xff] %v2920_v50  ;;  %2923 = vst [vmem:[%s16521_s8 + $0xf98] sm:$0xff] %v2922_v51  ;;  %v2926_v53 = vld [vmem:[%s16516_s7 + $0x1f50] sm:$0xff] }
 0x114   : > { %2925 = vst [vmem:[%s16521_s8 + $0xfa0] sm:$0xff] %v2924_v52  ;;  %v2928_v54 = vld [vmem:[%s16516_s7 + $0x1f60] sm:$0xff]  ;;  %v2930_v55 = vld [vmem:[%s16516_s7 + $0x1f70] sm:$0xff]  ;;  %2927 = vst [vmem:[%s16521_s8 + $0xfa8] sm:$0xff] %v2926_v53 }
 0x115   : > { %2929 = vst [vmem:[%s16521_s8 + $0xfb0] sm:$0xff] %v2928_v54  ;;  %2931 = vst [vmem:[%s16521_s8 + $0xfb8] sm:$0xff] %v2930_v55  ;;  %v2932_v56 = vld [vmem:[%s16516_s7 + $0x1f80] sm:$0xff]  ;;  %v2934_v57 = vld [vmem:[%s16516_s7 + $0x1f90] sm:$0xff] }
 0x116   : > { %v2936_v58 = vld [vmem:[%s16516_s7 + $0x1fa0] sm:$0xff]  ;;  %2933 = vst [vmem:[%s16521_s8 + $0xfc0] sm:$0xff] %v2932_v56  ;;  %2935 = vst [vmem:[%s16521_s8 + $0xfc8] sm:$0xff] %v2934_v57  ;;  %v2938_v59 = vld [vmem:[%s16516_s7 + $0x1fb0] sm:$0xff] }
 0x117   : > { %2937 = vst [vmem:[%s16521_s8 + $0xfd0] sm:$0xff] %v2936_v58  ;;  %v2940_v60 = vld [vmem:[%s16516_s7 + $0x1fc0] sm:$0xff]  ;;  %v2942_v61 = vld [vmem:[%s16516_s7 + $0x1fd0] sm:$0xff]  ;;  %2939 = vst [vmem:[%s16521_s8 + $0xfd8] sm:$0xff] %v2938_v59 }
 0x118   : > { %2941 = vst [vmem:[%s16521_s8 + $0xfe0] sm:$0xff] %v2940_v60  ;;  %2943 = vst [vmem:[%s16521_s8 + $0xfe8] sm:$0xff] %v2942_v61  ;;  %v2944_v62 = vld [vmem:[%s16516_s7 + $0x1fe0] sm:$0xff]  ;;  %v2946_v63 = vld [vmem:[%s16516_s7 + $0x1ff0] sm:$0xff] }
 0x119   : > { %v2948_v0 = vld [vmem:[%s16516_s7 + $0x2000] sm:$0xff]  ;;  %2945 = vst [vmem:[%s16521_s8 + $0xff0] sm:$0xff] %v2944_v62  ;;  %2947 = vst [vmem:[%s16521_s8 + $0xff8] sm:$0xff] %v2946_v63  ;;  %v2950_v1 = vld [vmem:[%s16516_s7 + $0x2010] sm:$0xff] }
 0x11a   : > { %2949 = vst [vmem:[%s16521_s8 + $0x1000] sm:$0xff] %v2948_v0  ;;  %v2952_v2 = vld [vmem:[%s16516_s7 + $0x2020] sm:$0xff]  ;;  %v2954_v3 = vld [vmem:[%s16516_s7 + $0x2030] sm:$0xff]  ;;  %2951 = vst [vmem:[%s16521_s8 + $0x1008] sm:$0xff] %v2950_v1 }
 0x11b   : > { %2953 = vst [vmem:[%s16521_s8 + $0x1010] sm:$0xff] %v2952_v2  ;;  %2955 = vst [vmem:[%s16521_s8 + $0x1018] sm:$0xff] %v2954_v3  ;;  %v2956_v4 = vld [vmem:[%s16516_s7 + $0x2040] sm:$0xff]  ;;  %v2958_v5 = vld [vmem:[%s16516_s7 + $0x2050] sm:$0xff] }
 0x11c   : > { %v2960_v6 = vld [vmem:[%s16516_s7 + $0x2060] sm:$0xff]  ;;  %2957 = vst [vmem:[%s16521_s8 + $0x1020] sm:$0xff] %v2956_v4  ;;  %2959 = vst [vmem:[%s16521_s8 + $0x1028] sm:$0xff] %v2958_v5  ;;  %v2962_v7 = vld [vmem:[%s16516_s7 + $0x2070] sm:$0xff] }
 0x11d   : > { %2961 = vst [vmem:[%s16521_s8 + $0x1030] sm:$0xff] %v2960_v6  ;;  %v2964_v8 = vld [vmem:[%s16516_s7 + $0x2080] sm:$0xff]  ;;  %v2966_v9 = vld [vmem:[%s16516_s7 + $0x2090] sm:$0xff]  ;;  %2963 = vst [vmem:[%s16521_s8 + $0x1038] sm:$0xff] %v2962_v7 }
 0x11e   : > { %2965 = vst [vmem:[%s16521_s8 + $0x1040] sm:$0xff] %v2964_v8  ;;  %2967 = vst [vmem:[%s16521_s8 + $0x1048] sm:$0xff] %v2966_v9  ;;  %v2968_v10 = vld [vmem:[%s16516_s7 + $0x20a0] sm:$0xff]  ;;  %v2970_v11 = vld [vmem:[%s16516_s7 + $0x20b0] sm:$0xff] }
 0x11f   : > { %v2972_v12 = vld [vmem:[%s16516_s7 + $0x20c0] sm:$0xff]  ;;  %2969 = vst [vmem:[%s16521_s8 + $0x1050] sm:$0xff] %v2968_v10  ;;  %2971 = vst [vmem:[%s16521_s8 + $0x1058] sm:$0xff] %v2970_v11  ;;  %v2974_v13 = vld [vmem:[%s16516_s7 + $0x20d0] sm:$0xff] }
 0x120   : > { %2973 = vst [vmem:[%s16521_s8 + $0x1060] sm:$0xff] %v2972_v12  ;;  %v2976_v14 = vld [vmem:[%s16516_s7 + $0x20e0] sm:$0xff]  ;;  %v2978_v15 = vld [vmem:[%s16516_s7 + $0x20f0] sm:$0xff]  ;;  %2975 = vst [vmem:[%s16521_s8 + $0x1068] sm:$0xff] %v2974_v13 }
 0x121   : > { %2977 = vst [vmem:[%s16521_s8 + $0x1070] sm:$0xff] %v2976_v14  ;;  %2979 = vst [vmem:[%s16521_s8 + $0x1078] sm:$0xff] %v2978_v15  ;;  %v2980_v16 = vld [vmem:[%s16516_s7 + $0x2100] sm:$0xff]  ;;  %v2982_v17 = vld [vmem:[%s16516_s7 + $0x2110] sm:$0xff] }
 0x122   : > { %v2984_v18 = vld [vmem:[%s16516_s7 + $0x2120] sm:$0xff]  ;;  %2981 = vst [vmem:[%s16521_s8 + $0x1080] sm:$0xff] %v2980_v16  ;;  %2983 = vst [vmem:[%s16521_s8 + $0x1088] sm:$0xff] %v2982_v17  ;;  %v2986_v19 = vld [vmem:[%s16516_s7 + $0x2130] sm:$0xff] }
 0x123   : > { %2985 = vst [vmem:[%s16521_s8 + $0x1090] sm:$0xff] %v2984_v18  ;;  %v2988_v20 = vld [vmem:[%s16516_s7 + $0x2140] sm:$0xff]  ;;  %v2990_v21 = vld [vmem:[%s16516_s7 + $0x2150] sm:$0xff]  ;;  %2987 = vst [vmem:[%s16521_s8 + $0x1098] sm:$0xff] %v2986_v19 }
 0x124   : > { %2989 = vst [vmem:[%s16521_s8 + $0x10a0] sm:$0xff] %v2988_v20  ;;  %2991 = vst [vmem:[%s16521_s8 + $0x10a8] sm:$0xff] %v2990_v21  ;;  %v2992_v22 = vld [vmem:[%s16516_s7 + $0x2160] sm:$0xff]  ;;  %v2994_v23 = vld [vmem:[%s16516_s7 + $0x2170] sm:$0xff] }
 0x125   : > { %v2996_v24 = vld [vmem:[%s16516_s7 + $0x2180] sm:$0xff]  ;;  %2993 = vst [vmem:[%s16521_s8 + $0x10b0] sm:$0xff] %v2992_v22  ;;  %2995 = vst [vmem:[%s16521_s8 + $0x10b8] sm:$0xff] %v2994_v23  ;;  %v2998_v25 = vld [vmem:[%s16516_s7 + $0x2190] sm:$0xff] }
 0x126   : > { %2997 = vst [vmem:[%s16521_s8 + $0x10c0] sm:$0xff] %v2996_v24  ;;  %v3000_v26 = vld [vmem:[%s16516_s7 + $0x21a0] sm:$0xff]  ;;  %v3002_v27 = vld [vmem:[%s16516_s7 + $0x21b0] sm:$0xff]  ;;  %2999 = vst [vmem:[%s16521_s8 + $0x10c8] sm:$0xff] %v2998_v25 }
 0x127   : > { %3001 = vst [vmem:[%s16521_s8 + $0x10d0] sm:$0xff] %v3000_v26  ;;  %3003 = vst [vmem:[%s16521_s8 + $0x10d8] sm:$0xff] %v3002_v27  ;;  %v3004_v28 = vld [vmem:[%s16516_s7 + $0x21c0] sm:$0xff]  ;;  %v3006_v29 = vld [vmem:[%s16516_s7 + $0x21d0] sm:$0xff] }
 0x128   : > { %v3008_v30 = vld [vmem:[%s16516_s7 + $0x21e0] sm:$0xff]  ;;  %3005 = vst [vmem:[%s16521_s8 + $0x10e0] sm:$0xff] %v3004_v28  ;;  %3007 = vst [vmem:[%s16521_s8 + $0x10e8] sm:$0xff] %v3006_v29  ;;  %v3010_v31 = vld [vmem:[%s16516_s7 + $0x21f0] sm:$0xff] }
 0x129   : > { %3009 = vst [vmem:[%s16521_s8 + $0x10f0] sm:$0xff] %v3008_v30  ;;  %v3012_v32 = vld [vmem:[%s16516_s7 + $0x2200] sm:$0xff]  ;;  %v3014_v33 = vld [vmem:[%s16516_s7 + $0x2210] sm:$0xff]  ;;  %3011 = vst [vmem:[%s16521_s8 + $0x10f8] sm:$0xff] %v3010_v31 }
 0x12a   : > { %3013 = vst [vmem:[%s16521_s8 + $0x1100] sm:$0xff] %v3012_v32  ;;  %3015 = vst [vmem:[%s16521_s8 + $0x1108] sm:$0xff] %v3014_v33  ;;  %v3016_v34 = vld [vmem:[%s16516_s7 + $0x2220] sm:$0xff]  ;;  %v3018_v35 = vld [vmem:[%s16516_s7 + $0x2230] sm:$0xff] }
 0x12b   : > { %v3020_v36 = vld [vmem:[%s16516_s7 + $0x2240] sm:$0xff]  ;;  %3017 = vst [vmem:[%s16521_s8 + $0x1110] sm:$0xff] %v3016_v34  ;;  %3019 = vst [vmem:[%s16521_s8 + $0x1118] sm:$0xff] %v3018_v35  ;;  %v3022_v37 = vld [vmem:[%s16516_s7 + $0x2250] sm:$0xff] }
 0x12c   : > { %3021 = vst [vmem:[%s16521_s8 + $0x1120] sm:$0xff] %v3020_v36  ;;  %v3024_v38 = vld [vmem:[%s16516_s7 + $0x2260] sm:$0xff]  ;;  %v3026_v39 = vld [vmem:[%s16516_s7 + $0x2270] sm:$0xff]  ;;  %3023 = vst [vmem:[%s16521_s8 + $0x1128] sm:$0xff] %v3022_v37 }
 0x12d   : > { %3025 = vst [vmem:[%s16521_s8 + $0x1130] sm:$0xff] %v3024_v38  ;;  %3027 = vst [vmem:[%s16521_s8 + $0x1138] sm:$0xff] %v3026_v39  ;;  %v3028_v40 = vld [vmem:[%s16516_s7 + $0x2280] sm:$0xff]  ;;  %v3030_v41 = vld [vmem:[%s16516_s7 + $0x2290] sm:$0xff] }
 0x12e   : > { %v3032_v42 = vld [vmem:[%s16516_s7 + $0x22a0] sm:$0xff]  ;;  %3029 = vst [vmem:[%s16521_s8 + $0x1140] sm:$0xff] %v3028_v40  ;;  %3031 = vst [vmem:[%s16521_s8 + $0x1148] sm:$0xff] %v3030_v41  ;;  %v3034_v43 = vld [vmem:[%s16516_s7 + $0x22b0] sm:$0xff] }
 0x12f   : > { %3033 = vst [vmem:[%s16521_s8 + $0x1150] sm:$0xff] %v3032_v42  ;;  %v3036_v44 = vld [vmem:[%s16516_s7 + $0x22c0] sm:$0xff]  ;;  %v3038_v45 = vld [vmem:[%s16516_s7 + $0x22d0] sm:$0xff]  ;;  %3035 = vst [vmem:[%s16521_s8 + $0x1158] sm:$0xff] %v3034_v43 }
 0x130   : > { %3037 = vst [vmem:[%s16521_s8 + $0x1160] sm:$0xff] %v3036_v44  ;;  %3039 = vst [vmem:[%s16521_s8 + $0x1168] sm:$0xff] %v3038_v45  ;;  %v3040_v46 = vld [vmem:[%s16516_s7 + $0x22e0] sm:$0xff]  ;;  %v3042_v47 = vld [vmem:[%s16516_s7 + $0x22f0] sm:$0xff] }
 0x131   : > { %v3044_v48 = vld [vmem:[%s16516_s7 + $0x2300] sm:$0xff]  ;;  %3041 = vst [vmem:[%s16521_s8 + $0x1170] sm:$0xff] %v3040_v46  ;;  %3043 = vst [vmem:[%s16521_s8 + $0x1178] sm:$0xff] %v3042_v47  ;;  %v3046_v49 = vld [vmem:[%s16516_s7 + $0x2310] sm:$0xff] }
 0x132   : > { %3045 = vst [vmem:[%s16521_s8 + $0x1180] sm:$0xff] %v3044_v48  ;;  %v3048_v50 = vld [vmem:[%s16516_s7 + $0x2320] sm:$0xff]  ;;  %v3050_v51 = vld [vmem:[%s16516_s7 + $0x2330] sm:$0xff]  ;;  %3047 = vst [vmem:[%s16521_s8 + $0x1188] sm:$0xff] %v3046_v49 }
 0x133   : > { %3049 = vst [vmem:[%s16521_s8 + $0x1190] sm:$0xff] %v3048_v50  ;;  %3051 = vst [vmem:[%s16521_s8 + $0x1198] sm:$0xff] %v3050_v51  ;;  %v3052_v52 = vld [vmem:[%s16516_s7 + $0x2340] sm:$0xff]  ;;  %v3054_v53 = vld [vmem:[%s16516_s7 + $0x2350] sm:$0xff] }
 0x134   : > { %v3056_v54 = vld [vmem:[%s16516_s7 + $0x2360] sm:$0xff]  ;;  %3053 = vst [vmem:[%s16521_s8 + $0x11a0] sm:$0xff] %v3052_v52  ;;  %3055 = vst [vmem:[%s16521_s8 + $0x11a8] sm:$0xff] %v3054_v53  ;;  %v3058_v55 = vld [vmem:[%s16516_s7 + $0x2370] sm:$0xff] }
 0x135   : > { %3057 = vst [vmem:[%s16521_s8 + $0x11b0] sm:$0xff] %v3056_v54  ;;  %v3060_v56 = vld [vmem:[%s16516_s7 + $0x2380] sm:$0xff]  ;;  %v3062_v57 = vld [vmem:[%s16516_s7 + $0x2390] sm:$0xff]  ;;  %3059 = vst [vmem:[%s16521_s8 + $0x11b8] sm:$0xff] %v3058_v55 }
 0x136   : > { %3061 = vst [vmem:[%s16521_s8 + $0x11c0] sm:$0xff] %v3060_v56  ;;  %3063 = vst [vmem:[%s16521_s8 + $0x11c8] sm:$0xff] %v3062_v57  ;;  %v3064_v58 = vld [vmem:[%s16516_s7 + $0x23a0] sm:$0xff]  ;;  %v3066_v59 = vld [vmem:[%s16516_s7 + $0x23b0] sm:$0xff] }
 0x137   : > { %v3068_v60 = vld [vmem:[%s16516_s7 + $0x23c0] sm:$0xff]  ;;  %3065 = vst [vmem:[%s16521_s8 + $0x11d0] sm:$0xff] %v3064_v58  ;;  %3067 = vst [vmem:[%s16521_s8 + $0x11d8] sm:$0xff] %v3066_v59  ;;  %v3070_v61 = vld [vmem:[%s16516_s7 + $0x23d0] sm:$0xff] }
 0x138   : > { %3069 = vst [vmem:[%s16521_s8 + $0x11e0] sm:$0xff] %v3068_v60  ;;  %v3072_v62 = vld [vmem:[%s16516_s7 + $0x23e0] sm:$0xff]  ;;  %v3074_v63 = vld [vmem:[%s16516_s7 + $0x23f0] sm:$0xff]  ;;  %3071 = vst [vmem:[%s16521_s8 + $0x11e8] sm:$0xff] %v3070_v61 }
 0x139   : > { %3073 = vst [vmem:[%s16521_s8 + $0x11f0] sm:$0xff] %v3072_v62  ;;  %3075 = vst [vmem:[%s16521_s8 + $0x11f8] sm:$0xff] %v3074_v63  ;;  %v3076_v0 = vld [vmem:[%s16516_s7 + $0x2400] sm:$0xff]  ;;  %v3078_v1 = vld [vmem:[%s16516_s7 + $0x2410] sm:$0xff] }
 0x13a   : > { %v3080_v2 = vld [vmem:[%s16516_s7 + $0x2420] sm:$0xff]  ;;  %3077 = vst [vmem:[%s16521_s8 + $0x1200] sm:$0xff] %v3076_v0  ;;  %3079 = vst [vmem:[%s16521_s8 + $0x1208] sm:$0xff] %v3078_v1  ;;  %v3082_v3 = vld [vmem:[%s16516_s7 + $0x2430] sm:$0xff] }
 0x13b   : > { %3081 = vst [vmem:[%s16521_s8 + $0x1210] sm:$0xff] %v3080_v2  ;;  %v3084_v4 = vld [vmem:[%s16516_s7 + $0x2440] sm:$0xff]  ;;  %v3086_v5 = vld [vmem:[%s16516_s7 + $0x2450] sm:$0xff]  ;;  %3083 = vst [vmem:[%s16521_s8 + $0x1218] sm:$0xff] %v3082_v3 }
 0x13c   : > { %3085 = vst [vmem:[%s16521_s8 + $0x1220] sm:$0xff] %v3084_v4  ;;  %3087 = vst [vmem:[%s16521_s8 + $0x1228] sm:$0xff] %v3086_v5  ;;  %v3088_v6 = vld [vmem:[%s16516_s7 + $0x2460] sm:$0xff]  ;;  %v3090_v7 = vld [vmem:[%s16516_s7 + $0x2470] sm:$0xff] }
 0x13d   : > { %v3092_v8 = vld [vmem:[%s16516_s7 + $0x2480] sm:$0xff]  ;;  %3089 = vst [vmem:[%s16521_s8 + $0x1230] sm:$0xff] %v3088_v6  ;;  %3091 = vst [vmem:[%s16521_s8 + $0x1238] sm:$0xff] %v3090_v7  ;;  %v3094_v9 = vld [vmem:[%s16516_s7 + $0x2490] sm:$0xff] }
 0x13e   : > { %3093 = vst [vmem:[%s16521_s8 + $0x1240] sm:$0xff] %v3092_v8  ;;  %v3096_v10 = vld [vmem:[%s16516_s7 + $0x24a0] sm:$0xff]  ;;  %v3098_v11 = vld [vmem:[%s16516_s7 + $0x24b0] sm:$0xff]  ;;  %3095 = vst [vmem:[%s16521_s8 + $0x1248] sm:$0xff] %v3094_v9 }
 0x13f   : > { %3097 = vst [vmem:[%s16521_s8 + $0x1250] sm:$0xff] %v3096_v10  ;;  %3099 = vst [vmem:[%s16521_s8 + $0x1258] sm:$0xff] %v3098_v11  ;;  %v3100_v12 = vld [vmem:[%s16516_s7 + $0x24c0] sm:$0xff]  ;;  %v3102_v13 = vld [vmem:[%s16516_s7 + $0x24d0] sm:$0xff] }
 0x140   : > { %v3104_v14 = vld [vmem:[%s16516_s7 + $0x24e0] sm:$0xff]  ;;  %3101 = vst [vmem:[%s16521_s8 + $0x1260] sm:$0xff] %v3100_v12  ;;  %3103 = vst [vmem:[%s16521_s8 + $0x1268] sm:$0xff] %v3102_v13  ;;  %v3106_v15 = vld [vmem:[%s16516_s7 + $0x24f0] sm:$0xff] }
 0x141   : > { %3105 = vst [vmem:[%s16521_s8 + $0x1270] sm:$0xff] %v3104_v14  ;;  %v3108_v16 = vld [vmem:[%s16516_s7 + $0x2500] sm:$0xff]  ;;  %v3110_v17 = vld [vmem:[%s16516_s7 + $0x2510] sm:$0xff]  ;;  %3107 = vst [vmem:[%s16521_s8 + $0x1278] sm:$0xff] %v3106_v15 }
 0x142   : > { %3109 = vst [vmem:[%s16521_s8 + $0x1280] sm:$0xff] %v3108_v16  ;;  %3111 = vst [vmem:[%s16521_s8 + $0x1288] sm:$0xff] %v3110_v17  ;;  %v3112_v18 = vld [vmem:[%s16516_s7 + $0x2520] sm:$0xff]  ;;  %v3114_v19 = vld [vmem:[%s16516_s7 + $0x2530] sm:$0xff] }
 0x143   : > { %v3116_v20 = vld [vmem:[%s16516_s7 + $0x2540] sm:$0xff]  ;;  %3113 = vst [vmem:[%s16521_s8 + $0x1290] sm:$0xff] %v3112_v18  ;;  %3115 = vst [vmem:[%s16521_s8 + $0x1298] sm:$0xff] %v3114_v19  ;;  %v3118_v21 = vld [vmem:[%s16516_s7 + $0x2550] sm:$0xff] }
 0x144   : > { %3117 = vst [vmem:[%s16521_s8 + $0x12a0] sm:$0xff] %v3116_v20  ;;  %v3120_v22 = vld [vmem:[%s16516_s7 + $0x2560] sm:$0xff]  ;;  %v3122_v23 = vld [vmem:[%s16516_s7 + $0x2570] sm:$0xff]  ;;  %3119 = vst [vmem:[%s16521_s8 + $0x12a8] sm:$0xff] %v3118_v21 }
 0x145   : > { %3121 = vst [vmem:[%s16521_s8 + $0x12b0] sm:$0xff] %v3120_v22  ;;  %3123 = vst [vmem:[%s16521_s8 + $0x12b8] sm:$0xff] %v3122_v23  ;;  %v3124_v24 = vld [vmem:[%s16516_s7 + $0x2580] sm:$0xff]  ;;  %v3126_v25 = vld [vmem:[%s16516_s7 + $0x2590] sm:$0xff] }
 0x146   : > { %v3128_v26 = vld [vmem:[%s16516_s7 + $0x25a0] sm:$0xff]  ;;  %3125 = vst [vmem:[%s16521_s8 + $0x12c0] sm:$0xff] %v3124_v24  ;;  %3127 = vst [vmem:[%s16521_s8 + $0x12c8] sm:$0xff] %v3126_v25  ;;  %v3130_v27 = vld [vmem:[%s16516_s7 + $0x25b0] sm:$0xff] }
 0x147   : > { %3129 = vst [vmem:[%s16521_s8 + $0x12d0] sm:$0xff] %v3128_v26  ;;  %v3132_v28 = vld [vmem:[%s16516_s7 + $0x25c0] sm:$0xff]  ;;  %v3134_v29 = vld [vmem:[%s16516_s7 + $0x25d0] sm:$0xff]  ;;  %3131 = vst [vmem:[%s16521_s8 + $0x12d8] sm:$0xff] %v3130_v27 }
 0x148   : > { %3133 = vst [vmem:[%s16521_s8 + $0x12e0] sm:$0xff] %v3132_v28  ;;  %3135 = vst [vmem:[%s16521_s8 + $0x12e8] sm:$0xff] %v3134_v29  ;;  %v3136_v30 = vld [vmem:[%s16516_s7 + $0x25e0] sm:$0xff]  ;;  %v3138_v31 = vld [vmem:[%s16516_s7 + $0x25f0] sm:$0xff] }
 0x149   : > { %v3140_v32 = vld [vmem:[%s16516_s7 + $0x2600] sm:$0xff]  ;;  %3137 = vst [vmem:[%s16521_s8 + $0x12f0] sm:$0xff] %v3136_v30  ;;  %3139 = vst [vmem:[%s16521_s8 + $0x12f8] sm:$0xff] %v3138_v31  ;;  %v3142_v33 = vld [vmem:[%s16516_s7 + $0x2610] sm:$0xff] }
 0x14a   : > { %3141 = vst [vmem:[%s16521_s8 + $0x1300] sm:$0xff] %v3140_v32  ;;  %v3144_v34 = vld [vmem:[%s16516_s7 + $0x2620] sm:$0xff]  ;;  %v3146_v35 = vld [vmem:[%s16516_s7 + $0x2630] sm:$0xff]  ;;  %3143 = vst [vmem:[%s16521_s8 + $0x1308] sm:$0xff] %v3142_v33 }
 0x14b   : > { %3145 = vst [vmem:[%s16521_s8 + $0x1310] sm:$0xff] %v3144_v34  ;;  %3147 = vst [vmem:[%s16521_s8 + $0x1318] sm:$0xff] %v3146_v35  ;;  %v3148_v36 = vld [vmem:[%s16516_s7 + $0x2640] sm:$0xff]  ;;  %v3150_v37 = vld [vmem:[%s16516_s7 + $0x2650] sm:$0xff] }
 0x14c   : > { %v3152_v38 = vld [vmem:[%s16516_s7 + $0x2660] sm:$0xff]  ;;  %3149 = vst [vmem:[%s16521_s8 + $0x1320] sm:$0xff] %v3148_v36  ;;  %3151 = vst [vmem:[%s16521_s8 + $0x1328] sm:$0xff] %v3150_v37  ;;  %v3154_v39 = vld [vmem:[%s16516_s7 + $0x2670] sm:$0xff] }
 0x14d   : > { %3153 = vst [vmem:[%s16521_s8 + $0x1330] sm:$0xff] %v3152_v38  ;;  %v3156_v40 = vld [vmem:[%s16516_s7 + $0x2680] sm:$0xff]  ;;  %v3158_v41 = vld [vmem:[%s16516_s7 + $0x2690] sm:$0xff]  ;;  %3155 = vst [vmem:[%s16521_s8 + $0x1338] sm:$0xff] %v3154_v39 }
 0x14e   : > { %3157 = vst [vmem:[%s16521_s8 + $0x1340] sm:$0xff] %v3156_v40  ;;  %3159 = vst [vmem:[%s16521_s8 + $0x1348] sm:$0xff] %v3158_v41  ;;  %v3160_v42 = vld [vmem:[%s16516_s7 + $0x26a0] sm:$0xff]  ;;  %v3162_v43 = vld [vmem:[%s16516_s7 + $0x26b0] sm:$0xff] }
 0x14f   : > { %v3164_v44 = vld [vmem:[%s16516_s7 + $0x26c0] sm:$0xff]  ;;  %3161 = vst [vmem:[%s16521_s8 + $0x1350] sm:$0xff] %v3160_v42  ;;  %3163 = vst [vmem:[%s16521_s8 + $0x1358] sm:$0xff] %v3162_v43  ;;  %v3166_v45 = vld [vmem:[%s16516_s7 + $0x26d0] sm:$0xff] }
 0x150   : > { %3165 = vst [vmem:[%s16521_s8 + $0x1360] sm:$0xff] %v3164_v44  ;;  %v3168_v46 = vld [vmem:[%s16516_s7 + $0x26e0] sm:$0xff]  ;;  %v3170_v47 = vld [vmem:[%s16516_s7 + $0x26f0] sm:$0xff]  ;;  %3167 = vst [vmem:[%s16521_s8 + $0x1368] sm:$0xff] %v3166_v45 }
 0x151   : > { %3169 = vst [vmem:[%s16521_s8 + $0x1370] sm:$0xff] %v3168_v46  ;;  %3171 = vst [vmem:[%s16521_s8 + $0x1378] sm:$0xff] %v3170_v47  ;;  %v3172_v48 = vld [vmem:[%s16516_s7 + $0x2700] sm:$0xff]  ;;  %v3174_v49 = vld [vmem:[%s16516_s7 + $0x2710] sm:$0xff] }
 0x152   : > { %v3176_v50 = vld [vmem:[%s16516_s7 + $0x2720] sm:$0xff]  ;;  %3173 = vst [vmem:[%s16521_s8 + $0x1380] sm:$0xff] %v3172_v48  ;;  %3175 = vst [vmem:[%s16521_s8 + $0x1388] sm:$0xff] %v3174_v49  ;;  %v3178_v51 = vld [vmem:[%s16516_s7 + $0x2730] sm:$0xff] }
 0x153   : > { %3177 = vst [vmem:[%s16521_s8 + $0x1390] sm:$0xff] %v3176_v50  ;;  %v3180_v52 = vld [vmem:[%s16516_s7 + $0x2740] sm:$0xff]  ;;  %v3182_v53 = vld [vmem:[%s16516_s7 + $0x2750] sm:$0xff]  ;;  %3179 = vst [vmem:[%s16521_s8 + $0x1398] sm:$0xff] %v3178_v51 }
 0x154   : > { %3181 = vst [vmem:[%s16521_s8 + $0x13a0] sm:$0xff] %v3180_v52  ;;  %3183 = vst [vmem:[%s16521_s8 + $0x13a8] sm:$0xff] %v3182_v53  ;;  %v3184_v54 = vld [vmem:[%s16516_s7 + $0x2760] sm:$0xff]  ;;  %v3186_v55 = vld [vmem:[%s16516_s7 + $0x2770] sm:$0xff] }
 0x155   : > { %v3188_v56 = vld [vmem:[%s16516_s7 + $0x2780] sm:$0xff]  ;;  %3185 = vst [vmem:[%s16521_s8 + $0x13b0] sm:$0xff] %v3184_v54  ;;  %3187 = vst [vmem:[%s16521_s8 + $0x13b8] sm:$0xff] %v3186_v55  ;;  %v3190_v57 = vld [vmem:[%s16516_s7 + $0x2790] sm:$0xff] }
 0x156   : > { %3189 = vst [vmem:[%s16521_s8 + $0x13c0] sm:$0xff] %v3188_v56  ;;  %v3192_v58 = vld [vmem:[%s16516_s7 + $0x27a0] sm:$0xff]  ;;  %v3194_v59 = vld [vmem:[%s16516_s7 + $0x27b0] sm:$0xff]  ;;  %3191 = vst [vmem:[%s16521_s8 + $0x13c8] sm:$0xff] %v3190_v57 }
 0x157   : > { %3193 = vst [vmem:[%s16521_s8 + $0x13d0] sm:$0xff] %v3192_v58  ;;  %3195 = vst [vmem:[%s16521_s8 + $0x13d8] sm:$0xff] %v3194_v59  ;;  %v3196_v60 = vld [vmem:[%s16516_s7 + $0x27c0] sm:$0xff]  ;;  %v3198_v61 = vld [vmem:[%s16516_s7 + $0x27d0] sm:$0xff] }
 0x158   : > { %v3200_v62 = vld [vmem:[%s16516_s7 + $0x27e0] sm:$0xff]  ;;  %3197 = vst [vmem:[%s16521_s8 + $0x13e0] sm:$0xff] %v3196_v60  ;;  %3199 = vst [vmem:[%s16521_s8 + $0x13e8] sm:$0xff] %v3198_v61  ;;  %v3202_v63 = vld [vmem:[%s16516_s7 + $0x27f0] sm:$0xff] }
 0x159   : > { %3201 = vst [vmem:[%s16521_s8 + $0x13f0] sm:$0xff] %v3200_v62  ;;  %v3204_v0 = vld [vmem:[%s16516_s7 + $0x2800] sm:$0xff]  ;;  %v3206_v1 = vld [vmem:[%s16516_s7 + $0x2810] sm:$0xff]  ;;  %3203 = vst [vmem:[%s16521_s8 + $0x13f8] sm:$0xff] %v3202_v63 }
 0x15a   : > { %3205 = vst [vmem:[%s16521_s8 + $0x1400] sm:$0xff] %v3204_v0  ;;  %3207 = vst [vmem:[%s16521_s8 + $0x1408] sm:$0xff] %v3206_v1  ;;  %v3208_v2 = vld [vmem:[%s16516_s7 + $0x2820] sm:$0xff]  ;;  %v3210_v3 = vld [vmem:[%s16516_s7 + $0x2830] sm:$0xff] }
 0x15b   : > { %v3212_v4 = vld [vmem:[%s16516_s7 + $0x2840] sm:$0xff]  ;;  %3209 = vst [vmem:[%s16521_s8 + $0x1410] sm:$0xff] %v3208_v2  ;;  %3211 = vst [vmem:[%s16521_s8 + $0x1418] sm:$0xff] %v3210_v3  ;;  %v3214_v5 = vld [vmem:[%s16516_s7 + $0x2850] sm:$0xff] }
 0x15c   : > { %3213 = vst [vmem:[%s16521_s8 + $0x1420] sm:$0xff] %v3212_v4  ;;  %v3216_v6 = vld [vmem:[%s16516_s7 + $0x2860] sm:$0xff]  ;;  %v3218_v7 = vld [vmem:[%s16516_s7 + $0x2870] sm:$0xff]  ;;  %3215 = vst [vmem:[%s16521_s8 + $0x1428] sm:$0xff] %v3214_v5 }
 0x15d   : > { %3217 = vst [vmem:[%s16521_s8 + $0x1430] sm:$0xff] %v3216_v6  ;;  %3219 = vst [vmem:[%s16521_s8 + $0x1438] sm:$0xff] %v3218_v7  ;;  %v3220_v8 = vld [vmem:[%s16516_s7 + $0x2880] sm:$0xff]  ;;  %v3222_v9 = vld [vmem:[%s16516_s7 + $0x2890] sm:$0xff] }
 0x15e   : > { %v3224_v10 = vld [vmem:[%s16516_s7 + $0x28a0] sm:$0xff]  ;;  %3221 = vst [vmem:[%s16521_s8 + $0x1440] sm:$0xff] %v3220_v8  ;;  %3223 = vst [vmem:[%s16521_s8 + $0x1448] sm:$0xff] %v3222_v9  ;;  %v3226_v11 = vld [vmem:[%s16516_s7 + $0x28b0] sm:$0xff] }
 0x15f   : > { %3225 = vst [vmem:[%s16521_s8 + $0x1450] sm:$0xff] %v3224_v10  ;;  %v3228_v12 = vld [vmem:[%s16516_s7 + $0x28c0] sm:$0xff]  ;;  %v3230_v13 = vld [vmem:[%s16516_s7 + $0x28d0] sm:$0xff]  ;;  %3227 = vst [vmem:[%s16521_s8 + $0x1458] sm:$0xff] %v3226_v11 }
 0x160   : > { %3229 = vst [vmem:[%s16521_s8 + $0x1460] sm:$0xff] %v3228_v12  ;;  %3231 = vst [vmem:[%s16521_s8 + $0x1468] sm:$0xff] %v3230_v13  ;;  %v3232_v14 = vld [vmem:[%s16516_s7 + $0x28e0] sm:$0xff]  ;;  %v3234_v15 = vld [vmem:[%s16516_s7 + $0x28f0] sm:$0xff] }
 0x161   : > { %v3236_v16 = vld [vmem:[%s16516_s7 + $0x2900] sm:$0xff]  ;;  %3233 = vst [vmem:[%s16521_s8 + $0x1470] sm:$0xff] %v3232_v14  ;;  %3235 = vst [vmem:[%s16521_s8 + $0x1478] sm:$0xff] %v3234_v15  ;;  %v3238_v17 = vld [vmem:[%s16516_s7 + $0x2910] sm:$0xff] }
 0x162   : > { %3237 = vst [vmem:[%s16521_s8 + $0x1480] sm:$0xff] %v3236_v16  ;;  %v3240_v18 = vld [vmem:[%s16516_s7 + $0x2920] sm:$0xff]  ;;  %v3242_v19 = vld [vmem:[%s16516_s7 + $0x2930] sm:$0xff]  ;;  %3239 = vst [vmem:[%s16521_s8 + $0x1488] sm:$0xff] %v3238_v17 }
 0x163   : > { %3241 = vst [vmem:[%s16521_s8 + $0x1490] sm:$0xff] %v3240_v18  ;;  %3243 = vst [vmem:[%s16521_s8 + $0x1498] sm:$0xff] %v3242_v19  ;;  %v3244_v20 = vld [vmem:[%s16516_s7 + $0x2940] sm:$0xff]  ;;  %v3246_v21 = vld [vmem:[%s16516_s7 + $0x2950] sm:$0xff] }
 0x164   : > { %v3248_v22 = vld [vmem:[%s16516_s7 + $0x2960] sm:$0xff]  ;;  %3245 = vst [vmem:[%s16521_s8 + $0x14a0] sm:$0xff] %v3244_v20  ;;  %3247 = vst [vmem:[%s16521_s8 + $0x14a8] sm:$0xff] %v3246_v21  ;;  %v3250_v23 = vld [vmem:[%s16516_s7 + $0x2970] sm:$0xff] }
 0x165   : > { %3249 = vst [vmem:[%s16521_s8 + $0x14b0] sm:$0xff] %v3248_v22  ;;  %v3252_v24 = vld [vmem:[%s16516_s7 + $0x2980] sm:$0xff]  ;;  %v3254_v25 = vld [vmem:[%s16516_s7 + $0x2990] sm:$0xff]  ;;  %3251 = vst [vmem:[%s16521_s8 + $0x14b8] sm:$0xff] %v3250_v23 }
 0x166   : > { %3253 = vst [vmem:[%s16521_s8 + $0x14c0] sm:$0xff] %v3252_v24  ;;  %3255 = vst [vmem:[%s16521_s8 + $0x14c8] sm:$0xff] %v3254_v25  ;;  %v3256_v26 = vld [vmem:[%s16516_s7 + $0x29a0] sm:$0xff]  ;;  %v3258_v27 = vld [vmem:[%s16516_s7 + $0x29b0] sm:$0xff] }
 0x167   : > { %v3260_v28 = vld [vmem:[%s16516_s7 + $0x29c0] sm:$0xff]  ;;  %3257 = vst [vmem:[%s16521_s8 + $0x14d0] sm:$0xff] %v3256_v26  ;;  %3259 = vst [vmem:[%s16521_s8 + $0x14d8] sm:$0xff] %v3258_v27  ;;  %v3262_v29 = vld [vmem:[%s16516_s7 + $0x29d0] sm:$0xff] }
 0x168   : > { %3261 = vst [vmem:[%s16521_s8 + $0x14e0] sm:$0xff] %v3260_v28  ;;  %v3264_v30 = vld [vmem:[%s16516_s7 + $0x29e0] sm:$0xff]  ;;  %v3266_v31 = vld [vmem:[%s16516_s7 + $0x29f0] sm:$0xff]  ;;  %3263 = vst [vmem:[%s16521_s8 + $0x14e8] sm:$0xff] %v3262_v29 }
 0x169   : > { %3265 = vst [vmem:[%s16521_s8 + $0x14f0] sm:$0xff] %v3264_v30  ;;  %3267 = vst [vmem:[%s16521_s8 + $0x14f8] sm:$0xff] %v3266_v31  ;;  %v3268_v32 = vld [vmem:[%s16516_s7 + $0x2a00] sm:$0xff]  ;;  %v3270_v33 = vld [vmem:[%s16516_s7 + $0x2a10] sm:$0xff] }
 0x16a   : > { %v3272_v34 = vld [vmem:[%s16516_s7 + $0x2a20] sm:$0xff]  ;;  %3269 = vst [vmem:[%s16521_s8 + $0x1500] sm:$0xff] %v3268_v32  ;;  %3271 = vst [vmem:[%s16521_s8 + $0x1508] sm:$0xff] %v3270_v33  ;;  %v3274_v35 = vld [vmem:[%s16516_s7 + $0x2a30] sm:$0xff] }
 0x16b   : > { %3273 = vst [vmem:[%s16521_s8 + $0x1510] sm:$0xff] %v3272_v34  ;;  %v3276_v36 = vld [vmem:[%s16516_s7 + $0x2a40] sm:$0xff]  ;;  %v3278_v37 = vld [vmem:[%s16516_s7 + $0x2a50] sm:$0xff]  ;;  %3275 = vst [vmem:[%s16521_s8 + $0x1518] sm:$0xff] %v3274_v35 }
 0x16c   : > { %3277 = vst [vmem:[%s16521_s8 + $0x1520] sm:$0xff] %v3276_v36  ;;  %3279 = vst [vmem:[%s16521_s8 + $0x1528] sm:$0xff] %v3278_v37  ;;  %v3280_v38 = vld [vmem:[%s16516_s7 + $0x2a60] sm:$0xff]  ;;  %v3282_v39 = vld [vmem:[%s16516_s7 + $0x2a70] sm:$0xff] }
 0x16d   : > { %v3284_v40 = vld [vmem:[%s16516_s7 + $0x2a80] sm:$0xff]  ;;  %3281 = vst [vmem:[%s16521_s8 + $0x1530] sm:$0xff] %v3280_v38  ;;  %3283 = vst [vmem:[%s16521_s8 + $0x1538] sm:$0xff] %v3282_v39  ;;  %v3286_v41 = vld [vmem:[%s16516_s7 + $0x2a90] sm:$0xff] }
 0x16e   : > { %3285 = vst [vmem:[%s16521_s8 + $0x1540] sm:$0xff] %v3284_v40  ;;  %v3288_v42 = vld [vmem:[%s16516_s7 + $0x2aa0] sm:$0xff]  ;;  %v3290_v43 = vld [vmem:[%s16516_s7 + $0x2ab0] sm:$0xff]  ;;  %3287 = vst [vmem:[%s16521_s8 + $0x1548] sm:$0xff] %v3286_v41 }
 0x16f   : > { %3289 = vst [vmem:[%s16521_s8 + $0x1550] sm:$0xff] %v3288_v42  ;;  %3291 = vst [vmem:[%s16521_s8 + $0x1558] sm:$0xff] %v3290_v43  ;;  %v3292_v44 = vld [vmem:[%s16516_s7 + $0x2ac0] sm:$0xff]  ;;  %v3294_v45 = vld [vmem:[%s16516_s7 + $0x2ad0] sm:$0xff] }
 0x170   : > { %v3296_v46 = vld [vmem:[%s16516_s7 + $0x2ae0] sm:$0xff]  ;;  %3293 = vst [vmem:[%s16521_s8 + $0x1560] sm:$0xff] %v3292_v44  ;;  %3295 = vst [vmem:[%s16521_s8 + $0x1568] sm:$0xff] %v3294_v45  ;;  %v3298_v47 = vld [vmem:[%s16516_s7 + $0x2af0] sm:$0xff] }
 0x171   : > { %3297 = vst [vmem:[%s16521_s8 + $0x1570] sm:$0xff] %v3296_v46  ;;  %v3300_v48 = vld [vmem:[%s16516_s7 + $0x2b00] sm:$0xff]  ;;  %v3302_v49 = vld [vmem:[%s16516_s7 + $0x2b10] sm:$0xff]  ;;  %3299 = vst [vmem:[%s16521_s8 + $0x1578] sm:$0xff] %v3298_v47 }
 0x172   : > { %3301 = vst [vmem:[%s16521_s8 + $0x1580] sm:$0xff] %v3300_v48  ;;  %3303 = vst [vmem:[%s16521_s8 + $0x1588] sm:$0xff] %v3302_v49  ;;  %v3304_v50 = vld [vmem:[%s16516_s7 + $0x2b20] sm:$0xff]  ;;  %v3306_v51 = vld [vmem:[%s16516_s7 + $0x2b30] sm:$0xff] }
 0x173   : > { %v3308_v52 = vld [vmem:[%s16516_s7 + $0x2b40] sm:$0xff]  ;;  %3305 = vst [vmem:[%s16521_s8 + $0x1590] sm:$0xff] %v3304_v50  ;;  %3307 = vst [vmem:[%s16521_s8 + $0x1598] sm:$0xff] %v3306_v51  ;;  %v3310_v53 = vld [vmem:[%s16516_s7 + $0x2b50] sm:$0xff] }
 0x174   : > { %3309 = vst [vmem:[%s16521_s8 + $0x15a0] sm:$0xff] %v3308_v52  ;;  %v3312_v54 = vld [vmem:[%s16516_s7 + $0x2b60] sm:$0xff]  ;;  %v3314_v55 = vld [vmem:[%s16516_s7 + $0x2b70] sm:$0xff]  ;;  %3311 = vst [vmem:[%s16521_s8 + $0x15a8] sm:$0xff] %v3310_v53 }
 0x175   : > { %3313 = vst [vmem:[%s16521_s8 + $0x15b0] sm:$0xff] %v3312_v54  ;;  %3315 = vst [vmem:[%s16521_s8 + $0x15b8] sm:$0xff] %v3314_v55  ;;  %v3316_v56 = vld [vmem:[%s16516_s7 + $0x2b80] sm:$0xff]  ;;  %v3318_v57 = vld [vmem:[%s16516_s7 + $0x2b90] sm:$0xff] }
 0x176   : > { %v3320_v58 = vld [vmem:[%s16516_s7 + $0x2ba0] sm:$0xff]  ;;  %3317 = vst [vmem:[%s16521_s8 + $0x15c0] sm:$0xff] %v3316_v56  ;;  %3319 = vst [vmem:[%s16521_s8 + $0x15c8] sm:$0xff] %v3318_v57  ;;  %v3322_v59 = vld [vmem:[%s16516_s7 + $0x2bb0] sm:$0xff] }
 0x177   : > { %3321 = vst [vmem:[%s16521_s8 + $0x15d0] sm:$0xff] %v3320_v58  ;;  %v3324_v60 = vld [vmem:[%s16516_s7 + $0x2bc0] sm:$0xff]  ;;  %v3326_v61 = vld [vmem:[%s16516_s7 + $0x2bd0] sm:$0xff]  ;;  %3323 = vst [vmem:[%s16521_s8 + $0x15d8] sm:$0xff] %v3322_v59 }
 0x178   : > { %3325 = vst [vmem:[%s16521_s8 + $0x15e0] sm:$0xff] %v3324_v60  ;;  %3327 = vst [vmem:[%s16521_s8 + $0x15e8] sm:$0xff] %v3326_v61  ;;  %v3328_v62 = vld [vmem:[%s16516_s7 + $0x2be0] sm:$0xff]  ;;  %v3330_v63 = vld [vmem:[%s16516_s7 + $0x2bf0] sm:$0xff] }
 0x179   : > { %v3332_v0 = vld [vmem:[%s16516_s7 + $0x2c00] sm:$0xff]  ;;  %3329 = vst [vmem:[%s16521_s8 + $0x15f0] sm:$0xff] %v3328_v62  ;;  %3331 = vst [vmem:[%s16521_s8 + $0x15f8] sm:$0xff] %v3330_v63  ;;  %v3334_v1 = vld [vmem:[%s16516_s7 + $0x2c10] sm:$0xff] }
 0x17a   : > { %3333 = vst [vmem:[%s16521_s8 + $0x1600] sm:$0xff] %v3332_v0  ;;  %v3336_v2 = vld [vmem:[%s16516_s7 + $0x2c20] sm:$0xff]  ;;  %v3338_v3 = vld [vmem:[%s16516_s7 + $0x2c30] sm:$0xff]  ;;  %3335 = vst [vmem:[%s16521_s8 + $0x1608] sm:$0xff] %v3334_v1 }
 0x17b   : > { %3337 = vst [vmem:[%s16521_s8 + $0x1610] sm:$0xff] %v3336_v2  ;;  %3339 = vst [vmem:[%s16521_s8 + $0x1618] sm:$0xff] %v3338_v3  ;;  %v3340_v4 = vld [vmem:[%s16516_s7 + $0x2c40] sm:$0xff]  ;;  %v3342_v5 = vld [vmem:[%s16516_s7 + $0x2c50] sm:$0xff] }
 0x17c   : > { %v3344_v6 = vld [vmem:[%s16516_s7 + $0x2c60] sm:$0xff]  ;;  %3341 = vst [vmem:[%s16521_s8 + $0x1620] sm:$0xff] %v3340_v4  ;;  %3343 = vst [vmem:[%s16521_s8 + $0x1628] sm:$0xff] %v3342_v5  ;;  %v3346_v7 = vld [vmem:[%s16516_s7 + $0x2c70] sm:$0xff] }
 0x17d   : > { %3345 = vst [vmem:[%s16521_s8 + $0x1630] sm:$0xff] %v3344_v6  ;;  %v3348_v8 = vld [vmem:[%s16516_s7 + $0x2c80] sm:$0xff]  ;;  %v3350_v9 = vld [vmem:[%s16516_s7 + $0x2c90] sm:$0xff]  ;;  %3347 = vst [vmem:[%s16521_s8 + $0x1638] sm:$0xff] %v3346_v7 }
 0x17e   : > { %3349 = vst [vmem:[%s16521_s8 + $0x1640] sm:$0xff] %v3348_v8  ;;  %3351 = vst [vmem:[%s16521_s8 + $0x1648] sm:$0xff] %v3350_v9  ;;  %v3352_v10 = vld [vmem:[%s16516_s7 + $0x2ca0] sm:$0xff]  ;;  %v3354_v11 = vld [vmem:[%s16516_s7 + $0x2cb0] sm:$0xff] }
 0x17f   : > { %v3356_v12 = vld [vmem:[%s16516_s7 + $0x2cc0] sm:$0xff]  ;;  %3353 = vst [vmem:[%s16521_s8 + $0x1650] sm:$0xff] %v3352_v10  ;;  %3355 = vst [vmem:[%s16521_s8 + $0x1658] sm:$0xff] %v3354_v11  ;;  %v3358_v13 = vld [vmem:[%s16516_s7 + $0x2cd0] sm:$0xff] }
 0x180   : > { %3357 = vst [vmem:[%s16521_s8 + $0x1660] sm:$0xff] %v3356_v12  ;;  %v3360_v14 = vld [vmem:[%s16516_s7 + $0x2ce0] sm:$0xff]  ;;  %v3362_v15 = vld [vmem:[%s16516_s7 + $0x2cf0] sm:$0xff]  ;;  %3359 = vst [vmem:[%s16521_s8 + $0x1668] sm:$0xff] %v3358_v13 }
 0x181   : > { %3361 = vst [vmem:[%s16521_s8 + $0x1670] sm:$0xff] %v3360_v14  ;;  %3363 = vst [vmem:[%s16521_s8 + $0x1678] sm:$0xff] %v3362_v15  ;;  %v3364_v16 = vld [vmem:[%s16516_s7 + $0x2d00] sm:$0xff]  ;;  %v3366_v17 = vld [vmem:[%s16516_s7 + $0x2d10] sm:$0xff] }
 0x182   : > { %v3368_v18 = vld [vmem:[%s16516_s7 + $0x2d20] sm:$0xff]  ;;  %3365 = vst [vmem:[%s16521_s8 + $0x1680] sm:$0xff] %v3364_v16  ;;  %3367 = vst [vmem:[%s16521_s8 + $0x1688] sm:$0xff] %v3366_v17  ;;  %v3370_v19 = vld [vmem:[%s16516_s7 + $0x2d30] sm:$0xff] }
 0x183   : > { %3369 = vst [vmem:[%s16521_s8 + $0x1690] sm:$0xff] %v3368_v18  ;;  %v3372_v20 = vld [vmem:[%s16516_s7 + $0x2d40] sm:$0xff]  ;;  %v3374_v21 = vld [vmem:[%s16516_s7 + $0x2d50] sm:$0xff]  ;;  %3371 = vst [vmem:[%s16521_s8 + $0x1698] sm:$0xff] %v3370_v19 }
 0x184   : > { %3373 = vst [vmem:[%s16521_s8 + $0x16a0] sm:$0xff] %v3372_v20  ;;  %3375 = vst [vmem:[%s16521_s8 + $0x16a8] sm:$0xff] %v3374_v21  ;;  %v3376_v22 = vld [vmem:[%s16516_s7 + $0x2d60] sm:$0xff]  ;;  %v3378_v23 = vld [vmem:[%s16516_s7 + $0x2d70] sm:$0xff] }
 0x185   : > { %v3380_v24 = vld [vmem:[%s16516_s7 + $0x2d80] sm:$0xff]  ;;  %3377 = vst [vmem:[%s16521_s8 + $0x16b0] sm:$0xff] %v3376_v22  ;;  %3379 = vst [vmem:[%s16521_s8 + $0x16b8] sm:$0xff] %v3378_v23  ;;  %v3382_v25 = vld [vmem:[%s16516_s7 + $0x2d90] sm:$0xff] }
 0x186   : > { %3381 = vst [vmem:[%s16521_s8 + $0x16c0] sm:$0xff] %v3380_v24  ;;  %v3384_v26 = vld [vmem:[%s16516_s7 + $0x2da0] sm:$0xff]  ;;  %v3386_v27 = vld [vmem:[%s16516_s7 + $0x2db0] sm:$0xff]  ;;  %3383 = vst [vmem:[%s16521_s8 + $0x16c8] sm:$0xff] %v3382_v25 }
 0x187   : > { %3385 = vst [vmem:[%s16521_s8 + $0x16d0] sm:$0xff] %v3384_v26  ;;  %3387 = vst [vmem:[%s16521_s8 + $0x16d8] sm:$0xff] %v3386_v27  ;;  %v3388_v28 = vld [vmem:[%s16516_s7 + $0x2dc0] sm:$0xff]  ;;  %v3390_v29 = vld [vmem:[%s16516_s7 + $0x2dd0] sm:$0xff] }
 0x188   : > { %v3392_v30 = vld [vmem:[%s16516_s7 + $0x2de0] sm:$0xff]  ;;  %3389 = vst [vmem:[%s16521_s8 + $0x16e0] sm:$0xff] %v3388_v28  ;;  %3391 = vst [vmem:[%s16521_s8 + $0x16e8] sm:$0xff] %v3390_v29  ;;  %v3394_v31 = vld [vmem:[%s16516_s7 + $0x2df0] sm:$0xff] }
 0x189   : > { %3393 = vst [vmem:[%s16521_s8 + $0x16f0] sm:$0xff] %v3392_v30  ;;  %v3396_v32 = vld [vmem:[%s16516_s7 + $0x2e00] sm:$0xff]  ;;  %v3398_v33 = vld [vmem:[%s16516_s7 + $0x2e10] sm:$0xff]  ;;  %3395 = vst [vmem:[%s16521_s8 + $0x16f8] sm:$0xff] %v3394_v31 }
 0x18a   : > { %3397 = vst [vmem:[%s16521_s8 + $0x1700] sm:$0xff] %v3396_v32  ;;  %3399 = vst [vmem:[%s16521_s8 + $0x1708] sm:$0xff] %v3398_v33  ;;  %v3400_v34 = vld [vmem:[%s16516_s7 + $0x2e20] sm:$0xff]  ;;  %v3402_v35 = vld [vmem:[%s16516_s7 + $0x2e30] sm:$0xff] }
 0x18b   : > { %v3404_v36 = vld [vmem:[%s16516_s7 + $0x2e40] sm:$0xff]  ;;  %3401 = vst [vmem:[%s16521_s8 + $0x1710] sm:$0xff] %v3400_v34  ;;  %3403 = vst [vmem:[%s16521_s8 + $0x1718] sm:$0xff] %v3402_v35  ;;  %v3406_v37 = vld [vmem:[%s16516_s7 + $0x2e50] sm:$0xff] }
 0x18c   : > { %3405 = vst [vmem:[%s16521_s8 + $0x1720] sm:$0xff] %v3404_v36  ;;  %v3408_v38 = vld [vmem:[%s16516_s7 + $0x2e60] sm:$0xff]  ;;  %v3410_v39 = vld [vmem:[%s16516_s7 + $0x2e70] sm:$0xff]  ;;  %3407 = vst [vmem:[%s16521_s8 + $0x1728] sm:$0xff] %v3406_v37 }
 0x18d   : > { %3409 = vst [vmem:[%s16521_s8 + $0x1730] sm:$0xff] %v3408_v38  ;;  %3411 = vst [vmem:[%s16521_s8 + $0x1738] sm:$0xff] %v3410_v39  ;;  %v3412_v40 = vld [vmem:[%s16516_s7 + $0x2e80] sm:$0xff]  ;;  %v3414_v41 = vld [vmem:[%s16516_s7 + $0x2e90] sm:$0xff] }
 0x18e   : > { %v3416_v42 = vld [vmem:[%s16516_s7 + $0x2ea0] sm:$0xff]  ;;  %3413 = vst [vmem:[%s16521_s8 + $0x1740] sm:$0xff] %v3412_v40  ;;  %3415 = vst [vmem:[%s16521_s8 + $0x1748] sm:$0xff] %v3414_v41  ;;  %v3418_v43 = vld [vmem:[%s16516_s7 + $0x2eb0] sm:$0xff] }
 0x18f   : > { %3417 = vst [vmem:[%s16521_s8 + $0x1750] sm:$0xff] %v3416_v42  ;;  %v3420_v44 = vld [vmem:[%s16516_s7 + $0x2ec0] sm:$0xff]  ;;  %v3422_v45 = vld [vmem:[%s16516_s7 + $0x2ed0] sm:$0xff]  ;;  %3419 = vst [vmem:[%s16521_s8 + $0x1758] sm:$0xff] %v3418_v43 }
 0x190   : > { %3421 = vst [vmem:[%s16521_s8 + $0x1760] sm:$0xff] %v3420_v44  ;;  %3423 = vst [vmem:[%s16521_s8 + $0x1768] sm:$0xff] %v3422_v45  ;;  %v3424_v46 = vld [vmem:[%s16516_s7 + $0x2ee0] sm:$0xff]  ;;  %v3426_v47 = vld [vmem:[%s16516_s7 + $0x2ef0] sm:$0xff] }
 0x191   : > { %v3428_v48 = vld [vmem:[%s16516_s7 + $0x2f00] sm:$0xff]  ;;  %3425 = vst [vmem:[%s16521_s8 + $0x1770] sm:$0xff] %v3424_v46  ;;  %3427 = vst [vmem:[%s16521_s8 + $0x1778] sm:$0xff] %v3426_v47  ;;  %v3430_v49 = vld [vmem:[%s16516_s7 + $0x2f10] sm:$0xff] }
 0x192   : > { %3429 = vst [vmem:[%s16521_s8 + $0x1780] sm:$0xff] %v3428_v48  ;;  %v3432_v50 = vld [vmem:[%s16516_s7 + $0x2f20] sm:$0xff]  ;;  %v3434_v51 = vld [vmem:[%s16516_s7 + $0x2f30] sm:$0xff]  ;;  %3431 = vst [vmem:[%s16521_s8 + $0x1788] sm:$0xff] %v3430_v49 }
 0x193   : > { %3433 = vst [vmem:[%s16521_s8 + $0x1790] sm:$0xff] %v3432_v50  ;;  %3435 = vst [vmem:[%s16521_s8 + $0x1798] sm:$0xff] %v3434_v51  ;;  %v3436_v52 = vld [vmem:[%s16516_s7 + $0x2f40] sm:$0xff]  ;;  %v3438_v53 = vld [vmem:[%s16516_s7 + $0x2f50] sm:$0xff] }
 0x194   : > { %v3440_v54 = vld [vmem:[%s16516_s7 + $0x2f60] sm:$0xff]  ;;  %3437 = vst [vmem:[%s16521_s8 + $0x17a0] sm:$0xff] %v3436_v52  ;;  %3439 = vst [vmem:[%s16521_s8 + $0x17a8] sm:$0xff] %v3438_v53  ;;  %v3442_v55 = vld [vmem:[%s16516_s7 + $0x2f70] sm:$0xff] }
 0x195   : > { %3441 = vst [vmem:[%s16521_s8 + $0x17b0] sm:$0xff] %v3440_v54  ;;  %v3444_v56 = vld [vmem:[%s16516_s7 + $0x2f80] sm:$0xff]  ;;  %v3446_v57 = vld [vmem:[%s16516_s7 + $0x2f90] sm:$0xff]  ;;  %3443 = vst [vmem:[%s16521_s8 + $0x17b8] sm:$0xff] %v3442_v55 }
 0x196   : > { %3445 = vst [vmem:[%s16521_s8 + $0x17c0] sm:$0xff] %v3444_v56  ;;  %3447 = vst [vmem:[%s16521_s8 + $0x17c8] sm:$0xff] %v3446_v57  ;;  %v3448_v58 = vld [vmem:[%s16516_s7 + $0x2fa0] sm:$0xff]  ;;  %v3450_v59 = vld [vmem:[%s16516_s7 + $0x2fb0] sm:$0xff] }
 0x197   : > { %v3452_v60 = vld [vmem:[%s16516_s7 + $0x2fc0] sm:$0xff]  ;;  %3449 = vst [vmem:[%s16521_s8 + $0x17d0] sm:$0xff] %v3448_v58  ;;  %3451 = vst [vmem:[%s16521_s8 + $0x17d8] sm:$0xff] %v3450_v59  ;;  %v3454_v61 = vld [vmem:[%s16516_s7 + $0x2fd0] sm:$0xff] }
 0x198   : > { %3453 = vst [vmem:[%s16521_s8 + $0x17e0] sm:$0xff] %v3452_v60  ;;  %v3456_v62 = vld [vmem:[%s16516_s7 + $0x2fe0] sm:$0xff]  ;;  %v3458_v63 = vld [vmem:[%s16516_s7 + $0x2ff0] sm:$0xff]  ;;  %3455 = vst [vmem:[%s16521_s8 + $0x17e8] sm:$0xff] %v3454_v61 }
 0x199   : > { %3457 = vst [vmem:[%s16521_s8 + $0x17f0] sm:$0xff] %v3456_v62  ;;  %3459 = vst [vmem:[%s16521_s8 + $0x17f8] sm:$0xff] %v3458_v63  ;;  %v3460_v0 = vld [vmem:[%s16516_s7 + $0x3000] sm:$0xff]  ;;  %v3462_v1 = vld [vmem:[%s16516_s7 + $0x3010] sm:$0xff] }
 0x19a   : > { %v3464_v2 = vld [vmem:[%s16516_s7 + $0x3020] sm:$0xff]  ;;  %3461 = vst [vmem:[%s16521_s8 + $0x1800] sm:$0xff] %v3460_v0  ;;  %3463 = vst [vmem:[%s16521_s8 + $0x1808] sm:$0xff] %v3462_v1  ;;  %v3466_v3 = vld [vmem:[%s16516_s7 + $0x3030] sm:$0xff] }
 0x19b   : > { %3465 = vst [vmem:[%s16521_s8 + $0x1810] sm:$0xff] %v3464_v2  ;;  %v3468_v4 = vld [vmem:[%s16516_s7 + $0x3040] sm:$0xff]  ;;  %v3470_v5 = vld [vmem:[%s16516_s7 + $0x3050] sm:$0xff]  ;;  %3467 = vst [vmem:[%s16521_s8 + $0x1818] sm:$0xff] %v3466_v3 }
 0x19c   : > { %3469 = vst [vmem:[%s16521_s8 + $0x1820] sm:$0xff] %v3468_v4  ;;  %3471 = vst [vmem:[%s16521_s8 + $0x1828] sm:$0xff] %v3470_v5  ;;  %v3472_v6 = vld [vmem:[%s16516_s7 + $0x3060] sm:$0xff]  ;;  %v3474_v7 = vld [vmem:[%s16516_s7 + $0x3070] sm:$0xff] }
 0x19d   : > { %v3476_v8 = vld [vmem:[%s16516_s7 + $0x3080] sm:$0xff]  ;;  %3473 = vst [vmem:[%s16521_s8 + $0x1830] sm:$0xff] %v3472_v6  ;;  %3475 = vst [vmem:[%s16521_s8 + $0x1838] sm:$0xff] %v3474_v7  ;;  %v3478_v9 = vld [vmem:[%s16516_s7 + $0x3090] sm:$0xff] }
 0x19e   : > { %3477 = vst [vmem:[%s16521_s8 + $0x1840] sm:$0xff] %v3476_v8  ;;  %v3480_v10 = vld [vmem:[%s16516_s7 + $0x30a0] sm:$0xff]  ;;  %v3482_v11 = vld [vmem:[%s16516_s7 + $0x30b0] sm:$0xff]  ;;  %3479 = vst [vmem:[%s16521_s8 + $0x1848] sm:$0xff] %v3478_v9 }
 0x19f   : > { %3481 = vst [vmem:[%s16521_s8 + $0x1850] sm:$0xff] %v3480_v10  ;;  %3483 = vst [vmem:[%s16521_s8 + $0x1858] sm:$0xff] %v3482_v11  ;;  %v3484_v12 = vld [vmem:[%s16516_s7 + $0x30c0] sm:$0xff]  ;;  %v3486_v13 = vld [vmem:[%s16516_s7 + $0x30d0] sm:$0xff] }
 0x1a0   : > { %v3488_v14 = vld [vmem:[%s16516_s7 + $0x30e0] sm:$0xff]  ;;  %3485 = vst [vmem:[%s16521_s8 + $0x1860] sm:$0xff] %v3484_v12  ;;  %3487 = vst [vmem:[%s16521_s8 + $0x1868] sm:$0xff] %v3486_v13  ;;  %v3490_v15 = vld [vmem:[%s16516_s7 + $0x30f0] sm:$0xff] }
 0x1a1   : > { %3489 = vst [vmem:[%s16521_s8 + $0x1870] sm:$0xff] %v3488_v14  ;;  %v3492_v16 = vld [vmem:[%s16516_s7 + $0x3100] sm:$0xff]  ;;  %v3494_v17 = vld [vmem:[%s16516_s7 + $0x3110] sm:$0xff]  ;;  %3491 = vst [vmem:[%s16521_s8 + $0x1878] sm:$0xff] %v3490_v15 }
 0x1a2   : > { %3493 = vst [vmem:[%s16521_s8 + $0x1880] sm:$0xff] %v3492_v16  ;;  %3495 = vst [vmem:[%s16521_s8 + $0x1888] sm:$0xff] %v3494_v17  ;;  %v3496_v18 = vld [vmem:[%s16516_s7 + $0x3120] sm:$0xff]  ;;  %v3498_v19 = vld [vmem:[%s16516_s7 + $0x3130] sm:$0xff] }
 0x1a3   : > { %v3500_v20 = vld [vmem:[%s16516_s7 + $0x3140] sm:$0xff]  ;;  %3497 = vst [vmem:[%s16521_s8 + $0x1890] sm:$0xff] %v3496_v18  ;;  %3499 = vst [vmem:[%s16521_s8 + $0x1898] sm:$0xff] %v3498_v19  ;;  %v3502_v21 = vld [vmem:[%s16516_s7 + $0x3150] sm:$0xff] }
 0x1a4   : > { %3501 = vst [vmem:[%s16521_s8 + $0x18a0] sm:$0xff] %v3500_v20  ;;  %v3504_v22 = vld [vmem:[%s16516_s7 + $0x3160] sm:$0xff]  ;;  %v3506_v23 = vld [vmem:[%s16516_s7 + $0x3170] sm:$0xff]  ;;  %3503 = vst [vmem:[%s16521_s8 + $0x18a8] sm:$0xff] %v3502_v21 }
 0x1a5   : > { %3505 = vst [vmem:[%s16521_s8 + $0x18b0] sm:$0xff] %v3504_v22  ;;  %3507 = vst [vmem:[%s16521_s8 + $0x18b8] sm:$0xff] %v3506_v23  ;;  %v3508_v24 = vld [vmem:[%s16516_s7 + $0x3180] sm:$0xff]  ;;  %v3510_v25 = vld [vmem:[%s16516_s7 + $0x3190] sm:$0xff] }
 0x1a6   : > { %v3512_v26 = vld [vmem:[%s16516_s7 + $0x31a0] sm:$0xff]  ;;  %3509 = vst [vmem:[%s16521_s8 + $0x18c0] sm:$0xff] %v3508_v24  ;;  %3511 = vst [vmem:[%s16521_s8 + $0x18c8] sm:$0xff] %v3510_v25  ;;  %v3514_v27 = vld [vmem:[%s16516_s7 + $0x31b0] sm:$0xff] }
 0x1a7   : > { %3513 = vst [vmem:[%s16521_s8 + $0x18d0] sm:$0xff] %v3512_v26  ;;  %v3516_v28 = vld [vmem:[%s16516_s7 + $0x31c0] sm:$0xff]  ;;  %v3518_v29 = vld [vmem:[%s16516_s7 + $0x31d0] sm:$0xff]  ;;  %3515 = vst [vmem:[%s16521_s8 + $0x18d8] sm:$0xff] %v3514_v27 }
 0x1a8   : > { %3517 = vst [vmem:[%s16521_s8 + $0x18e0] sm:$0xff] %v3516_v28  ;;  %3519 = vst [vmem:[%s16521_s8 + $0x18e8] sm:$0xff] %v3518_v29  ;;  %v3520_v30 = vld [vmem:[%s16516_s7 + $0x31e0] sm:$0xff]  ;;  %v3522_v31 = vld [vmem:[%s16516_s7 + $0x31f0] sm:$0xff] }
 0x1a9   : > { %v3524_v32 = vld [vmem:[%s16516_s7 + $0x3200] sm:$0xff]  ;;  %3521 = vst [vmem:[%s16521_s8 + $0x18f0] sm:$0xff] %v3520_v30  ;;  %3523 = vst [vmem:[%s16521_s8 + $0x18f8] sm:$0xff] %v3522_v31  ;;  %v3526_v33 = vld [vmem:[%s16516_s7 + $0x3210] sm:$0xff] }
 0x1aa   : > { %3525 = vst [vmem:[%s16521_s8 + $0x1900] sm:$0xff] %v3524_v32  ;;  %v3528_v34 = vld [vmem:[%s16516_s7 + $0x3220] sm:$0xff]  ;;  %v3530_v35 = vld [vmem:[%s16516_s7 + $0x3230] sm:$0xff]  ;;  %3527 = vst [vmem:[%s16521_s8 + $0x1908] sm:$0xff] %v3526_v33 }
 0x1ab   : > { %3529 = vst [vmem:[%s16521_s8 + $0x1910] sm:$0xff] %v3528_v34  ;;  %3531 = vst [vmem:[%s16521_s8 + $0x1918] sm:$0xff] %v3530_v35  ;;  %v3532_v36 = vld [vmem:[%s16516_s7 + $0x3240] sm:$0xff]  ;;  %v3534_v37 = vld [vmem:[%s16516_s7 + $0x3250] sm:$0xff] }
 0x1ac   : > { %v3536_v38 = vld [vmem:[%s16516_s7 + $0x3260] sm:$0xff]  ;;  %3533 = vst [vmem:[%s16521_s8 + $0x1920] sm:$0xff] %v3532_v36  ;;  %3535 = vst [vmem:[%s16521_s8 + $0x1928] sm:$0xff] %v3534_v37  ;;  %v3538_v39 = vld [vmem:[%s16516_s7 + $0x3270] sm:$0xff] }
 0x1ad   : > { %3537 = vst [vmem:[%s16521_s8 + $0x1930] sm:$0xff] %v3536_v38  ;;  %v3540_v40 = vld [vmem:[%s16516_s7 + $0x3280] sm:$0xff]  ;;  %v3542_v41 = vld [vmem:[%s16516_s7 + $0x3290] sm:$0xff]  ;;  %3539 = vst [vmem:[%s16521_s8 + $0x1938] sm:$0xff] %v3538_v39 }
 0x1ae   : > { %3541 = vst [vmem:[%s16521_s8 + $0x1940] sm:$0xff] %v3540_v40  ;;  %3543 = vst [vmem:[%s16521_s8 + $0x1948] sm:$0xff] %v3542_v41  ;;  %v3544_v42 = vld [vmem:[%s16516_s7 + $0x32a0] sm:$0xff]  ;;  %v3546_v43 = vld [vmem:[%s16516_s7 + $0x32b0] sm:$0xff] }
 0x1af   : > { %v3548_v44 = vld [vmem:[%s16516_s7 + $0x32c0] sm:$0xff]  ;;  %3545 = vst [vmem:[%s16521_s8 + $0x1950] sm:$0xff] %v3544_v42  ;;  %3547 = vst [vmem:[%s16521_s8 + $0x1958] sm:$0xff] %v3546_v43  ;;  %v3550_v45 = vld [vmem:[%s16516_s7 + $0x32d0] sm:$0xff] }
 0x1b0   : > { %3549 = vst [vmem:[%s16521_s8 + $0x1960] sm:$0xff] %v3548_v44  ;;  %v3552_v46 = vld [vmem:[%s16516_s7 + $0x32e0] sm:$0xff]  ;;  %v3554_v47 = vld [vmem:[%s16516_s7 + $0x32f0] sm:$0xff]  ;;  %3551 = vst [vmem:[%s16521_s8 + $0x1968] sm:$0xff] %v3550_v45 }
 0x1b1   : > { %3553 = vst [vmem:[%s16521_s8 + $0x1970] sm:$0xff] %v3552_v46  ;;  %3555 = vst [vmem:[%s16521_s8 + $0x1978] sm:$0xff] %v3554_v47  ;;  %v3556_v48 = vld [vmem:[%s16516_s7 + $0x3300] sm:$0xff]  ;;  %v3558_v49 = vld [vmem:[%s16516_s7 + $0x3310] sm:$0xff] }
 0x1b2   : > { %v3560_v50 = vld [vmem:[%s16516_s7 + $0x3320] sm:$0xff]  ;;  %3557 = vst [vmem:[%s16521_s8 + $0x1980] sm:$0xff] %v3556_v48  ;;  %3559 = vst [vmem:[%s16521_s8 + $0x1988] sm:$0xff] %v3558_v49  ;;  %v3562_v51 = vld [vmem:[%s16516_s7 + $0x3330] sm:$0xff] }
 0x1b3   : > { %3561 = vst [vmem:[%s16521_s8 + $0x1990] sm:$0xff] %v3560_v50  ;;  %v3564_v52 = vld [vmem:[%s16516_s7 + $0x3340] sm:$0xff]  ;;  %v3566_v53 = vld [vmem:[%s16516_s7 + $0x3350] sm:$0xff]  ;;  %3563 = vst [vmem:[%s16521_s8 + $0x1998] sm:$0xff] %v3562_v51 }
 0x1b4   : > { %3565 = vst [vmem:[%s16521_s8 + $0x19a0] sm:$0xff] %v3564_v52  ;;  %3567 = vst [vmem:[%s16521_s8 + $0x19a8] sm:$0xff] %v3566_v53  ;;  %v3568_v54 = vld [vmem:[%s16516_s7 + $0x3360] sm:$0xff]  ;;  %v3570_v55 = vld [vmem:[%s16516_s7 + $0x3370] sm:$0xff] }
 0x1b5   : > { %v3572_v56 = vld [vmem:[%s16516_s7 + $0x3380] sm:$0xff]  ;;  %3569 = vst [vmem:[%s16521_s8 + $0x19b0] sm:$0xff] %v3568_v54  ;;  %3571 = vst [vmem:[%s16521_s8 + $0x19b8] sm:$0xff] %v3570_v55  ;;  %v3574_v57 = vld [vmem:[%s16516_s7 + $0x3390] sm:$0xff] }
 0x1b6   : > { %3573 = vst [vmem:[%s16521_s8 + $0x19c0] sm:$0xff] %v3572_v56  ;;  %v3576_v58 = vld [vmem:[%s16516_s7 + $0x33a0] sm:$0xff]  ;;  %v3578_v59 = vld [vmem:[%s16516_s7 + $0x33b0] sm:$0xff]  ;;  %3575 = vst [vmem:[%s16521_s8 + $0x19c8] sm:$0xff] %v3574_v57 }
 0x1b7   : > { %3577 = vst [vmem:[%s16521_s8 + $0x19d0] sm:$0xff] %v3576_v58  ;;  %3579 = vst [vmem:[%s16521_s8 + $0x19d8] sm:$0xff] %v3578_v59  ;;  %v3580_v60 = vld [vmem:[%s16516_s7 + $0x33c0] sm:$0xff]  ;;  %v3582_v61 = vld [vmem:[%s16516_s7 + $0x33d0] sm:$0xff] }
 0x1b8   : > { %v3584_v62 = vld [vmem:[%s16516_s7 + $0x33e0] sm:$0xff]  ;;  %3581 = vst [vmem:[%s16521_s8 + $0x19e0] sm:$0xff] %v3580_v60  ;;  %3583 = vst [vmem:[%s16521_s8 + $0x19e8] sm:$0xff] %v3582_v61  ;;  %v3586_v63 = vld [vmem:[%s16516_s7 + $0x33f0] sm:$0xff] }
 0x1b9   : > { %3585 = vst [vmem:[%s16521_s8 + $0x19f0] sm:$0xff] %v3584_v62  ;;  %v3588_v0 = vld [vmem:[%s16516_s7 + $0x3400] sm:$0xff]  ;;  %v3590_v1 = vld [vmem:[%s16516_s7 + $0x3410] sm:$0xff]  ;;  %3587 = vst [vmem:[%s16521_s8 + $0x19f8] sm:$0xff] %v3586_v63 }
 0x1ba   : > { %3589 = vst [vmem:[%s16521_s8 + $0x1a00] sm:$0xff] %v3588_v0  ;;  %3591 = vst [vmem:[%s16521_s8 + $0x1a08] sm:$0xff] %v3590_v1  ;;  %v3592_v2 = vld [vmem:[%s16516_s7 + $0x3420] sm:$0xff]  ;;  %v3594_v3 = vld [vmem:[%s16516_s7 + $0x3430] sm:$0xff] }
 0x1bb   : > { %v3596_v4 = vld [vmem:[%s16516_s7 + $0x3440] sm:$0xff]  ;;  %3593 = vst [vmem:[%s16521_s8 + $0x1a10] sm:$0xff] %v3592_v2  ;;  %3595 = vst [vmem:[%s16521_s8 + $0x1a18] sm:$0xff] %v3594_v3  ;;  %v3598_v5 = vld [vmem:[%s16516_s7 + $0x3450] sm:$0xff] }
 0x1bc   : > { %3597 = vst [vmem:[%s16521_s8 + $0x1a20] sm:$0xff] %v3596_v4  ;;  %v3600_v6 = vld [vmem:[%s16516_s7 + $0x3460] sm:$0xff]  ;;  %v3602_v7 = vld [vmem:[%s16516_s7 + $0x3470] sm:$0xff]  ;;  %3599 = vst [vmem:[%s16521_s8 + $0x1a28] sm:$0xff] %v3598_v5 }
 0x1bd   : > { %3601 = vst [vmem:[%s16521_s8 + $0x1a30] sm:$0xff] %v3600_v6  ;;  %3603 = vst [vmem:[%s16521_s8 + $0x1a38] sm:$0xff] %v3602_v7  ;;  %v3604_v8 = vld [vmem:[%s16516_s7 + $0x3480] sm:$0xff]  ;;  %v3606_v9 = vld [vmem:[%s16516_s7 + $0x3490] sm:$0xff] }
 0x1be   : > { %v3608_v10 = vld [vmem:[%s16516_s7 + $0x34a0] sm:$0xff]  ;;  %3605 = vst [vmem:[%s16521_s8 + $0x1a40] sm:$0xff] %v3604_v8  ;;  %3607 = vst [vmem:[%s16521_s8 + $0x1a48] sm:$0xff] %v3606_v9  ;;  %v3610_v11 = vld [vmem:[%s16516_s7 + $0x34b0] sm:$0xff] }
 0x1bf   : > { %3609 = vst [vmem:[%s16521_s8 + $0x1a50] sm:$0xff] %v3608_v10  ;;  %v3612_v12 = vld [vmem:[%s16516_s7 + $0x34c0] sm:$0xff]  ;;  %v3614_v13 = vld [vmem:[%s16516_s7 + $0x34d0] sm:$0xff]  ;;  %3611 = vst [vmem:[%s16521_s8 + $0x1a58] sm:$0xff] %v3610_v11 }
 0x1c0   : > { %3613 = vst [vmem:[%s16521_s8 + $0x1a60] sm:$0xff] %v3612_v12  ;;  %3615 = vst [vmem:[%s16521_s8 + $0x1a68] sm:$0xff] %v3614_v13  ;;  %v3616_v14 = vld [vmem:[%s16516_s7 + $0x34e0] sm:$0xff]  ;;  %v3618_v15 = vld [vmem:[%s16516_s7 + $0x34f0] sm:$0xff] }
 0x1c1   : > { %v3620_v16 = vld [vmem:[%s16516_s7 + $0x3500] sm:$0xff]  ;;  %3617 = vst [vmem:[%s16521_s8 + $0x1a70] sm:$0xff] %v3616_v14  ;;  %3619 = vst [vmem:[%s16521_s8 + $0x1a78] sm:$0xff] %v3618_v15  ;;  %v3622_v17 = vld [vmem:[%s16516_s7 + $0x3510] sm:$0xff] }
 0x1c2   : > { %3621 = vst [vmem:[%s16521_s8 + $0x1a80] sm:$0xff] %v3620_v16  ;;  %v3624_v18 = vld [vmem:[%s16516_s7 + $0x3520] sm:$0xff]  ;;  %v3626_v19 = vld [vmem:[%s16516_s7 + $0x3530] sm:$0xff]  ;;  %3623 = vst [vmem:[%s16521_s8 + $0x1a88] sm:$0xff] %v3622_v17 }
 0x1c3   : > { %3625 = vst [vmem:[%s16521_s8 + $0x1a90] sm:$0xff] %v3624_v18  ;;  %3627 = vst [vmem:[%s16521_s8 + $0x1a98] sm:$0xff] %v3626_v19  ;;  %v3628_v20 = vld [vmem:[%s16516_s7 + $0x3540] sm:$0xff]  ;;  %v3630_v21 = vld [vmem:[%s16516_s7 + $0x3550] sm:$0xff] }
 0x1c4   : > { %v3632_v22 = vld [vmem:[%s16516_s7 + $0x3560] sm:$0xff]  ;;  %3629 = vst [vmem:[%s16521_s8 + $0x1aa0] sm:$0xff] %v3628_v20  ;;  %3631 = vst [vmem:[%s16521_s8 + $0x1aa8] sm:$0xff] %v3630_v21  ;;  %v3634_v23 = vld [vmem:[%s16516_s7 + $0x3570] sm:$0xff] }
 0x1c5   : > { %3633 = vst [vmem:[%s16521_s8 + $0x1ab0] sm:$0xff] %v3632_v22  ;;  %v3636_v24 = vld [vmem:[%s16516_s7 + $0x3580] sm:$0xff]  ;;  %v3638_v25 = vld [vmem:[%s16516_s7 + $0x3590] sm:$0xff]  ;;  %3635 = vst [vmem:[%s16521_s8 + $0x1ab8] sm:$0xff] %v3634_v23 }
 0x1c6   : > { %3637 = vst [vmem:[%s16521_s8 + $0x1ac0] sm:$0xff] %v3636_v24  ;;  %3639 = vst [vmem:[%s16521_s8 + $0x1ac8] sm:$0xff] %v3638_v25  ;;  %v3640_v26 = vld [vmem:[%s16516_s7 + $0x35a0] sm:$0xff]  ;;  %v3642_v27 = vld [vmem:[%s16516_s7 + $0x35b0] sm:$0xff] }
 0x1c7   : > { %v3644_v28 = vld [vmem:[%s16516_s7 + $0x35c0] sm:$0xff]  ;;  %3641 = vst [vmem:[%s16521_s8 + $0x1ad0] sm:$0xff] %v3640_v26  ;;  %3643 = vst [vmem:[%s16521_s8 + $0x1ad8] sm:$0xff] %v3642_v27  ;;  %v3646_v29 = vld [vmem:[%s16516_s7 + $0x35d0] sm:$0xff] }
 0x1c8   : > { %3645 = vst [vmem:[%s16521_s8 + $0x1ae0] sm:$0xff] %v3644_v28  ;;  %v3648_v30 = vld [vmem:[%s16516_s7 + $0x35e0] sm:$0xff]  ;;  %v3650_v31 = vld [vmem:[%s16516_s7 + $0x35f0] sm:$0xff]  ;;  %3647 = vst [vmem:[%s16521_s8 + $0x1ae8] sm:$0xff] %v3646_v29 }
 0x1c9   : > { %3649 = vst [vmem:[%s16521_s8 + $0x1af0] sm:$0xff] %v3648_v30  ;;  %3651 = vst [vmem:[%s16521_s8 + $0x1af8] sm:$0xff] %v3650_v31 }
 0x1ca PF: > { %p14030_p7 = scmp.ge.s32.totalorder %s16432_s18, 1  ;;  %p7156_p8 = scmp.lt.s32.totalorder %s16432_s18, 7 }
 0x1cc   : > { %p7157_p9 = pnand %p14030_p7, %p7156_p8 }
 0x1cd   : > { %s7163_s9 = sand.u32 (!%p7157_p9), 1, %s16408_s12   ;;  %s7195_s10 = smul.u32 (!%p7157_p9), 54, %s16416_s14 }
 0x1ce   : > { %7160 = sbr.rel (%p7157_p9) target bundleno = 1611 (0x64b), region = 80  ;;  %s14032_s21 = sshll.u32 (!%p7157_p9), %s16420_s15, 1 }
 0x1cf   : > { %s15008_s11 = smul.u32 (!%p7157_p9), 6912, %s7163_s9  ;;  %p7196_p10 = scmp.lt.s32.totalorder (!%p7157_p9), %s7195_s10, 161 }
 0x1d0   : > { %p7204_p11 = scmp.lt.s32.totalorder (!%p7157_p9), %s14032_s21, 3  ;;  %p14035_p12 = scmp.ne.s32.totalorder (!%p7157_p9), %s16416_s14, 0 }
 0x1d1   : > { %s18270_s5 = scalar_lea.vmem (!%p7157_p9), [#allocation2], %s15008_s11 }
 0x1d5   : > { %s19446_s10 = smov (!%p7196_p10, %s7195_s10), 161  ;;  %s19448_s21 = smov (!%p7204_p11, %s14032_s21), 3 }
 0x1d6   : > { %s14031_s22 = sshll.u32 %s19446_s10, 1  ;;  %s7206_s12 = scalar_lea.vmem %s19431_s2, %s19448_s21  ;;  %v16434_v32 = vmov (!%p14035_p12), 0.0  }
 0x1d7   : > { %s18258_s26 = scalar_lea.vmem %s19429_s0, %s14031_s22  ;;  %s14034_s29 = sshll.u32 %s19448_s21, 1 }
 0x1d8   : > { %s18268_s4 = scalar_lea.vmem %s19432_s3, %s14034_s29  ;;  %7217 = sbr.rel (%p14035_p12) target bundleno = 479 (0x1df), region = 88 }
 0x1d9   : > { %7218 = vst [vmem:[%s18268_s4] sm:$0xf] (!%p14035_p12), %v16434_v32 }
 0x1df PF: > { %v15067_v33 = vld [vmem:[%s18270_s5 + $0x4] ss:$8 sps:$4 sm:$0xff]   ;;  %v15071_v35 = vld [vmem:[%s18270_s5] ss:$8 sps:$4 sm:$0xff]   ;;  %v15073_v37 = vld [vmem:[%s18270_s5 + $0x14] ss:$8 sps:$4 sm:$0xff]   ;;  %v7251_v7 = vlaneseq }
 0x1e0   : > { %v15069_v34 = vld [vmem:[%s18270_s5 + $0xd04] ss:$8 sps:$4 sm:$0xff]   ;;  %12769 = vmatprep.subr.bf16.mxu1 %v15067_v33  ;;  %v15072_v36 = vld [vmem:[%s18270_s5 + $0xd00] ss:$8 sps:$4 sm:$0xff]   ;;  %v15075_v38 = vld [vmem:[%s18270_s5 + $0xd14] ss:$8 sps:$4 sm:$0xff]  }
 0x1e1   : > { %13302 = vmatprep.subr.bf16.mxu0 %v15069_v34  ;;  %12770 = vmatpush1.bf16.msra.mxu1 %v15071_v35  ;;  %v15077_v39 = vld [vmem:[%s18270_s5 + $0x10] ss:$8 sps:$4 sm:$0xff]   ;;  %v15079_v41 = vld [vmem:[%s18270_s5 + $0x24] ss:$8 sps:$4 sm:$0xff]   ;;  %v15083_v43 = vld [vmem:[%s18270_s5 + $0x20] ss:$8 sps:$4 sm:$0xff]  }
 0x1e2   : > { %13303 = vmatpush1.bf16.msra.mxu0 %v15072_v36  ;;  %12771 = vmatprep.subr.bf16.mxu1 %v15073_v37  ;;  %v15078_v40 = vld [vmem:[%s18270_s5 + $0xd10] ss:$8 sps:$4 sm:$0xff]   ;;  %v15081_v42 = vld [vmem:[%s18270_s5 + $0xd24] ss:$8 sps:$4 sm:$0xff]   ;;  %v15084_v44 = vld [vmem:[%s18270_s5 + $0xd20] ss:$8 sps:$4 sm:$0xff]  }
 0x1e3   : > { %13304 = vmatprep.subr.bf16.mxu0 %v15075_v38  ;;  %v15085_v45 = vld [vmem:[%s18270_s5 + $0x34] ss:$8 sps:$4 sm:$0xff]   ;;  %v15089_v47 = vld [vmem:[%s18270_s5 + $0x30] ss:$8 sps:$4 sm:$0xff]   ;;  %v15091_v49 = vld [vmem:[%s18270_s5 + $0x44] ss:$8 sps:$4 sm:$0xff]  }
 0x1e4   : > { %v15087_v46 = vld [vmem:[%s18270_s5 + $0xd34] ss:$8 sps:$4 sm:$0xff]   ;;  %v15090_v48 = vld [vmem:[%s18270_s5 + $0xd30] ss:$8 sps:$4 sm:$0xff]   ;;  %v15093_v50 = vld [vmem:[%s18270_s5 + $0xd44] ss:$8 sps:$4 sm:$0xff]  }
 0x1e5   : > { %12772 = vmatpush1.bf16.msra.mxu1 %v15077_v39  ;;  %v15095_v51 = vld [vmem:[%s18270_s5 + $0x40] ss:$8 sps:$4 sm:$0xff]   ;;  %v15097_v53 = vld [vmem:[%s18270_s5 + $0x54] ss:$8 sps:$4 sm:$0xff]   ;;  %v15101_v55 = vld [vmem:[%s18270_s5 + $0x50] ss:$8 sps:$4 sm:$0xff]  }
 0x1e6   : > { %13305 = vmatpush1.bf16.msra.mxu0 %v15078_v40  ;;  %12773 = vmatprep.subr.bf16.mxu1 %v15079_v41  ;;  %v15096_v52 = vld [vmem:[%s18270_s5 + $0xd40] ss:$8 sps:$4 sm:$0xff]   ;;  %v15099_v54 = vld [vmem:[%s18270_s5 + $0xd54] ss:$8 sps:$4 sm:$0xff]   ;;  %v15102_v56 = vld [vmem:[%s18270_s5 + $0xd50] ss:$8 sps:$4 sm:$0xff]  }
 0x1e7   : > { %13306 = vmatprep.subr.bf16.mxu0 %v15081_v42  ;;  %v15103_v57 = vld [vmem:[%s18270_s5 + $0x64] ss:$8 sps:$4 sm:$0xff]   ;;  %v15107_v59 = vld [vmem:[%s18270_s5 + $0x60] ss:$8 sps:$4 sm:$0xff]   ;;  %v15109_v61 = vld [vmem:[%s18270_s5 + $0x74] ss:$8 sps:$4 sm:$0xff]  }
 0x1e8   : > { %v15105_v58 = vld [vmem:[%s18270_s5 + $0xd64] ss:$8 sps:$4 sm:$0xff]   ;;  %v15108_v60 = vld [vmem:[%s18270_s5 + $0xd60] ss:$8 sps:$4 sm:$0xff]   ;;  %v15111_v62 = vld [vmem:[%s18270_s5 + $0xd74] ss:$8 sps:$4 sm:$0xff]  }
 0x1e9   : > { %12774 = vmatpush1.bf16.msra.mxu1 %v15083_v43  ;;  %v15113_v63 = vld [vmem:[%s18270_s5 + $0x70] ss:$8 sps:$4 sm:$0xff]   ;;  %v15115_v1 = vld [vmem:[%s18270_s5 + $0x84] ss:$8 sps:$4 sm:$0xff]   ;;  %v15119_v3 = vld [vmem:[%s18270_s5 + $0x80] ss:$8 sps:$4 sm:$0xff]  }
 0x1ea   : > { %13307 = vmatpush1.bf16.msra.mxu0 %v15084_v44  ;;  %12775 = vmatprep.subr.bf16.mxu1 %v15085_v45  ;;  %v15114_v0 = vld [vmem:[%s18270_s5 + $0xd70] ss:$8 sps:$4 sm:$0xff]   ;;  %v15117_v2 = vld [vmem:[%s18270_s5 + $0xd84] ss:$8 sps:$4 sm:$0xff]   ;;  %v15120_v4 = vld [vmem:[%s18270_s5 + $0xd80] ss:$8 sps:$4 sm:$0xff]  }
 0x1eb   : > { %13308 = vmatprep.subr.bf16.mxu0 %v15087_v46  ;;  %v16435_v5 = vmov 1983009808   ;;  %v15121_v8 = vld [vmem:[%s18270_s5 + $0x94] ss:$8 sps:$4 sm:$0xff]   ;;  %v15125_v10 = vld [vmem:[%s18270_s5 + $0x90] ss:$8 sps:$4 sm:$0xff]  }
 0x1ec   : > { %v7249_v6 = vunpack.c.l.s4 %v16435_v5  ;;  %v15123_v9 = vld [vmem:[%s18270_s5 + $0xd94] ss:$8 sps:$4 sm:$0xff]   ;;  %v18313_v12 = vshrl.u32 %v7251_v7, 7  ;;  %v15126_v13 = vld [vmem:[%s18270_s5 + $0xd90] ss:$8 sps:$4 sm:$0xff]   ;;  %v7219_v21 = vld [vmem:[%s18258_s26] sm:$0xff] }
 0x1ed   : > { %12776 = vmatpush1.bf16.msra.mxu1 %v15089_v47  ;;  %v15127_v14 = vld [vmem:[%s18270_s5 + $0xa4] ss:$8 sps:$4 sm:$0xff]   ;;  %v15131_v16 = vld [vmem:[%s18270_s5 + $0xa0] ss:$8 sps:$4 sm:$0xff]   ;;  %v15133_v19 = vld [vmem:[%s18270_s5 + $0xb4] ss:$8 sps:$4 sm:$0xff]   ;;  %v7247_v42 = vcombine.high %v7219_v21, %v7219_v21 }
 0x1ee   : > { %13309 = vmatpush1.bf16.msra.mxu0 %v15090_v48  ;;  %12777 = vmatprep.subr.bf16.mxu1 %v15091_v49  ;;  %v7250_v11 = vunpack.c.0.s8 %v7249_v6  ;;  %v15129_v15 = vld [vmem:[%s18270_s5 + $0xda4] ss:$8 sps:$4 sm:$0xff]   ;;  %v15132_v17 = vld [vmem:[%s18270_s5 + $0xda0] ss:$8 sps:$4 sm:$0xff]   ;;  %v15135_v20 = vld [vmem:[%s18270_s5 + $0xdb4] ss:$8 sps:$4 sm:$0xff]  }
 0x1ef   : > { %13310 = vmatprep.subr.bf16.mxu0 %v15093_v50  ;;  %v15137_v22 = vld [vmem:[%s18270_s5 + $0xb0] ss:$8 sps:$4 sm:$0xff]   ;;  %v15139_v26 = vld [vmem:[%s18270_s5 + $0xc4] ss:$8 sps:$4 sm:$0xff]   ;;  %v15143_v32 = vld [vmem:[%s18270_s5 + $0xc0] ss:$8 sps:$4 sm:$0xff]  }
 0x1f0   : > { %v18321_v18 = vsub.s32 %v7250_v11, %v18313_v12  ;;  %v15138_v24 = vld [vmem:[%s18270_s5 + $0xdb0] ss:$8 sps:$4 sm:$0xff]   ;;  %v15141_v27 = vld [vmem:[%s18270_s5 + $0xdc4] ss:$8 sps:$4 sm:$0xff]   ;;  %v15144_v33 = vld [vmem:[%s18270_s5 + $0xdc0] ss:$8 sps:$4 sm:$0xff]  }
 0x1f1   : > { %12778 = vmatpush1.bf16.msra.mxu1 %v15095_v51  ;;  %v7225_v25 = vld [vmem:[%s18258_s26 + $0x30] sm:$0xff]  ;;  %v15151_v40 = vld [vmem:[%s18270_s5 + $0xe4] ss:$8 sps:$4 sm:$0xff]   ;;  %v15155_v43 = vld [vmem:[%s18270_s5 + $0xe0] ss:$8 sps:$4 sm:$0xff]   ;;  %p14901_p13 = scmp.ne.s32.totalorder %s16416_s14, 2 }
 0x1f2   : > { %13311 = vmatpush1.bf16.msra.mxu0 %v15096_v52  ;;  %12779 = vmatprep.subr.bf16.mxu1 %v15097_v53  ;;  %v18328_v23 = vrot.slane %v7219_v21, %v18321_v18  ;;  %v7349_v29 = vcombine.high %v7225_v25, %v7225_v25  ;;  %v15145_v34 = vld [vmem:[%s18270_s5 + $0xd4] ss:$8 sps:$4 sm:$0xff]   ;;  %v15149_v38 = vld [vmem:[%s18270_s5 + $0xd0] ss:$8 sps:$4 sm:$0xff]   ;;  %v15153_v41 = vld [vmem:[%s18270_s5 + $0xde4] ss:$8 sps:$4 sm:$0xff]   ;;  %v18350_v47 = vrot.slane %v7247_v42, %v18321_v18 }
 0x1f3   : > { %13312 = vmatprep.subr.bf16.mxu0 %v15099_v54  ;;  %v15147_v35 = vld [vmem:[%s18270_s5 + $0xdd4] ss:$8 sps:$4 sm:$0xff]   ;;  %v15150_v39 = vld [vmem:[%s18270_s5 + $0xdd0] ss:$8 sps:$4 sm:$0xff]   ;;  %v15156_v44 = vld [vmem:[%s18270_s5 + $0xde0] ss:$8 sps:$4 sm:$0xff]  }
 0x1f4   : > { %v7262_v28 = vcombine.high %v18328_v23, %v18328_v23  ;;  %v7363_v31 = vrot.slane %v7349_v29, %v18321_v18  ;;  %v15157_v45 = vld [vmem:[%s18270_s5 + $0xf4] ss:$8 sps:$4 sm:$0xff]   ;;  %v15161_v48 = vld [vmem:[%s18270_s5 + $0xf0] ss:$8 sps:$4 sm:$0xff]   ;;  %v15166_v50 = vld [vmem:[%s18270_s5 + $0x104] ss:$8 sps:$4 sm:$0xff]   ;;  %v7263_v52 = vcombine.high %v18350_v47, %v18350_v47  ;;  %v7530_v53 = vpack.c.bf16 %v18328_v23, %v18328_v23 }
 0x1f5   : > { %12780 = vmatpush1.bf16.msra.mxu1 %v15101_v55  ;;  %v15159_v46 = vld [vmem:[%s18270_s5 + $0xdf4] ss:$8 sps:$4 sm:$0xff]   ;;  %v15162_v49 = vld [vmem:[%s18270_s5 + $0xdf0] ss:$8 sps:$4 sm:$0xff]   ;;  %v15170_v51 = vld [vmem:[%s18270_s5 + $0xe04] ss:$8 sps:$4 sm:$0xff]  }
 0x1f6   : > { %13313 = vmatpush1.bf16.msra.mxu0 %v15102_v56  ;;  %12781 = vmatprep.subr.bf16.mxu1 %v15103_v57  ;;  %v7531_v30 = vpack.c.bf16 %v7262_v28, %v7262_v28  ;;  %v7365_v36 = vcombine.high %v7363_v31, %v7363_v31  ;;  %v7556_v54 = vpack.c.bf16 %v7363_v31, %v7363_v31  ;;  %v15164_v55 = vld [vmem:[%s18270_s5 + $0x100] ss:$8 sps:$4 sm:$0xff]   ;;  %v15173_v57 = vld [vmem:[%s18270_s5 + $0x114] ss:$8 sps:$4 sm:$0xff]   ;;  %v15186_v5 = vld [vmem:[%s18270_s5 + $0xe30] ss:$8 sps:$4 sm:$0xff]  }
 0x1f7   : > { %13314 = vmatprep.subr.bf16.mxu0 %v15105_v58  ;;  %v15168_v56 = vld [vmem:[%s18270_s5 + $0xe00] ss:$8 sps:$4 sm:$0xff]   ;;  %v15176_v58 = vld [vmem:[%s18270_s5 + $0xe14] ss:$8 sps:$4 sm:$0xff]   ;;  %v15191_v6 = vld [vmem:[%s18270_s5 + $0x144] ss:$8 sps:$4 sm:$0xff]  }
 0x1f8   : > { %12801 = vmatprep.mubr.bf16.mxu1 %v7531_v30  ;;  %v7557_v37 = vpack.c.bf16 %v7365_v36, %v7365_v36  ;;  %v15194_v7 = vld [vmem:[%s18270_s5 + $0xe44] ss:$8 sps:$4 sm:$0xff]   ;;  %v15200_v11 = vld [vmem:[%s18270_s5 + $0xe54] ss:$8 sps:$4 sm:$0xff]   ;;  %v15207_v25 = vld [vmem:[%s18270_s5 + $0x170] ss:$8 sps:$4 sm:$0xff]  }
 0x1f9   : > { %12782 = vmatpush1.bf16.msra.mxu1 %v15107_v59  ;;  %v7533_v59 = vpack.c.bf16 %v7263_v52, %v7263_v52  ;;  %v15209_v21 = vld [vmem:[%s18270_s5 + $0x174] ss:$8 sps:$4 sm:$0xff]   ;;  %v15218_v29 = vld [vmem:[%s18270_s5 + $0xe84] ss:$8 sps:$4 sm:$0xff]   ;;  %v15213_v30 = vld [vmem:[%s18270_s5 + $0x180] ss:$8 sps:$4 sm:$0xff]  }
 0x1fa   : > { %13315 = vmatpush1.bf16.msra.mxu0 %v15108_v60  ;;  %12783 = vmatprep.subr.bf16.mxu1 %v15109_v61  ;;  %v15171_v60 = vld [vmem:[%s18270_s5 + $0x110] ss:$8 sps:$4 sm:$0xff]   ;;  %v15212_v23 = vld [vmem:[%s18270_s5 + $0xe74] ss:$8 sps:$4 sm:$0xff]   ;;  %v15216_v31 = vld [vmem:[%s18270_s5 + $0xe80] ss:$8 sps:$4 sm:$0xff]  }
 0x1fb   : > { %13316 = vmatprep.subr.bf16.mxu0 %v15111_v62  ;;  %13334 = vmatprep.mubr.bf16.mxu0 %v7557_v37  ;;  %v15174_v61 = vld [vmem:[%s18270_s5 + $0xe10] ss:$8 sps:$4 sm:$0xff]   ;;  %v15179_v62 = vld [vmem:[%s18270_s5 + $0x124] ss:$8 sps:$4 sm:$0xff]  }
 0x1fc   : > { %v15227_v36 = vld [vmem:[%s18270_s5 + $0x1a4] ss:$8 sps:$4 sm:$0xff]   ;;  %v15231_v42 = vld [vmem:[%s18270_s5 + $0x1b0] ss:$8 sps:$4 sm:$0xff]  }
 0x1fd   : > { %12784 = vmatpush1.bf16.msra.mxu1 %v15113_v63  ;;  %v15182_v63 = vld [vmem:[%s18270_s5 + $0xe24] ss:$8 sps:$4 sm:$0xff]   ;;  %v15246_v52 = vld [vmem:[%s18270_s5 + $0xed0] ss:$8 sps:$4 sm:$0xff]  }
 0x1fe   : > { %13317 = vmatpush1.bf16.msra.mxu0 %v15114_v0  ;;  %12785 = vmatprep.subr.bf16.mxu1 %v15115_v1  ;;  %v15177_v0 = vld [vmem:[%s18270_s5 + $0x120] ss:$8 sps:$4 sm:$0xff]   ;;  %v15230_v37 = vld [vmem:[%s18270_s5 + $0xea4] ss:$8 sps:$4 sm:$0xff]  }
 0x1ff   : > { %13318 = vmatprep.subr.bf16.mxu0 %v15117_v2  ;;  %v15180_v1 = vld [vmem:[%s18270_s5 + $0xe20] ss:$8 sps:$4 sm:$0xff]   ;;  %v15185_v2 = vld [vmem:[%s18270_s5 + $0x134] ss:$8 sps:$4 sm:$0xff]  }
 0x201   : > { %12786 = vmatpush1.bf16.msra.mxu1 %v15119_v3  ;;  %v15188_v3 = vld [vmem:[%s18270_s5 + $0xe34] ss:$8 sps:$4 sm:$0xff]  }
 0x202   : > { %13319 = vmatpush1.bf16.msra.mxu0 %v15120_v4  ;;  %12787 = vmatprep.subr.bf16.mxu1 %v15121_v8  ;;  %v15183_v4 = vld [vmem:[%s18270_s5 + $0x130] ss:$8 sps:$4 sm:$0xff]   ;;  %v15189_v8 = vld [vmem:[%s18270_s5 + $0x140] ss:$8 sps:$4 sm:$0xff]  }
 0x203   : > { %13320 = vmatprep.subr.bf16.mxu0 %v15123_v9  ;;  %v15192_v9 = vld [vmem:[%s18270_s5 + $0xe40] ss:$8 sps:$4 sm:$0xff]  }
 0x205   : > { %12788 = vmatpush1.bf16.msra.mxu1 %v15125_v10  ;;  %v15197_v10 = vld [vmem:[%s18270_s5 + $0x154] ss:$8 sps:$4 sm:$0xff]  }
 0x206   : > { %13321 = vmatpush1.bf16.msra.mxu0 %v15126_v13  ;;  %12789 = vmatprep.subr.bf16.mxu1 %v15127_v14  ;;  %v15195_v13 = vld [vmem:[%s18270_s5 + $0x150] ss:$8 sps:$4 sm:$0xff]  }
 0x207   : > { %13322 = vmatprep.subr.bf16.mxu0 %v15129_v15  ;;  %v15198_v14 = vld [vmem:[%s18270_s5 + $0xe50] ss:$8 sps:$4 sm:$0xff]   ;;  %v15203_v15 = vld [vmem:[%s18270_s5 + $0x164] ss:$8 sps:$4 sm:$0xff]  }
 0x209   : > { %12790 = vmatpush1.bf16.msra.mxu1 %v15131_v16  ;;  %v15206_v16 = vld [vmem:[%s18270_s5 + $0xe64] ss:$8 sps:$4 sm:$0xff]  }
 0x20a   : > { %13323 = vmatpush1.bf16.msra.mxu0 %v15132_v17  ;;  %12791 = vmatprep.subr.bf16.mxu1 %v15133_v19  ;;  %v15201_v17 = vld [vmem:[%s18270_s5 + $0x160] ss:$8 sps:$4 sm:$0xff]   ;;  %v18386_v19 = vld [vmem:[%s18258_s26 + $0x38] sm:$0xff] }
 0x20b   : > { %13324 = vmatprep.subr.bf16.mxu0 %v15135_v20  ;;  %v15204_v20 = vld [vmem:[%s18270_s5 + $0xe60] ss:$8 sps:$4 sm:$0xff]  }
 0x20d   : > { %12792 = vmatpush1.bf16.msra.mxu1 %v15137_v22  ;;  %v18392_v22 = vrot.slane %v18386_v19, %v18321_v18 }
 0x20e   : > { %13325 = vmatpush1.bf16.msra.mxu0 %v15138_v24  ;;  %12793 = vmatprep.subr.bf16.mxu1 %v15139_v26  ;;  %v15210_v26 = vld [vmem:[%s18270_s5 + $0xe70] ss:$8 sps:$4 sm:$0xff]  }
 0x20f   : > { %13326 = vmatprep.subr.bf16.mxu0 %v15141_v27  ;;  %v7381_v24 = vcombine.high %v18392_v22, %v18392_v22  ;;  %v15215_v27 = vld [vmem:[%s18270_s5 + $0x184] ss:$8 sps:$4 sm:$0xff]  }
 0x211   : > { %12794 = vmatpush1.bf16.msra.mxu1 %v15143_v32  ;;  %v7559_v28 = vpack.c.bf16 %v7381_v24, %v7381_v24  ;;  %v15221_v32 = vld [vmem:[%s18270_s5 + $0x194] ss:$8 sps:$4 sm:$0xff]   ;;  %v15287_v24 = vld [vmem:[%s18270_s5 + $0x244] ss:$8 sps:$4 sm:$0xff]  }
 0x212   : > { %13327 = vmatpush1.bf16.msra.mxu0 %v15144_v33  ;;  %12795 = vmatprep.subr.bf16.mxu1 %v15145_v34  ;;  %v15224_v33 = vld [vmem:[%s18270_s5 + $0xe94] ss:$8 sps:$4 sm:$0xff]   ;;  %v15219_v34 = vld [vmem:[%s18270_s5 + $0x190] ss:$8 sps:$4 sm:$0xff]  }
 0x213   : > { %13328 = vmatprep.subr.bf16.mxu0 %v15147_v35  ;;  %v15222_v35 = vld [vmem:[%s18270_s5 + $0xe90] ss:$8 sps:$4 sm:$0xff]  }
 0x215   : > { %12796 = vmatpush1.bf16.msra.mxu1 %v15149_v38  ;;  %v15225_v38 = vld [vmem:[%s18270_s5 + $0x1a0] ss:$8 sps:$4 sm:$0xff]  }
 0x216   : > { %13329 = vmatpush1.bf16.msra.mxu0 %v15150_v39  ;;  %12797 = vmatprep.subr.bf16.mxu1 %v15151_v40  ;;  %v15228_v39 = vld [vmem:[%s18270_s5 + $0xea0] ss:$8 sps:$4 sm:$0xff]   ;;  %v15233_v40 = vld [vmem:[%s18270_s5 + $0x1b4] ss:$8 sps:$4 sm:$0xff]  }
 0x217   : > { %13330 = vmatprep.subr.bf16.mxu0 %v15153_v41  ;;  %v15236_v41 = vld [vmem:[%s18270_s5 + $0xeb4] ss:$8 sps:$4 sm:$0xff]  }
 0x219   : > { %12798 = vmatpush1.bf16.msra.mxu1 %v15155_v43  ;;  %v15234_v43 = vld [vmem:[%s18270_s5 + $0xeb0] ss:$8 sps:$4 sm:$0xff]  }
 0x21a   : > { %13331 = vmatpush1.bf16.msra.mxu0 %v15156_v44  ;;  %12799 = vmatprep.subr.bf16.mxu1 %v15157_v45  ;;  %v15239_v44 = vld [vmem:[%s18270_s5 + $0x1c4] ss:$8 sps:$4 sm:$0xff]  }
 0x21b   : > { %13332 = vmatprep.subr.bf16.mxu0 %v15159_v46  ;;  %v15242_v45 = vld [vmem:[%s18270_s5 + $0xec4] ss:$8 sps:$4 sm:$0xff]   ;;  %v15237_v46 = vld [vmem:[%s18270_s5 + $0x1c0] ss:$8 sps:$4 sm:$0xff]  }
 0x21d   : > { %12800 = vmatpush1.bf16.msra.mxu1 %v15161_v48  ;;  %v15240_v48 = vld [vmem:[%s18270_s5 + $0xec0] ss:$8 sps:$4 sm:$0xff]  }
 0x21e   : > { %13333 = vmatpush1.bf16.msra.mxu0 %v15162_v49  ;;  %12810 = vmatprep.subr.bf16.mxu1 %v15166_v50  ;;  %v15245_v49 = vld [vmem:[%s18270_s5 + $0x1d4] ss:$8 sps:$4 sm:$0xff]  }
 0x21f   : > { %13343 = vmatprep.subr.bf16.mxu0 %v15170_v51  ;;  %v15248_v50 = vld [vmem:[%s18270_s5 + $0xed4] ss:$8 sps:$4 sm:$0xff]   ;;  %v15243_v51 = vld [vmem:[%s18270_s5 + $0x1d0] ss:$8 sps:$4 sm:$0xff]  }
 0x220   : > { %12802 = vmatmul.mubr.bf16.vlgmr.msra.gmra.mrb[0].mxu1 %v7530_v53  ;;  %v15251_v53 = vld [vmem:[%s18270_s5 + $0x1e4] ss:$8 sps:$4 sm:$0xff]  }
 0x221   : > { %13335 = vmatmul.mubr.bf16.vlgmr.msra.gmra.mrb[0].mxu0 %v7556_v54  ;;  %12811 = vmatpush1.bf16.msra.mxu1 %v15164_v55  ;;  %v15254_v54 = vld [vmem:[%s18270_s5 + $0xee4] ss:$8 sps:$4 sm:$0xff]   ;;  %v7366_v55 = vcombine.high %v18386_v19, %v18386_v19  ;;  %v15276_v19 = vld [vmem:[%s18270_s5 + $0xf20] ss:$8 sps:$4 sm:$0xff]  }
 0x222   : > { %13344 = vmatpush1.bf16.msra.mxu0 %v15168_v56  ;;  %12812 = vmatprep.subr.bf16.mxu1 %v15173_v57  ;;  %v15249_v56 = vld [vmem:[%s18270_s5 + $0x1e0] ss:$8 sps:$4 sm:$0xff]  }
 0x223   : > { %13345 = vmatprep.subr.bf16.mxu0 %v15176_v58  ;;  %12842 = vmatprep.mubr.bf16.mxu1 %v7533_v59  ;;  %v15252_v57 = vld [vmem:[%s18270_s5 + $0xee0] ss:$8 sps:$4 sm:$0xff]   ;;  %v15257_v58 = vld [vmem:[%s18270_s5 + $0x1f4] ss:$8 sps:$4 sm:$0xff]  }
 0x224   : > { %13375 = vmatprep.mubr.bf16.mxu0 %v7559_v28  ;;  %v15260_v59 = vld [vmem:[%s18270_s5 + $0xef4] ss:$8 sps:$4 sm:$0xff]  }
 0x225   : > { %12813 = vmatpush1.bf16.msra.mxu1 %v15171_v60  ;;  %v18432_v60 = vrot.slane %v7366_v55, %v18321_v18  ;;  %v15293_v28 = vld [vmem:[%s18270_s5 + $0x254] ss:$8 sps:$4 sm:$0xff]   ;;  %v15327_v55 = vld [vmem:[%s18270_s5 + $0x2b0] ss:$8 sps:$4 sm:$0xff]  }
 0x226   : > { %13346 = vmatpush1.bf16.msra.mxu0 %v15174_v61  ;;  %12814 = vmatprep.subr.bf16.mxu1 %v15179_v62  ;;  %v15255_v61 = vld [vmem:[%s18270_s5 + $0x1f0] ss:$8 sps:$4 sm:$0xff]  }
 0x227   : > { %13347 = vmatprep.subr.bf16.mxu0 %v15182_v63  ;;  %v15258_v62 = vld [vmem:[%s18270_s5 + $0xef0] ss:$8 sps:$4 sm:$0xff]   ;;  %v15263_v63 = vld [vmem:[%s18270_s5 + $0x204] ss:$8 sps:$4 sm:$0xff]  }
 0x229   : > { %12815 = vmatpush1.bf16.msra.mxu1 %v15177_v0  ;;  %v15266_v0 = vld [vmem:[%s18270_s5 + $0xf04] ss:$8 sps:$4 sm:$0xff]  }
 0x22a   : > { %13348 = vmatpush1.bf16.msra.mxu0 %v15180_v1  ;;  %12816 = vmatprep.subr.bf16.mxu1 %v15185_v2  ;;  %v7382_v1 = vcombine.high %v18432_v60, %v18432_v60  ;;  %v15261_v2 = vld [vmem:[%s18270_s5 + $0x200] ss:$8 sps:$4 sm:$0xff]  }
 0x22b   : > { %13349 = vmatprep.subr.bf16.mxu0 %v15188_v3  ;;  %v15264_v3 = vld [vmem:[%s18270_s5 + $0xf00] ss:$8 sps:$4 sm:$0xff]  }
 0x22d   : > { %12817 = vmatpush1.bf16.msra.mxu1 %v15183_v4  ;;  %v7532_v4 = vpack.c.bf16 %v18350_v47, %v18350_v47  ;;  %v7561_v47 = vpack.c.bf16 %v7382_v1, %v7382_v1  ;;  %v15342_v1 = vld [vmem:[%s18270_s5 + $0xfd0] ss:$8 sps:$4 sm:$0xff]  }
 0x22e   : > { %13350 = vmatpush1.bf16.msra.mxu0 %v15186_v5  ;;  %12818 = vmatprep.subr.bf16.mxu1 %v15191_v6  ;;  %v7558_v5 = vpack.c.bf16 %v18392_v22, %v18392_v22  ;;  %v15269_v6 = vld [vmem:[%s18270_s5 + $0x214] ss:$8 sps:$4 sm:$0xff]   ;;  %v15279_v22 = vld [vmem:[%s18270_s5 + $0x230] ss:$8 sps:$4 sm:$0xff]  }
 0x22f   : > { %13351 = vmatprep.subr.bf16.mxu0 %v15194_v7  ;;  %v15272_v7 = vld [vmem:[%s18270_s5 + $0xf14] ss:$8 sps:$4 sm:$0xff]  }
 0x231   : > { %12819 = vmatpush1.bf16.msra.mxu1 %v15189_v8  ;;  %v18449_v8 = vld [vmem:[%s18258_s26 + $0x8] sm:$0xff] }
 0x232   : > { %13352 = vmatpush1.bf16.msra.mxu0 %v15192_v9  ;;  %12820 = vmatprep.subr.bf16.mxu1 %v15197_v10  ;;  %v18453_v9 = vrot.slane %v18449_v8, %v18321_v18  ;;  %v15267_v10 = vld [vmem:[%s18270_s5 + $0x210] ss:$8 sps:$4 sm:$0xff]  }
 0x233   : > { %13353 = vmatprep.subr.bf16.mxu0 %v15200_v11  ;;  %v15270_v11 = vld [vmem:[%s18270_s5 + $0xf10] ss:$8 sps:$4 sm:$0xff]  }
 0x235   : > { %12821 = vmatpush1.bf16.msra.mxu1 %v15195_v13  ;;  %v15275_v13 = vld [vmem:[%s18270_s5 + $0x224] ss:$8 sps:$4 sm:$0xff]  }
 0x236   : > { %13354 = vmatpush1.bf16.msra.mxu0 %v15198_v14  ;;  %12822 = vmatprep.subr.bf16.mxu1 %v15203_v15  ;;  %v7279_v14 = vcombine.high %v18453_v9, %v18453_v9  ;;  %v15278_v15 = vld [vmem:[%s18270_s5 + $0xf24] ss:$8 sps:$4 sm:$0xff]  }
 0x237   : > { %13355 = vmatprep.subr.bf16.mxu0 %v15206_v16 }
 0x238   : > { %v7535_v16 = vpack.c.bf16 %v7279_v14, %v7279_v14  ;;  %v15354_v14 = vld [vmem:[%s18270_s5 + $0xff0] ss:$8 sps:$4 sm:$0xff]  }
 0x239   : > { %12823 = vmatpush1.bf16.msra.mxu1 %v15201_v17  ;;  %v15273_v17 = vld [vmem:[%s18270_s5 + $0x220] ss:$8 sps:$4 sm:$0xff]  }
 0x23a   : > { %13356 = vmatpush1.bf16.msra.mxu0 %v15204_v20  ;;  %12824 = vmatprep.subr.bf16.mxu1 %v15209_v21  ;;  %v15281_v20 = vld [vmem:[%s18270_s5 + $0x234] ss:$8 sps:$4 sm:$0xff]  }
 0x23b   : > { %13357 = vmatprep.subr.bf16.mxu0 %v15212_v23  ;;  %v15284_v21 = vld [vmem:[%s18270_s5 + $0xf34] ss:$8 sps:$4 sm:$0xff]   ;;  %v15282_v23 = vld [vmem:[%s18270_s5 + $0xf30] ss:$8 sps:$4 sm:$0xff]  }
 0x23d   : > { %12825 = vmatpush1.bf16.msra.mxu1 %v15207_v25  ;;  %v15290_v25 = vld [vmem:[%s18270_s5 + $0xf44] ss:$8 sps:$4 sm:$0xff]  }
 0x23e   : > { %13358 = vmatpush1.bf16.msra.mxu0 %v15210_v26  ;;  %12826 = vmatprep.subr.bf16.mxu1 %v15215_v27  ;;  %v15285_v26 = vld [vmem:[%s18270_s5 + $0x240] ss:$8 sps:$4 sm:$0xff]  }
 0x23f   : > { %13359 = vmatprep.subr.bf16.mxu0 %v15218_v29  ;;  %v15288_v27 = vld [vmem:[%s18270_s5 + $0xf40] ss:$8 sps:$4 sm:$0xff]   ;;  %v15296_v29 = vld [vmem:[%s18270_s5 + $0xf54] ss:$8 sps:$4 sm:$0xff]  }
 0x241   : > { %12827 = vmatpush1.bf16.msra.mxu1 %v15213_v30  ;;  %v15291_v30 = vld [vmem:[%s18270_s5 + $0x250] ss:$8 sps:$4 sm:$0xff]  }
 0x242   : > { %13360 = vmatpush1.bf16.msra.mxu0 %v15216_v31  ;;  %12828 = vmatprep.subr.bf16.mxu1 %v15221_v32  ;;  %v15294_v31 = vld [vmem:[%s18270_s5 + $0xf50] ss:$8 sps:$4 sm:$0xff]   ;;  %v15299_v32 = vld [vmem:[%s18270_s5 + $0x264] ss:$8 sps:$4 sm:$0xff]  }
 0x243   : > { %13361 = vmatprep.subr.bf16.mxu0 %v15224_v33  ;;  %v15302_v33 = vld [vmem:[%s18270_s5 + $0xf64] ss:$8 sps:$4 sm:$0xff]  }
 0x245   : > { %12829 = vmatpush1.bf16.msra.mxu1 %v15219_v34  ;;  %v15297_v34 = vld [vmem:[%s18270_s5 + $0x260] ss:$8 sps:$4 sm:$0xff]  }
 0x246   : > { %13362 = vmatpush1.bf16.msra.mxu0 %v15222_v35  ;;  %12830 = vmatprep.subr.bf16.mxu1 %v15227_v36  ;;  %v15300_v35 = vld [vmem:[%s18270_s5 + $0xf60] ss:$8 sps:$4 sm:$0xff]   ;;  %v15305_v36 = vld [vmem:[%s18270_s5 + $0x274] ss:$8 sps:$4 sm:$0xff]  }
 0x247   : > { %13363 = vmatprep.subr.bf16.mxu0 %v15230_v37  ;;  %v15308_v37 = vld [vmem:[%s18270_s5 + $0xf74] ss:$8 sps:$4 sm:$0xff]  }
 0x249   : > { %12831 = vmatpush1.bf16.msra.mxu1 %v15225_v38  ;;  %v15303_v38 = vld [vmem:[%s18270_s5 + $0x270] ss:$8 sps:$4 sm:$0xff]  }
 0x24a   : > { %13364 = vmatpush1.bf16.msra.mxu0 %v15228_v39  ;;  %12832 = vmatprep.subr.bf16.mxu1 %v15233_v40  ;;  %v15306_v39 = vld [vmem:[%s18270_s5 + $0xf70] ss:$8 sps:$4 sm:$0xff]   ;;  %v15311_v40 = vld [vmem:[%s18270_s5 + $0x284] ss:$8 sps:$4 sm:$0xff]  }
 0x24b   : > { %13365 = vmatprep.subr.bf16.mxu0 %v15236_v41  ;;  %v15314_v41 = vld [vmem:[%s18270_s5 + $0xf84] ss:$8 sps:$4 sm:$0xff]  }
 0x24d   : > { %12833 = vmatpush1.bf16.msra.mxu1 %v15231_v42  ;;  %v15309_v42 = vld [vmem:[%s18270_s5 + $0x280] ss:$8 sps:$4 sm:$0xff]  }
 0x24e   : > { %13366 = vmatpush1.bf16.msra.mxu0 %v15234_v43  ;;  %12834 = vmatprep.subr.bf16.mxu1 %v15239_v44  ;;  %v15312_v43 = vld [vmem:[%s18270_s5 + $0xf80] ss:$8 sps:$4 sm:$0xff]   ;;  %v15317_v44 = vld [vmem:[%s18270_s5 + $0x294] ss:$8 sps:$4 sm:$0xff]  }
 0x24f   : > { %13367 = vmatprep.subr.bf16.mxu0 %v15242_v45  ;;  %v15320_v45 = vld [vmem:[%s18270_s5 + $0xf94] ss:$8 sps:$4 sm:$0xff]  }
 0x251   : > { %12835 = vmatpush1.bf16.msra.mxu1 %v15237_v46  ;;  %v15315_v46 = vld [vmem:[%s18270_s5 + $0x290] ss:$8 sps:$4 sm:$0xff]  }
 0x252   : > { %13368 = vmatpush1.bf16.msra.mxu0 %v15240_v48  ;;  %12836 = vmatprep.subr.bf16.mxu1 %v15245_v49  ;;  %v15318_v48 = vld [vmem:[%s18270_s5 + $0xf90] ss:$8 sps:$4 sm:$0xff]   ;;  %v15323_v49 = vld [vmem:[%s18270_s5 + $0x2a4] ss:$8 sps:$4 sm:$0xff]  }
 0x253   : > { %13369 = vmatprep.subr.bf16.mxu0 %v15248_v50  ;;  %v15326_v50 = vld [vmem:[%s18270_s5 + $0xfa4] ss:$8 sps:$4 sm:$0xff]  }
 0x255   : > { %12837 = vmatpush1.bf16.msra.mxu1 %v15243_v51  ;;  %v15321_v51 = vld [vmem:[%s18270_s5 + $0x2a0] ss:$8 sps:$4 sm:$0xff]  }
 0x256   : > { %13370 = vmatpush1.bf16.msra.mxu0 %v15246_v52  ;;  %12838 = vmatprep.subr.bf16.mxu1 %v15251_v53  ;;  %v15324_v52 = vld [vmem:[%s18270_s5 + $0xfa0] ss:$8 sps:$4 sm:$0xff]   ;;  %v15329_v53 = vld [vmem:[%s18270_s5 + $0x2b4] ss:$8 sps:$4 sm:$0xff]  }
 0x257   : > { %13371 = vmatprep.subr.bf16.mxu0 %v15254_v54  ;;  %v15332_v54 = vld [vmem:[%s18270_s5 + $0xfb4] ss:$8 sps:$4 sm:$0xff]  }
 0x259   : > { %12839 = vmatpush1.bf16.msra.mxu1 %v15249_v56  ;;  %v15330_v56 = vld [vmem:[%s18270_s5 + $0xfb0] ss:$8 sps:$4 sm:$0xff]  }
 0x25a   : > { %13372 = vmatpush1.bf16.msra.mxu0 %v15252_v57  ;;  %12840 = vmatprep.subr.bf16.mxu1 %v15257_v58  ;;  %v15335_v57 = vld [vmem:[%s18270_s5 + $0x2c4] ss:$8 sps:$4 sm:$0xff]  }
 0x25b   : > { %13373 = vmatprep.subr.bf16.mxu0 %v15260_v59  ;;  %v15338_v58 = vld [vmem:[%s18270_s5 + $0xfc4] ss:$8 sps:$4 sm:$0xff]   ;;  %v15333_v59 = vld [vmem:[%s18270_s5 + $0x2c0] ss:$8 sps:$4 sm:$0xff]  }
 0x25d   : > { %12841 = vmatpush1.bf16.msra.mxu1 %v15255_v61  ;;  %v15336_v61 = vld [vmem:[%s18270_s5 + $0xfc0] ss:$8 sps:$4 sm:$0xff]  }
 0x25e   : > { %13374 = vmatpush1.bf16.msra.mxu0 %v15258_v62  ;;  %12851 = vmatprep.subr.bf16.mxu1 %v15263_v63  ;;  %v15341_v62 = vld [vmem:[%s18270_s5 + $0x2d4] ss:$8 sps:$4 sm:$0xff]  }
 0x25f   : > { %13384 = vmatprep.subr.bf16.mxu0 %v15266_v0  ;;  %v15344_v63 = vld [vmem:[%s18270_s5 + $0xfd4] ss:$8 sps:$4 sm:$0xff]   ;;  %v15339_v0 = vld [vmem:[%s18270_s5 + $0x2d0] ss:$8 sps:$4 sm:$0xff]  }
 0x260   : > { %12843 = vmatmul.mubr.bf16.vlgmr.msra.gmra.mrb[0].mxu1 %v7532_v4  ;;  %v15345_v4 = vld [vmem:[%s18270_s5 + $0x2e0] ss:$8 sps:$4 sm:$0xff]  }
 0x261   : > { %13376 = vmatmul.mubr.bf16.vlgmr.msra.gmra.mrb[0].mxu0 %v7558_v5  ;;  %12852 = vmatpush1.bf16.msra.mxu1 %v15261_v2  ;;  %v15347_v2 = vld [vmem:[%s18270_s5 + $0x2e4] ss:$8 sps:$4 sm:$0xff]   ;;  %v7264_v5 = vcombine.high %v18449_v8, %v18449_v8  ;;  %v15351_v8 = vld [vmem:[%s18270_s5 + $0x2f0] ss:$8 sps:$4 sm:$0xff]  }
 0x262   : > { %13385 = vmatpush1.bf16.msra.mxu0 %v15264_v3  ;;  %12853 = vmatprep.subr.bf16.mxu1 %v15269_v6  ;;  %v15350_v3 = vld [vmem:[%s18270_s5 + $0xfe4] ss:$8 sps:$4 sm:$0xff]  }
 0x263   : > { %13386 = vmatprep.subr.bf16.mxu0 %v15272_v7  ;;  %13416 = vmatprep.mubr.bf16.mxu0 %v7561_v47  ;;  %v18513_v6 = vld [vmem:[%s18258_s26 + $0x40] sm:$0xff]  ;;  %v15353_v47 = vld [vmem:[%s18270_s5 + $0x2f4] ss:$8 sps:$4 sm:$0xff]  }
 0x264   : > { %12883 = vmatprep.mubr.bf16.mxu1 %v7535_v16  ;;  %v15348_v7 = vld [vmem:[%s18270_s5 + $0xfe0] ss:$8 sps:$4 sm:$0xff]   ;;  %v15363_v16 = vld [vmem:[%s18270_s5 + $0x1004] ss:$8 sps:$4 sm:$0xff]  }
 0x265   : > { %12854 = vmatpush1.bf16.msra.mxu1 %v15267_v10  ;;  %v15356_v10 = vld [vmem:[%s18270_s5 + $0xff4] ss:$8 sps:$4 sm:$0xff]  }
 0x266   : > { %13387 = vmatpush1.bf16.msra.mxu0 %v15270_v11  ;;  %12855 = vmatprep.subr.bf16.mxu1 %v15275_v13  ;;  %v18519_v11 = vrot.slane %v7264_v5, %v18321_v18  ;;  %v18523_v13 = vrot.slane %v18513_v6, %v18321_v18  ;;  %v15427_v5 = vld [vmem:[%s18270_s5 + $0x10b0] ss:$8 sps:$4 sm:$0xff]  }
 0x267   : > { %13388 = vmatprep.subr.bf16.mxu0 %v15278_v15  ;;  %v15359_v15 = vld [vmem:[%s18270_s5 + $0x304] ss:$8 sps:$4 sm:$0xff]  }
 0x269   : > { %12856 = vmatpush1.bf16.msra.mxu1 %v15273_v17  ;;  %v7280_v17 = vcombine.high %v18519_v11, %v18519_v11 }
 0x26a   : > { %13389 = vmatpush1.bf16.msra.mxu0 %v15276_v19  ;;  %12857 = vmatprep.subr.bf16.mxu1 %v15281_v20  ;;  %v7398_v19 = vcombine.high %v18523_v13, %v18523_v13  ;;  %v15357_v20 = vld [vmem:[%s18270_s5 + $0x300] ss:$8 sps:$4 sm:$0xff]  }
 0x26b   : > { %13390 = vmatprep.subr.bf16.mxu0 %v15284_v21  ;;  %v7534_v21 = vpack.c.bf16 %v18453_v9, %v18453_v9  ;;  %v15364_v9 = vld [vmem:[%s18270_s5 + $0x310] ss:$8 sps:$4 sm:$0xff]  }
 0x26d   : > { %12858 = vmatpush1.bf16.msra.mxu1 %v15279_v22  ;;  %v7560_v22 = vpack.c.bf16 %v18432_v60, %v18432_v60  ;;  %v15367_v60 = vld [vmem:[%s18270_s5 + $0x1010] ss:$8 sps:$4 sm:$0xff]  }
 0x26e   : > { %13391 = vmatpush1.bf16.msra.mxu0 %v15282_v23  ;;  %12859 = vmatprep.subr.bf16.mxu1 %v15287_v24  ;;  %v15361_v23 = vld [vmem:[%s18270_s5 + $0x1000] ss:$8 sps:$4 sm:$0xff]   ;;  %v15366_v24 = vld [vmem:[%s18270_s5 + $0x314] ss:$8 sps:$4 sm:$0xff]  }
 0x26f   : > { %13392 = vmatprep.subr.bf16.mxu0 %v15290_v25  ;;  %v15369_v25 = vld [vmem:[%s18270_s5 + $0x1014] ss:$8 sps:$4 sm:$0xff]  }
 0x271   : > { %12860 = vmatpush1.bf16.msra.mxu1 %v15285_v26  ;;  %v7537_v26 = vpack.c.bf16 %v7280_v17, %v7280_v17  ;;  %v15439_v17 = vld [vmem:[%s18270_s5 + $0x10d0] ss:$8 sps:$4 sm:$0xff]  }
 0x272   : > { %13393 = vmatpush1.bf16.msra.mxu0 %v15288_v27  ;;  %12861 = vmatprep.subr.bf16.mxu1 %v15293_v28  ;;  %v7563_v27 = vpack.c.bf16 %v7398_v19, %v7398_v19  ;;  %v15372_v28 = vld [vmem:[%s18270_s5 + $0x324] ss:$8 sps:$4 sm:$0xff]  }
 0x273   : > { %13394 = vmatprep.subr.bf16.mxu0 %v15296_v29  ;;  %v15375_v29 = vld [vmem:[%s18270_s5 + $0x1024] ss:$8 sps:$4 sm:$0xff]  }
 0x274   : > { %v15444_v19 = vld [vmem:[%s18270_s5 + $0x3e4] ss:$8 sps:$4 sm:$0xff]  }
 0x275   : > { %12862 = vmatpush1.bf16.msra.mxu1 %v15291_v30  ;;  %v15370_v30 = vld [vmem:[%s18270_s5 + $0x320] ss:$8 sps:$4 sm:$0xff]  }
 0x276   : > { %13395 = vmatpush1.bf16.msra.mxu0 %v15294_v31  ;;  %12863 = vmatprep.subr.bf16.mxu1 %v15299_v32  ;;  %v15373_v31 = vld [vmem:[%s18270_s5 + $0x1020] ss:$8 sps:$4 sm:$0xff]   ;;  %v15378_v32 = vld [vmem:[%s18270_s5 + $0x334] ss:$8 sps:$4 sm:$0xff]  }
 0x277   : > { %13396 = vmatprep.subr.bf16.mxu0 %v15302_v33  ;;  %v15381_v33 = vld [vmem:[%s18270_s5 + $0x1034] ss:$8 sps:$4 sm:$0xff]  }
 0x279   : > { %12864 = vmatpush1.bf16.msra.mxu1 %v15297_v34  ;;  %v15376_v34 = vld [vmem:[%s18270_s5 + $0x330] ss:$8 sps:$4 sm:$0xff]  }
 0x27a   : > { %13397 = vmatpush1.bf16.msra.mxu0 %v15300_v35  ;;  %12865 = vmatprep.subr.bf16.mxu1 %v15305_v36  ;;  %v15379_v35 = vld [vmem:[%s18270_s5 + $0x1030] ss:$8 sps:$4 sm:$0xff]   ;;  %v15384_v36 = vld [vmem:[%s18270_s5 + $0x344] ss:$8 sps:$4 sm:$0xff]  }
 0x27b   : > { %13398 = vmatprep.subr.bf16.mxu0 %v15308_v37  ;;  %v15387_v37 = vld [vmem:[%s18270_s5 + $0x1044] ss:$8 sps:$4 sm:$0xff]  }
 0x27d   : > { %12866 = vmatpush1.bf16.msra.mxu1 %v15303_v38  ;;  %v15382_v38 = vld [vmem:[%s18270_s5 + $0x340] ss:$8 sps:$4 sm:$0xff]  }
 0x27e   : > { %13399 = vmatpush1.bf16.msra.mxu0 %v15306_v39  ;;  %12867 = vmatprep.subr.bf16.mxu1 %v15311_v40  ;;  %v15385_v39 = vld [vmem:[%s18270_s5 + $0x1040] ss:$8 sps:$4 sm:$0xff]   ;;  %v15390_v40 = vld [vmem:[%s18270_s5 + $0x354] ss:$8 sps:$4 sm:$0xff]  }
 0x27f   : > { %13400 = vmatprep.subr.bf16.mxu0 %v15314_v41  ;;  %v15393_v41 = vld [vmem:[%s18270_s5 + $0x1054] ss:$8 sps:$4 sm:$0xff]  }
 0x281   : > { %12868 = vmatpush1.bf16.msra.mxu1 %v15309_v42  ;;  %v15388_v42 = vld [vmem:[%s18270_s5 + $0x350] ss:$8 sps:$4 sm:$0xff]  }
 0x282   : > { %13401 = vmatpush1.bf16.msra.mxu0 %v15312_v43  ;;  %12869 = vmatprep.subr.bf16.mxu1 %v15317_v44  ;;  %v15391_v43 = vld [vmem:[%s18270_s5 + $0x1050] ss:$8 sps:$4 sm:$0xff]   ;;  %v15396_v44 = vld [vmem:[%s18270_s5 + $0x364] ss:$8 sps:$4 sm:$0xff]  }
 0x283   : > { %13402 = vmatprep.subr.bf16.mxu0 %v15320_v45  ;;  %v15399_v45 = vld [vmem:[%s18270_s5 + $0x1064] ss:$8 sps:$4 sm:$0xff]  }
 0x285   : > { %12870 = vmatpush1.bf16.msra.mxu1 %v15315_v46  ;;  %v15394_v46 = vld [vmem:[%s18270_s5 + $0x360] ss:$8 sps:$4 sm:$0xff]  }
 0x286   : > { %13403 = vmatpush1.bf16.msra.mxu0 %v15318_v48  ;;  %12871 = vmatprep.subr.bf16.mxu1 %v15323_v49  ;;  %v15397_v48 = vld [vmem:[%s18270_s5 + $0x1060] ss:$8 sps:$4 sm:$0xff]   ;;  %v15402_v49 = vld [vmem:[%s18270_s5 + $0x374] ss:$8 sps:$4 sm:$0xff]  }
 0x287   : > { %13404 = vmatprep.subr.bf16.mxu0 %v15326_v50  ;;  %v15405_v50 = vld [vmem:[%s18270_s5 + $0x1074] ss:$8 sps:$4 sm:$0xff]  }
 0x289   : > { %12872 = vmatpush1.bf16.msra.mxu1 %v15321_v51  ;;  %v15400_v51 = vld [vmem:[%s18270_s5 + $0x370] ss:$8 sps:$4 sm:$0xff]  }
 0x28a   : > { %13405 = vmatpush1.bf16.msra.mxu0 %v15324_v52  ;;  %12873 = vmatprep.subr.bf16.mxu1 %v15329_v53  ;;  %v15403_v52 = vld [vmem:[%s18270_s5 + $0x1070] ss:$8 sps:$4 sm:$0xff]   ;;  %v15408_v53 = vld [vmem:[%s18270_s5 + $0x384] ss:$8 sps:$4 sm:$0xff]  }
 0x28b   : > { %13406 = vmatprep.subr.bf16.mxu0 %v15332_v54  ;;  %v15411_v54 = vld [vmem:[%s18270_s5 + $0x1084] ss:$8 sps:$4 sm:$0xff]  }
 0x28d   : > { %12874 = vmatpush1.bf16.msra.mxu1 %v15327_v55  ;;  %v15406_v55 = vld [vmem:[%s18270_s5 + $0x380] ss:$8 sps:$4 sm:$0xff]  }
 0x28e   : > { %13407 = vmatpush1.bf16.msra.mxu0 %v15330_v56  ;;  %12875 = vmatprep.subr.bf16.mxu1 %v15335_v57  ;;  %v15409_v56 = vld [vmem:[%s18270_s5 + $0x1080] ss:$8 sps:$4 sm:$0xff]   ;;  %v15414_v57 = vld [vmem:[%s18270_s5 + $0x394] ss:$8 sps:$4 sm:$0xff]  }
 0x28f   : > { %13408 = vmatprep.subr.bf16.mxu0 %v15338_v58  ;;  %v15417_v58 = vld [vmem:[%s18270_s5 + $0x1094] ss:$8 sps:$4 sm:$0xff]  }
 0x291   : > { %12876 = vmatpush1.bf16.msra.mxu1 %v15333_v59  ;;  %v15412_v59 = vld [vmem:[%s18270_s5 + $0x390] ss:$8 sps:$4 sm:$0xff]  }
 0x292   : > { %13409 = vmatpush1.bf16.msra.mxu0 %v15336_v61  ;;  %12877 = vmatprep.subr.bf16.mxu1 %v15341_v62  ;;  %v15415_v61 = vld [vmem:[%s18270_s5 + $0x1090] ss:$8 sps:$4 sm:$0xff]   ;;  %v15420_v62 = vld [vmem:[%s18270_s5 + $0x3a4] ss:$8 sps:$4 sm:$0xff]  }
 0x293   : > { %13410 = vmatprep.subr.bf16.mxu0 %v15344_v63  ;;  %v15423_v63 = vld [vmem:[%s18270_s5 + $0x10a4] ss:$8 sps:$4 sm:$0xff]  }
 0x295   : > { %12878 = vmatpush1.bf16.msra.mxu1 %v15339_v0  ;;  %v15418_v0 = vld [vmem:[%s18270_s5 + $0x3a0] ss:$8 sps:$4 sm:$0xff]  }
 0x296   : > { %13411 = vmatpush1.bf16.msra.mxu0 %v15342_v1  ;;  %12879 = vmatprep.subr.bf16.mxu1 %v15347_v2  ;;  %v15421_v1 = vld [vmem:[%s18270_s5 + $0x10a0] ss:$8 sps:$4 sm:$0xff]   ;;  %v15426_v2 = vld [vmem:[%s18270_s5 + $0x3b4] ss:$8 sps:$4 sm:$0xff]  }
 0x297   : > { %13412 = vmatprep.subr.bf16.mxu0 %v15350_v3  ;;  %v15429_v3 = vld [vmem:[%s18270_s5 + $0x10b4] ss:$8 sps:$4 sm:$0xff]  }
 0x299   : > { %12880 = vmatpush1.bf16.msra.mxu1 %v15345_v4  ;;  %v15424_v4 = vld [vmem:[%s18270_s5 + $0x3b0] ss:$8 sps:$4 sm:$0xff]  }
 0x29a   : > { %13413 = vmatpush1.bf16.msra.mxu0 %v15348_v7  ;;  %12881 = vmatprep.subr.bf16.mxu1 %v15353_v47  ;;  %v15432_v7 = vld [vmem:[%s18270_s5 + $0x3c4] ss:$8 sps:$4 sm:$0xff]  }
 0x29b   : > { %13414 = vmatprep.subr.bf16.mxu0 %v15356_v10  ;;  %v15435_v47 = vld [vmem:[%s18270_s5 + $0x10c4] ss:$8 sps:$4 sm:$0xff]   ;;  %v15430_v10 = vld [vmem:[%s18270_s5 + $0x3c0] ss:$8 sps:$4 sm:$0xff]  }
 0x29d   : > { %12882 = vmatpush1.bf16.msra.mxu1 %v15351_v8  ;;  %v15433_v8 = vld [vmem:[%s18270_s5 + $0x10c0] ss:$8 sps:$4 sm:$0xff]  }
 0x29e   : > { %13415 = vmatpush1.bf16.msra.mxu0 %v15354_v14  ;;  %12892 = vmatprep.subr.bf16.mxu1 %v15359_v15  ;;  %v15438_v14 = vld [vmem:[%s18270_s5 + $0x3d4] ss:$8 sps:$4 sm:$0xff]  }
 0x29f   : > { %13425 = vmatprep.subr.bf16.mxu0 %v15363_v16  ;;  %v15441_v15 = vld [vmem:[%s18270_s5 + $0x10d4] ss:$8 sps:$4 sm:$0xff]   ;;  %v15436_v16 = vld [vmem:[%s18270_s5 + $0x3d0] ss:$8 sps:$4 sm:$0xff]  }
 0x2a0   : > { %12884 = vmatmul.mubr.bf16.vlgmr.msra.gmra.mrb[0].mxu1 %v7534_v21  ;;  %v7383_v21 = vcombine.high %v18513_v6, %v18513_v6  ;;  %v15448_v6 = vld [vmem:[%s18270_s5 + $0x3f0] ss:$8 sps:$4 sm:$0xff]  }
 0x2a1   : > { %13417 = vmatmul.mubr.bf16.vlgmr.msra.gmra.mrb[0].mxu0 %v7560_v22  ;;  %12893 = vmatpush1.bf16.msra.mxu1 %v15357_v20  ;;  %v15447_v20 = vld [vmem:[%s18270_s5 + $0x10e4] ss:$8 sps:$4 sm:$0xff]   ;;  %v18596_v22 = vld [vmem:[%s18258_s26 + $0x10] sm:$0xff] }
 0x2a2   : > { %13426 = vmatpush1.bf16.msra.mxu0 %v15361_v23  ;;  %12894 = vmatprep.subr.bf16.mxu1 %v15366_v24  ;;  %v15442_v23 = vld [vmem:[%s18270_s5 + $0x3e0] ss:$8 sps:$4 sm:$0xff]  }
 0x2a3   : > { %13427 = vmatprep.subr.bf16.mxu0 %v15369_v25  ;;  %12924 = vmatprep.mubr.bf16.mxu1 %v7537_v26  ;;  %v15445_v24 = vld [vmem:[%s18270_s5 + $0x10e0] ss:$8 sps:$4 sm:$0xff]   ;;  %v15450_v25 = vld [vmem:[%s18270_s5 + $0x3f4] ss:$8 sps:$4 sm:$0xff]  }
 0x2a4   : > { %13457 = vmatprep.mubr.bf16.mxu0 %v7563_v27  ;;  %v15453_v26 = vld [vmem:[%s18270_s5 + $0x10f4] ss:$8 sps:$4 sm:$0xff]   ;;  %v18604_v27 = vrot.slane %v18596_v22, %v18321_v18 }
 0x2a5   : > { %12895 = vmatpush1.bf16.msra.mxu1 %v15364_v9  ;;  %v18607_v9 = vrot.slane %v7383_v21, %v18321_v18  ;;  %v15521_v21 = vld [vmem:[%s18270_s5 + $0x4b0] ss:$8 sps:$4 sm:$0xff]  }
 0x2a6   : > { %13428 = vmatpush1.bf16.msra.mxu0 %v15367_v60  ;;  %12896 = vmatprep.subr.bf16.mxu1 %v15372_v28  ;;  %v15451_v60 = vld [vmem:[%s18270_s5 + $0x10f0] ss:$8 sps:$4 sm:$0xff]   ;;  %v15457_v28 = vld [vmem:[%s18270_s5 + $0x404] ss:$8 sps:$4 sm:$0xff]  }
 0x2a7   : > { %13429 = vmatprep.subr.bf16.mxu0 %v15375_v29  ;;  %v15460_v29 = vld [vmem:[%s18270_s5 + $0x1104] ss:$8 sps:$4 sm:$0xff]  }
 0x2a9   : > { %12897 = vmatpush1.bf16.msra.mxu1 %v15370_v30  ;;  %v7296_v30 = vcombine.high %v18604_v27, %v18604_v27 }
 0x2aa   : > { %13430 = vmatpush1.bf16.msra.mxu0 %v15373_v31  ;;  %12898 = vmatprep.subr.bf16.mxu1 %v15378_v32  ;;  %v7399_v31 = vcombine.high %v18607_v9, %v18607_v9  ;;  %v7536_v32 = vpack.c.bf16 %v18519_v11, %v18519_v11  ;;  %v15461_v11 = vld [vmem:[%s18270_s5 + $0x410] ss:$8 sps:$4 sm:$0xff]  }
 0x2ab   : > { %13431 = vmatprep.subr.bf16.mxu0 %v15381_v33  ;;  %v7562_v33 = vpack.c.bf16 %v18523_v13, %v18523_v13  ;;  %v15464_v13 = vld [vmem:[%s18270_s5 + $0x1110] ss:$8 sps:$4 sm:$0xff]  }
 0x2ad   : > { %12899 = vmatpush1.bf16.msra.mxu1 %v15376_v34  ;;  %v15455_v34 = vld [vmem:[%s18270_s5 + $0x400] ss:$8 sps:$4 sm:$0xff]  }
 0x2ae   : > { %13432 = vmatpush1.bf16.msra.mxu0 %v15379_v35  ;;  %12900 = vmatprep.subr.bf16.mxu1 %v15384_v36  ;;  %v15458_v35 = vld [vmem:[%s18270_s5 + $0x1100] ss:$8 sps:$4 sm:$0xff]   ;;  %v15463_v36 = vld [vmem:[%s18270_s5 + $0x414] ss:$8 sps:$4 sm:$0xff]  }
 0x2af   : > { %13433 = vmatprep.subr.bf16.mxu0 %v15387_v37  ;;  %v15466_v37 = vld [vmem:[%s18270_s5 + $0x1114] ss:$8 sps:$4 sm:$0xff]  }
 0x2b1   : > { %12901 = vmatpush1.bf16.msra.mxu1 %v15382_v38  ;;  %v7539_v38 = vpack.c.bf16 %v7296_v30, %v7296_v30  ;;  %v15536_v30 = vld [vmem:[%s18270_s5 + $0x11d0] ss:$8 sps:$4 sm:$0xff]  }
 0x2b2   : > { %13434 = vmatpush1.bf16.msra.mxu0 %v15385_v39  ;;  %12902 = vmatprep.subr.bf16.mxu1 %v15390_v40  ;;  %v7565_v39 = vpack.c.bf16 %v7399_v31, %v7399_v31  ;;  %v15469_v40 = vld [vmem:[%s18270_s5 + $0x424] ss:$8 sps:$4 sm:$0xff]  }
 0x2b3   : > { %13435 = vmatprep.subr.bf16.mxu0 %v15393_v41  ;;  %v15472_v41 = vld [vmem:[%s18270_s5 + $0x1124] ss:$8 sps:$4 sm:$0xff]  }
 0x2b4   : > { %v15541_v31 = vld [vmem:[%s18270_s5 + $0x4e4] ss:$8 sps:$4 sm:$0xff]  }
 0x2b5   : > { %12903 = vmatpush1.bf16.msra.mxu1 %v15388_v42  ;;  %v15467_v42 = vld [vmem:[%s18270_s5 + $0x420] ss:$8 sps:$4 sm:$0xff]  }
 0x2b6   : > { %13436 = vmatpush1.bf16.msra.mxu0 %v15391_v43  ;;  %12904 = vmatprep.subr.bf16.mxu1 %v15396_v44  ;;  %v15470_v43 = vld [vmem:[%s18270_s5 + $0x1120] ss:$8 sps:$4 sm:$0xff]   ;;  %v15475_v44 = vld [vmem:[%s18270_s5 + $0x434] ss:$8 sps:$4 sm:$0xff]  }
 0x2b7   : > { %13437 = vmatprep.subr.bf16.mxu0 %v15399_v45  ;;  %v15478_v45 = vld [vmem:[%s18270_s5 + $0x1134] ss:$8 sps:$4 sm:$0xff]  }
 0x2b9   : > { %12905 = vmatpush1.bf16.msra.mxu1 %v15394_v46  ;;  %v15473_v46 = vld [vmem:[%s18270_s5 + $0x430] ss:$8 sps:$4 sm:$0xff]  }
 0x2ba   : > { %13438 = vmatpush1.bf16.msra.mxu0 %v15397_v48  ;;  %12906 = vmatprep.subr.bf16.mxu1 %v15402_v49  ;;  %v15476_v48 = vld [vmem:[%s18270_s5 + $0x1130] ss:$8 sps:$4 sm:$0xff]   ;;  %v15481_v49 = vld [vmem:[%s18270_s5 + $0x444] ss:$8 sps:$4 sm:$0xff]  }
 0x2bb   : > { %13439 = vmatprep.subr.bf16.mxu0 %v15405_v50  ;;  %v15484_v50 = vld [vmem:[%s18270_s5 + $0x1144] ss:$8 sps:$4 sm:$0xff]  }
 0x2bd   : > { %12907 = vmatpush1.bf16.msra.mxu1 %v15400_v51  ;;  %v15479_v51 = vld [vmem:[%s18270_s5 + $0x440] ss:$8 sps:$4 sm:$0xff]  }
 0x2be   : > { %13440 = vmatpush1.bf16.msra.mxu0 %v15403_v52  ;;  %12908 = vmatprep.subr.bf16.mxu1 %v15408_v53  ;;  %v15482_v52 = vld [vmem:[%s18270_s5 + $0x1140] ss:$8 sps:$4 sm:$0xff]   ;;  %v15487_v53 = vld [vmem:[%s18270_s5 + $0x454] ss:$8 sps:$4 sm:$0xff]  }
 0x2bf   : > { %13441 = vmatprep.subr.bf16.mxu0 %v15411_v54  ;;  %v15490_v54 = vld [vmem:[%s18270_s5 + $0x1154] ss:$8 sps:$4 sm:$0xff]  }
 0x2c1   : > { %12909 = vmatpush1.bf16.msra.mxu1 %v15406_v55  ;;  %v15485_v55 = vld [vmem:[%s18270_s5 + $0x450] ss:$8 sps:$4 sm:$0xff]  }
 0x2c2   : > { %13442 = vmatpush1.bf16.msra.mxu0 %v15409_v56  ;;  %12910 = vmatprep.subr.bf16.mxu1 %v15414_v57  ;;  %v15488_v56 = vld [vmem:[%s18270_s5 + $0x1150] ss:$8 sps:$4 sm:$0xff]   ;;  %v15493_v57 = vld [vmem:[%s18270_s5 + $0x464] ss:$8 sps:$4 sm:$0xff]  }
 0x2c3   : > { %13443 = vmatprep.subr.bf16.mxu0 %v15417_v58  ;;  %v15496_v58 = vld [vmem:[%s18270_s5 + $0x1164] ss:$8 sps:$4 sm:$0xff]  }
 0x2c5   : > { %12911 = vmatpush1.bf16.msra.mxu1 %v15412_v59  ;;  %v15491_v59 = vld [vmem:[%s18270_s5 + $0x460] ss:$8 sps:$4 sm:$0xff]  }
 0x2c6   : > { %13444 = vmatpush1.bf16.msra.mxu0 %v15415_v61  ;;  %12912 = vmatprep.subr.bf16.mxu1 %v15420_v62  ;;  %v15494_v61 = vld [vmem:[%s18270_s5 + $0x1160] ss:$8 sps:$4 sm:$0xff]   ;;  %v15499_v62 = vld [vmem:[%s18270_s5 + $0x474] ss:$8 sps:$4 sm:$0xff]  }
 0x2c7   : > { %13445 = vmatprep.subr.bf16.mxu0 %v15423_v63  ;;  %v15502_v63 = vld [vmem:[%s18270_s5 + $0x1174] ss:$8 sps:$4 sm:$0xff]  }
 0x2c9   : > { %12913 = vmatpush1.bf16.msra.mxu1 %v15418_v0  ;;  %v15497_v0 = vld [vmem:[%s18270_s5 + $0x470] ss:$8 sps:$4 sm:$0xff]  }
 0x2ca   : > { %13446 = vmatpush1.bf16.msra.mxu0 %v15421_v1  ;;  %12914 = vmatprep.subr.bf16.mxu1 %v15426_v2  ;;  %v15500_v1 = vld [vmem:[%s18270_s5 + $0x1170] ss:$8 sps:$4 sm:$0xff]   ;;  %v15505_v2 = vld [vmem:[%s18270_s5 + $0x484] ss:$8 sps:$4 sm:$0xff]  }
 0x2cb   : > { %13447 = vmatprep.subr.bf16.mxu0 %v15429_v3  ;;  %v15508_v3 = vld [vmem:[%s18270_s5 + $0x1184] ss:$8 sps:$4 sm:$0xff]  }
 0x2cd   : > { %12915 = vmatpush1.bf16.msra.mxu1 %v15424_v4  ;;  %v15503_v4 = vld [vmem:[%s18270_s5 + $0x480] ss:$8 sps:$4 sm:$0xff]  }
 0x2ce   : > { %13448 = vmatpush1.bf16.msra.mxu0 %v15427_v5  ;;  %12916 = vmatprep.subr.bf16.mxu1 %v15432_v7  ;;  %v15506_v5 = vld [vmem:[%s18270_s5 + $0x1180] ss:$8 sps:$4 sm:$0xff]   ;;  %v15511_v7 = vld [vmem:[%s18270_s5 + $0x494] ss:$8 sps:$4 sm:$0xff]  }
 0x2cf   : > { %13449 = vmatprep.subr.bf16.mxu0 %v15435_v47  ;;  %v15514_v47 = vld [vmem:[%s18270_s5 + $0x1194] ss:$8 sps:$4 sm:$0xff]  }
 0x2d1   : > { %12917 = vmatpush1.bf16.msra.mxu1 %v15430_v10  ;;  %v15509_v10 = vld [vmem:[%s18270_s5 + $0x490] ss:$8 sps:$4 sm:$0xff]  }
 0x2d2   : > { %13450 = vmatpush1.bf16.msra.mxu0 %v15433_v8  ;;  %12918 = vmatprep.subr.bf16.mxu1 %v15438_v14  ;;  %v15512_v8 = vld [vmem:[%s18270_s5 + $0x1190] ss:$8 sps:$4 sm:$0xff]   ;;  %v15517_v14 = vld [vmem:[%s18270_s5 + $0x4a4] ss:$8 sps:$4 sm:$0xff]  }
 0x2d3   : > { %13451 = vmatprep.subr.bf16.mxu0 %v15441_v15  ;;  %v15520_v15 = vld [vmem:[%s18270_s5 + $0x11a4] ss:$8 sps:$4 sm:$0xff]  }
 0x2d5   : > { %12919 = vmatpush1.bf16.msra.mxu1 %v15436_v16  ;;  %v15515_v16 = vld [vmem:[%s18270_s5 + $0x4a0] ss:$8 sps:$4 sm:$0xff]  }
 0x2d6   : > { %13452 = vmatpush1.bf16.msra.mxu0 %v15439_v17  ;;  %12920 = vmatprep.subr.bf16.mxu1 %v15444_v19  ;;  %v15518_v17 = vld [vmem:[%s18270_s5 + $0x11a0] ss:$8 sps:$4 sm:$0xff]   ;;  %v15523_v19 = vld [vmem:[%s18270_s5 + $0x4b4] ss:$8 sps:$4 sm:$0xff]  }
 0x2d7   : > { %13453 = vmatprep.subr.bf16.mxu0 %v15447_v20  ;;  %v15526_v20 = vld [vmem:[%s18270_s5 + $0x11b4] ss:$8 sps:$4 sm:$0xff]  }
 0x2d9   : > { %12921 = vmatpush1.bf16.msra.mxu1 %v15442_v23  ;;  %v15524_v23 = vld [vmem:[%s18270_s5 + $0x11b0] ss:$8 sps:$4 sm:$0xff]  }
 0x2da   : > { %13454 = vmatpush1.bf16.msra.mxu0 %v15445_v24  ;;  %12922 = vmatprep.subr.bf16.mxu1 %v15450_v25  ;;  %v15529_v24 = vld [vmem:[%s18270_s5 + $0x4c4] ss:$8 sps:$4 sm:$0xff]  }
 0x2db   : > { %13455 = vmatprep.subr.bf16.mxu0 %v15453_v26  ;;  %v15532_v25 = vld [vmem:[%s18270_s5 + $0x11c4] ss:$8 sps:$4 sm:$0xff]   ;;  %v15527_v26 = vld [vmem:[%s18270_s5 + $0x4c0] ss:$8 sps:$4 sm:$0xff]  }
 0x2dd   : > { %12923 = vmatpush1.bf16.msra.mxu1 %v15448_v6  ;;  %v15530_v6 = vld [vmem:[%s18270_s5 + $0x11c0] ss:$8 sps:$4 sm:$0xff]  }
 0x2de   : > { %13456 = vmatpush1.bf16.msra.mxu0 %v15451_v60  ;;  %12933 = vmatprep.subr.bf16.mxu1 %v15457_v28  ;;  %v15535_v60 = vld [vmem:[%s18270_s5 + $0x4d4] ss:$8 sps:$4 sm:$0xff]  }
 0x2df   : > { %13466 = vmatprep.subr.bf16.mxu0 %v15460_v29  ;;  %v15538_v28 = vld [vmem:[%s18270_s5 + $0x11d4] ss:$8 sps:$4 sm:$0xff]   ;;  %v15533_v29 = vld [vmem:[%s18270_s5 + $0x4d0] ss:$8 sps:$4 sm:$0xff]  }
 0x2e0   : > { %12925 = vmatmul.mubr.bf16.vlgmr.msra.gmra.mrb[0].mxu1 %v7536_v32  ;;  %v15544_v32 = vld [vmem:[%s18270_s5 + $0x11e4] ss:$8 sps:$4 sm:$0xff]  }
 0x2e1   : > { %13458 = vmatmul.mubr.bf16.vlgmr.msra.gmra.mrb[0].mxu0 %v7562_v33  ;;  %12934 = vmatpush1.bf16.msra.mxu1 %v15455_v34  ;;  %v18678_v33 = vld [vmem:[%s18258_s26 + $0x48] sm:$0xff]  ;;  %v7281_v34 = vcombine.high %v18596_v22, %v18596_v22  ;;  %v15545_v22 = vld [vmem:[%s18270_s5 + $0x4f0] ss:$8 sps:$4 sm:$0xff]  }
 0x2e2   : > { %13467 = vmatpush1.bf16.msra.mxu0 %v15458_v35  ;;  %12935 = vmatprep.subr.bf16.mxu1 %v15463_v36  ;;  %v15539_v35 = vld [vmem:[%s18270_s5 + $0x4e0] ss:$8 sps:$4 sm:$0xff]  }
 0x2e3   : > { %13468 = vmatprep.subr.bf16.mxu0 %v15466_v37  ;;  %12965 = vmatprep.mubr.bf16.mxu1 %v7539_v38  ;;  %v15542_v36 = vld [vmem:[%s18270_s5 + $0x11e0] ss:$8 sps:$4 sm:$0xff]   ;;  %v15547_v37 = vld [vmem:[%s18270_s5 + $0x4f4] ss:$8 sps:$4 sm:$0xff]  }
 0x2e4   : > { %13498 = vmatprep.mubr.bf16.mxu0 %v7565_v39  ;;  %v15550_v38 = vld [vmem:[%s18270_s5 + $0x11f4] ss:$8 sps:$4 sm:$0xff]   ;;  %v18687_v39 = vrot.slane %v7281_v34, %v18321_v18  ;;  %v15618_v34 = vld [vmem:[%s18270_s5 + $0x5b0] ss:$8 sps:$4 sm:$0xff]  }
 0x2e5   : > { %12936 = vmatpush1.bf16.msra.mxu1 %v15461_v11  ;;  %v18691_v11 = vrot.slane %v18678_v33, %v18321_v18 }
 0x2e6   : > { %13469 = vmatpush1.bf16.msra.mxu0 %v15464_v13  ;;  %12937 = vmatprep.subr.bf16.mxu1 %v15469_v40  ;;  %v15548_v13 = vld [vmem:[%s18270_s5 + $0x11f0] ss:$8 sps:$4 sm:$0xff]   ;;  %v15553_v40 = vld [vmem:[%s18270_s5 + $0x504] ss:$8 sps:$4 sm:$0xff]  }
 0x2e7   : > { %13470 = vmatprep.subr.bf16.mxu0 %v15472_v41  ;;  %v15557_v41 = vld [vmem:[%s18270_s5 + $0x1204] ss:$8 sps:$4 sm:$0xff]  }
 0x2e9   : > { %12938 = vmatpush1.bf16.msra.mxu1 %v15467_v42  ;;  %v7297_v42 = vcombine.high %v18687_v39, %v18687_v39 }
 0x2ea   : > { %13471 = vmatpush1.bf16.msra.mxu0 %v15470_v43  ;;  %12939 = vmatprep.subr.bf16.mxu1 %v15475_v44  ;;  %v7415_v43 = vcombine.high %v18691_v11, %v18691_v11  ;;  %v7538_v44 = vpack.c.bf16 %v18604_v27, %v18604_v27  ;;  %v15558_v27 = vld [vmem:[%s18270_s5 + $0x510] ss:$8 sps:$4 sm:$0xff]  }
 0x2eb   : > { %13472 = vmatprep.subr.bf16.mxu0 %v15478_v45  ;;  %v7564_v45 = vpack.c.bf16 %v18607_v9, %v18607_v9  ;;  %v15561_v9 = vld [vmem:[%s18270_s5 + $0x1210] ss:$8 sps:$4 sm:$0xff]  }
 0x2ed   : > { %12940 = vmatpush1.bf16.msra.mxu1 %v15473_v46  ;;  %v15551_v46 = vld [vmem:[%s18270_s5 + $0x500] ss:$8 sps:$4 sm:$0xff]  }
 0x2ee   : > { %13473 = vmatpush1.bf16.msra.mxu0 %v15476_v48  ;;  %12941 = vmatprep.subr.bf16.mxu1 %v15481_v49  ;;  %v15555_v48 = vld [vmem:[%s18270_s5 + $0x1200] ss:$8 sps:$4 sm:$0xff]   ;;  %v15560_v49 = vld [vmem:[%s18270_s5 + $0x514] ss:$8 sps:$4 sm:$0xff]  }
 0x2ef   : > { %13474 = vmatprep.subr.bf16.mxu0 %v15484_v50  ;;  %v15563_v50 = vld [vmem:[%s18270_s5 + $0x1214] ss:$8 sps:$4 sm:$0xff]  }
 0x2f1   : > { %12942 = vmatpush1.bf16.msra.mxu1 %v15479_v51  ;;  %v7541_v51 = vpack.c.bf16 %v7297_v42, %v7297_v42  ;;  %v15633_v42 = vld [vmem:[%s18270_s5 + $0x12d0] ss:$8 sps:$4 sm:$0xff]  }
 0x2f2   : > { %13475 = vmatpush1.bf16.msra.mxu0 %v15482_v52  ;;  %12943 = vmatprep.subr.bf16.mxu1 %v15487_v53  ;;  %v7567_v52 = vpack.c.bf16 %v7415_v43, %v7415_v43  ;;  %v15566_v53 = vld [vmem:[%s18270_s5 + $0x524] ss:$8 sps:$4 sm:$0xff]  }
 0x2f3   : > { %13476 = vmatprep.subr.bf16.mxu0 %v15490_v54  ;;  %v15569_v54 = vld [vmem:[%s18270_s5 + $0x1224] ss:$8 sps:$4 sm:$0xff]  }
 0x2f4   : > { %v15638_v43 = vld [vmem:[%s18270_s5 + $0x5e4] ss:$8 sps:$4 sm:$0xff]  }
 0x2f5   : > { %12944 = vmatpush1.bf16.msra.mxu1 %v15485_v55  ;;  %v15564_v55 = vld [vmem:[%s18270_s5 + $0x520] ss:$8 sps:$4 sm:$0xff]  }
 0x2f6   : > { %13477 = vmatpush1.bf16.msra.mxu0 %v15488_v56  ;;  %12945 = vmatprep.subr.bf16.mxu1 %v15493_v57  ;;  %v15567_v56 = vld [vmem:[%s18270_s5 + $0x1220] ss:$8 sps:$4 sm:$0xff]   ;;  %v15572_v57 = vld [vmem:[%s18270_s5 + $0x534] ss:$8 sps:$4 sm:$0xff]  }
 0x2f7   : > { %13478 = vmatprep.subr.bf16.mxu0 %v15496_v58  ;;  %v15575_v58 = vld [vmem:[%s18270_s5 + $0x1234] ss:$8 sps:$4 sm:$0xff]  }
 0x2f9   : > { %12946 = vmatpush1.bf16.msra.mxu1 %v15491_v59  ;;  %v15570_v59 = vld [vmem:[%s18270_s5 + $0x530] ss:$8 sps:$4 sm:$0xff]  }
 0x2fa   : > { %13479 = vmatpush1.bf16.msra.mxu0 %v15494_v61  ;;  %12947 = vmatprep.subr.bf16.mxu1 %v15499_v62  ;;  %v15573_v61 = vld [vmem:[%s18270_s5 + $0x1230] ss:$8 sps:$4 sm:$0xff]   ;;  %v15578_v62 = vld [vmem:[%s18270_s5 + $0x544] ss:$8 sps:$4 sm:$0xff]  }
 0x2fb   : > { %13480 = vmatprep.subr.bf16.mxu0 %v15502_v63  ;;  %v15581_v63 = vld [vmem:[%s18270_s5 + $0x1244] ss:$8 sps:$4 sm:$0xff]  }
 0x2fd   : > { %12948 = vmatpush1.bf16.msra.mxu1 %v15497_v0  ;;  %v15576_v0 = vld [vmem:[%s18270_s5 + $0x540] ss:$8 sps:$4 sm:$0xff]  }
 0x2fe   : > { %13481 = vmatpush1.bf16.msra.mxu0 %v15500_v1  ;;  %12949 = vmatprep.subr.bf16.mxu1 %v15505_v2  ;;  %v15579_v1 = vld [vmem:[%s18270_s5 + $0x1240] ss:$8 sps:$4 sm:$0xff]   ;;  %v15584_v2 = vld [vmem:[%s18270_s5 + $0x554] ss:$8 sps:$4 sm:$0xff]  }
 0x2ff   : > { %13482 = vmatprep.subr.bf16.mxu0 %v15508_v3  ;;  %v15587_v3 = vld [vmem:[%s18270_s5 + $0x1254] ss:$8 sps:$4 sm:$0xff]  }
 0x301   : > { %12950 = vmatpush1.bf16.msra.mxu1 %v15503_v4  ;;  %v15582_v4 = vld [vmem:[%s18270_s5 + $0x550] ss:$8 sps:$4 sm:$0xff]  }
 0x302   : > { %13483 = vmatpush1.bf16.msra.mxu0 %v15506_v5  ;;  %12951 = vmatprep.subr.bf16.mxu1 %v15511_v7  ;;  %v15585_v5 = vld [vmem:[%s18270_s5 + $0x1250] ss:$8 sps:$4 sm:$0xff]   ;;  %v15590_v7 = vld [vmem:[%s18270_s5 + $0x564] ss:$8 sps:$4 sm:$0xff]  }
 0x303   : > { %13484 = vmatprep.subr.bf16.mxu0 %v15514_v47  ;;  %v15593_v47 = vld [vmem:[%s18270_s5 + $0x1264] ss:$8 sps:$4 sm:$0xff]  }
 0x305   : > { %12952 = vmatpush1.bf16.msra.mxu1 %v15509_v10  ;;  %v15588_v10 = vld [vmem:[%s18270_s5 + $0x560] ss:$8 sps:$4 sm:$0xff]  }
 0x306   : > { %13485 = vmatpush1.bf16.msra.mxu0 %v15512_v8  ;;  %12953 = vmatprep.subr.bf16.mxu1 %v15517_v14  ;;  %v15591_v8 = vld [vmem:[%s18270_s5 + $0x1260] ss:$8 sps:$4 sm:$0xff]   ;;  %v15596_v14 = vld [vmem:[%s18270_s5 + $0x574] ss:$8 sps:$4 sm:$0xff]  }
 0x307   : > { %13486 = vmatprep.subr.bf16.mxu0 %v15520_v15  ;;  %v15599_v15 = vld [vmem:[%s18270_s5 + $0x1274] ss:$8 sps:$4 sm:$0xff]  }
 0x309   : > { %12954 = vmatpush1.bf16.msra.mxu1 %v15515_v16  ;;  %v15594_v16 = vld [vmem:[%s18270_s5 + $0x570] ss:$8 sps:$4 sm:$0xff]  }
 0x30a   : > { %13487 = vmatpush1.bf16.msra.mxu0 %v15518_v17  ;;  %12955 = vmatprep.subr.bf16.mxu1 %v15523_v19  ;;  %v15597_v17 = vld [vmem:[%s18270_s5 + $0x1270] ss:$8 sps:$4 sm:$0xff]   ;;  %v15602_v19 = vld [vmem:[%s18270_s5 + $0x584] ss:$8 sps:$4 sm:$0xff]  }
 0x30b   : > { %13488 = vmatprep.subr.bf16.mxu0 %v15526_v20  ;;  %v15605_v20 = vld [vmem:[%s18270_s5 + $0x1284] ss:$8 sps:$4 sm:$0xff]  }
 0x30d   : > { %12956 = vmatpush1.bf16.msra.mxu1 %v15521_v21  ;;  %v15600_v21 = vld [vmem:[%s18270_s5 + $0x580] ss:$8 sps:$4 sm:$0xff]  }
 0x30e   : > { %13489 = vmatpush1.bf16.msra.mxu0 %v15524_v23  ;;  %12957 = vmatprep.subr.bf16.mxu1 %v15529_v24  ;;  %v15603_v23 = vld [vmem:[%s18270_s5 + $0x1280] ss:$8 sps:$4 sm:$0xff]   ;;  %v15608_v24 = vld [vmem:[%s18270_s5 + $0x594] ss:$8 sps:$4 sm:$0xff]  }
 0x30f   : > { %13490 = vmatprep.subr.bf16.mxu0 %v15532_v25  ;;  %v15611_v25 = vld [vmem:[%s18270_s5 + $0x1294] ss:$8 sps:$4 sm:$0xff]  }
 0x311   : > { %12958 = vmatpush1.bf16.msra.mxu1 %v15527_v26  ;;  %v15606_v26 = vld [vmem:[%s18270_s5 + $0x590] ss:$8 sps:$4 sm:$0xff]  }
 0x312   : > { %13491 = vmatpush1.bf16.msra.mxu0 %v15530_v6  ;;  %12959 = vmatprep.subr.bf16.mxu1 %v15535_v60  ;;  %v15609_v6 = vld [vmem:[%s18270_s5 + $0x1290] ss:$8 sps:$4 sm:$0xff]   ;;  %v15614_v60 = vld [vmem:[%s18270_s5 + $0x5a4] ss:$8 sps:$4 sm:$0xff]  }
 0x313   : > { %13492 = vmatprep.subr.bf16.mxu0 %v15538_v28  ;;  %v15617_v28 = vld [vmem:[%s18270_s5 + $0x12a4] ss:$8 sps:$4 sm:$0xff]  }
 0x315   : > { %12960 = vmatpush1.bf16.msra.mxu1 %v15533_v29  ;;  %v15612_v29 = vld [vmem:[%s18270_s5 + $0x5a0] ss:$8 sps:$4 sm:$0xff]  }
 0x316   : > { %13493 = vmatpush1.bf16.msra.mxu0 %v15536_v30  ;;  %12961 = vmatprep.subr.bf16.mxu1 %v15541_v31  ;;  %v15615_v30 = vld [vmem:[%s18270_s5 + $0x12a0] ss:$8 sps:$4 sm:$0xff]   ;;  %v15620_v31 = vld [vmem:[%s18270_s5 + $0x5b4] ss:$8 sps:$4 sm:$0xff]  }
 0x317   : > { %13494 = vmatprep.subr.bf16.mxu0 %v15544_v32  ;;  %v15623_v32 = vld [vmem:[%s18270_s5 + $0x12b4] ss:$8 sps:$4 sm:$0xff]  }
 0x319   : > { %12962 = vmatpush1.bf16.msra.mxu1 %v15539_v35  ;;  %v15621_v35 = vld [vmem:[%s18270_s5 + $0x12b0] ss:$8 sps:$4 sm:$0xff]  }
 0x31a   : > { %13495 = vmatpush1.bf16.msra.mxu0 %v15542_v36  ;;  %12963 = vmatprep.subr.bf16.mxu1 %v15547_v37  ;;  %v15626_v36 = vld [vmem:[%s18270_s5 + $0x5c4] ss:$8 sps:$4 sm:$0xff]  }
 0x31b   : > { %13496 = vmatprep.subr.bf16.mxu0 %v15550_v38  ;;  %v15629_v37 = vld [vmem:[%s18270_s5 + $0x12c4] ss:$8 sps:$4 sm:$0xff]   ;;  %v15624_v38 = vld [vmem:[%s18270_s5 + $0x5c0] ss:$8 sps:$4 sm:$0xff]  }
 0x31d   : > { %12964 = vmatpush1.bf16.msra.mxu1 %v15545_v22  ;;  %v15627_v22 = vld [vmem:[%s18270_s5 + $0x12c0] ss:$8 sps:$4 sm:$0xff]  }
 0x31e   : > { %13497 = vmatpush1.bf16.msra.mxu0 %v15548_v13  ;;  %12974 = vmatprep.subr.bf16.mxu1 %v15553_v40  ;;  %v15632_v13 = vld [vmem:[%s18270_s5 + $0x5d4] ss:$8 sps:$4 sm:$0xff]  }
 0x31f   : > { %13507 = vmatprep.subr.bf16.mxu0 %v15557_v41  ;;  %v15635_v40 = vld [vmem:[%s18270_s5 + $0x12d4] ss:$8 sps:$4 sm:$0xff]   ;;  %v15630_v41 = vld [vmem:[%s18270_s5 + $0x5d0] ss:$8 sps:$4 sm:$0xff]  }
 0x320   : > { %12966 = vmatmul.mubr.bf16.vlgmr.msra.gmra.mrb[0].mxu1 %v7538_v44  ;;  %v15641_v44 = vld [vmem:[%s18270_s5 + $0x12e4] ss:$8 sps:$4 sm:$0xff]  }
 0x321   : > { %13499 = vmatmul.mubr.bf16.vlgmr.msra.gmra.mrb[0].mxu0 %v7564_v45  ;;  %12975 = vmatpush1.bf16.msra.mxu1 %v15551_v46  ;;  %v18762_v45 = vld [vmem:[%s18258_s26 + $0x18] sm:$0xff]  ;;  %v7400_v46 = vcombine.high %v18678_v33, %v18678_v33 }
 0x322   : > { %13508 = vmatpush1.bf16.msra.mxu0 %v15555_v48  ;;  %12976 = vmatprep.subr.bf16.mxu1 %v15560_v49  ;;  %v15636_v48 = vld [vmem:[%s18270_s5 + $0x5e0] ss:$8 sps:$4 sm:$0xff]   ;;  %v15642_v33 = vld [vmem:[%s18270_s5 + $0x5f0] ss:$8 sps:$4 sm:$0xff]  }
 0x323   : > { %13509 = vmatprep.subr.bf16.mxu0 %v15563_v50  ;;  %13006 = vmatprep.mubr.bf16.mxu1 %v7541_v51  ;;  %v15639_v49 = vld [vmem:[%s18270_s5 + $0x12e0] ss:$8 sps:$4 sm:$0xff]   ;;  %v15644_v50 = vld [vmem:[%s18270_s5 + $0x5f4] ss:$8 sps:$4 sm:$0xff]  }
 0x324   : > { %13539 = vmatprep.mubr.bf16.mxu0 %v7567_v52  ;;  %v15647_v51 = vld [vmem:[%s18270_s5 + $0x12f4] ss:$8 sps:$4 sm:$0xff]   ;;  %v18772_v52 = vrot.slane %v18762_v45, %v18321_v18 }
 0x325   : > { %12977 = vmatpush1.bf16.msra.mxu1 %v15558_v27  ;;  %v18775_v27 = vrot.slane %v7400_v46, %v18321_v18  ;;  %v15715_v46 = vld [vmem:[%s18270_s5 + $0x6b0] ss:$8 sps:$4 sm:$0xff]  }
 0x326   : > { %13510 = vmatpush1.bf16.msra.mxu0 %v15561_v9  ;;  %12978 = vmatprep.subr.bf16.mxu1 %v15566_v53  ;;  %v15645_v9 = vld [vmem:[%s18270_s5 + $0x12f0] ss:$8 sps:$4 sm:$0xff]   ;;  %v15651_v53 = vld [vmem:[%s18270_s5 + $0x604] ss:$8 sps:$4 sm:$0xff]  }
 0x327   : > { %13511 = vmatprep.subr.bf16.mxu0 %v15569_v54  ;;  %v15654_v54 = vld [vmem:[%s18270_s5 + $0x1304] ss:$8 sps:$4 sm:$0xff]  }
 0x329   : > { %12979 = vmatpush1.bf16.msra.mxu1 %v15564_v55  ;;  %v7313_v55 = vcombine.high %v18772_v52, %v18772_v52 }
 0x32a   : > { %13512 = vmatpush1.bf16.msra.mxu0 %v15567_v56  ;;  %12980 = vmatprep.subr.bf16.mxu1 %v15572_v57  ;;  %v7416_v56 = vcombine.high %v18775_v27, %v18775_v27  ;;  %v7540_v57 = vpack.c.bf16 %v18687_v39, %v18687_v39  ;;  %v15655_v39 = vld [vmem:[%s18270_s5 + $0x610] ss:$8 sps:$4 sm:$0xff]  }
 0x32b   : > { %13513 = vmatprep.subr.bf16.mxu0 %v15575_v58  ;;  %v7566_v58 = vpack.c.bf16 %v18691_v11, %v18691_v11  ;;  %v15658_v11 = vld [vmem:[%s18270_s5 + $0x1310] ss:$8 sps:$4 sm:$0xff]  }
 0x32d   : > { %12981 = vmatpush1.bf16.msra.mxu1 %v15570_v59  ;;  %v15649_v59 = vld [vmem:[%s18270_s5 + $0x600] ss:$8 sps:$4 sm:$0xff]  }
 0x32e   : > { %13514 = vmatpush1.bf16.msra.mxu0 %v15573_v61  ;;  %12982 = vmatprep.subr.bf16.mxu1 %v15578_v62  ;;  %v15652_v61 = vld [vmem:[%s18270_s5 + $0x1300] ss:$8 sps:$4 sm:$0xff]   ;;  %v15657_v62 = vld [vmem:[%s18270_s5 + $0x614] ss:$8 sps:$4 sm:$0xff]  }
 0x32f   : > { %13515 = vmatprep.subr.bf16.mxu0 %v15581_v63  ;;  %v15660_v63 = vld [vmem:[%s18270_s5 + $0x1314] ss:$8 sps:$4 sm:$0xff]  }
 0x331   : > { %12983 = vmatpush1.bf16.msra.mxu1 %v15576_v0  ;;  %v7543_v0 = vpack.c.bf16 %v7313_v55, %v7313_v55  ;;  %v15730_v55 = vld [vmem:[%s18270_s5 + $0x13d0] ss:$8 sps:$4 sm:$0xff]  }
 0x332   : > { %13516 = vmatpush1.bf16.msra.mxu0 %v15579_v1  ;;  %12984 = vmatprep.subr.bf16.mxu1 %v15584_v2  ;;  %v7569_v1 = vpack.c.bf16 %v7416_v56, %v7416_v56  ;;  %v15663_v2 = vld [vmem:[%s18270_s5 + $0x624] ss:$8 sps:$4 sm:$0xff]  }
 0x333   : > { %13517 = vmatprep.subr.bf16.mxu0 %v15587_v3  ;;  %v15666_v3 = vld [vmem:[%s18270_s5 + $0x1324] ss:$8 sps:$4 sm:$0xff]  }
 0x334   : > { %v15735_v56 = vld [vmem:[%s18270_s5 + $0x6e4] ss:$8 sps:$4 sm:$0xff]  }
 0x335   : > { %12985 = vmatpush1.bf16.msra.mxu1 %v15582_v4  ;;  %v15661_v4 = vld [vmem:[%s18270_s5 + $0x620] ss:$8 sps:$4 sm:$0xff]  }
 0x336   : > { %13518 = vmatpush1.bf16.msra.mxu0 %v15585_v5  ;;  %12986 = vmatprep.subr.bf16.mxu1 %v15590_v7  ;;  %v15664_v5 = vld [vmem:[%s18270_s5 + $0x1320] ss:$8 sps:$4 sm:$0xff]   ;;  %v15669_v7 = vld [vmem:[%s18270_s5 + $0x634] ss:$8 sps:$4 sm:$0xff]  }
 0x337   : > { %13519 = vmatprep.subr.bf16.mxu0 %v15593_v47  ;;  %v15672_v47 = vld [vmem:[%s18270_s5 + $0x1334] ss:$8 sps:$4 sm:$0xff]  }
 0x339   : > { %12987 = vmatpush1.bf16.msra.mxu1 %v15588_v10  ;;  %v15667_v10 = vld [vmem:[%s18270_s5 + $0x630] ss:$8 sps:$4 sm:$0xff]  }
 0x33a   : > { %13520 = vmatpush1.bf16.msra.mxu0 %v15591_v8  ;;  %12988 = vmatprep.subr.bf16.mxu1 %v15596_v14  ;;  %v15670_v8 = vld [vmem:[%s18270_s5 + $0x1330] ss:$8 sps:$4 sm:$0xff]   ;;  %v15675_v14 = vld [vmem:[%s18270_s5 + $0x644] ss:$8 sps:$4 sm:$0xff]  }
 0x33b   : > { %13521 = vmatprep.subr.bf16.mxu0 %v15599_v15  ;;  %v15678_v15 = vld [vmem:[%s18270_s5 + $0x1344] ss:$8 sps:$4 sm:$0xff]  }
 0x33d   : > { %12989 = vmatpush1.bf16.msra.mxu1 %v15594_v16  ;;  %v15673_v16 = vld [vmem:[%s18270_s5 + $0x640] ss:$8 sps:$4 sm:$0xff]  }
 0x33e   : > { %13522 = vmatpush1.bf16.msra.mxu0 %v15597_v17  ;;  %12990 = vmatprep.subr.bf16.mxu1 %v15602_v19  ;;  %v15676_v17 = vld [vmem:[%s18270_s5 + $0x1340] ss:$8 sps:$4 sm:$0xff]   ;;  %v15681_v19 = vld [vmem:[%s18270_s5 + $0x654] ss:$8 sps:$4 sm:$0xff]  }
 0x33f   : > { %13523 = vmatprep.subr.bf16.mxu0 %v15605_v20  ;;  %v15684_v20 = vld [vmem:[%s18270_s5 + $0x1354] ss:$8 sps:$4 sm:$0xff]  }
 0x341   : > { %12991 = vmatpush1.bf16.msra.mxu1 %v15600_v21  ;;  %v15679_v21 = vld [vmem:[%s18270_s5 + $0x650] ss:$8 sps:$4 sm:$0xff]  }
 0x342   : > { %13524 = vmatpush1.bf16.msra.mxu0 %v15603_v23  ;;  %12992 = vmatprep.subr.bf16.mxu1 %v15608_v24  ;;  %v15682_v23 = vld [vmem:[%s18270_s5 + $0x1350] ss:$8 sps:$4 sm:$0xff]   ;;  %v15687_v24 = vld [vmem:[%s18270_s5 + $0x664] ss:$8 sps:$4 sm:$0xff]  }
 0x343   : > { %13525 = vmatprep.subr.bf16.mxu0 %v15611_v25  ;;  %v15690_v25 = vld [vmem:[%s18270_s5 + $0x1364] ss:$8 sps:$4 sm:$0xff]  }
 0x345   : > { %12993 = vmatpush1.bf16.msra.mxu1 %v15606_v26  ;;  %v15685_v26 = vld [vmem:[%s18270_s5 + $0x660] ss:$8 sps:$4 sm:$0xff]  }
 0x346   : > { %13526 = vmatpush1.bf16.msra.mxu0 %v15609_v6  ;;  %12994 = vmatprep.subr.bf16.mxu1 %v15614_v60  ;;  %v15688_v6 = vld [vmem:[%s18270_s5 + $0x1360] ss:$8 sps:$4 sm:$0xff]   ;;  %v15693_v60 = vld [vmem:[%s18270_s5 + $0x674] ss:$8 sps:$4 sm:$0xff]  }
 0x347   : > { %13527 = vmatprep.subr.bf16.mxu0 %v15617_v28  ;;  %v15696_v28 = vld [vmem:[%s18270_s5 + $0x1374] ss:$8 sps:$4 sm:$0xff]  }
 0x349   : > { %12995 = vmatpush1.bf16.msra.mxu1 %v15612_v29  ;;  %v15691_v29 = vld [vmem:[%s18270_s5 + $0x670] ss:$8 sps:$4 sm:$0xff]  }
 0x34a   : > { %13528 = vmatpush1.bf16.msra.mxu0 %v15615_v30  ;;  %12996 = vmatprep.subr.bf16.mxu1 %v15620_v31  ;;  %v15694_v30 = vld [vmem:[%s18270_s5 + $0x1370] ss:$8 sps:$4 sm:$0xff]   ;;  %v15699_v31 = vld [vmem:[%s18270_s5 + $0x684] ss:$8 sps:$4 sm:$0xff]  }
 0x34b   : > { %13529 = vmatprep.subr.bf16.mxu0 %v15623_v32  ;;  %v15702_v32 = vld [vmem:[%s18270_s5 + $0x1384] ss:$8 sps:$4 sm:$0xff]  }
 0x34d   : > { %12997 = vmatpush1.bf16.msra.mxu1 %v15618_v34  ;;  %v15697_v34 = vld [vmem:[%s18270_s5 + $0x680] ss:$8 sps:$4 sm:$0xff]  }
 0x34e   : > { %13530 = vmatpush1.bf16.msra.mxu0 %v15621_v35  ;;  %12998 = vmatprep.subr.bf16.mxu1 %v15626_v36  ;;  %v15700_v35 = vld [vmem:[%s18270_s5 + $0x1380] ss:$8 sps:$4 sm:$0xff]   ;;  %v15705_v36 = vld [vmem:[%s18270_s5 + $0x694] ss:$8 sps:$4 sm:$0xff]  }
 0x34f   : > { %13531 = vmatprep.subr.bf16.mxu0 %v15629_v37  ;;  %v15708_v37 = vld [vmem:[%s18270_s5 + $0x1394] ss:$8 sps:$4 sm:$0xff]  }
 0x351   : > { %12999 = vmatpush1.bf16.msra.mxu1 %v15624_v38  ;;  %v15703_v38 = vld [vmem:[%s18270_s5 + $0x690] ss:$8 sps:$4 sm:$0xff]  }
 0x352   : > { %13532 = vmatpush1.bf16.msra.mxu0 %v15627_v22  ;;  %13000 = vmatprep.subr.bf16.mxu1 %v15632_v13  ;;  %v15706_v22 = vld [vmem:[%s18270_s5 + $0x1390] ss:$8 sps:$4 sm:$0xff]   ;;  %v15711_v13 = vld [vmem:[%s18270_s5 + $0x6a4] ss:$8 sps:$4 sm:$0xff]  }
 0x353   : > { %13533 = vmatprep.subr.bf16.mxu0 %v15635_v40  ;;  %v15714_v40 = vld [vmem:[%s18270_s5 + $0x13a4] ss:$8 sps:$4 sm:$0xff]  }
 0x355   : > { %13001 = vmatpush1.bf16.msra.mxu1 %v15630_v41  ;;  %v15709_v41 = vld [vmem:[%s18270_s5 + $0x6a0] ss:$8 sps:$4 sm:$0xff]  }
 0x356   : > { %13534 = vmatpush1.bf16.msra.mxu0 %v15633_v42  ;;  %13002 = vmatprep.subr.bf16.mxu1 %v15638_v43  ;;  %v15712_v42 = vld [vmem:[%s18270_s5 + $0x13a0] ss:$8 sps:$4 sm:$0xff]   ;;  %v15717_v43 = vld [vmem:[%s18270_s5 + $0x6b4] ss:$8 sps:$4 sm:$0xff]  }
 0x357   : > { %13535 = vmatprep.subr.bf16.mxu0 %v15641_v44  ;;  %v15720_v44 = vld [vmem:[%s18270_s5 + $0x13b4] ss:$8 sps:$4 sm:$0xff]  }
 0x359   : > { %13003 = vmatpush1.bf16.msra.mxu1 %v15636_v48  ;;  %v15718_v48 = vld [vmem:[%s18270_s5 + $0x13b0] ss:$8 sps:$4 sm:$0xff]  }
 0x35a   : > { %13536 = vmatpush1.bf16.msra.mxu0 %v15639_v49  ;;  %13004 = vmatprep.subr.bf16.mxu1 %v15644_v50  ;;  %v15723_v49 = vld [vmem:[%s18270_s5 + $0x6c4] ss:$8 sps:$4 sm:$0xff]  }
 0x35b   : > { %13537 = vmatprep.subr.bf16.mxu0 %v15647_v51  ;;  %v15726_v50 = vld [vmem:[%s18270_s5 + $0x13c4] ss:$8 sps:$4 sm:$0xff]   ;;  %v15721_v51 = vld [vmem:[%s18270_s5 + $0x6c0] ss:$8 sps:$4 sm:$0xff]  }
 0x35d   : > { %13005 = vmatpush1.bf16.msra.mxu1 %v15642_v33  ;;  %v15724_v33 = vld [vmem:[%s18270_s5 + $0x13c0] ss:$8 sps:$4 sm:$0xff]  }
 0x35e   : > { %13538 = vmatpush1.bf16.msra.mxu0 %v15645_v9  ;;  %13015 = vmatprep.subr.bf16.mxu1 %v15651_v53  ;;  %v15729_v9 = vld [vmem:[%s18270_s5 + $0x6d4] ss:$8 sps:$4 sm:$0xff]  }
 0x35f   : > { %13548 = vmatprep.subr.bf16.mxu0 %v15654_v54  ;;  %v15732_v53 = vld [vmem:[%s18270_s5 + $0x13d4] ss:$8 sps:$4 sm:$0xff]   ;;  %v15727_v54 = vld [vmem:[%s18270_s5 + $0x6d0] ss:$8 sps:$4 sm:$0xff]  }
 0x360   : > { %13007 = vmatmul.mubr.bf16.vlgmr.msra.gmra.mrb[0].mxu1 %v7540_v57  ;;  %v15738_v57 = vld [vmem:[%s18270_s5 + $0x13e4] ss:$8 sps:$4 sm:$0xff]  }
 0x361   : > { %13540 = vmatmul.mubr.bf16.vlgmr.msra.gmra.mrb[0].mxu0 %v7566_v58  ;;  %13016 = vmatpush1.bf16.msra.mxu1 %v15649_v59  ;;  %v18846_v58 = vld [vmem:[%s18258_s26 + $0x50] sm:$0xff]  ;;  %v7298_v59 = vcombine.high %v18762_v45, %v18762_v45 }
 0x362   : > { %13549 = vmatpush1.bf16.msra.mxu0 %v15652_v61  ;;  %13017 = vmatprep.subr.bf16.mxu1 %v15657_v62  ;;  %v15733_v61 = vld [vmem:[%s18270_s5 + $0x6e0] ss:$8 sps:$4 sm:$0xff]   ;;  %v15739_v45 = vld [vmem:[%s18270_s5 + $0x6f0] ss:$8 sps:$4 sm:$0xff]  }
 0x363   : > { %13550 = vmatprep.subr.bf16.mxu0 %v15660_v63  ;;  %13047 = vmatprep.mubr.bf16.mxu1 %v7543_v0  ;;  %v15736_v62 = vld [vmem:[%s18270_s5 + $0x13e0] ss:$8 sps:$4 sm:$0xff]   ;;  %v15741_v63 = vld [vmem:[%s18270_s5 + $0x6f4] ss:$8 sps:$4 sm:$0xff]  }
 0x364   : > { %13580 = vmatprep.mubr.bf16.mxu0 %v7569_v1  ;;  %v15744_v0 = vld [vmem:[%s18270_s5 + $0x13f4] ss:$8 sps:$4 sm:$0xff]   ;;  %v18855_v1 = vrot.slane %v7298_v59, %v18321_v18  ;;  %v15812_v59 = vld [vmem:[%s18270_s5 + $0x7b0] ss:$8 sps:$4 sm:$0xff]  }
 0x365   : > { %13018 = vmatpush1.bf16.msra.mxu1 %v15655_v39  ;;  %v18859_v39 = vrot.slane %v18846_v58, %v18321_v18 }
 0x366   : > { %13551 = vmatpush1.bf16.msra.mxu0 %v15658_v11  ;;  %13019 = vmatprep.subr.bf16.mxu1 %v15663_v2  ;;  %v15742_v11 = vld [vmem:[%s18270_s5 + $0x13f0] ss:$8 sps:$4 sm:$0xff]   ;;  %v15747_v2 = vld [vmem:[%s18270_s5 + $0x704] ss:$8 sps:$4 sm:$0xff]  }
 0x367   : > { %13552 = vmatprep.subr.bf16.mxu0 %v15666_v3  ;;  %v15751_v3 = vld [vmem:[%s18270_s5 + $0x1404] ss:$8 sps:$4 sm:$0xff]  }
 0x369   : > { %13020 = vmatpush1.bf16.msra.mxu1 %v15661_v4  ;;  %v7314_v4 = vcombine.high %v18855_v1, %v18855_v1 }
 0x36a   : > { %13553 = vmatpush1.bf16.msra.mxu0 %v15664_v5  ;;  %13021 = vmatprep.subr.bf16.mxu1 %v15669_v7  ;;  %v7432_v5 = vcombine.high %v18859_v39, %v18859_v39  ;;  %v7542_v7 = vpack.c.bf16 %v18772_v52, %v18772_v52  ;;  %v15752_v52 = vld [vmem:[%s18270_s5 + $0x710] ss:$8 sps:$4 sm:$0xff]  }
 0x36b   : > { %13554 = vmatprep.subr.bf16.mxu0 %v15672_v47  ;;  %v7568_v47 = vpack.c.bf16 %v18775_v27, %v18775_v27  ;;  %v15755_v27 = vld [vmem:[%s18270_s5 + $0x1410] ss:$8 sps:$4 sm:$0xff]  }
 0x36d   : > { %13022 = vmatpush1.bf16.msra.mxu1 %v15667_v10  ;;  %v15745_v10 = vld [vmem:[%s18270_s5 + $0x700] ss:$8 sps:$4 sm:$0xff]  }
 0x36e   : > { %13555 = vmatpush1.bf16.msra.mxu0 %v15670_v8  ;;  %13023 = vmatprep.subr.bf16.mxu1 %v15675_v14  ;;  %v15749_v8 = vld [vmem:[%s18270_s5 + $0x1400] ss:$8 sps:$4 sm:$0xff]   ;;  %v15754_v14 = vld [vmem:[%s18270_s5 + $0x714] ss:$8 sps:$4 sm:$0xff]  }
 0x36f   : > { %13556 = vmatprep.subr.bf16.mxu0 %v15678_v15  ;;  %v15757_v15 = vld [vmem:[%s18270_s5 + $0x1414] ss:$8 sps:$4 sm:$0xff]  }
 0x371   : > { %13024 = vmatpush1.bf16.msra.mxu1 %v15673_v16  ;;  %v7545_v16 = vpack.c.bf16 %v7314_v4, %v7314_v4  ;;  %v15827_v4 = vld [vmem:[%s18270_s5 + $0x14d0] ss:$8 sps:$4 sm:$0xff]  }
 0x372   : > { %13557 = vmatpush1.bf16.msra.mxu0 %v15676_v17  ;;  %13025 = vmatprep.subr.bf16.mxu1 %v15681_v19  ;;  %v7571_v17 = vpack.c.bf16 %v7432_v5, %v7432_v5  ;;  %v15760_v19 = vld [vmem:[%s18270_s5 + $0x724] ss:$8 sps:$4 sm:$0xff]  }
 0x373   : > { %13558 = vmatprep.subr.bf16.mxu0 %v15684_v20  ;;  %v15763_v20 = vld [vmem:[%s18270_s5 + $0x1424] ss:$8 sps:$4 sm:$0xff]  }
 0x374   : > { %v15832_v5 = vld [vmem:[%s18270_s5 + $0x7e4] ss:$8 sps:$4 sm:$0xff]  }
 0x375   : > { %13026 = vmatpush1.bf16.msra.mxu1 %v15679_v21  ;;  %v15758_v21 = vld [vmem:[%s18270_s5 + $0x720] ss:$8 sps:$4 sm:$0xff]  }
 0x376   : > { %13559 = vmatpush1.bf16.msra.mxu0 %v15682_v23  ;;  %13027 = vmatprep.subr.bf16.mxu1 %v15687_v24  ;;  %v15761_v23 = vld [vmem:[%s18270_s5 + $0x1420] ss:$8 sps:$4 sm:$0xff]   ;;  %v15766_v24 = vld [vmem:[%s18270_s5 + $0x734] ss:$8 sps:$4 sm:$0xff]  }
 0x377   : > { %13560 = vmatprep.subr.bf16.mxu0 %v15690_v25  ;;  %v15769_v25 = vld [vmem:[%s18270_s5 + $0x1434] ss:$8 sps:$4 sm:$0xff]  }
 0x379   : > { %13028 = vmatpush1.bf16.msra.mxu1 %v15685_v26  ;;  %v15764_v26 = vld [vmem:[%s18270_s5 + $0x730] ss:$8 sps:$4 sm:$0xff]  }
 0x37a   : > { %13561 = vmatpush1.bf16.msra.mxu0 %v15688_v6  ;;  %13029 = vmatprep.subr.bf16.mxu1 %v15693_v60  ;;  %v15767_v6 = vld [vmem:[%s18270_s5 + $0x1430] ss:$8 sps:$4 sm:$0xff]   ;;  %v15772_v60 = vld [vmem:[%s18270_s5 + $0x744] ss:$8 sps:$4 sm:$0xff]  }
 0x37b   : > { %13562 = vmatprep.subr.bf16.mxu0 %v15696_v28  ;;  %v15775_v28 = vld [vmem:[%s18270_s5 + $0x1444] ss:$8 sps:$4 sm:$0xff]  }
 0x37d   : > { %13030 = vmatpush1.bf16.msra.mxu1 %v15691_v29  ;;  %v15770_v29 = vld [vmem:[%s18270_s5 + $0x740] ss:$8 sps:$4 sm:$0xff]  }
 0x37e   : > { %13563 = vmatpush1.bf16.msra.mxu0 %v15694_v30  ;;  %13031 = vmatprep.subr.bf16.mxu1 %v15699_v31  ;;  %v15773_v30 = vld [vmem:[%s18270_s5 + $0x1440] ss:$8 sps:$4 sm:$0xff]   ;;  %v15778_v31 = vld [vmem:[%s18270_s5 + $0x754] ss:$8 sps:$4 sm:$0xff]  }
 0x37f   : > { %13564 = vmatprep.subr.bf16.mxu0 %v15702_v32  ;;  %v15781_v32 = vld [vmem:[%s18270_s5 + $0x1454] ss:$8 sps:$4 sm:$0xff]  }
 0x381   : > { %13032 = vmatpush1.bf16.msra.mxu1 %v15697_v34  ;;  %v15776_v34 = vld [vmem:[%s18270_s5 + $0x750] ss:$8 sps:$4 sm:$0xff]  }
 0x382   : > { %13565 = vmatpush1.bf16.msra.mxu0 %v15700_v35  ;;  %13033 = vmatprep.subr.bf16.mxu1 %v15705_v36  ;;  %v15779_v35 = vld [vmem:[%s18270_s5 + $0x1450] ss:$8 sps:$4 sm:$0xff]   ;;  %v15784_v36 = vld [vmem:[%s18270_s5 + $0x764] ss:$8 sps:$4 sm:$0xff]  }
 0x383   : > { %13566 = vmatprep.subr.bf16.mxu0 %v15708_v37  ;;  %v15787_v37 = vld [vmem:[%s18270_s5 + $0x1464] ss:$8 sps:$4 sm:$0xff]  }
 0x385   : > { %13034 = vmatpush1.bf16.msra.mxu1 %v15703_v38  ;;  %v15782_v38 = vld [vmem:[%s18270_s5 + $0x760] ss:$8 sps:$4 sm:$0xff]  }
 0x386   : > { %13567 = vmatpush1.bf16.msra.mxu0 %v15706_v22  ;;  %13035 = vmatprep.subr.bf16.mxu1 %v15711_v13  ;;  %v15785_v22 = vld [vmem:[%s18270_s5 + $0x1460] ss:$8 sps:$4 sm:$0xff]   ;;  %v15790_v13 = vld [vmem:[%s18270_s5 + $0x774] ss:$8 sps:$4 sm:$0xff]  }
 0x387   : > { %13568 = vmatprep.subr.bf16.mxu0 %v15714_v40  ;;  %v15793_v40 = vld [vmem:[%s18270_s5 + $0x1474] ss:$8 sps:$4 sm:$0xff]  }
 0x389   : > { %13036 = vmatpush1.bf16.msra.mxu1 %v15709_v41  ;;  %v15788_v41 = vld [vmem:[%s18270_s5 + $0x770] ss:$8 sps:$4 sm:$0xff]  }
 0x38a   : > { %13569 = vmatpush1.bf16.msra.mxu0 %v15712_v42  ;;  %13037 = vmatprep.subr.bf16.mxu1 %v15717_v43  ;;  %v15791_v42 = vld [vmem:[%s18270_s5 + $0x1470] ss:$8 sps:$4 sm:$0xff]   ;;  %v15796_v43 = vld [vmem:[%s18270_s5 + $0x784] ss:$8 sps:$4 sm:$0xff]  }
 0x38b   : > { %13570 = vmatprep.subr.bf16.mxu0 %v15720_v44  ;;  %v15799_v44 = vld [vmem:[%s18270_s5 + $0x1484] ss:$8 sps:$4 sm:$0xff]  }
 0x38d   : > { %13038 = vmatpush1.bf16.msra.mxu1 %v15715_v46  ;;  %v15794_v46 = vld [vmem:[%s18270_s5 + $0x780] ss:$8 sps:$4 sm:$0xff]  }
 0x38e   : > { %13571 = vmatpush1.bf16.msra.mxu0 %v15718_v48  ;;  %13039 = vmatprep.subr.bf16.mxu1 %v15723_v49  ;;  %v15797_v48 = vld [vmem:[%s18270_s5 + $0x1480] ss:$8 sps:$4 sm:$0xff]   ;;  %v15802_v49 = vld [vmem:[%s18270_s5 + $0x794] ss:$8 sps:$4 sm:$0xff]  }
 0x38f   : > { %13572 = vmatprep.subr.bf16.mxu0 %v15726_v50  ;;  %v15805_v50 = vld [vmem:[%s18270_s5 + $0x1494] ss:$8 sps:$4 sm:$0xff]  }
 0x391   : > { %13040 = vmatpush1.bf16.msra.mxu1 %v15721_v51  ;;  %v15800_v51 = vld [vmem:[%s18270_s5 + $0x790] ss:$8 sps:$4 sm:$0xff]  }
 0x392   : > { %13573 = vmatpush1.bf16.msra.mxu0 %v15724_v33  ;;  %13041 = vmatprep.subr.bf16.mxu1 %v15729_v9  ;;  %v15803_v33 = vld [vmem:[%s18270_s5 + $0x1490] ss:$8 sps:$4 sm:$0xff]   ;;  %v15808_v9 = vld [vmem:[%s18270_s5 + $0x7a4] ss:$8 sps:$4 sm:$0xff]  }
 0x393   : > { %13574 = vmatprep.subr.bf16.mxu0 %v15732_v53  ;;  %v15811_v53 = vld [vmem:[%s18270_s5 + $0x14a4] ss:$8 sps:$4 sm:$0xff]  }
 0x395   : > { %13042 = vmatpush1.bf16.msra.mxu1 %v15727_v54  ;;  %v15806_v54 = vld [vmem:[%s18270_s5 + $0x7a0] ss:$8 sps:$4 sm:$0xff]  }
 0x396   : > { %13575 = vmatpush1.bf16.msra.mxu0 %v15730_v55  ;;  %13043 = vmatprep.subr.bf16.mxu1 %v15735_v56  ;;  %v15809_v55 = vld [vmem:[%s18270_s5 + $0x14a0] ss:$8 sps:$4 sm:$0xff]   ;;  %v15814_v56 = vld [vmem:[%s18270_s5 + $0x7b4] ss:$8 sps:$4 sm:$0xff]  }
 0x397   : > { %13576 = vmatprep.subr.bf16.mxu0 %v15738_v57  ;;  %v15817_v57 = vld [vmem:[%s18270_s5 + $0x14b4] ss:$8 sps:$4 sm:$0xff]  }
 0x399   : > { %13044 = vmatpush1.bf16.msra.mxu1 %v15733_v61  ;;  %v15815_v61 = vld [vmem:[%s18270_s5 + $0x14b0] ss:$8 sps:$4 sm:$0xff]  }
 0x39a   : > { %13577 = vmatpush1.bf16.msra.mxu0 %v15736_v62  ;;  %13045 = vmatprep.subr.bf16.mxu1 %v15741_v63  ;;  %v15820_v62 = vld [vmem:[%s18270_s5 + $0x7c4] ss:$8 sps:$4 sm:$0xff]  }
 0x39b   : > { %13578 = vmatprep.subr.bf16.mxu0 %v15744_v0  ;;  %v15823_v63 = vld [vmem:[%s18270_s5 + $0x14c4] ss:$8 sps:$4 sm:$0xff]   ;;  %v15818_v0 = vld [vmem:[%s18270_s5 + $0x7c0] ss:$8 sps:$4 sm:$0xff]  }
 0x39d   : > { %13046 = vmatpush1.bf16.msra.mxu1 %v15739_v45  ;;  %v15821_v45 = vld [vmem:[%s18270_s5 + $0x14c0] ss:$8 sps:$4 sm:$0xff]  }
 0x39e   : > { %13579 = vmatpush1.bf16.msra.mxu0 %v15742_v11  ;;  %13056 = vmatprep.subr.bf16.mxu1 %v15747_v2  ;;  %v15826_v11 = vld [vmem:[%s18270_s5 + $0x7d4] ss:$8 sps:$4 sm:$0xff]  }
 0x39f   : > { %13589 = vmatprep.subr.bf16.mxu0 %v15751_v3  ;;  %v15829_v2 = vld [vmem:[%s18270_s5 + $0x14d4] ss:$8 sps:$4 sm:$0xff]   ;;  %v15824_v3 = vld [vmem:[%s18270_s5 + $0x7d0] ss:$8 sps:$4 sm:$0xff]  }
 0x3a0   : > { %13048 = vmatmul.mubr.bf16.vlgmr.msra.gmra.mrb[0].mxu1 %v7542_v7  ;;  %v15835_v7 = vld [vmem:[%s18270_s5 + $0x14e4] ss:$8 sps:$4 sm:$0xff]  }
 0x3a1   : > { %13581 = vmatmul.mubr.bf16.vlgmr.msra.gmra.mrb[0].mxu0 %v7568_v47  ;;  %13057 = vmatpush1.bf16.msra.mxu1 %v15745_v10  ;;  %v7417_v47 = vcombine.high %v18846_v58, %v18846_v58  ;;  %v18932_v10 = vld [vmem:[%s18258_s26 + $0x20] sm:$0xff]  ;;  %v15836_v58 = vld [vmem:[%s18270_s5 + $0x7f0] ss:$8 sps:$4 sm:$0xff]  }
 0x3a2   : > { %13590 = vmatpush1.bf16.msra.mxu0 %v15749_v8  ;;  %13058 = vmatprep.subr.bf16.mxu1 %v15754_v14  ;;  %v15830_v8 = vld [vmem:[%s18270_s5 + $0x7e0] ss:$8 sps:$4 sm:$0xff]  }
 0x3a3   : > { %13591 = vmatprep.subr.bf16.mxu0 %v15757_v15  ;;  %13088 = vmatprep.mubr.bf16.mxu1 %v7545_v16  ;;  %v15833_v14 = vld [vmem:[%s18270_s5 + $0x14e0] ss:$8 sps:$4 sm:$0xff]   ;;  %v15838_v15 = vld [vmem:[%s18270_s5 + $0x7f4] ss:$8 sps:$4 sm:$0xff]  }
 0x3a4   : > { %13621 = vmatprep.mubr.bf16.mxu0 %v7571_v17  ;;  %v15841_v16 = vld [vmem:[%s18270_s5 + $0x14f4] ss:$8 sps:$4 sm:$0xff]   ;;  %v18940_v17 = vrot.slane %v18932_v10, %v18321_v18 }
 0x3a5   : > { %13059 = vmatpush1.bf16.msra.mxu1 %v15752_v52  ;;  %v18943_v52 = vrot.slane %v7417_v47, %v18321_v18  ;;  %v15909_v47 = vld [vmem:[%s18270_s5 + $0x8b0] ss:$8 sps:$4 sm:$0xff]  }
 0x3a6   : > { %13592 = vmatpush1.bf16.msra.mxu0 %v15755_v27  ;;  %13060 = vmatprep.subr.bf16.mxu1 %v15760_v19  ;;  %v15839_v27 = vld [vmem:[%s18270_s5 + $0x14f0] ss:$8 sps:$4 sm:$0xff]   ;;  %v15845_v19 = vld [vmem:[%s18270_s5 + $0x804] ss:$8 sps:$4 sm:$0xff]  }
 0x3a7   : > { %13593 = vmatprep.subr.bf16.mxu0 %v15763_v20  ;;  %v15848_v20 = vld [vmem:[%s18270_s5 + $0x1504] ss:$8 sps:$4 sm:$0xff]  }
 0x3a9   : > { %13061 = vmatpush1.bf16.msra.mxu1 %v15758_v21  ;;  %v7330_v21 = vcombine.high %v18940_v17, %v18940_v17 }
 0x3aa   : > { %13594 = vmatpush1.bf16.msra.mxu0 %v15761_v23  ;;  %13062 = vmatprep.subr.bf16.mxu1 %v15766_v24  ;;  %v7433_v23 = vcombine.high %v18943_v52, %v18943_v52  ;;  %v7544_v24 = vpack.c.bf16 %v18855_v1, %v18855_v1  ;;  %v15849_v1 = vld [vmem:[%s18270_s5 + $0x810] ss:$8 sps:$4 sm:$0xff]  }
 0x3ab   : > { %13595 = vmatprep.subr.bf16.mxu0 %v15769_v25  ;;  %v7570_v25 = vpack.c.bf16 %v18859_v39, %v18859_v39  ;;  %v15852_v39 = vld [vmem:[%s18270_s5 + $0x1510] ss:$8 sps:$4 sm:$0xff]  }
 0x3ad   : > { %13063 = vmatpush1.bf16.msra.mxu1 %v15764_v26  ;;  %v15843_v26 = vld [vmem:[%s18270_s5 + $0x800] ss:$8 sps:$4 sm:$0xff]  }
 0x3ae   : > { %13596 = vmatpush1.bf16.msra.mxu0 %v15767_v6  ;;  %13064 = vmatprep.subr.bf16.mxu1 %v15772_v60  ;;  %v15846_v6 = vld [vmem:[%s18270_s5 + $0x1500] ss:$8 sps:$4 sm:$0xff]   ;;  %v15851_v60 = vld [vmem:[%s18270_s5 + $0x814] ss:$8 sps:$4 sm:$0xff]  }
 0x3af   : > { %13597 = vmatprep.subr.bf16.mxu0 %v15775_v28  ;;  %v15854_v28 = vld [vmem:[%s18270_s5 + $0x1514] ss:$8 sps:$4 sm:$0xff]  }
 0x3b1   : > { %13065 = vmatpush1.bf16.msra.mxu1 %v15770_v29  ;;  %v7547_v29 = vpack.c.bf16 %v7330_v21, %v7330_v21  ;;  %v15924_v21 = vld [vmem:[%s18270_s5 + $0x15d0] ss:$8 sps:$4 sm:$0xff]  }
 0x3b2   : > { %13598 = vmatpush1.bf16.msra.mxu0 %v15773_v30  ;;  %13066 = vmatprep.subr.bf16.mxu1 %v15778_v31  ;;  %v7573_v30 = vpack.c.bf16 %v7433_v23, %v7433_v23  ;;  %v15857_v31 = vld [vmem:[%s18270_s5 + $0x824] ss:$8 sps:$4 sm:$0xff]  }
 0x3b3   : > { %13599 = vmatprep.subr.bf16.mxu0 %v15781_v32  ;;  %v15860_v32 = vld [vmem:[%s18270_s5 + $0x1524] ss:$8 sps:$4 sm:$0xff]  }
 0x3b4   : > { %v15929_v23 = vld [vmem:[%s18270_s5 + $0x8e4] ss:$8 sps:$4 sm:$0xff]  }
 0x3b5   : > { %13067 = vmatpush1.bf16.msra.mxu1 %v15776_v34  ;;  %v15855_v34 = vld [vmem:[%s18270_s5 + $0x820] ss:$8 sps:$4 sm:$0xff]  }
 0x3b6   : > { %13600 = vmatpush1.bf16.msra.mxu0 %v15779_v35  ;;  %13068 = vmatprep.subr.bf16.mxu1 %v15784_v36  ;;  %v15858_v35 = vld [vmem:[%s18270_s5 + $0x1520] ss:$8 sps:$4 sm:$0xff]   ;;  %v15863_v36 = vld [vmem:[%s18270_s5 + $0x834] ss:$8 sps:$4 sm:$0xff]  }
 0x3b7   : > { %13601 = vmatprep.subr.bf16.mxu0 %v15787_v37  ;;  %v15866_v37 = vld [vmem:[%s18270_s5 + $0x1534] ss:$8 sps:$4 sm:$0xff]  }
 0x3b9   : > { %13069 = vmatpush1.bf16.msra.mxu1 %v15782_v38  ;;  %v15861_v38 = vld [vmem:[%s18270_s5 + $0x830] ss:$8 sps:$4 sm:$0xff]  }
 0x3ba   : > { %13602 = vmatpush1.bf16.msra.mxu0 %v15785_v22  ;;  %13070 = vmatprep.subr.bf16.mxu1 %v15790_v13  ;;  %v15864_v22 = vld [vmem:[%s18270_s5 + $0x1530] ss:$8 sps:$4 sm:$0xff]   ;;  %v15869_v13 = vld [vmem:[%s18270_s5 + $0x844] ss:$8 sps:$4 sm:$0xff]  }
 0x3bb   : > { %13603 = vmatprep.subr.bf16.mxu0 %v15793_v40  ;;  %v15872_v40 = vld [vmem:[%s18270_s5 + $0x1544] ss:$8 sps:$4 sm:$0xff]  }
 0x3bd   : > { %13071 = vmatpush1.bf16.msra.mxu1 %v15788_v41  ;;  %v15867_v41 = vld [vmem:[%s18270_s5 + $0x840] ss:$8 sps:$4 sm:$0xff]  }
 0x3be   : > { %13604 = vmatpush1.bf16.msra.mxu0 %v15791_v42  ;;  %13072 = vmatprep.subr.bf16.mxu1 %v15796_v43  ;;  %v15870_v42 = vld [vmem:[%s18270_s5 + $0x1540] ss:$8 sps:$4 sm:$0xff]   ;;  %v15875_v43 = vld [vmem:[%s18270_s5 + $0x854] ss:$8 sps:$4 sm:$0xff]  }
 0x3bf   : > { %13605 = vmatprep.subr.bf16.mxu0 %v15799_v44  ;;  %v15878_v44 = vld [vmem:[%s18270_s5 + $0x1554] ss:$8 sps:$4 sm:$0xff]  }
 0x3c1   : > { %13073 = vmatpush1.bf16.msra.mxu1 %v15794_v46  ;;  %v15873_v46 = vld [vmem:[%s18270_s5 + $0x850] ss:$8 sps:$4 sm:$0xff]  }
 0x3c2   : > { %13606 = vmatpush1.bf16.msra.mxu0 %v15797_v48  ;;  %13074 = vmatprep.subr.bf16.mxu1 %v15802_v49  ;;  %v15876_v48 = vld [vmem:[%s18270_s5 + $0x1550] ss:$8 sps:$4 sm:$0xff]   ;;  %v15881_v49 = vld [vmem:[%s18270_s5 + $0x864] ss:$8 sps:$4 sm:$0xff]  }
 0x3c3   : > { %13607 = vmatprep.subr.bf16.mxu0 %v15805_v50  ;;  %v15884_v50 = vld [vmem:[%s18270_s5 + $0x1564] ss:$8 sps:$4 sm:$0xff]  }
 0x3c5   : > { %13075 = vmatpush1.bf16.msra.mxu1 %v15800_v51  ;;  %v15879_v51 = vld [vmem:[%s18270_s5 + $0x860] ss:$8 sps:$4 sm:$0xff]  }
 0x3c6   : > { %13608 = vmatpush1.bf16.msra.mxu0 %v15803_v33  ;;  %13076 = vmatprep.subr.bf16.mxu1 %v15808_v9  ;;  %v15882_v33 = vld [vmem:[%s18270_s5 + $0x1560] ss:$8 sps:$4 sm:$0xff]   ;;  %v15887_v9 = vld [vmem:[%s18270_s5 + $0x874] ss:$8 sps:$4 sm:$0xff]  }
 0x3c7   : > { %13609 = vmatprep.subr.bf16.mxu0 %v15811_v53  ;;  %v15890_v53 = vld [vmem:[%s18270_s5 + $0x1574] ss:$8 sps:$4 sm:$0xff]  }
 0x3c9   : > { %13077 = vmatpush1.bf16.msra.mxu1 %v15806_v54  ;;  %v15885_v54 = vld [vmem:[%s18270_s5 + $0x870] ss:$8 sps:$4 sm:$0xff]  }
 0x3ca   : > { %13610 = vmatpush1.bf16.msra.mxu0 %v15809_v55  ;;  %13078 = vmatprep.subr.bf16.mxu1 %v15814_v56  ;;  %v15888_v55 = vld [vmem:[%s18270_s5 + $0x1570] ss:$8 sps:$4 sm:$0xff]   ;;  %v15893_v56 = vld [vmem:[%s18270_s5 + $0x884] ss:$8 sps:$4 sm:$0xff]  }
 0x3cb   : > { %13611 = vmatprep.subr.bf16.mxu0 %v15817_v57  ;;  %v15896_v57 = vld [vmem:[%s18270_s5 + $0x1584] ss:$8 sps:$4 sm:$0xff]  }
 0x3cd   : > { %13079 = vmatpush1.bf16.msra.mxu1 %v15812_v59  ;;  %v15891_v59 = vld [vmem:[%s18270_s5 + $0x880] ss:$8 sps:$4 sm:$0xff]  }
 0x3ce   : > { %13612 = vmatpush1.bf16.msra.mxu0 %v15815_v61  ;;  %13080 = vmatprep.subr.bf16.mxu1 %v15820_v62  ;;  %v15894_v61 = vld [vmem:[%s18270_s5 + $0x1580] ss:$8 sps:$4 sm:$0xff]   ;;  %v15899_v62 = vld [vmem:[%s18270_s5 + $0x894] ss:$8 sps:$4 sm:$0xff]  }
 0x3cf   : > { %13613 = vmatprep.subr.bf16.mxu0 %v15823_v63  ;;  %v15902_v63 = vld [vmem:[%s18270_s5 + $0x1594] ss:$8 sps:$4 sm:$0xff]  }
 0x3d1   : > { %13081 = vmatpush1.bf16.msra.mxu1 %v15818_v0  ;;  %v15897_v0 = vld [vmem:[%s18270_s5 + $0x890] ss:$8 sps:$4 sm:$0xff]  }
 0x3d2   : > { %13614 = vmatpush1.bf16.msra.mxu0 %v15821_v45  ;;  %13082 = vmatprep.subr.bf16.mxu1 %v15826_v11  ;;  %v15900_v45 = vld [vmem:[%s18270_s5 + $0x1590] ss:$8 sps:$4 sm:$0xff]   ;;  %v15905_v11 = vld [vmem:[%s18270_s5 + $0x8a4] ss:$8 sps:$4 sm:$0xff]  }
 0x3d3   : > { %13615 = vmatprep.subr.bf16.mxu0 %v15829_v2  ;;  %v15908_v2 = vld [vmem:[%s18270_s5 + $0x15a4] ss:$8 sps:$4 sm:$0xff]  }
 0x3d5   : > { %13083 = vmatpush1.bf16.msra.mxu1 %v15824_v3  ;;  %v15903_v3 = vld [vmem:[%s18270_s5 + $0x8a0] ss:$8 sps:$4 sm:$0xff]  }
 0x3d6   : > { %13616 = vmatpush1.bf16.msra.mxu0 %v15827_v4  ;;  %13084 = vmatprep.subr.bf16.mxu1 %v15832_v5  ;;  %v15906_v4 = vld [vmem:[%s18270_s5 + $0x15a0] ss:$8 sps:$4 sm:$0xff]   ;;  %v15911_v5 = vld [vmem:[%s18270_s5 + $0x8b4] ss:$8 sps:$4 sm:$0xff]  }
 0x3d7   : > { %13617 = vmatprep.subr.bf16.mxu0 %v15835_v7  ;;  %v15914_v7 = vld [vmem:[%s18270_s5 + $0x15b4] ss:$8 sps:$4 sm:$0xff]  }
 0x3d9   : > { %13085 = vmatpush1.bf16.msra.mxu1 %v15830_v8  ;;  %v15912_v8 = vld [vmem:[%s18270_s5 + $0x15b0] ss:$8 sps:$4 sm:$0xff]  }
 0x3da   : > { %13618 = vmatpush1.bf16.msra.mxu0 %v15833_v14  ;;  %13086 = vmatprep.subr.bf16.mxu1 %v15838_v15  ;;  %v15917_v14 = vld [vmem:[%s18270_s5 + $0x8c4] ss:$8 sps:$4 sm:$0xff]  }
 0x3db   : > { %13619 = vmatprep.subr.bf16.mxu0 %v15841_v16  ;;  %v15920_v15 = vld [vmem:[%s18270_s5 + $0x15c4] ss:$8 sps:$4 sm:$0xff]   ;;  %v15915_v16 = vld [vmem:[%s18270_s5 + $0x8c0] ss:$8 sps:$4 sm:$0xff]  }
 0x3dd   : > { %13087 = vmatpush1.bf16.msra.mxu1 %v15836_v58  ;;  %v15918_v58 = vld [vmem:[%s18270_s5 + $0x15c0] ss:$8 sps:$4 sm:$0xff]  }
 0x3de   : > { %13620 = vmatpush1.bf16.msra.mxu0 %v15839_v27  ;;  %13097 = vmatprep.subr.bf16.mxu1 %v15845_v19  ;;  %v15923_v27 = vld [vmem:[%s18270_s5 + $0x8d4] ss:$8 sps:$4 sm:$0xff]  }
 0x3df   : > { %13630 = vmatprep.subr.bf16.mxu0 %v15848_v20  ;;  %v15926_v19 = vld [vmem:[%s18270_s5 + $0x15d4] ss:$8 sps:$4 sm:$0xff]   ;;  %v15921_v20 = vld [vmem:[%s18270_s5 + $0x8d0] ss:$8 sps:$4 sm:$0xff]  }
 0x3e0   : > { %13089 = vmatmul.mubr.bf16.vlgmr.msra.gmra.mrb[0].mxu1 %v7544_v24  ;;  %v15932_v24 = vld [vmem:[%s18270_s5 + $0x15e4] ss:$8 sps:$4 sm:$0xff]  }
 0x3e1   : > { %13622 = vmatmul.mubr.bf16.vlgmr.msra.gmra.mrb[0].mxu0 %v7570_v25  ;;  %13098 = vmatpush1.bf16.msra.mxu1 %v15843_v26  ;;  %v7315_v25 = vcombine.high %v18932_v10, %v18932_v10  ;;  %v19016_v26 = vld [vmem:[%s18258_s26 + $0x58] sm:$0xff] }
 0x3e2   : > { %13631 = vmatpush1.bf16.msra.mxu0 %v15846_v6  ;;  %13099 = vmatprep.subr.bf16.mxu1 %v15851_v60  ;;  %v15927_v6 = vld [vmem:[%s18270_s5 + $0x8e0] ss:$8 sps:$4 sm:$0xff]   ;;  %v15933_v10 = vld [vmem:[%s18270_s5 + $0x8f0] ss:$8 sps:$4 sm:$0xff]  }
 0x3e3   : > { %13632 = vmatprep.subr.bf16.mxu0 %v15854_v28  ;;  %13129 = vmatprep.mubr.bf16.mxu1 %v7547_v29  ;;  %v15930_v60 = vld [vmem:[%s18270_s5 + $0x15e0] ss:$8 sps:$4 sm:$0xff]   ;;  %v15935_v28 = vld [vmem:[%s18270_s5 + $0x8f4] ss:$8 sps:$4 sm:$0xff]  }
 0x3e4   : > { %13662 = vmatprep.mubr.bf16.mxu0 %v7573_v30  ;;  %v15938_v29 = vld [vmem:[%s18270_s5 + $0x15f4] ss:$8 sps:$4 sm:$0xff]   ;;  %v19023_v30 = vrot.slane %v7315_v25, %v18321_v18  ;;  %v16006_v25 = vld [vmem:[%s18270_s5 + $0x9b0] ss:$8 sps:$4 sm:$0xff]  }
 0x3e5   : > { %13100 = vmatpush1.bf16.msra.mxu1 %v15849_v1  ;;  %v19027_v1 = vrot.slane %v19016_v26, %v18321_v18 }
 0x3e6   : > { %13633 = vmatpush1.bf16.msra.mxu0 %v15852_v39  ;;  %13101 = vmatprep.subr.bf16.mxu1 %v15857_v31  ;;  %v15936_v39 = vld [vmem:[%s18270_s5 + $0x15f0] ss:$8 sps:$4 sm:$0xff]   ;;  %v15941_v31 = vld [vmem:[%s18270_s5 + $0x904] ss:$8 sps:$4 sm:$0xff]  }
 0x3e7   : > { %13634 = vmatprep.subr.bf16.mxu0 %v15860_v32  ;;  %v15945_v32 = vld [vmem:[%s18270_s5 + $0x1604] ss:$8 sps:$4 sm:$0xff]  }
 0x3e9   : > { %13102 = vmatpush1.bf16.msra.mxu1 %v15855_v34  ;;  %v7331_v34 = vcombine.high %v19023_v30, %v19023_v30 }
 0x3ea   : > { %13635 = vmatpush1.bf16.msra.mxu0 %v15858_v35  ;;  %13103 = vmatprep.subr.bf16.mxu1 %v15863_v36  ;;  %v7449_v35 = vcombine.high %v19027_v1, %v19027_v1  ;;  %v7546_v36 = vpack.c.bf16 %v18940_v17, %v18940_v17  ;;  %v15946_v17 = vld [vmem:[%s18270_s5 + $0x910] ss:$8 sps:$4 sm:$0xff]  }
 0x3eb   : > { %13636 = vmatprep.subr.bf16.mxu0 %v15866_v37  ;;  %v7572_v37 = vpack.c.bf16 %v18943_v52, %v18943_v52  ;;  %v15949_v52 = vld [vmem:[%s18270_s5 + $0x1610] ss:$8 sps:$4 sm:$0xff]  }
 0x3ed   : > { %13104 = vmatpush1.bf16.msra.mxu1 %v15861_v38  ;;  %v15939_v38 = vld [vmem:[%s18270_s5 + $0x900] ss:$8 sps:$4 sm:$0xff]  }
 0x3ee   : > { %13637 = vmatpush1.bf16.msra.mxu0 %v15864_v22  ;;  %13105 = vmatprep.subr.bf16.mxu1 %v15869_v13  ;;  %v15943_v22 = vld [vmem:[%s18270_s5 + $0x1600] ss:$8 sps:$4 sm:$0xff]   ;;  %v15948_v13 = vld [vmem:[%s18270_s5 + $0x914] ss:$8 sps:$4 sm:$0xff]  }
 0x3ef   : > { %13638 = vmatprep.subr.bf16.mxu0 %v15872_v40  ;;  %v15951_v40 = vld [vmem:[%s18270_s5 + $0x1614] ss:$8 sps:$4 sm:$0xff]  }
 0x3f1   : > { %13106 = vmatpush1.bf16.msra.mxu1 %v15867_v41  ;;  %v7549_v41 = vpack.c.bf16 %v7331_v34, %v7331_v34  ;;  %v16021_v34 = vld [vmem:[%s18270_s5 + $0x16d0] ss:$8 sps:$4 sm:$0xff]  }
 0x3f2   : > { %13639 = vmatpush1.bf16.msra.mxu0 %v15870_v42  ;;  %13107 = vmatprep.subr.bf16.mxu1 %v15875_v43  ;;  %v7575_v42 = vpack.c.bf16 %v7449_v35, %v7449_v35  ;;  %v15954_v43 = vld [vmem:[%s18270_s5 + $0x924] ss:$8 sps:$4 sm:$0xff]  }
 0x3f3   : > { %13640 = vmatprep.subr.bf16.mxu0 %v15878_v44  ;;  %v15957_v44 = vld [vmem:[%s18270_s5 + $0x1624] ss:$8 sps:$4 sm:$0xff]  }
 0x3f4   : > { %v16026_v35 = vld [vmem:[%s18270_s5 + $0x9e4] ss:$8 sps:$4 sm:$0xff]  }
 0x3f5   : > { %13108 = vmatpush1.bf16.msra.mxu1 %v15873_v46  ;;  %v15952_v46 = vld [vmem:[%s18270_s5 + $0x920] ss:$8 sps:$4 sm:$0xff]  }
 0x3f6   : > { %13641 = vmatpush1.bf16.msra.mxu0 %v15876_v48  ;;  %13109 = vmatprep.subr.bf16.mxu1 %v15881_v49  ;;  %v15955_v48 = vld [vmem:[%s18270_s5 + $0x1620] ss:$8 sps:$4 sm:$0xff]   ;;  %v15960_v49 = vld [vmem:[%s18270_s5 + $0x934] ss:$8 sps:$4 sm:$0xff]  }
 0x3f7   : > { %13642 = vmatprep.subr.bf16.mxu0 %v15884_v50  ;;  %v15963_v50 = vld [vmem:[%s18270_s5 + $0x1634] ss:$8 sps:$4 sm:$0xff]  }
 0x3f9   : > { %13110 = vmatpush1.bf16.msra.mxu1 %v15879_v51  ;;  %v15958_v51 = vld [vmem:[%s18270_s5 + $0x930] ss:$8 sps:$4 sm:$0xff]  }
 0x3fa   : > { %13643 = vmatpush1.bf16.msra.mxu0 %v15882_v33  ;;  %13111 = vmatprep.subr.bf16.mxu1 %v15887_v9  ;;  %v15961_v33 = vld [vmem:[%s18270_s5 + $0x1630] ss:$8 sps:$4 sm:$0xff]   ;;  %v15966_v9 = vld [vmem:[%s18270_s5 + $0x944] ss:$8 sps:$4 sm:$0xff]  }
 0x3fb   : > { %13644 = vmatprep.subr.bf16.mxu0 %v15890_v53  ;;  %v15969_v53 = vld [vmem:[%s18270_s5 + $0x1644] ss:$8 sps:$4 sm:$0xff]  }
 0x3fd   : > { %13112 = vmatpush1.bf16.msra.mxu1 %v15885_v54  ;;  %v15964_v54 = vld [vmem:[%s18270_s5 + $0x940] ss:$8 sps:$4 sm:$0xff]  }
 0x3fe   : > { %13645 = vmatpush1.bf16.msra.mxu0 %v15888_v55  ;;  %13113 = vmatprep.subr.bf16.mxu1 %v15893_v56  ;;  %v15967_v55 = vld [vmem:[%s18270_s5 + $0x1640] ss:$8 sps:$4 sm:$0xff]   ;;  %v15972_v56 = vld [vmem:[%s18270_s5 + $0x954] ss:$8 sps:$4 sm:$0xff]  }
 0x3ff   : > { %13646 = vmatprep.subr.bf16.mxu0 %v15896_v57  ;;  %v15975_v57 = vld [vmem:[%s18270_s5 + $0x1654] ss:$8 sps:$4 sm:$0xff]  }
 0x401   : > { %13114 = vmatpush1.bf16.msra.mxu1 %v15891_v59  ;;  %v15970_v59 = vld [vmem:[%s18270_s5 + $0x950] ss:$8 sps:$4 sm:$0xff]  }
 0x402   : > { %13647 = vmatpush1.bf16.msra.mxu0 %v15894_v61  ;;  %13115 = vmatprep.subr.bf16.mxu1 %v15899_v62  ;;  %v15973_v61 = vld [vmem:[%s18270_s5 + $0x1650] ss:$8 sps:$4 sm:$0xff]   ;;  %v15978_v62 = vld [vmem:[%s18270_s5 + $0x964] ss:$8 sps:$4 sm:$0xff]  }
 0x403   : > { %13648 = vmatprep.subr.bf16.mxu0 %v15902_v63  ;;  %v15981_v63 = vld [vmem:[%s18270_s5 + $0x1664] ss:$8 sps:$4 sm:$0xff]  }
 0x405   : > { %13116 = vmatpush1.bf16.msra.mxu1 %v15897_v0  ;;  %v15976_v0 = vld [vmem:[%s18270_s5 + $0x960] ss:$8 sps:$4 sm:$0xff]  }
 0x406   : > { %13649 = vmatpush1.bf16.msra.mxu0 %v15900_v45  ;;  %13117 = vmatprep.subr.bf16.mxu1 %v15905_v11  ;;  %v15979_v45 = vld [vmem:[%s18270_s5 + $0x1660] ss:$8 sps:$4 sm:$0xff]   ;;  %v15984_v11 = vld [vmem:[%s18270_s5 + $0x974] ss:$8 sps:$4 sm:$0xff]  }
 0x407   : > { %13650 = vmatprep.subr.bf16.mxu0 %v15908_v2  ;;  %v15987_v2 = vld [vmem:[%s18270_s5 + $0x1674] ss:$8 sps:$4 sm:$0xff]  }
 0x409   : > { %13118 = vmatpush1.bf16.msra.mxu1 %v15903_v3  ;;  %v15982_v3 = vld [vmem:[%s18270_s5 + $0x970] ss:$8 sps:$4 sm:$0xff]  }
 0x40a   : > { %13651 = vmatpush1.bf16.msra.mxu0 %v15906_v4  ;;  %13119 = vmatprep.subr.bf16.mxu1 %v15911_v5  ;;  %v15985_v4 = vld [vmem:[%s18270_s5 + $0x1670] ss:$8 sps:$4 sm:$0xff]   ;;  %v15990_v5 = vld [vmem:[%s18270_s5 + $0x984] ss:$8 sps:$4 sm:$0xff]  }
 0x40b   : > { %13652 = vmatprep.subr.bf16.mxu0 %v15914_v7  ;;  %v15993_v7 = vld [vmem:[%s18270_s5 + $0x1684] ss:$8 sps:$4 sm:$0xff]  }
 0x40d   : > { %13120 = vmatpush1.bf16.msra.mxu1 %v15909_v47  ;;  %v15988_v47 = vld [vmem:[%s18270_s5 + $0x980] ss:$8 sps:$4 sm:$0xff]  }
 0x40e   : > { %13653 = vmatpush1.bf16.msra.mxu0 %v15912_v8  ;;  %13121 = vmatprep.subr.bf16.mxu1 %v15917_v14  ;;  %v15991_v8 = vld [vmem:[%s18270_s5 + $0x1680] ss:$8 sps:$4 sm:$0xff]   ;;  %v15996_v14 = vld [vmem:[%s18270_s5 + $0x994] ss:$8 sps:$4 sm:$0xff]  }
 0x40f   : > { %13654 = vmatprep.subr.bf16.mxu0 %v15920_v15  ;;  %v15999_v15 = vld [vmem:[%s18270_s5 + $0x1694] ss:$8 sps:$4 sm:$0xff]  }
 0x411   : > { %13122 = vmatpush1.bf16.msra.mxu1 %v15915_v16  ;;  %v15994_v16 = vld [vmem:[%s18270_s5 + $0x990] ss:$8 sps:$4 sm:$0xff]  }
 0x412   : > { %13655 = vmatpush1.bf16.msra.mxu0 %v15918_v58  ;;  %13123 = vmatprep.subr.bf16.mxu1 %v15923_v27  ;;  %v15997_v58 = vld [vmem:[%s18270_s5 + $0x1690] ss:$8 sps:$4 sm:$0xff]   ;;  %v16002_v27 = vld [vmem:[%s18270_s5 + $0x9a4] ss:$8 sps:$4 sm:$0xff]  }
 0x413   : > { %13656 = vmatprep.subr.bf16.mxu0 %v15926_v19  ;;  %v16005_v19 = vld [vmem:[%s18270_s5 + $0x16a4] ss:$8 sps:$4 sm:$0xff]  }
 0x415   : > { %13124 = vmatpush1.bf16.msra.mxu1 %v15921_v20  ;;  %v16000_v20 = vld [vmem:[%s18270_s5 + $0x9a0] ss:$8 sps:$4 sm:$0xff]  }
 0x416   : > { %13657 = vmatpush1.bf16.msra.mxu0 %v15924_v21  ;;  %13125 = vmatprep.subr.bf16.mxu1 %v15929_v23  ;;  %v16003_v21 = vld [vmem:[%s18270_s5 + $0x16a0] ss:$8 sps:$4 sm:$0xff]   ;;  %v16008_v23 = vld [vmem:[%s18270_s5 + $0x9b4] ss:$8 sps:$4 sm:$0xff]  }
 0x417   : > { %13658 = vmatprep.subr.bf16.mxu0 %v15932_v24  ;;  %v16011_v24 = vld [vmem:[%s18270_s5 + $0x16b4] ss:$8 sps:$4 sm:$0xff]  }
 0x419   : > { %13126 = vmatpush1.bf16.msra.mxu1 %v15927_v6  ;;  %v16009_v6 = vld [vmem:[%s18270_s5 + $0x16b0] ss:$8 sps:$4 sm:$0xff]  }
 0x41a   : > { %13659 = vmatpush1.bf16.msra.mxu0 %v15930_v60  ;;  %13127 = vmatprep.subr.bf16.mxu1 %v15935_v28  ;;  %v16014_v60 = vld [vmem:[%s18270_s5 + $0x9c4] ss:$8 sps:$4 sm:$0xff]  }
 0x41b   : > { %13660 = vmatprep.subr.bf16.mxu0 %v15938_v29  ;;  %v16017_v28 = vld [vmem:[%s18270_s5 + $0x16c4] ss:$8 sps:$4 sm:$0xff]   ;;  %v16012_v29 = vld [vmem:[%s18270_s5 + $0x9c0] ss:$8 sps:$4 sm:$0xff]  }
 0x41d   : > { %13128 = vmatpush1.bf16.msra.mxu1 %v15933_v10  ;;  %v16015_v10 = vld [vmem:[%s18270_s5 + $0x16c0] ss:$8 sps:$4 sm:$0xff]  }
 0x41e   : > { %13661 = vmatpush1.bf16.msra.mxu0 %v15936_v39  ;;  %13138 = vmatprep.subr.bf16.mxu1 %v15941_v31  ;;  %v16020_v39 = vld [vmem:[%s18270_s5 + $0x9d4] ss:$8 sps:$4 sm:$0xff]  }
 0x41f   : > { %13671 = vmatprep.subr.bf16.mxu0 %v15945_v32  ;;  %v16023_v31 = vld [vmem:[%s18270_s5 + $0x16d4] ss:$8 sps:$4 sm:$0xff]   ;;  %v16018_v32 = vld [vmem:[%s18270_s5 + $0x9d0] ss:$8 sps:$4 sm:$0xff]  }
 0x420   : > { %13130 = vmatmul.mubr.bf16.vlgmr.msra.gmra.mrb[0].mxu1 %v7546_v36  ;;  %v16029_v36 = vld [vmem:[%s18270_s5 + $0x16e4] ss:$8 sps:$4 sm:$0xff]  }
 0x421   : > { %13663 = vmatmul.mubr.bf16.vlgmr.msra.gmra.mrb[0].mxu0 %v7572_v37  ;;  %13139 = vmatpush1.bf16.msra.mxu1 %v15939_v38  ;;  %v7434_v37 = vcombine.high %v19016_v26, %v19016_v26  ;;  %v19100_v38 = vld [vmem:[%s18258_s26 + $0x28] sm:$0xff]  ;;  %v16030_v26 = vld [vmem:[%s18270_s5 + $0x9f0] ss:$8 sps:$4 sm:$0xff]  }
 0x422   : > { %13672 = vmatpush1.bf16.msra.mxu0 %v15943_v22  ;;  %13140 = vmatprep.subr.bf16.mxu1 %v15948_v13  ;;  %v16024_v22 = vld [vmem:[%s18270_s5 + $0x9e0] ss:$8 sps:$4 sm:$0xff]  }
 0x423   : > { %13673 = vmatprep.subr.bf16.mxu0 %v15951_v40  ;;  %13170 = vmatprep.mubr.bf16.mxu1 %v7549_v41  ;;  %v16027_v13 = vld [vmem:[%s18270_s5 + $0x16e0] ss:$8 sps:$4 sm:$0xff]   ;;  %v16032_v40 = vld [vmem:[%s18270_s5 + $0x9f4] ss:$8 sps:$4 sm:$0xff]  }
 0x424   : > { %13703 = vmatprep.mubr.bf16.mxu0 %v7575_v42  ;;  %v16035_v41 = vld [vmem:[%s18270_s5 + $0x16f4] ss:$8 sps:$4 sm:$0xff]   ;;  %v19108_v42 = vrot.slane %v19100_v38, %v18321_v18 }
 0x425   : > { %13141 = vmatpush1.bf16.msra.mxu1 %v15946_v17  ;;  %v19111_v17 = vrot.slane %v7434_v37, %v18321_v18  ;;  %v16103_v37 = vld [vmem:[%s18270_s5 + $0xab0] ss:$8 sps:$4 sm:$0xff]  }
 0x426   : > { %13674 = vmatpush1.bf16.msra.mxu0 %v15949_v52  ;;  %13142 = vmatprep.subr.bf16.mxu1 %v15954_v43  ;;  %v16033_v52 = vld [vmem:[%s18270_s5 + $0x16f0] ss:$8 sps:$4 sm:$0xff]   ;;  %v16039_v43 = vld [vmem:[%s18270_s5 + $0xa04] ss:$8 sps:$4 sm:$0xff]  }
 0x427   : > { %13675 = vmatprep.subr.bf16.mxu0 %v15957_v44  ;;  %v16042_v44 = vld [vmem:[%s18270_s5 + $0x1704] ss:$8 sps:$4 sm:$0xff]  }
 0x429   : > { %13143 = vmatpush1.bf16.msra.mxu1 %v15952_v46  ;;  %v7347_v46 = vcombine.high %v19108_v42, %v19108_v42 }
 0x42a   : > { %13676 = vmatpush1.bf16.msra.mxu0 %v15955_v48  ;;  %13144 = vmatprep.subr.bf16.mxu1 %v15960_v49  ;;  %v7450_v48 = vcombine.high %v19111_v17, %v19111_v17  ;;  %v7548_v49 = vpack.c.bf16 %v19023_v30, %v19023_v30  ;;  %v16043_v30 = vld [vmem:[%s18270_s5 + $0xa10] ss:$8 sps:$4 sm:$0xff]  }
 0x42b   : > { %13677 = vmatprep.subr.bf16.mxu0 %v15963_v50  ;;  %v7574_v50 = vpack.c.bf16 %v19027_v1, %v19027_v1  ;;  %v16046_v1 = vld [vmem:[%s18270_s5 + $0x1710] ss:$8 sps:$4 sm:$0xff]  }
 0x42d   : > { %13145 = vmatpush1.bf16.msra.mxu1 %v15958_v51  ;;  %v16037_v51 = vld [vmem:[%s18270_s5 + $0xa00] ss:$8 sps:$4 sm:$0xff]  }
 0x42e   : > { %13678 = vmatpush1.bf16.msra.mxu0 %v15961_v33  ;;  %13146 = vmatprep.subr.bf16.mxu1 %v15966_v9  ;;  %v16040_v33 = vld [vmem:[%s18270_s5 + $0x1700] ss:$8 sps:$4 sm:$0xff]   ;;  %v16045_v9 = vld [vmem:[%s18270_s5 + $0xa14] ss:$8 sps:$4 sm:$0xff]  }
 0x42f   : > { %13679 = vmatprep.subr.bf16.mxu0 %v15969_v53  ;;  %v16048_v53 = vld [vmem:[%s18270_s5 + $0x1714] ss:$8 sps:$4 sm:$0xff]  }
 0x431   : > { %13147 = vmatpush1.bf16.msra.mxu1 %v15964_v54  ;;  %v7551_v54 = vpack.c.bf16 %v7347_v46, %v7347_v46  ;;  %v16118_v46 = vld [vmem:[%s18270_s5 + $0x17d0] ss:$8 sps:$4 sm:$0xff]  }
 0x432   : > { %13680 = vmatpush1.bf16.msra.mxu0 %v15967_v55  ;;  %13148 = vmatprep.subr.bf16.mxu1 %v15972_v56  ;;  %v7577_v55 = vpack.c.bf16 %v7450_v48, %v7450_v48  ;;  %v16051_v56 = vld [vmem:[%s18270_s5 + $0xa24] ss:$8 sps:$4 sm:$0xff]  }
 0x433   : > { %13681 = vmatprep.subr.bf16.mxu0 %v15975_v57  ;;  %v16054_v57 = vld [vmem:[%s18270_s5 + $0x1724] ss:$8 sps:$4 sm:$0xff]  }
 0x434   : > { %v16123_v48 = vld [vmem:[%s18270_s5 + $0xae4] ss:$8 sps:$4 sm:$0xff]  }
 0x435   : > { %13149 = vmatpush1.bf16.msra.mxu1 %v15970_v59  ;;  %v16049_v59 = vld [vmem:[%s18270_s5 + $0xa20] ss:$8 sps:$4 sm:$0xff]  }
 0x436   : > { %13682 = vmatpush1.bf16.msra.mxu0 %v15973_v61  ;;  %13150 = vmatprep.subr.bf16.mxu1 %v15978_v62  ;;  %v16052_v61 = vld [vmem:[%s18270_s5 + $0x1720] ss:$8 sps:$4 sm:$0xff]   ;;  %v16057_v62 = vld [vmem:[%s18270_s5 + $0xa34] ss:$8 sps:$4 sm:$0xff]  }
 0x437   : > { %13683 = vmatprep.subr.bf16.mxu0 %v15981_v63  ;;  %v16060_v63 = vld [vmem:[%s18270_s5 + $0x1734] ss:$8 sps:$4 sm:$0xff]  }
 0x439   : > { %13151 = vmatpush1.bf16.msra.mxu1 %v15976_v0  ;;  %v16055_v0 = vld [vmem:[%s18270_s5 + $0xa30] ss:$8 sps:$4 sm:$0xff]  }
 0x43a   : > { %13684 = vmatpush1.bf16.msra.mxu0 %v15979_v45  ;;  %13152 = vmatprep.subr.bf16.mxu1 %v15984_v11  ;;  %v16058_v45 = vld [vmem:[%s18270_s5 + $0x1730] ss:$8 sps:$4 sm:$0xff]   ;;  %v16063_v11 = vld [vmem:[%s18270_s5 + $0xa44] ss:$8 sps:$4 sm:$0xff]  }
 0x43b   : > { %13685 = vmatprep.subr.bf16.mxu0 %v15987_v2  ;;  %v16066_v2 = vld [vmem:[%s18270_s5 + $0x1744] ss:$8 sps:$4 sm:$0xff]  }
 0x43d   : > { %13153 = vmatpush1.bf16.msra.mxu1 %v15982_v3  ;;  %v16061_v3 = vld [vmem:[%s18270_s5 + $0xa40] ss:$8 sps:$4 sm:$0xff]  }
 0x43e   : > { %13686 = vmatpush1.bf16.msra.mxu0 %v15985_v4  ;;  %13154 = vmatprep.subr.bf16.mxu1 %v15990_v5  ;;  %v16064_v4 = vld [vmem:[%s18270_s5 + $0x1740] ss:$8 sps:$4 sm:$0xff]   ;;  %v16069_v5 = vld [vmem:[%s18270_s5 + $0xa54] ss:$8 sps:$4 sm:$0xff]  }
 0x43f   : > { %13687 = vmatprep.subr.bf16.mxu0 %v15993_v7  ;;  %v16072_v7 = vld [vmem:[%s18270_s5 + $0x1754] ss:$8 sps:$4 sm:$0xff]  }
 0x441   : > { %13155 = vmatpush1.bf16.msra.mxu1 %v15988_v47  ;;  %v16067_v47 = vld [vmem:[%s18270_s5 + $0xa50] ss:$8 sps:$4 sm:$0xff]  }
 0x442   : > { %13688 = vmatpush1.bf16.msra.mxu0 %v15991_v8  ;;  %13156 = vmatprep.subr.bf16.mxu1 %v15996_v14  ;;  %v16070_v8 = vld [vmem:[%s18270_s5 + $0x1750] ss:$8 sps:$4 sm:$0xff]   ;;  %v16075_v14 = vld [vmem:[%s18270_s5 + $0xa64] ss:$8 sps:$4 sm:$0xff]  }
 0x443   : > { %13689 = vmatprep.subr.bf16.mxu0 %v15999_v15  ;;  %v16078_v15 = vld [vmem:[%s18270_s5 + $0x1764] ss:$8 sps:$4 sm:$0xff]  }
 0x445   : > { %13157 = vmatpush1.bf16.msra.mxu1 %v15994_v16  ;;  %v16073_v16 = vld [vmem:[%s18270_s5 + $0xa60] ss:$8 sps:$4 sm:$0xff]  }
 0x446   : > { %13690 = vmatpush1.bf16.msra.mxu0 %v15997_v58  ;;  %13158 = vmatprep.subr.bf16.mxu1 %v16002_v27  ;;  %v16076_v58 = vld [vmem:[%s18270_s5 + $0x1760] ss:$8 sps:$4 sm:$0xff]   ;;  %v16081_v27 = vld [vmem:[%s18270_s5 + $0xa74] ss:$8 sps:$4 sm:$0xff]  }
 0x447   : > { %13691 = vmatprep.subr.bf16.mxu0 %v16005_v19  ;;  %v16084_v19 = vld [vmem:[%s18270_s5 + $0x1774] ss:$8 sps:$4 sm:$0xff]  }
 0x449   : > { %13159 = vmatpush1.bf16.msra.mxu1 %v16000_v20  ;;  %v16079_v20 = vld [vmem:[%s18270_s5 + $0xa70] ss:$8 sps:$4 sm:$0xff]  }
 0x44a   : > { %13692 = vmatpush1.bf16.msra.mxu0 %v16003_v21  ;;  %13160 = vmatprep.subr.bf16.mxu1 %v16008_v23  ;;  %v16082_v21 = vld [vmem:[%s18270_s5 + $0x1770] ss:$8 sps:$4 sm:$0xff]   ;;  %v16087_v23 = vld [vmem:[%s18270_s5 + $0xa84] ss:$8 sps:$4 sm:$0xff]  }
 0x44b   : > { %13693 = vmatprep.subr.bf16.mxu0 %v16011_v24  ;;  %v16090_v24 = vld [vmem:[%s18270_s5 + $0x1784] ss:$8 sps:$4 sm:$0xff]  }
 0x44d   : > { %13161 = vmatpush1.bf16.msra.mxu1 %v16006_v25  ;;  %v16085_v25 = vld [vmem:[%s18270_s5 + $0xa80] ss:$8 sps:$4 sm:$0xff]  }
 0x44e   : > { %13694 = vmatpush1.bf16.msra.mxu0 %v16009_v6  ;;  %13162 = vmatprep.subr.bf16.mxu1 %v16014_v60  ;;  %v16088_v6 = vld [vmem:[%s18270_s5 + $0x1780] ss:$8 sps:$4 sm:$0xff]   ;;  %v16093_v60 = vld [vmem:[%s18270_s5 + $0xa94] ss:$8 sps:$4 sm:$0xff]  }
 0x44f   : > { %13695 = vmatprep.subr.bf16.mxu0 %v16017_v28  ;;  %v16096_v28 = vld [vmem:[%s18270_s5 + $0x1794] ss:$8 sps:$4 sm:$0xff]  }
 0x451   : > { %13163 = vmatpush1.bf16.msra.mxu1 %v16012_v29  ;;  %v16091_v29 = vld [vmem:[%s18270_s5 + $0xa90] ss:$8 sps:$4 sm:$0xff]  }
 0x452   : > { %13696 = vmatpush1.bf16.msra.mxu0 %v16015_v10  ;;  %13164 = vmatprep.subr.bf16.mxu1 %v16020_v39  ;;  %v16094_v10 = vld [vmem:[%s18270_s5 + $0x1790] ss:$8 sps:$4 sm:$0xff]   ;;  %v16099_v39 = vld [vmem:[%s18270_s5 + $0xaa4] ss:$8 sps:$4 sm:$0xff]  }
 0x453   : > { %13697 = vmatprep.subr.bf16.mxu0 %v16023_v31  ;;  %v16102_v31 = vld [vmem:[%s18270_s5 + $0x17a4] ss:$8 sps:$4 sm:$0xff]  }
 0x455   : > { %13165 = vmatpush1.bf16.msra.mxu1 %v16018_v32  ;;  %v16097_v32 = vld [vmem:[%s18270_s5 + $0xaa0] ss:$8 sps:$4 sm:$0xff]  }
 0x456   : > { %13698 = vmatpush1.bf16.msra.mxu0 %v16021_v34  ;;  %13166 = vmatprep.subr.bf16.mxu1 %v16026_v35  ;;  %v16100_v34 = vld [vmem:[%s18270_s5 + $0x17a0] ss:$8 sps:$4 sm:$0xff]   ;;  %v16105_v35 = vld [vmem:[%s18270_s5 + $0xab4] ss:$8 sps:$4 sm:$0xff]  }
 0x457   : > { %13699 = vmatprep.subr.bf16.mxu0 %v16029_v36  ;;  %v16108_v36 = vld [vmem:[%s18270_s5 + $0x17b4] ss:$8 sps:$4 sm:$0xff]  }
 0x459   : > { %13167 = vmatpush1.bf16.msra.mxu1 %v16024_v22  ;;  %v16106_v22 = vld [vmem:[%s18270_s5 + $0x17b0] ss:$8 sps:$4 sm:$0xff]  }
 0x45a   : > { %13700 = vmatpush1.bf16.msra.mxu0 %v16027_v13  ;;  %13168 = vmatprep.subr.bf16.mxu1 %v16032_v40  ;;  %v16111_v13 = vld [vmem:[%s18270_s5 + $0xac4] ss:$8 sps:$4 sm:$0xff]  }
 0x45b   : > { %13701 = vmatprep.subr.bf16.mxu0 %v16035_v41  ;;  %v16114_v40 = vld [vmem:[%s18270_s5 + $0x17c4] ss:$8 sps:$4 sm:$0xff]   ;;  %v16109_v41 = vld [vmem:[%s18270_s5 + $0xac0] ss:$8 sps:$4 sm:$0xff]  }
 0x45d   : > { %13169 = vmatpush1.bf16.msra.mxu1 %v16030_v26  ;;  %v16112_v26 = vld [vmem:[%s18270_s5 + $0x17c0] ss:$8 sps:$4 sm:$0xff]  }
 0x45e   : > { %13702 = vmatpush1.bf16.msra.mxu0 %v16033_v52  ;;  %13179 = vmatprep.subr.bf16.mxu1 %v16039_v43  ;;  %v16117_v52 = vld [vmem:[%s18270_s5 + $0xad4] ss:$8 sps:$4 sm:$0xff]  }
 0x45f   : > { %13712 = vmatprep.subr.bf16.mxu0 %v16042_v44  ;;  %v16120_v43 = vld [vmem:[%s18270_s5 + $0x17d4] ss:$8 sps:$4 sm:$0xff]   ;;  %v16115_v44 = vld [vmem:[%s18270_s5 + $0xad0] ss:$8 sps:$4 sm:$0xff]  }
 0x460   : > { %13171 = vmatmul.mubr.bf16.vlgmr.msra.gmra.mrb[0].mxu1 %v7548_v49  ;;  %v16126_v49 = vld [vmem:[%s18270_s5 + $0x17e4] ss:$8 sps:$4 sm:$0xff]  }
 0x461   : > { %13704 = vmatmul.mubr.bf16.vlgmr.msra.gmra.mrb[0].mxu0 %v7574_v50  ;;  %13180 = vmatpush1.bf16.msra.mxu1 %v16037_v51  ;;  %v7332_v50 = vcombine.high %v19100_v38, %v19100_v38  ;;  %v19184_v51 = vld [vmem:[%s18258_s26 + $0x60] sm:$0xff]  ;;  %v16127_v38 = vld [vmem:[%s18270_s5 + $0xaf0] ss:$8 sps:$4 sm:$0xff]  }
 0x462   : > { %13713 = vmatpush1.bf16.msra.mxu0 %v16040_v33  ;;  %13181 = vmatprep.subr.bf16.mxu1 %v16045_v9  ;;  %v16121_v33 = vld [vmem:[%s18270_s5 + $0xae0] ss:$8 sps:$4 sm:$0xff]  }
 0x463   : > { %13714 = vmatprep.subr.bf16.mxu0 %v16048_v53  ;;  %13211 = vmatprep.mubr.bf16.mxu1 %v7551_v54  ;;  %v16124_v9 = vld [vmem:[%s18270_s5 + $0x17e0] ss:$8 sps:$4 sm:$0xff]   ;;  %v16129_v53 = vld [vmem:[%s18270_s5 + $0xaf4] ss:$8 sps:$4 sm:$0xff]  }
 0x464   : > { %13744 = vmatprep.mubr.bf16.mxu0 %v7577_v55  ;;  %v16132_v54 = vld [vmem:[%s18270_s5 + $0x17f4] ss:$8 sps:$4 sm:$0xff]   ;;  %v19191_v55 = vrot.slane %v7332_v50, %v18321_v18  ;;  %v16200_v50 = vld [vmem:[%s18270_s5 + $0xbb0] ss:$8 sps:$4 sm:$0xff]  }
 0x465   : > { %13182 = vmatpush1.bf16.msra.mxu1 %v16043_v30  ;;  %v19195_v30 = vrot.slane %v19184_v51, %v18321_v18 }
 0x466   : > { %13715 = vmatpush1.bf16.msra.mxu0 %v16046_v1  ;;  %13183 = vmatprep.subr.bf16.mxu1 %v16051_v56  ;;  %v16130_v1 = vld [vmem:[%s18270_s5 + $0x17f0] ss:$8 sps:$4 sm:$0xff]   ;;  %v16135_v56 = vld [vmem:[%s18270_s5 + $0xb04] ss:$8 sps:$4 sm:$0xff]  }
 0x467   : > { %13716 = vmatprep.subr.bf16.mxu0 %v16054_v57  ;;  %v16139_v57 = vld [vmem:[%s18270_s5 + $0x1804] ss:$8 sps:$4 sm:$0xff]  }
 0x469   : > { %13184 = vmatpush1.bf16.msra.mxu1 %v16049_v59  ;;  %v7348_v59 = vcombine.high %v19191_v55, %v19191_v55 }
 0x46a   : > { %13717 = vmatpush1.bf16.msra.mxu0 %v16052_v61  ;;  %13185 = vmatprep.subr.bf16.mxu1 %v16057_v62  ;;  %v7466_v61 = vcombine.high %v19195_v30, %v19195_v30  ;;  %v7550_v62 = vpack.c.bf16 %v19108_v42, %v19108_v42  ;;  %v16140_v42 = vld [vmem:[%s18270_s5 + $0xb10] ss:$8 sps:$4 sm:$0xff]  }
 0x46b   : > { %13718 = vmatprep.subr.bf16.mxu0 %v16060_v63  ;;  %v7576_v63 = vpack.c.bf16 %v19111_v17, %v19111_v17  ;;  %v16143_v17 = vld [vmem:[%s18270_s5 + $0x1810] ss:$8 sps:$4 sm:$0xff]  }
 0x46d   : > { %13186 = vmatpush1.bf16.msra.mxu1 %v16055_v0  ;;  %v16133_v0 = vld [vmem:[%s18270_s5 + $0xb00] ss:$8 sps:$4 sm:$0xff]  }
 0x46e   : > { %13719 = vmatpush1.bf16.msra.mxu0 %v16058_v45  ;;  %13187 = vmatprep.subr.bf16.mxu1 %v16063_v11  ;;  %v16137_v45 = vld [vmem:[%s18270_s5 + $0x1800] ss:$8 sps:$4 sm:$0xff]   ;;  %v16142_v11 = vld [vmem:[%s18270_s5 + $0xb14] ss:$8 sps:$4 sm:$0xff]  }
 0x46f   : > { %13720 = vmatprep.subr.bf16.mxu0 %v16066_v2  ;;  %v16145_v2 = vld [vmem:[%s18270_s5 + $0x1814] ss:$8 sps:$4 sm:$0xff]  }
 0x471   : > { %13188 = vmatpush1.bf16.msra.mxu1 %v16061_v3  ;;  %v7553_v3 = vpack.c.bf16 %v7348_v59, %v7348_v59  ;;  %v16215_v59 = vld [vmem:[%s18270_s5 + $0x18d0] ss:$8 sps:$4 sm:$0xff]  }
 0x472   : > { %13721 = vmatpush1.bf16.msra.mxu0 %v16064_v4  ;;  %13189 = vmatprep.subr.bf16.mxu1 %v16069_v5  ;;  %v7579_v4 = vpack.c.bf16 %v7466_v61, %v7466_v61  ;;  %v16148_v5 = vld [vmem:[%s18270_s5 + $0xb24] ss:$8 sps:$4 sm:$0xff]  }
 0x473   : > { %13722 = vmatprep.subr.bf16.mxu0 %v16072_v7  ;;  %v16151_v7 = vld [vmem:[%s18270_s5 + $0x1824] ss:$8 sps:$4 sm:$0xff]  }
 0x474   : > { %v16220_v61 = vld [vmem:[%s18270_s5 + $0xbe4] ss:$8 sps:$4 sm:$0xff]  }
 0x475   : > { %13190 = vmatpush1.bf16.msra.mxu1 %v16067_v47  ;;  %v16146_v47 = vld [vmem:[%s18270_s5 + $0xb20] ss:$8 sps:$4 sm:$0xff]  }
 0x476   : > { %13723 = vmatpush1.bf16.msra.mxu0 %v16070_v8  ;;  %13191 = vmatprep.subr.bf16.mxu1 %v16075_v14  ;;  %v16149_v8 = vld [vmem:[%s18270_s5 + $0x1820] ss:$8 sps:$4 sm:$0xff]   ;;  %v16154_v14 = vld [vmem:[%s18270_s5 + $0xb34] ss:$8 sps:$4 sm:$0xff]  }
 0x477   : > { %13724 = vmatprep.subr.bf16.mxu0 %v16078_v15  ;;  %v16157_v15 = vld [vmem:[%s18270_s5 + $0x1834] ss:$8 sps:$4 sm:$0xff]  }
 0x479   : > { %13192 = vmatpush1.bf16.msra.mxu1 %v16073_v16  ;;  %v16152_v16 = vld [vmem:[%s18270_s5 + $0xb30] ss:$8 sps:$4 sm:$0xff]  }
 0x47a   : > { %13725 = vmatpush1.bf16.msra.mxu0 %v16076_v58  ;;  %13193 = vmatprep.subr.bf16.mxu1 %v16081_v27  ;;  %v16155_v58 = vld [vmem:[%s18270_s5 + $0x1830] ss:$8 sps:$4 sm:$0xff]   ;;  %v16160_v27 = vld [vmem:[%s18270_s5 + $0xb44] ss:$8 sps:$4 sm:$0xff]  }
 0x47b   : > { %13726 = vmatprep.subr.bf16.mxu0 %v16084_v19  ;;  %v16163_v19 = vld [vmem:[%s18270_s5 + $0x1844] ss:$8 sps:$4 sm:$0xff]  }
 0x47d   : > { %13194 = vmatpush1.bf16.msra.mxu1 %v16079_v20  ;;  %v16158_v20 = vld [vmem:[%s18270_s5 + $0xb40] ss:$8 sps:$4 sm:$0xff]  }
 0x47e   : > { %13727 = vmatpush1.bf16.msra.mxu0 %v16082_v21  ;;  %13195 = vmatprep.subr.bf16.mxu1 %v16087_v23  ;;  %v16161_v21 = vld [vmem:[%s18270_s5 + $0x1840] ss:$8 sps:$4 sm:$0xff]   ;;  %v16166_v23 = vld [vmem:[%s18270_s5 + $0xb54] ss:$8 sps:$4 sm:$0xff]  }
 0x47f   : > { %13728 = vmatprep.subr.bf16.mxu0 %v16090_v24  ;;  %v16169_v24 = vld [vmem:[%s18270_s5 + $0x1854] ss:$8 sps:$4 sm:$0xff]  }
 0x481   : > { %13196 = vmatpush1.bf16.msra.mxu1 %v16085_v25  ;;  %v16164_v25 = vld [vmem:[%s18270_s5 + $0xb50] ss:$8 sps:$4 sm:$0xff]  }
 0x482   : > { %13729 = vmatpush1.bf16.msra.mxu0 %v16088_v6  ;;  %13197 = vmatprep.subr.bf16.mxu1 %v16093_v60  ;;  %v16167_v6 = vld [vmem:[%s18270_s5 + $0x1850] ss:$8 sps:$4 sm:$0xff]   ;;  %v16172_v60 = vld [vmem:[%s18270_s5 + $0xb64] ss:$8 sps:$4 sm:$0xff]  }
 0x483   : > { %13730 = vmatprep.subr.bf16.mxu0 %v16096_v28  ;;  %v16175_v28 = vld [vmem:[%s18270_s5 + $0x1864] ss:$8 sps:$4 sm:$0xff]  }
 0x485   : > { %13198 = vmatpush1.bf16.msra.mxu1 %v16091_v29  ;;  %v16170_v29 = vld [vmem:[%s18270_s5 + $0xb60] ss:$8 sps:$4 sm:$0xff]  }
 0x486   : > { %13731 = vmatpush1.bf16.msra.mxu0 %v16094_v10  ;;  %13199 = vmatprep.subr.bf16.mxu1 %v16099_v39  ;;  %v16173_v10 = vld [vmem:[%s18270_s5 + $0x1860] ss:$8 sps:$4 sm:$0xff]   ;;  %v16178_v39 = vld [vmem:[%s18270_s5 + $0xb74] ss:$8 sps:$4 sm:$0xff]  }
 0x487   : > { %13732 = vmatprep.subr.bf16.mxu0 %v16102_v31  ;;  %v16181_v31 = vld [vmem:[%s18270_s5 + $0x1874] ss:$8 sps:$4 sm:$0xff]  }
 0x489   : > { %13200 = vmatpush1.bf16.msra.mxu1 %v16097_v32  ;;  %v16176_v32 = vld [vmem:[%s18270_s5 + $0xb70] ss:$8 sps:$4 sm:$0xff]  }
 0x48a   : > { %13733 = vmatpush1.bf16.msra.mxu0 %v16100_v34  ;;  %13201 = vmatprep.subr.bf16.mxu1 %v16105_v35  ;;  %v16179_v34 = vld [vmem:[%s18270_s5 + $0x1870] ss:$8 sps:$4 sm:$0xff]   ;;  %v16184_v35 = vld [vmem:[%s18270_s5 + $0xb84] ss:$8 sps:$4 sm:$0xff]  }
 0x48b   : > { %13734 = vmatprep.subr.bf16.mxu0 %v16108_v36  ;;  %v16187_v36 = vld [vmem:[%s18270_s5 + $0x1884] ss:$8 sps:$4 sm:$0xff]  }
 0x48d   : > { %13202 = vmatpush1.bf16.msra.mxu1 %v16103_v37  ;;  %v16182_v37 = vld [vmem:[%s18270_s5 + $0xb80] ss:$8 sps:$4 sm:$0xff]  }
 0x48e   : > { %13735 = vmatpush1.bf16.msra.mxu0 %v16106_v22  ;;  %13203 = vmatprep.subr.bf16.mxu1 %v16111_v13  ;;  %v16185_v22 = vld [vmem:[%s18270_s5 + $0x1880] ss:$8 sps:$4 sm:$0xff]   ;;  %v16190_v13 = vld [vmem:[%s18270_s5 + $0xb94] ss:$8 sps:$4 sm:$0xff]  }
 0x48f   : > { %13736 = vmatprep.subr.bf16.mxu0 %v16114_v40  ;;  %v16193_v40 = vld [vmem:[%s18270_s5 + $0x1894] ss:$8 sps:$4 sm:$0xff]  }
 0x491   : > { %13204 = vmatpush1.bf16.msra.mxu1 %v16109_v41  ;;  %v16188_v41 = vld [vmem:[%s18270_s5 + $0xb90] ss:$8 sps:$4 sm:$0xff]  }
 0x492   : > { %13737 = vmatpush1.bf16.msra.mxu0 %v16112_v26  ;;  %13205 = vmatprep.subr.bf16.mxu1 %v16117_v52  ;;  %v16191_v26 = vld [vmem:[%s18270_s5 + $0x1890] ss:$8 sps:$4 sm:$0xff]   ;;  %v16196_v52 = vld [vmem:[%s18270_s5 + $0xba4] ss:$8 sps:$4 sm:$0xff]  }
 0x493   : > { %13738 = vmatprep.subr.bf16.mxu0 %v16120_v43  ;;  %v16199_v43 = vld [vmem:[%s18270_s5 + $0x18a4] ss:$8 sps:$4 sm:$0xff]  }
 0x495   : > { %13206 = vmatpush1.bf16.msra.mxu1 %v16115_v44  ;;  %v16194_v44 = vld [vmem:[%s18270_s5 + $0xba0] ss:$8 sps:$4 sm:$0xff]  }
 0x496   : > { %13739 = vmatpush1.bf16.msra.mxu0 %v16118_v46  ;;  %13207 = vmatprep.subr.bf16.mxu1 %v16123_v48  ;;  %v16197_v46 = vld [vmem:[%s18270_s5 + $0x18a0] ss:$8 sps:$4 sm:$0xff]   ;;  %v16202_v48 = vld [vmem:[%s18270_s5 + $0xbb4] ss:$8 sps:$4 sm:$0xff]  }
 0x497   : > { %13740 = vmatprep.subr.bf16.mxu0 %v16126_v49  ;;  %v16205_v49 = vld [vmem:[%s18270_s5 + $0x18b4] ss:$8 sps:$4 sm:$0xff]  }
 0x499   : > { %13208 = vmatpush1.bf16.msra.mxu1 %v16121_v33  ;;  %v16203_v33 = vld [vmem:[%s18270_s5 + $0x18b0] ss:$8 sps:$4 sm:$0xff]  }
 0x49a   : > { %13741 = vmatpush1.bf16.msra.mxu0 %v16124_v9  ;;  %13209 = vmatprep.subr.bf16.mxu1 %v16129_v53  ;;  %v16208_v9 = vld [vmem:[%s18270_s5 + $0xbc4] ss:$8 sps:$4 sm:$0xff]  }
 0x49b   : > { %13742 = vmatprep.subr.bf16.mxu0 %v16132_v54  ;;  %v16211_v53 = vld [vmem:[%s18270_s5 + $0x18c4] ss:$8 sps:$4 sm:$0xff]   ;;  %v16206_v54 = vld [vmem:[%s18270_s5 + $0xbc0] ss:$8 sps:$4 sm:$0xff]  }
 0x49d   : > { %13210 = vmatpush1.bf16.msra.mxu1 %v16127_v38  ;;  %v16209_v38 = vld [vmem:[%s18270_s5 + $0x18c0] ss:$8 sps:$4 sm:$0xff]  }
 0x49e   : > { %13743 = vmatpush1.bf16.msra.mxu0 %v16130_v1  ;;  %13220 = vmatprep.subr.bf16.mxu1 %v16135_v56  ;;  %v16214_v1 = vld [vmem:[%s18270_s5 + $0xbd4] ss:$8 sps:$4 sm:$0xff]  }
 0x49f   : > { %13753 = vmatprep.subr.bf16.mxu0 %v16139_v57  ;;  %v16217_v56 = vld [vmem:[%s18270_s5 + $0x18d4] ss:$8 sps:$4 sm:$0xff]   ;;  %v16212_v57 = vld [vmem:[%s18270_s5 + $0xbd0] ss:$8 sps:$4 sm:$0xff]  }
 0x4a0   : > { %13212 = vmatmul.mubr.bf16.vlgmr.msra.gmra.mrb[0].mxu1 %v7550_v62  ;;  %v16223_v62 = vld [vmem:[%s18270_s5 + $0x18e4] ss:$8 sps:$4 sm:$0xff]  }
 0x4a1   : > { %13745 = vmatmul.mubr.bf16.vlgmr.msra.gmra.mrb[0].mxu0 %v7576_v63  ;;  %13221 = vmatpush1.bf16.msra.mxu1 %v16133_v0  ;;  %v7451_v63 = vcombine.high %v19184_v51, %v19184_v51  ;;  %v16218_v0 = vld [vmem:[%s18270_s5 + $0xbe0] ss:$8 sps:$4 sm:$0xff]   ;;  %v16224_v51 = vld [vmem:[%s18270_s5 + $0xbf0] ss:$8 sps:$4 sm:$0xff]  }
 0x4a2   : > { %13754 = vmatpush1.bf16.msra.mxu0 %v16137_v45  ;;  %13222 = vmatprep.subr.bf16.mxu1 %v16142_v11  ;;  %v16221_v45 = vld [vmem:[%s18270_s5 + $0x18e0] ss:$8 sps:$4 sm:$0xff]   ;;  %v16226_v11 = vld [vmem:[%s18270_s5 + $0xbf4] ss:$8 sps:$4 sm:$0xff]  }
 0x4a3   : > { %13755 = vmatprep.subr.bf16.mxu0 %v16145_v2  ;;  %13252 = vmatprep.mubr.bf16.mxu1 %v7553_v3  ;;  %v16229_v2 = vld [vmem:[%s18270_s5 + $0x18f4] ss:$8 sps:$4 sm:$0xff]  }
 0x4a4   : > { %13785 = vmatprep.mubr.bf16.mxu0 %v7579_v4  ;;  %v19272_v3 = vld.sshfl [vmem:[%s18258_s26 + $0x30] sm:$0xff pattern:$0x76325410]  ;;  %v19275_v4 = vrot.slane %v7451_v63, %v18321_v18 }
 0x4a5   : > { %13223 = vmatpush1.bf16.msra.mxu1 %v16140_v42  ;;  %v16227_v42 = vld [vmem:[%s18270_s5 + $0x18f0] ss:$8 sps:$4 sm:$0xff]  }
 0x4a6   : > { %13756 = vmatpush1.bf16.msra.mxu0 %v16143_v17  ;;  %13224 = vmatprep.subr.bf16.mxu1 %v16148_v5  ;;  %v16233_v17 = vld [vmem:[%s18270_s5 + $0xc04] ss:$8 sps:$4 sm:$0xff]   ;;  %v16300_v63 = vld [vmem:[%s18270_s5 + $0x19b0] ss:$8 sps:$4 sm:$0xff]  }
 0x4a7   : > { %13757 = vmatprep.subr.bf16.mxu0 %v16151_v7  ;;  %v16236_v5 = vld [vmem:[%s18270_s5 + $0x1904] ss:$8 sps:$4 sm:$0xff]   ;;  %v7364_v7 = vcombine.high %v19272_v3, %v19272_v3 }
 0x4a9   : > { %13225 = vmatpush1.bf16.msra.mxu1 %v16146_v47  ;;  %v7467_v47 = vcombine.high %v19275_v4, %v19275_v4 }
 0x4aa   : > { %13758 = vmatpush1.bf16.msra.mxu0 %v16149_v8  ;;  %13226 = vmatprep.subr.bf16.mxu1 %v16154_v14  ;;  %v7552_v8 = vpack.c.bf16 %v19191_v55, %v19191_v55  ;;  %v7578_v14 = vpack.c.bf16 %v19195_v30, %v19195_v30  ;;  %v16237_v55 = vld [vmem:[%s18270_s5 + $0xc10] ss:$8 sps:$4 sm:$0xff]  }
 0x4ab   : > { %13759 = vmatprep.subr.bf16.mxu0 %v16157_v15  ;;  %v16231_v15 = vld [vmem:[%s18270_s5 + $0xc00] ss:$8 sps:$4 sm:$0xff]   ;;  %v16240_v30 = vld [vmem:[%s18270_s5 + $0x1910] ss:$8 sps:$4 sm:$0xff]  }
 0x4ad   : > { %13227 = vmatpush1.bf16.msra.mxu1 %v16152_v16  ;;  %v16234_v16 = vld [vmem:[%s18270_s5 + $0x1900] ss:$8 sps:$4 sm:$0xff]  }
 0x4ae   : > { %13760 = vmatpush1.bf16.msra.mxu0 %v16155_v58  ;;  %13228 = vmatprep.subr.bf16.mxu1 %v16160_v27  ;;  %v16239_v58 = vld [vmem:[%s18270_s5 + $0xc14] ss:$8 sps:$4 sm:$0xff]  }
 0x4af   : > { %13761 = vmatprep.subr.bf16.mxu0 %v16163_v19  ;;  %v16242_v27 = vld [vmem:[%s18270_s5 + $0x1914] ss:$8 sps:$4 sm:$0xff]   ;;  %v7555_v19 = vpack.c.bf16 %v7364_v7, %v7364_v7  ;;  %v16317_v7 = vld [vmem:[%s18270_s5 + $0xce4] ss:$8 sps:$4 sm:$0xff]  }
 0x4b1   : > { %13229 = vmatpush1.bf16.msra.mxu1 %v16158_v20  ;;  %v7581_v20 = vpack.c.bf16 %v7467_v47, %v7467_v47  ;;  %v16320_v47 = vld [vmem:[%s18270_s5 + $0x19e4] ss:$8 sps:$4 sm:$0xff]  }
 0x4b2   : > { %13762 = vmatpush1.bf16.msra.mxu0 %v16161_v21  ;;  %13230 = vmatprep.subr.bf16.mxu1 %v16166_v23  ;;  %v16245_v21 = vld [vmem:[%s18270_s5 + $0xc24] ss:$8 sps:$4 sm:$0xff]  }
 0x4b3   : > { %13763 = vmatprep.subr.bf16.mxu0 %v16169_v24  ;;  %v16248_v23 = vld [vmem:[%s18270_s5 + $0x1924] ss:$8 sps:$4 sm:$0xff]   ;;  %v16243_v24 = vld [vmem:[%s18270_s5 + $0xc20] ss:$8 sps:$4 sm:$0xff]  }
 0x4b5   : > { %13231 = vmatpush1.bf16.msra.mxu1 %v16164_v25  ;;  %v16246_v25 = vld [vmem:[%s18270_s5 + $0x1920] ss:$8 sps:$4 sm:$0xff]  }
 0x4b6   : > { %13764 = vmatpush1.bf16.msra.mxu0 %v16167_v6  ;;  %13232 = vmatprep.subr.bf16.mxu1 %v16172_v60  ;;  %v16251_v6 = vld [vmem:[%s18270_s5 + $0xc34] ss:$8 sps:$4 sm:$0xff]  }
 0x4b7   : > { %13765 = vmatprep.subr.bf16.mxu0 %v16175_v28  ;;  %v16254_v60 = vld [vmem:[%s18270_s5 + $0x1934] ss:$8 sps:$4 sm:$0xff]   ;;  %v16249_v28 = vld [vmem:[%s18270_s5 + $0xc30] ss:$8 sps:$4 sm:$0xff]  }
 0x4b9   : > { %13233 = vmatpush1.bf16.msra.mxu1 %v16170_v29  ;;  %v16252_v29 = vld [vmem:[%s18270_s5 + $0x1930] ss:$8 sps:$4 sm:$0xff]  }
 0x4ba   : > { %13766 = vmatpush1.bf16.msra.mxu0 %v16173_v10  ;;  %13234 = vmatprep.subr.bf16.mxu1 %v16178_v39  ;;  %v16257_v10 = vld [vmem:[%s18270_s5 + $0xc44] ss:$8 sps:$4 sm:$0xff]  }
 0x4bb   : > { %13767 = vmatprep.subr.bf16.mxu0 %v16181_v31  ;;  %v16260_v39 = vld [vmem:[%s18270_s5 + $0x1944] ss:$8 sps:$4 sm:$0xff]   ;;  %v16255_v31 = vld [vmem:[%s18270_s5 + $0xc40] ss:$8 sps:$4 sm:$0xff]  }
 0x4bd   : > { %13235 = vmatpush1.bf16.msra.mxu1 %v16176_v32  ;;  %v16258_v32 = vld [vmem:[%s18270_s5 + $0x1940] ss:$8 sps:$4 sm:$0xff]  }
 0x4be   : > { %13768 = vmatpush1.bf16.msra.mxu0 %v16179_v34  ;;  %13236 = vmatprep.subr.bf16.mxu1 %v16184_v35  ;;  %v16263_v34 = vld [vmem:[%s18270_s5 + $0xc54] ss:$8 sps:$4 sm:$0xff]  }
 0x4bf   : > { %13769 = vmatprep.subr.bf16.mxu0 %v16187_v36  ;;  %v16266_v35 = vld [vmem:[%s18270_s5 + $0x1954] ss:$8 sps:$4 sm:$0xff]   ;;  %v16261_v36 = vld [vmem:[%s18270_s5 + $0xc50] ss:$8 sps:$4 sm:$0xff]  }
 0x4c1   : > { %13237 = vmatpush1.bf16.msra.mxu1 %v16182_v37  ;;  %v16264_v37 = vld [vmem:[%s18270_s5 + $0x1950] ss:$8 sps:$4 sm:$0xff]  }
 0x4c2   : > { %13770 = vmatpush1.bf16.msra.mxu0 %v16185_v22  ;;  %13238 = vmatprep.subr.bf16.mxu1 %v16190_v13  ;;  %v16269_v22 = vld [vmem:[%s18270_s5 + $0xc64] ss:$8 sps:$4 sm:$0xff]  }
 0x4c3   : > { %13771 = vmatprep.subr.bf16.mxu0 %v16193_v40  ;;  %v16272_v13 = vld [vmem:[%s18270_s5 + $0x1964] ss:$8 sps:$4 sm:$0xff]   ;;  %v16267_v40 = vld [vmem:[%s18270_s5 + $0xc60] ss:$8 sps:$4 sm:$0xff]  }
 0x4c5   : > { %13239 = vmatpush1.bf16.msra.mxu1 %v16188_v41  ;;  %v16270_v41 = vld [vmem:[%s18270_s5 + $0x1960] ss:$8 sps:$4 sm:$0xff]  }
 0x4c6   : > { %13772 = vmatpush1.bf16.msra.mxu0 %v16191_v26  ;;  %13240 = vmatprep.subr.bf16.mxu1 %v16196_v52  ;;  %v16275_v26 = vld [vmem:[%s18270_s5 + $0xc74] ss:$8 sps:$4 sm:$0xff]  }
 0x4c7   : > { %13773 = vmatprep.subr.bf16.mxu0 %v16199_v43  ;;  %v16278_v52 = vld [vmem:[%s18270_s5 + $0x1974] ss:$8 sps:$4 sm:$0xff]   ;;  %v16273_v43 = vld [vmem:[%s18270_s5 + $0xc70] ss:$8 sps:$4 sm:$0xff]  }
 0x4c9   : > { %13241 = vmatpush1.bf16.msra.mxu1 %v16194_v44  ;;  %v16276_v44 = vld [vmem:[%s18270_s5 + $0x1970] ss:$8 sps:$4 sm:$0xff]  }
 0x4ca   : > { %13774 = vmatpush1.bf16.msra.mxu0 %v16197_v46  ;;  %13242 = vmatprep.subr.bf16.mxu1 %v16202_v48  ;;  %v16281_v46 = vld [vmem:[%s18270_s5 + $0xc84] ss:$8 sps:$4 sm:$0xff]  }
 0x4cb   : > { %13775 = vmatprep.subr.bf16.mxu0 %v16205_v49  ;;  %v16284_v48 = vld [vmem:[%s18270_s5 + $0x1984] ss:$8 sps:$4 sm:$0xff]   ;;  %v16279_v49 = vld [vmem:[%s18270_s5 + $0xc80] ss:$8 sps:$4 sm:$0xff]  }
 0x4cd   : > { %13243 = vmatpush1.bf16.msra.mxu1 %v16200_v50  ;;  %v16282_v50 = vld [vmem:[%s18270_s5 + $0x1980] ss:$8 sps:$4 sm:$0xff]  }
 0x4ce   : > { %13776 = vmatpush1.bf16.msra.mxu0 %v16203_v33  ;;  %13244 = vmatprep.subr.bf16.mxu1 %v16208_v9  ;;  %v16287_v33 = vld [vmem:[%s18270_s5 + $0xc94] ss:$8 sps:$4 sm:$0xff]  }
 0x4cf   : > { %13777 = vmatprep.subr.bf16.mxu0 %v16211_v53  ;;  %v16290_v9 = vld [vmem:[%s18270_s5 + $0x1994] ss:$8 sps:$4 sm:$0xff]   ;;  %v16285_v53 = vld [vmem:[%s18270_s5 + $0xc90] ss:$8 sps:$4 sm:$0xff]  }
 0x4d1   : > { %13245 = vmatpush1.bf16.msra.mxu1 %v16206_v54  ;;  %v16288_v54 = vld [vmem:[%s18270_s5 + $0x1990] ss:$8 sps:$4 sm:$0xff]  }
 0x4d2   : > { %13778 = vmatpush1.bf16.msra.mxu0 %v16209_v38  ;;  %13246 = vmatprep.subr.bf16.mxu1 %v16214_v1  ;;  %v16293_v38 = vld [vmem:[%s18270_s5 + $0xca4] ss:$8 sps:$4 sm:$0xff]  }
 0x4d3   : > { %13779 = vmatprep.subr.bf16.mxu0 %v16217_v56  ;;  %v16296_v1 = vld [vmem:[%s18270_s5 + $0x19a4] ss:$8 sps:$4 sm:$0xff]   ;;  %v16291_v56 = vld [vmem:[%s18270_s5 + $0xca0] ss:$8 sps:$4 sm:$0xff]  }
 0x4d5   : > { %13247 = vmatpush1.bf16.msra.mxu1 %v16212_v57  ;;  %v16294_v57 = vld [vmem:[%s18270_s5 + $0x19a0] ss:$8 sps:$4 sm:$0xff]  }
 0x4d6   : > { %13780 = vmatpush1.bf16.msra.mxu0 %v16215_v59  ;;  %13248 = vmatprep.subr.bf16.mxu1 %v16220_v61  ;;  %v16299_v59 = vld [vmem:[%s18270_s5 + $0xcb4] ss:$8 sps:$4 sm:$0xff]  }
 0x4d7   : > { %13781 = vmatprep.subr.bf16.mxu0 %v16223_v62  ;;  %v16302_v61 = vld [vmem:[%s18270_s5 + $0x19b4] ss:$8 sps:$4 sm:$0xff]   ;;  %v16297_v62 = vld [vmem:[%s18270_s5 + $0xcb0] ss:$8 sps:$4 sm:$0xff]  }
 0x4d9   : > { %13249 = vmatpush1.bf16.msra.mxu1 %v16218_v0  ;;  %v16305_v0 = vld [vmem:[%s18270_s5 + $0xcc4] ss:$8 sps:$4 sm:$0xff]  }
 0x4da   : > { %13782 = vmatpush1.bf16.msra.mxu0 %v16221_v45  ;;  %13250 = vmatprep.subr.bf16.mxu1 %v16226_v11  ;;  %v16308_v45 = vld [vmem:[%s18270_s5 + $0x19c4] ss:$8 sps:$4 sm:$0xff]   ;;  %v16303_v11 = vld [vmem:[%s18270_s5 + $0xcc0] ss:$8 sps:$4 sm:$0xff]  }
 0x4db   : > { %13783 = vmatprep.subr.bf16.mxu0 %v16229_v2  ;;  %v16306_v2 = vld [vmem:[%s18270_s5 + $0x19c0] ss:$8 sps:$4 sm:$0xff]  }
 0x4dd   : > { %13251 = vmatpush1.bf16.msra.mxu1 %v16224_v51  ;;  %v16311_v51 = vld [vmem:[%s18270_s5 + $0xcd4] ss:$8 sps:$4 sm:$0xff]  }
 0x4de   : > { %13784 = vmatpush1.bf16.msra.mxu0 %v16227_v42  ;;  %13261 = vmatprep.subr.bf16.mxu1 %v16233_v17  ;;  %v16314_v42 = vld [vmem:[%s18270_s5 + $0x19d4] ss:$8 sps:$4 sm:$0xff]   ;;  %v16309_v17 = vld [vmem:[%s18270_s5 + $0xcd0] ss:$8 sps:$4 sm:$0xff]  }
 0x4df   : > { %13794 = vmatprep.subr.bf16.mxu0 %v16236_v5  ;;  %v16312_v5 = vld [vmem:[%s18270_s5 + $0x19d0] ss:$8 sps:$4 sm:$0xff]  }
 0x4e0   : > { %13253 = vmatmul.mubr.bf16.vlgmr.msra.gmra.mrb[0].mxu1 %v7552_v8  ;;  %v16315_v8 = vld [vmem:[%s18270_s5 + $0xce0] ss:$8 sps:$4 sm:$0xff]  }
 0x4e1   : > { %13786 = vmatmul.mubr.bf16.vlgmr.msra.gmra.mrb[0].mxu0 %v7578_v14  ;;  %13262 = vmatpush1.bf16.msra.mxu1 %v16231_v15  ;;  %v16318_v14 = vld [vmem:[%s18270_s5 + $0x19e0] ss:$8 sps:$4 sm:$0xff]   ;;  %v16323_v15 = vld [vmem:[%s18270_s5 + $0xcf4] ss:$8 sps:$4 sm:$0xff]  }
 0x4e2   : > { %13795 = vmatpush1.bf16.msra.mxu0 %v16234_v16  ;;  %13263 = vmatprep.subr.bf16.mxu1 %v16239_v58  ;;  %v16326_v16 = vld [vmem:[%s18270_s5 + $0x19f4] ss:$8 sps:$4 sm:$0xff]   ;;  %v19350_v58 = vld.sshfl [vmem:[%s18258_s26 + $0x68] sm:$0x33 pattern:$0x76325410] }
 0x4e3   : > { %13796 = vmatprep.subr.bf16.mxu0 %v16242_v27  ;;  %13293 = vmatprep.mubr.bf16.mxu1 %v7555_v19  ;;  %v16321_v27 = vld [vmem:[%s18270_s5 + $0xcf0] ss:$8 sps:$4 sm:$0xff]  }
 0x4e4   : > { %13826 = vmatprep.mubr.bf16.mxu0 %v7581_v20  ;;  %v16324_v19 = vld [vmem:[%s18270_s5 + $0x19f0] ss:$8 sps:$4 sm:$0xff]   ;;  %v7475_v20 = vcombine.high %v19350_v58, %v19350_v58 }
 0x4e5   : > { %13264 = vmatpush1.bf16.msra.mxu1 %v16237_v55  ;;  %v16330_v55 = vld [vmem:[%s18270_s5 + $0x1a04] ss:$8 sps:$4 sm:$0xff]  }
 0x4e6   : > { %13797 = vmatpush1.bf16.msra.mxu0 %v16240_v30  ;;  %13265 = vmatprep.subr.bf16.mxu1 %v16245_v21  ;;  %v7554_v30 = vpack.c.bf16 %v19272_v3, %v19272_v3  ;;  %v7580_v21 = vpack.c.bf16 %v19275_v4, %v19275_v4  ;;  %v16336_v3 = vld [vmem:[%s18270_s5 + $0x1a24] ss:$8 sps:$4 sm:$0xff]   ;;  %v16334_v4 = vld [vmem:[%s18270_s5 + $0x1a20] ss:$8 sps:$4 sm:$0xff]  }
 0x4e7   : > { %13798 = vmatprep.subr.bf16.mxu0 %v16248_v23  ;;  %v16328_v23 = vld [vmem:[%s18270_s5 + $0x1a00] ss:$8 sps:$4 sm:$0xff]  }
 0x4e9   : > { %13266 = vmatpush1.bf16.msra.mxu1 %v16243_v24  ;;  %v7583_v24 = vpack.c.bf16 %v7475_v20, %v7475_v20 }
 0x4ea   : > { %13799 = vmatpush1.bf16.msra.mxu0 %v16246_v25  ;;  %13267 = vmatprep.subr.bf16.mxu1 %v16251_v6  ;;  %v16333_v25 = vld [vmem:[%s18270_s5 + $0x1a14] ss:$8 sps:$4 sm:$0xff]   ;;  %v16331_v6 = vld [vmem:[%s18270_s5 + $0x1a10] ss:$8 sps:$4 sm:$0xff]  }
 0x4eb   : > { %13800 = vmatprep.subr.bf16.mxu0 %v16254_v60  ;;  %v16339_v60 = vld [vmem:[%s18270_s5 + $0x1a34] ss:$8 sps:$4 sm:$0xff]  }
 0x4ed   : > { %13268 = vmatpush1.bf16.msra.mxu1 %v16249_v28  ;;  %v16337_v28 = vld [vmem:[%s18270_s5 + $0x1a30] ss:$8 sps:$4 sm:$0xff]  }
 0x4ee   : > { %13801 = vmatpush1.bf16.msra.mxu0 %v16252_v29  ;;  %13269 = vmatprep.subr.bf16.mxu1 %v16257_v10  ;;  %v16342_v29 = vld [vmem:[%s18270_s5 + $0x1a44] ss:$8 sps:$4 sm:$0xff]   ;;  %v16340_v10 = vld [vmem:[%s18270_s5 + $0x1a40] ss:$8 sps:$4 sm:$0xff]  }
 0x4ef   : > { %13802 = vmatprep.subr.bf16.mxu0 %v16260_v39  ;;  %v16345_v39 = vld [vmem:[%s18270_s5 + $0x1a54] ss:$8 sps:$4 sm:$0xff]  }
 0x4f1   : > { %13270 = vmatpush1.bf16.msra.mxu1 %v16255_v31  ;;  %v16343_v31 = vld [vmem:[%s18270_s5 + $0x1a50] ss:$8 sps:$4 sm:$0xff]  }
 0x4f2   : > { %13803 = vmatpush1.bf16.msra.mxu0 %v16258_v32  ;;  %13271 = vmatprep.subr.bf16.mxu1 %v16263_v34  ;;  %v16348_v32 = vld [vmem:[%s18270_s5 + $0x1a64] ss:$8 sps:$4 sm:$0xff]   ;;  %v16346_v34 = vld [vmem:[%s18270_s5 + $0x1a60] ss:$8 sps:$4 sm:$0xff]  }
 0x4f3   : > { %13804 = vmatprep.subr.bf16.mxu0 %v16266_v35  ;;  %v16351_v35 = vld [vmem:[%s18270_s5 + $0x1a74] ss:$8 sps:$4 sm:$0xff]  }
 0x4f5   : > { %13272 = vmatpush1.bf16.msra.mxu1 %v16261_v36  ;;  %v16349_v36 = vld [vmem:[%s18270_s5 + $0x1a70] ss:$8 sps:$4 sm:$0xff]  }
 0x4f6   : > { %13805 = vmatpush1.bf16.msra.mxu0 %v16264_v37  ;;  %13273 = vmatprep.subr.bf16.mxu1 %v16269_v22  ;;  %v16354_v37 = vld [vmem:[%s18270_s5 + $0x1a84] ss:$8 sps:$4 sm:$0xff]   ;;  %v16352_v22 = vld [vmem:[%s18270_s5 + $0x1a80] ss:$8 sps:$4 sm:$0xff]  }
 0x4f7   : > { %13806 = vmatprep.subr.bf16.mxu0 %v16272_v13  ;;  %v16357_v13 = vld [vmem:[%s18270_s5 + $0x1a94] ss:$8 sps:$4 sm:$0xff]  }
 0x4f9   : > { %13274 = vmatpush1.bf16.msra.mxu1 %v16267_v40  ;;  %v16355_v40 = vld [vmem:[%s18270_s5 + $0x1a90] ss:$8 sps:$4 sm:$0xff]  }
 0x4fa   : > { %13807 = vmatpush1.bf16.msra.mxu0 %v16270_v41  ;;  %13275 = vmatprep.subr.bf16.mxu1 %v16275_v26  ;;  %v16360_v41 = vld [vmem:[%s18270_s5 + $0x1aa4] ss:$8 sps:$4 sm:$0xff]   ;;  %v16358_v26 = vld [vmem:[%s18270_s5 + $0x1aa0] ss:$8 sps:$4 sm:$0xff]  }
 0x4fb   : > { %13808 = vmatprep.subr.bf16.mxu0 %v16278_v52  ;;  %v16363_v52 = vld [vmem:[%s18270_s5 + $0x1ab4] ss:$8 sps:$4 sm:$0xff]  }
 0x4fd   : > { %13276 = vmatpush1.bf16.msra.mxu1 %v16273_v43  ;;  %v16361_v43 = vld [vmem:[%s18270_s5 + $0x1ab0] ss:$8 sps:$4 sm:$0xff]  }
 0x4fe   : > { %13809 = vmatpush1.bf16.msra.mxu0 %v16276_v44  ;;  %13277 = vmatprep.subr.bf16.mxu1 %v16281_v46  ;;  %v16366_v44 = vld [vmem:[%s18270_s5 + $0x1ac4] ss:$8 sps:$4 sm:$0xff]   ;;  %v16364_v46 = vld [vmem:[%s18270_s5 + $0x1ac0] ss:$8 sps:$4 sm:$0xff]  }
 0x4ff   : > { %13810 = vmatprep.subr.bf16.mxu0 %v16284_v48  ;;  %v16369_v48 = vld [vmem:[%s18270_s5 + $0x1ad4] ss:$8 sps:$4 sm:$0xff]  }
 0x501   : > { %13278 = vmatpush1.bf16.msra.mxu1 %v16279_v49  ;;  %v16367_v49 = vld [vmem:[%s18270_s5 + $0x1ad0] ss:$8 sps:$4 sm:$0xff]  }
 0x502   : > { %13811 = vmatpush1.bf16.msra.mxu0 %v16282_v50  ;;  %13279 = vmatprep.subr.bf16.mxu1 %v16287_v33  ;;  %v16372_v50 = vld [vmem:[%s18270_s5 + $0x1ae4] ss:$8 sps:$4 sm:$0xff]   ;;  %v16370_v33 = vld [vmem:[%s18270_s5 + $0x1ae0] ss:$8 sps:$4 sm:$0xff]  }
 0x503   : > { %13812 = vmatprep.subr.bf16.mxu0 %v16290_v9  ;;  %v16375_v9 = vld [vmem:[%s18270_s5 + $0x1af4] ss:$8 sps:$4 sm:$0xff]  }
 0x505   : > { %13280 = vmatpush1.bf16.msra.mxu1 %v16285_v53  ;;  %v16373_v53 = vld [vmem:[%s18270_s5 + $0x1af0] ss:$8 sps:$4 sm:$0xff]  }
 0x506   : > { %13813 = vmatpush1.bf16.msra.mxu0 %v16288_v54  ;;  %13281 = vmatprep.subr.bf16.mxu1 %v16293_v38  ;;  %v7582_v54 = vpack.c.bf16 %v19350_v58, %v19350_v58 }
 0x507   : > { %13814 = vmatprep.subr.bf16.mxu0 %v16296_v1 }
 0x509   : > { %13282 = vmatpush1.bf16.msra.mxu1 %v16291_v56 }
 0x50a   : > { %13815 = vmatpush1.bf16.msra.mxu0 %v16294_v57  ;;  %13283 = vmatprep.subr.bf16.mxu1 %v16299_v59 }
 0x50b   : > { %13816 = vmatprep.subr.bf16.mxu0 %v16302_v61 }
 0x50d   : > { %13284 = vmatpush1.bf16.msra.mxu1 %v16297_v62 }
 0x50e   : > { %13817 = vmatpush1.bf16.msra.mxu0 %v16300_v63  ;;  %13285 = vmatprep.subr.bf16.mxu1 %v16305_v0 }
 0x50f   : > { %13818 = vmatprep.subr.bf16.mxu0 %v16308_v45 }
 0x511   : > { %13286 = vmatpush1.bf16.msra.mxu1 %v16303_v11 }
 0x512   : > { %13819 = vmatpush1.bf16.msra.mxu0 %v16306_v2  ;;  %13287 = vmatprep.subr.bf16.mxu1 %v16311_v51  ;;  %v7584_v2 = vld [vmem:[%s18268_s4] sm:$0xf] }
 0x513   : > { %13820 = vmatprep.subr.bf16.mxu0 %v16314_v42 }
 0x515   : > { %13288 = vmatpush1.bf16.msra.mxu1 %v16309_v17  ;;  %v13894_v17 = vld [vmem:[%s7206_s12] sm:$0x3] (!%p14901_p13) }
 0x516   : > { %13821 = vmatpush1.bf16.msra.mxu0 %v16312_v5  ;;  %13289 = vmatprep.subr.bf16.mxu1 %v16317_v7  ;;  %v13898_v5 = vsub.s32 (!%p14901_p13), 0, %v18313_v12  ;;  %v13902_v7 = vsub.s32 (!%p14901_p13), 1, %v18313_v12 }
 0x517   : > { %13822 = vmatprep.subr.bf16.mxu0 %v16320_v47 }
 0x518   : > { %v13899_v47 = vrot.slane (!%p14901_p13), %v13894_v17, %v13898_v5 }
 0x519   : > { %13290 = vmatpush1.bf16.msra.mxu1 %v16315_v8  ;;  %v13903_v8 = vrot.slane (!%p14901_p13), %v13894_v17, %v13902_v7 }
 0x51a   : > { %13823 = vmatpush1.bf16.msra.mxu0 %v16318_v14  ;;  %13291 = vmatprep.subr.bf16.mxu1 %v16323_v15 }
 0x51b   : > { %13824 = vmatprep.subr.bf16.mxu0 %v16326_v16  ;;  %v13904_v14 = vcombine.low (!%p14901_p13), %v13899_v47, %v13903_v8 }
 0x51d   : > { %13292 = vmatpush1.bf16.msra.mxu1 %v16321_v27  ;;  %v13911_v16 = vrot.slane (!%p14901_p13), %v13904_v14, %v18321_v18 }
 0x51e   : > { %13825 = vmatpush1.bf16.msra.mxu0 %v16324_v19 }
 0x51f   : > { %13835 = vmatprep.subr.bf16.mxu0 %v16330_v55 }
 0x520   : > { %13294 = vmatmul.mubr.bf16.vlgmr.msra.gmra.mrb[0].mxu1 %v7554_v30 }
 0x521   : > { %13827 = vmatmul.mubr.bf16.vlgmr.msra.gmra.mrb[0].mxu0 %v7580_v21 }
 0x522   : > { %13836 = vmatpush1.bf16.msra.mxu0 %v16328_v23  ;;  %13867 = vmatprep.mubr.bf16.mxu0 %v7583_v24 }
 0x523   : > { %13837 = vmatprep.subr.bf16.mxu0 %v16333_v25 }
 0x526   : > { %13838 = vmatpush1.bf16.msra.mxu0 %v16331_v6 }
 0x527   : > { %13839 = vmatprep.subr.bf16.mxu0 %v16336_v3 }
 0x52a   : > { %13840 = vmatpush1.bf16.msra.mxu0 %v16334_v4 }
 0x52b   : > { %13841 = vmatprep.subr.bf16.mxu0 %v16339_v60 }
 0x52e   : > { %13842 = vmatpush1.bf16.msra.mxu0 %v16337_v28 }
 0x52f   : > { %13843 = vmatprep.subr.bf16.mxu0 %v16342_v29 }
 0x532   : > { %13844 = vmatpush1.bf16.msra.mxu0 %v16340_v10 }
 0x533   : > { %13845 = vmatprep.subr.bf16.mxu0 %v16345_v39 }
 0x536   : > { %13846 = vmatpush1.bf16.msra.mxu0 %v16343_v31 }
 0x537   : > { %13847 = vmatprep.subr.bf16.mxu0 %v16348_v32 }
 0x53a   : > { %13848 = vmatpush1.bf16.msra.mxu0 %v16346_v34 }
 0x53b   : > { %13849 = vmatprep.subr.bf16.mxu0 %v16351_v35 }
 0x53e   : > { %13850 = vmatpush1.bf16.msra.mxu0 %v16349_v36 }
 0x53f   : > { %13851 = vmatprep.subr.bf16.mxu0 %v16354_v37 }
 0x542   : > { %13852 = vmatpush1.bf16.msra.mxu0 %v16352_v22 }
 0x543   : > { %13853 = vmatprep.subr.bf16.mxu0 %v16357_v13 }
 0x546   : > { %13854 = vmatpush1.bf16.msra.mxu0 %v16355_v40 }
 0x547   : > { %13855 = vmatprep.subr.bf16.mxu0 %v16360_v41 }
 0x54a   : > { %13856 = vmatpush1.bf16.msra.mxu0 %v16358_v26 }
 0x54b   : > { %13857 = vmatprep.subr.bf16.mxu0 %v16363_v52 }
 0x54e   : > { %13858 = vmatpush1.bf16.msra.mxu0 %v16361_v43 }
 0x54f   : > { %13859 = vmatprep.subr.bf16.mxu0 %v16366_v44 }
 0x552   : > { %13860 = vmatpush1.bf16.msra.mxu0 %v16364_v46 }
 0x553   : > { %13861 = vmatprep.subr.bf16.mxu0 %v16369_v48 }
 0x556   : > { %13862 = vmatpush1.bf16.msra.mxu0 %v16367_v49 }
 0x557   : > { %13863 = vmatprep.subr.bf16.mxu0 %v16372_v50 }
 0x55a   : > { %13864 = vmatpush1.bf16.msra.mxu0 %v16370_v33 }
 0x55b   : > { %13865 = vmatprep.subr.bf16.mxu0 %v16375_v9 }
 0x55e   : > { %13866 = vmatpush1.bf16.msra.mxu0 %v16373_v53 }
 0x561   : > { %13868 = vmatmul.mubr.bf16.vlgmr.msra.gmra.mrb[0].mxu0 %v7582_v54 }
 0x5f3   : > { %v13295_v38 = vpop.f32.mrb[0].mxu1 }
 0x5f4   : > { %v13297_v1 = vpop.f32.mrb[1].mxu1 }
 0x5f5   : > { %v13299_v56 = vpop.f32.mrb[2].mxu1 }
 0x5f6   : > { %v13300_v57 = vpop.f32.mrb[3].mxu1 }
 0x634   : > { %v13869_v59 = vpop.f32.mrb[0].mxu0 }
 0x635   : > { %v14905_v61 = vadd.f32 %v13869_v59, %v13295_v38  ;;  %v13871_v62 = vpop.f32.mrb[1].mxu0 }
 0x636   : > { %v14906_v63 = vadd.f32 %v13871_v62, %v13297_v1  ;;  %v13873_v0 = vpop.f32.mrb[2].mxu0 }
 0x637   : > { %v13874_v45 = vpop.f32.mrb[3].mxu0 }
 0x638   : > { %v13878_v11 = vcombine.low %v14905_v61, %v14906_v63  ;;  %13892 = sbr.rel (%p14901_p13) target bundleno = 1611 (0x64b), region = 92 }
 0x63a   : > { %v13885_v51 = vrot.slane %v13878_v11, %v18321_v18 }
 0x63c   : > { %v13887_v42 = vadd.f32 %v13885_v51, %v7584_v2 }
 0x63e   : > { %13888 = vst [vmem:[%s18268_s4] sm:$0xf] %v13887_v42 }
 0x645   : > { %v13893_v15 = vld [vmem:[%s18268_s4] sm:$0xf] }
 0x646   : > { %v13913_v58 = vadd.f32 %v13911_v16, %v13893_v15 }
 0x648   : > { %v13914_v27 = vmax.f32 %v13913_v58, 0.0 }
 0x64a   : > { %13915 = vst [vmem:[%s18268_s4] sm:$0xf] %v13914_v27 }
 0x64b PF: > { %s13_s18 = sadd.s32 1, %s16432_s18   ;;  %s19433_s12 = smov %s16412_s13 }
 0x64c   : > { %p10_p0 = scmp.ge.s32.totalorder %s13_s18, 8   ;;  %s19434_s13 = smov %s16507_s25 }
 0x64d   : > { %s19435_s14 = smov %s16424_s16  ;;  %s19436_s15 = smov %s16428_s17 }
 0x64e   : > { %s19437_s16 = smov %s19440_s19  ;;  %s19438_s17 = smov %s19444_s20 }
 0x64f   :  { %12 = sbr.rel (!%p10_p0) target bundleno = 4 (0x4), region = 139 }

</bundles_post_ra>
